<compile_context>
chip_gen: v7x
topology: tpu7x:2x2x1
jax: 0.10.0
libtpu: 0.0.40
codegen_flags: <defaults>
</compile_context>

<pallas_src>
import jax
import jax.numpy as jnp
from jax import lax
from jax.experimental import pallas as pl
from jax.experimental.pallas import tpu as pltpu


# ----------------------------- small helpers --------------------------------

def _swish(x, alpha, beta):
    # SpookyNet learnable Swish: alpha * silu(beta * x)
    z = beta * x
    return alpha * z * (1.0 / (1.0 + jnp.exp(-z)))


def _orthogonal(key, rows, cols):
    # deterministic (semi-)orthogonal init, rows >= cols assumed
    a = jax.random.normal(key, (rows, cols), dtype=jnp.float32)
    q, _ = jnp.linalg.qr(a)
    return q.astype(jnp.float32)


def _full_spec(arr):
    nd = arr.ndim
    return pl.BlockSpec(arr.shape, lambda i, _nd=nd: (0,) * _nd)


_VMEM_LIMIT_CACHE = [None]


def _vmem_limit_bytes():
    # Per-generation VMEM limit: 3/4 of physical capacity (v5e/v6e: 96 MiB,
    # v7x: 48 MiB) instead of a hardcoded 64 MiB.
    if _VMEM_LIMIT_CACHE[0] is None:
        cap = 128 * 1024 * 1024
        try:
            info = pltpu.get_tpu_info()
            cap = int(getattr(info, "vmem_capacity_bytes", cap))
        except Exception:
            pass
        _VMEM_LIMIT_CACHE[0] = max(int(cap * 3 // 4), 32 * 1024 * 1024)
    return _VMEM_LIMIT_CACHE[0]


def _cparams(*semantics):
    return pltpu.CompilerParams(dimension_semantics=semantics,
                                vmem_limit_bytes=_vmem_limit_bytes())


# ------------------ in-kernel ResidualStack / ResidualMLP --------------------
# Packed parameters:
#   vec_ref: [(6R (+3)), F] f32  rows = per-block (a1, beta1, b1, a2, beta2, b2),
#            followed by (fa, fbeta, fb) when with_final.
#   w_ref:   [(2R (+1)), F, F] bf16 already-transposed weights (used as h @ w).
# The residual stream h stays f32; only MXU inputs are cast to bf16 (DEFAULT
# MXU precision truncates to bf16 anyway, so this loses no accuracy).

def _resmlp_ref(h, vec_ref, w_ref, num_residual, with_final):
    bf16 = jnp.bfloat16
    for r in range(num_residual):          # static unroll, R is tiny
        o = 6 * r
        y = _swish(h, vec_ref[o:o + 1, :], vec_ref[o + 1:o + 2, :])
        y = jnp.dot(y.astype(bf16), w_ref[2 * r],
                    preferred_element_type=jnp.float32)
        y = y + vec_ref[o + 2:o + 3, :]
        y = _swish(y, vec_ref[o + 3:o + 4, :], vec_ref[o + 4:o + 5, :])
        y = jnp.dot(y.astype(bf16), w_ref[2 * r + 1],
                    preferred_element_type=jnp.float32)
        y = y + vec_ref[o + 5:o + 6, :]
        h = h + y
    if with_final:
        o = 6 * num_residual
        y = _swish(h, vec_ref[o:o + 1, :], vec_ref[o + 1:o + 2, :])
        h = jnp.dot(y.astype(bf16), w_ref[2 * num_residual],
                    preferred_element_type=jnp.float32)
        h = h + vec_ref[o + 2:o + 3, :]
    return h


# ---------------- Kernel A: residual_pre + fused branch MLPs -----------------

def _make_branch_kernel(r_pre, branch_rs):
    nb = len(branch_rs)          # 7 branches: x, s, p, d, q, k, v

    def kernel(*refs):
        x_ref = refs[0]
        pre_vec, pre_w = refs[1], refs[2]
        b_refs = refs[3:3 + 2 * nb]
        xt_ref, brl_ref, q_ref, kv_ref = refs[3 + 2 * nb:7 + 2 * nb]
        F = x_ref.shape[1]

        xt = _resmlp_ref(x_ref[...], pre_vec, pre_w, r_pre, False)
        xt_ref[...] = xt

        outs = []
        for b in range(nb):
            outs.append(_resmlp_ref(xt, b_refs[2 * b], b_refs[2 * b + 1],
                                    branch_rs[b], True))
        # Direct slice-stores (no concatenate): x|s|p|d -> br_local, q, k|v -> kv.
        for b in range(4):
            brl_ref[:, b * F:(b + 1) * F] = outs[b].astype(jnp.bfloat16)
        q_ref[...] = outs[4].astype(jnp.bfloat16)
        kv_ref[:, 0:F] = outs[5].astype(jnp.bfloat16)
        kv_ref[:, F:2 * F] = outs[6].astype(jnp.bfloat16)

    return kernel


def _fused_branches(x, pre, branch_list, tile_n):
    n_atoms, F = x.shape
    inputs = [x, pre["vec"], pre["w"]]
    branch_rs = []
    for b in branch_list:
        inputs += [b["vec"], b["w"]]
        branch_rs.append(b["R"])
    in_specs = [pl.BlockSpec((tile_n, F), lambda i: (i, 0))]
    in_specs += [_full_spec(a) for a in inputs[1:]]
    out_specs = (pl.BlockSpec((tile_n, F), lambda i: (i, 0)),
                 pl.BlockSpec((tile_n, 4 * F), lambda i: (i, 0)),
                 pl.BlockSpec((tile_n, F), lambda i: (i, 0)),
                 pl.BlockSpec((tile_n, 2 * F), lambda i: (i, 0)))
    out_shape = (jax.ShapeDtypeStruct((n_atoms, F), jnp.float32),
                 jax.ShapeDtypeStruct((n_atoms, 4 * F), jnp.bfloat16),
                 jax.ShapeDtypeStruct((n_atoms, F), jnp.bfloat16),
                 jax.ShapeDtypeStruct((n_atoms, 2 * F), jnp.bfloat16))
    return pl.pallas_call(
        _make_branch_kernel(pre["R"], tuple(branch_rs)),
        grid=(n_atoms // tile_n,),
        in_specs=in_specs,
        out_specs=out_specs,
        out_shape=out_shape,
        compiler_params=_cparams("parallel"),
    )(*inputs)


# ------------- Kernel B: LocalInteraction (pair-tiled reduction) --------------

def _make_local_kernel(dim_f, r_local):
    F = dim_f

    def kernel(idx_i_ref, idx_j_ref, rbf_ref, pd_ref, br_ref,
               wr_ref, wp_ref, wd_ref, lvec_ref, lw_ref, o_ref, acc_ref):
        t = pl.program_id(0)

        @pl.when(t == 0)
        def _init():
            acc_ref[...] = jnp.zeros_like(acc_ref)

        tile_p = rbf_ref.shape[0]
        n_atoms = br_ref.shape[0]

        # Per-tile one-hot gather/scatter matrices in bf16 (0/1 is exact);
        # gather of bf16 features through a bf16 one-hot is exact.
        # TODO(synk): index-driven gather for large N (one-hot is O(P*N)).
        lane = lax.broadcasted_iota(jnp.int32, (tile_p, n_atoms), 1)
        oh_j = (idx_j_ref[...] == lane).astype(jnp.bfloat16)     # [tP, N]
        oh_i = (idx_i_ref[...] == lane).astype(jnp.bfloat16)     # [tP, N]

        # radial projections (s|p|d) in one wide matmul
        g = jnp.dot(rbf_ref[...].astype(jnp.bfloat16), wr_ref[...],
                    preferred_element_type=jnp.float32)          # [tP, 3F]
        gs, gp, gd = g[:, :F], g[:, F:2 * F], g[:, 2 * F:]

        # gather neighbour features xs/xp/xd (j side) in one matmul
        xj = jnp.dot(oh_j, br_ref[:, F:4 * F],
                     preferred_element_type=jnp.float32)         # [tP, 3F]
        xs_j, xp_j, xd_j = xj[:, :F], xj[:, F:2 * F], xj[:, 2 * F:]

        pd = pd_ref[...]                                         # [tP, 8] pij|dij
        msgs = [gs * xs_j]
        for c in range(3):
            msgs.append(gp * pd[:, c:c + 1] * xp_j)
        for c in range(5):
            msgs.append(gd * pd[:, 3 + c:4 + c] * xd_j)
        msg = jnp.concatenate(msgs, axis=-1).astype(jnp.bfloat16)   # [tP, 9F]

        # segment-sum over idx_i: one wide transposed contraction per tile
        acc_ref[...] += lax.dot_general(
            oh_i, msg, (((0,), (0,)), ((), ())),
            preferred_element_type=jnp.float32)                  # [N, 9F] f32

        @pl.when(t == pl.num_programs(0) - 1)
        def _finalize():
            acc = acc_ref[...]
            res = br_ref[:, 0:F].astype(jnp.float32) + acc[:, :F]   # xx + s

            # grouped projections: one stacked matmul for the 3 p-components
            # and one for the 5 d-components (instead of 8 tiny dots)
            p_stack = jnp.concatenate(
                [acc[:, (1 + c) * F:(2 + c) * F] for c in range(3)],
                axis=0).astype(jnp.bfloat16)                        # [3N, F]
            pab = jnp.dot(p_stack, wp_ref[...],
                          preferred_element_type=jnp.float32)       # [3N, 2F]
            pprod = pab[:, :F] * pab[:, F:]
            for c in range(3):
                res = res + pprod[c * n_atoms:(c + 1) * n_atoms]

            d_stack = jnp.concatenate(
                [acc[:, (4 + c) * F:(5 + c) * F] for c in range(5)],
                axis=0).astype(jnp.bfloat16)                        # [5N, F]
            dab = jnp.dot(d_stack, wd_ref[...],
                          preferred_element_type=jnp.float32)       # [5N, 2F]
            dprod = dab[:, :F] * dab[:, F:]
            for c in range(5):
                res = res + dprod[c * n_atoms:(c + 1) * n_atoms]

            # post-core ResidualMLP folded into the finalize step
            o_ref[...] = _resmlp_ref(res, lvec_ref, lw_ref, r_local, True)

    return kernel


def _local_interaction(br_local, rbf, pdij, idx_i_col, idx_j_col, lp, tile_p):
    n_atoms = br_local.shape[0]
    F = br_local.shape[1] // 4
    num_pairs, num_rbf = rbf.shape
    in_specs = [
        pl.BlockSpec((tile_p, 1), lambda t: (t, 0)),             # idx_i
        pl.BlockSpec((tile_p, 1), lambda t: (t, 0)),             # idx_j
        pl.BlockSpec((tile_p, num_rbf), lambda t: (t, 0)),       # rbf tile
        pl.BlockSpec((tile_p, 8), lambda t: (t, 0)),             # pij|dij tile
        _full_spec(br_local),
        _full_spec(lp["wr"]), _full_spec(lp["wp"]), _full_spec(lp["wd"]),
        _full_spec(lp["res"]["vec"]), _full_spec(lp["res"]["w"]),
    ]
    return pl.pallas_call(
        _make_local_kernel(F, lp["res"]["R"]),
        grid=(num_pairs // tile_p,),
        in_specs=in_specs,
        out_specs=pl.BlockSpec((n_atoms, F), lambda t: (0, 0)),
        out_shape=jax.ShapeDtypeStruct((n_atoms, F), jnp.float32),
        scratch_shapes=[pltpu.VMEM((n_atoms, 9 * F), jnp.float32)],
        compiler_params=_cparams("arbitrary"),
    )(idx_i_col, idx_j_col, rbf, pdij, br_local,
      lp["wr"], lp["wp"], lp["wd"], lp["res"]["vec"], lp["res"]["w"])


# ----- Kernel C1: nonlocal k-side statistics (ksum, k^T v), num_batch == 1 ----

def _kstats_kernel(kv_ref, omega_ref, ksum_ref, ktv_ref):
    F = omega_ref.shape[0]
    m = omega_ref.shape[1]
    scale = float(F) ** -0.25
    inv_sqrt_m = 1.0 / float(m) ** 0.5
    two_sqrt_d = 2.0 * float(F) ** 0.5
    eps = 1e-4

    k = kv_ref[:, 0:F]                               # bf16 [N, F]
    v = kv_ref[:, F:2 * F]                           # bf16 [N, F]
    uk = jnp.dot(k, omega_ref[...],
                 preferred_element_type=jnp.float32) * scale
    kf = k.astype(jnp.float32)
    hk = jnp.sum(kf * kf, axis=-1, keepdims=True) / two_sqrt_d
    maxk = jnp.max(jnp.max(uk, axis=-1, keepdims=True), axis=0, keepdims=True)
    kp = (jnp.exp(uk - hk - maxk) + eps) * inv_sqrt_m
    ksum_ref[...] = jnp.sum(kp, axis=0, keepdims=True)              # [1, m]
    ktv_ref[...] = lax.dot_general(
        kp.astype(jnp.bfloat16), v, (((0,), (0,)), ((), ())),
        preferred_element_type=jnp.float32)                         # [m, F]


def _k_statistics(kv, omega):
    n_atoms, two_f = kv.shape
    F = two_f // 2
    m = omega.shape[1]
    return pl.pallas_call(
        _kstats_kernel,
        grid=(1,),
        in_specs=[_full_spec(kv), _full_spec(omega)],
        out_specs=(pl.BlockSpec((1, m), lambda i: (0, 0)),
                   pl.BlockSpec((m, F), lambda i: (0, 0))),
        out_shape=(jax.ShapeDtypeStruct((1, m), jnp.float32),
                   jax.ShapeDtypeStruct((m, F), jnp.float32)),
        compiler_params=_cparams("arbitrary"),
    )(kv, omega)


# -- Kernel C2: q-side attention fused with residual_post + output ResidualMLP --

def _make_attn_combine_kernel(r_post, r_out):
    def kernel(q_ref, xt_ref, l_ref, ksum_ref, ktv_ref, omega_ref,
               pvec_ref, pw_ref, ovec_ref, ow_ref, x_out_ref, y_out_ref):
        F = q_ref.shape[1]
        m = omega_ref.shape[1]
        scale = float(F) ** -0.25
        inv_sqrt_m = 1.0 / float(m) ** 0.5
        two_sqrt_d = 2.0 * float(F) ** 0.5
        eps = 1e-4

        q = q_ref[...]                                     # bf16 [tile, F]
        uq = jnp.dot(q, omega_ref[...],
                     preferred_element_type=jnp.float32) * scale
        qf = q.astype(jnp.float32)
        hq = jnp.sum(qf * qf, axis=-1, keepdims=True) / two_sqrt_d
        maxq = jnp.max(uq, axis=-1, keepdims=True)
        qp = (jnp.exp(uq - hq - maxq) + eps) * inv_sqrt_m
        norm = jnp.sum(qp * ksum_ref[...], axis=-1, keepdims=True) + 1e-8
        n = jnp.dot(qp, ktv_ref[...],
                    preferred_element_type=jnp.float32) / norm       # exact div

        # residual_post + output ResidualMLP fused epilogue
        h = xt_ref[...] + l_ref[...] + n
        h = _resmlp_ref(h, pvec_ref, pw_ref, r_post, False)
        x_out_ref[...] = h
        y_out_ref[...] = _resmlp_ref(h, ovec_ref, ow_ref, r_out, True)

    return kernel


def _attention_combine(q, xt, l, ksum, ktv, omega, post, out_block, tile_n):
    n_atoms, F = xt.shape
    row = pl.BlockSpec((tile_n, F), lambda i: (i, 0))
    in_specs = [row, row, row,
                _full_spec(ksum), _full_spec(ktv), _full_spec(omega),
                _full_spec(post["vec"]), _full_spec(post["w"]),
                _full_spec(out_block["vec"]), _full_spec(out_block["w"])]
    out_specs = (row, row)
    out_shape = (jax.ShapeDtypeStruct((n_atoms, F), jnp.float32),
                 jax.ShapeDtypeStruct((n_atoms, F), jnp.float32))
    return pl.pallas_call(
        _make_attn_combine_kernel(post["R"], out_block["R"]),
        grid=(n_atoms // tile_n,),
        in_specs=in_specs, out_specs=out_specs, out_shape=out_shape,
        compiler_params=_cparams("parallel"),
    )(q, xt, l, ksum, ktv, omega, post["vec"], post["w"],
      out_block["vec"], out_block["w"])


# ------------------------- parameter construction ----------------------------

def _init_resmlp_packed(key, F, num_residual, with_final):
    assert num_residual >= 1
    n_mat = 2 * num_residual + (1 if with_final else 0)
    keys = jax.random.split(key, n_mat)
    # NOTE: weights are synthetic-deterministic; the zero-inits of the
    # reference reset_parameters() are replaced by orthogonal init so the
    # kernels are non-trivially exercised.  Weights stored bf16, f32 accum.
    w = jnp.stack([_orthogonal(keys[i], F, F) for i in range(n_mat)])
    rows = []
    for _ in range(num_residual):
        rows += [jnp.ones((F,)), jnp.full((F,), 1.702), jnp.zeros((F,)),
                 jnp.ones((F,)), jnp.full((F,), 1.702), jnp.zeros((F,))]
    if with_final:
        rows += [jnp.ones((F,)), jnp.full((F,), 1.702), jnp.zeros((F,))]
    vec = jnp.stack(rows).astype(jnp.float32)
    return dict(vec=vec, w=w.astype(jnp.bfloat16), R=num_residual)


def init_interaction_module(key, F, num_rbf, cfg):
    ks = jax.random.split(key, 18)
    branch_cfg = [("x", cfg["num_residual_local_x"]),
                  ("s", cfg["num_residual_local_s"]),
                  ("p", cfg["num_residual_local_p"]),
                  ("d", cfg["num_residual_local_d"]),
                  ("q", cfg["num_residual_nonlocal_q"]),
                  ("k", cfg["num_residual_nonlocal_k"]),
                  ("v", cfg["num_residual_nonlocal_v"])]
    branches = {name: _init_resmlp_packed(ks[i], F, r, True)
                for i, (name, r) in enumerate(branch_cfg)}
    local = dict(
        # radial_s|p|d stacked into one [num_rbf, 3F] matrix (bf16)
        wr=jnp.concatenate([_orthogonal(ks[7], F, num_rbf).T,
                            _orthogonal(ks[8], F, num_rbf).T,
                            _orthogonal(ks[9], F, num_rbf).T],
                           axis=-1).astype(jnp.bfloat16),
        wp=_orthogonal(ks[10], 2 * F, F).T.astype(jnp.bfloat16),   # [F, 2F]
        wd=_orthogonal(ks[11], 2 * F, F).T.astype(jnp.bfloat16),   # [F, 2F]
        res=_init_resmlp_packed(ks[12], F, cfg["num_residual_local"], True),
    )
    return dict(
        pre=_init_resmlp_packed(ks[13], F, cfg["num_residual_pre"], False),
        branches=branches,
        local=local,
        omega=jax.random.normal(ks[14], (F, F),
                                dtype=jnp.float32).astype(jnp.bfloat16),
        post=_init_resmlp_packed(ks[15], F, cfg["num_residual_post"], False),
        out=_init_resmlp_packed(ks[16], F, cfg["num_residual_output"], True),
    )


# ------------------------------ forward pass ---------------------------------

_BRANCH_ORDER = ("x", "s", "p", "d", "q", "k", "v")


def interaction_module_forward(params, x, rbf, pij, dij, idx_i, idx_j,
                               num_batch, batch_seg, mask=None, *,
                               tile_n=None, tile_p=None):
    if num_batch != 1:
        # TODO(synk): num_batch > 1 masked-attention branch (per-molecule
        # segment max + pair masking) is not implemented.
        raise NotImplementedError("only num_batch == 1 is supported")
    N, F = x.shape
    P = rbf.shape[0]
    if tile_n is None:
        tile_n = N if N <= 512 else 512   # 512 cap keeps v7x (64 MiB VMEM) safe
    if tile_p is None:
        tile_p = P if P <= 256 else 256   # sweep 256-512 on v5e/v6e for real P
    assert N % tile_n == 0 and tile_n % 8 == 0
    assert P % tile_p == 0 and tile_p % 8 == 0

    # A) residual_pre + 7 fused branch ResidualMLPs
    #    -> xt [N,F] f32, br_local [N,4F] bf16, q [N,F] bf16, kv [N,2F] bf16
    branch_list = [params["branches"][name] for name in _BRANCH_ORDER]
    xt, br_local, q, kv = _fused_branches(x, params["pre"], branch_list, tile_n)

    # B) LocalInteraction (tiled pair reduction + folded post-resblock)
    pdij = jnp.concatenate([pij, dij], axis=-1)              # [P, 8]
    idx_i_col = idx_i.astype(jnp.int32)[:, None]             # [P, 1]
    idx_j_col = idx_j.astype(jnp.int32)[:, None]
    l = _local_interaction(br_local, rbf, pdij, idx_i_col, idx_j_col,
                           params["local"], tile_p)

    # C1) nonlocal k-side statistics (once), C2) q-side attention fused with
    #     residual_post + output ResidualMLP -> both module outputs
    ksum, ktv = _k_statistics(kv, params["omega"])
    return _attention_combine(q, xt, l, ksum, ktv, params["omega"],
                              params["post"], params["out"], tile_n)


# ------------------------------------ main -----------------------------------

if __name__ == "__main__":
    F, NUM_RBF, N, P = 64, 16, 128, 512
    cfg = dict(
        num_residual_pre=2,
        num_residual_local_x=1, num_residual_local_s=1,
        num_residual_local_p=1, num_residual_local_d=1,
        num_residual_local=1,
        num_residual_nonlocal_q=1, num_residual_nonlocal_k=1,
        num_residual_nonlocal_v=1,
        num_residual_post=1, num_residual_output=1,
    )

    key = jax.random.PRNGKey(0)
    kpar, kx, krbf, kpij, kdij, ki, kj = jax.random.split(key, 7)
    params = init_interaction_module(kpar, F, NUM_RBF, cfg)

    x = jax.random.normal(kx, (N, F), dtype=jnp.float32)
    rbf = jax.random.uniform(krbf, (P, NUM_RBF), dtype=jnp.float32)
    pij = jax.random.normal(kpij, (P, 3), dtype=jnp.float32)
    dij = jax.random.normal(kdij, (P, 5), dtype=jnp.float32)
    idx_i = jax.random.randint(ki, (P,), 0, N, dtype=jnp.int32)
    idx_j = jax.random.randint(kj, (P,), 0, N, dtype=jnp.int32)
    batch_seg = jnp.zeros((N,), dtype=jnp.int32)

    x_out, y_out = interaction_module_forward(
        params, x, rbf, pij, dij, idx_i, idx_j, 1, batch_seg, mask=None)
    jax.block_until_ready((x_out, y_out))
    assert x_out.shape == (N, F) and y_out.shape == (N, F)
    assert bool(jnp.all(jnp.isfinite(x_out))) and bool(jnp.all(jnp.isfinite(y_out)))
    print("KERNEL_OK")
</pallas_src>

<mosaic_0001>
module attributes {stable_mosaic.version = 11 : i64} {
  func.func @kernel(%arg0: i32, %arg1: memref<128x64xf32, #tpu.memory_space<vmem>>, %arg2: memref<12x64xf32, #tpu.memory_space<vmem>>, %arg3: memref<4x64x64xbf16, #tpu.memory_space<vmem>>, %arg4: memref<9x64xf32, #tpu.memory_space<vmem>>, %arg5: memref<3x64x64xbf16, #tpu.memory_space<vmem>>, %arg6: memref<9x64xf32, #tpu.memory_space<vmem>>, %arg7: memref<3x64x64xbf16, #tpu.memory_space<vmem>>, %arg8: memref<9x64xf32, #tpu.memory_space<vmem>>, %arg9: memref<3x64x64xbf16, #tpu.memory_space<vmem>>, %arg10: memref<9x64xf32, #tpu.memory_space<vmem>>, %arg11: memref<3x64x64xbf16, #tpu.memory_space<vmem>>, %arg12: memref<9x64xf32, #tpu.memory_space<vmem>>, %arg13: memref<3x64x64xbf16, #tpu.memory_space<vmem>>, %arg14: memref<9x64xf32, #tpu.memory_space<vmem>>, %arg15: memref<3x64x64xbf16, #tpu.memory_space<vmem>>, %arg16: memref<9x64xf32, #tpu.memory_space<vmem>>, %arg17: memref<3x64x64xbf16, #tpu.memory_space<vmem>>, %arg18: memref<128x64xf32, #tpu.memory_space<vmem>>, %arg19: memref<128x256xbf16, #tpu.memory_space<vmem>>, %arg20: memref<128x64xbf16, #tpu.memory_space<vmem>>, %arg21: memref<128x128xbf16, #tpu.memory_space<vmem>>) attributes {dimension_semantics = [#tpu.dimension_semantics<parallel>], iteration_bounds = array<i64: 1>, scalar_prefetch = 0 : i64, scratch_operands = 0 : i64, tpu.core_type = #tpu.core_type<tc>, window_params = [{transform_indices = @transform_0, window_bounds = array<i64: 128, 64>}, {pipeline_mode = #tpu.pipeline_mode<synchronous>, transform_indices = @transform_1, window_bounds = array<i64: 12, 64>}, {pipeline_mode = #tpu.pipeline_mode<synchronous>, transform_indices = @transform_2, window_bounds = array<i64: 4, 64, 64>}, {pipeline_mode = #tpu.pipeline_mode<synchronous>, transform_indices = @transform_3, window_bounds = array<i64: 9, 64>}, {pipeline_mode = #tpu.pipeline_mode<synchronous>, transform_indices = @transform_4, window_bounds = array<i64: 3, 64, 64>}, {pipeline_mode = #tpu.pipeline_mode<synchronous>, transform_indices = @transform_5, window_bounds = array<i64: 9, 64>}, {pipeline_mode = #tpu.pipeline_mode<synchronous>, transform_indices = @transform_6, window_bounds = array<i64: 3, 64, 64>}, {pipeline_mode = #tpu.pipeline_mode<synchronous>, transform_indices = @transform_7, window_bounds = array<i64: 9, 64>}, {pipeline_mode = #tpu.pipeline_mode<synchronous>, transform_indices = @transform_8, window_bounds = array<i64: 3, 64, 64>}, {pipeline_mode = #tpu.pipeline_mode<synchronous>, transform_indices = @transform_9, window_bounds = array<i64: 9, 64>}, {pipeline_mode = #tpu.pipeline_mode<synchronous>, transform_indices = @transform_10, window_bounds = array<i64: 3, 64, 64>}, {pipeline_mode = #tpu.pipeline_mode<synchronous>, transform_indices = @transform_11, window_bounds = array<i64: 9, 64>}, {pipeline_mode = #tpu.pipeline_mode<synchronous>, transform_indices = @transform_12, window_bounds = array<i64: 3, 64, 64>}, {pipeline_mode = #tpu.pipeline_mode<synchronous>, transform_indices = @transform_13, window_bounds = array<i64: 9, 64>}, {pipeline_mode = #tpu.pipeline_mode<synchronous>, transform_indices = @transform_14, window_bounds = array<i64: 3, 64, 64>}, {pipeline_mode = #tpu.pipeline_mode<synchronous>, transform_indices = @transform_15, window_bounds = array<i64: 9, 64>}, {pipeline_mode = #tpu.pipeline_mode<synchronous>, transform_indices = @transform_16, window_bounds = array<i64: 3, 64, 64>}, {transform_indices = @transform_17, window_bounds = array<i64: 128, 64>}, {transform_indices = @transform_18, window_bounds = array<i64: 128, 256>}, {transform_indices = @transform_19, window_bounds = array<i64: 128, 64>}, {transform_indices = @transform_20, window_bounds = array<i64: 128, 128>}]} {
    %c0 = arith.constant 0 : index
    %c0_0 = arith.constant 0 : index
    %0 = vector.load %arg1[%c0, %c0_0] : memref<128x64xf32, #tpu.memory_space<vmem>>, vector<128x64xf32>
    %c0_1 = arith.constant 0 : index
    %c0_2 = arith.constant 0 : index
    %1 = vector.load %arg2[%c0_1, %c0_2] : memref<12x64xf32, #tpu.memory_space<vmem>>, vector<1x64xf32>
    %c1 = arith.constant 1 : index
    %c0_3 = arith.constant 0 : index
    %2 = vector.load %arg2[%c1, %c0_3] : memref<12x64xf32, #tpu.memory_space<vmem>>, vector<1x64xf32>
    %3 = vector.broadcast %2 : vector<1x64xf32> to vector<128x64xf32>
    %4 = arith.mulf %3, %0 : vector<128x64xf32>
    %5 = vector.broadcast %1 : vector<1x64xf32> to vector<128x64xf32>
    %6 = arith.mulf %5, %4 : vector<128x64xf32>
    %cst = arith.constant 0.000000e+00 : f32
    %7 = vector.broadcast %cst : f32 to vector<128x64xf32>
    %8 = arith.subf %7, %4 : vector<128x64xf32>
    %9 = math.exp %8 : vector<128x64xf32>
    %cst_4 = arith.constant 1.000000e+00 : f32
    %10 = vector.broadcast %cst_4 : f32 to vector<128x64xf32>
    %11 = arith.addf %10, %9 : vector<128x64xf32>
    %cst_5 = arith.constant 1.000000e+00 : f32
    %12 = vector.broadcast %cst_5 : f32 to vector<128x64xf32>
    %13 = arith.divf %12, %11 : vector<128x64xf32>
    %14 = arith.mulf %6, %13 : vector<128x64xf32>
    %15 = arith.truncf %14 : vector<128x64xf32> to vector<128x64xbf16>
    %c0_6 = arith.constant 0 : index
    %c0_7 = arith.constant 0 : index
    %c0_8 = arith.constant 0 : index
    %16 = vector.load %arg3[%c0_6, %c0_7, %c0_8] : memref<4x64x64xbf16, #tpu.memory_space<vmem>>, vector<1x64x64xbf16>
    %17 = vector.shape_cast %16 : vector<1x64x64xbf16> to vector<64x64xbf16>
    %cst_9 = arith.constant dense<0.000000e+00> : vector<128x64xf32>
    %18 = tpu.matmul %15, %17, %cst_9 {dimension_numbers = #tpu.dot_dimension_numbers<[1], [0], [0], [1], [0, 0, 1, 1], [], []>} : vector<128x64xbf16>, vector<64x64xbf16>, vector<128x64xf32> -> vector<128x64xf32>
    %c2 = arith.constant 2 : index
    %c0_10 = arith.constant 0 : index
    %19 = vector.load %arg2[%c2, %c0_10] : memref<12x64xf32, #tpu.memory_space<vmem>>, vector<1x64xf32>
    %20 = vector.broadcast %19 : vector<1x64xf32> to vector<128x64xf32>
    %21 = arith.addf %18, %20 : vector<128x64xf32>
    %c3 = arith.constant 3 : index
    %c0_11 = arith.constant 0 : index
    %22 = vector.load %arg2[%c3, %c0_11] : memref<12x64xf32, #tpu.memory_space<vmem>>, vector<1x64xf32>
    %c4 = arith.constant 4 : index
    %c0_12 = arith.constant 0 : index
    %23 = vector.load %arg2[%c4, %c0_12] : memref<12x64xf32, #tpu.memory_space<vmem>>, vector<1x64xf32>
    %24 = vector.broadcast %23 : vector<1x64xf32> to vector<128x64xf32>
    %25 = arith.mulf %24, %21 : vector<128x64xf32>
    %26 = vector.broadcast %22 : vector<1x64xf32> to vector<128x64xf32>
    %27 = arith.mulf %26, %25 : vector<128x64xf32>
    %cst_13 = arith.constant 0.000000e+00 : f32
    %28 = vector.broadcast %cst_13 : f32 to vector<128x64xf32>
    %29 = arith.subf %28, %25 : vector<128x64xf32>
    %30 = math.exp %29 : vector<128x64xf32>
    %cst_14 = arith.constant 1.000000e+00 : f32
    %31 = vector.broadcast %cst_14 : f32 to vector<128x64xf32>
    %32 = arith.addf %31, %30 : vector<128x64xf32>
    %cst_15 = arith.constant 1.000000e+00 : f32
    %33 = vector.broadcast %cst_15 : f32 to vector<128x64xf32>
    %34 = arith.divf %33, %32 : vector<128x64xf32>
    %35 = arith.mulf %27, %34 : vector<128x64xf32>
    %36 = arith.truncf %35 : vector<128x64xf32> to vector<128x64xbf16>
    %c1_16 = arith.constant 1 : index
    %c0_17 = arith.constant 0 : index
    %c0_18 = arith.constant 0 : index
    %37 = vector.load %arg3[%c1_16, %c0_17, %c0_18] : memref<4x64x64xbf16, #tpu.memory_space<vmem>>, vector<1x64x64xbf16>
    %38 = vector.shape_cast %37 : vector<1x64x64xbf16> to vector<64x64xbf16>
    %cst_19 = arith.constant dense<0.000000e+00> : vector<128x64xf32>
    %39 = tpu.matmul %36, %38, %cst_19 {dimension_numbers = #tpu.dot_dimension_numbers<[1], [0], [0], [1], [0, 0, 1, 1], [], []>} : vector<128x64xbf16>, vector<64x64xbf16>, vector<128x64xf32> -> vector<128x64xf32>
    %c5 = arith.constant 5 : index
    %c0_20 = arith.constant 0 : index
    %40 = vector.load %arg2[%c5, %c0_20] : memref<12x64xf32, #tpu.memory_space<vmem>>, vector<1x64xf32>
    %41 = vector.broadcast %40 : vector<1x64xf32> to vector<128x64xf32>
    %42 = arith.addf %39, %41 : vector<128x64xf32>
    %43 = arith.addf %0, %42 : vector<128x64xf32>
    %c6 = arith.constant 6 : index
    %c0_21 = arith.constant 0 : index
    %44 = vector.load %arg2[%c6, %c0_21] : memref<12x64xf32, #tpu.memory_space<vmem>>, vector<1x64xf32>
    %c7 = arith.constant 7 : index
    %c0_22 = arith.constant 0 : index
    %45 = vector.load %arg2[%c7, %c0_22] : memref<12x64xf32, #tpu.memory_space<vmem>>, vector<1x64xf32>
    %46 = vector.broadcast %45 : vector<1x64xf32> to vector<128x64xf32>
    %47 = arith.mulf %46, %43 : vector<128x64xf32>
    %48 = vector.broadcast %44 : vector<1x64xf32> to vector<128x64xf32>
    %49 = arith.mulf %48, %47 : vector<128x64xf32>
    %cst_23 = arith.constant 0.000000e+00 : f32
    %50 = vector.broadcast %cst_23 : f32 to vector<128x64xf32>
    %51 = arith.subf %50, %47 : vector<128x64xf32>
    %52 = math.exp %51 : vector<128x64xf32>
    %cst_24 = arith.constant 1.000000e+00 : f32
    %53 = vector.broadcast %cst_24 : f32 to vector<128x64xf32>
    %54 = arith.addf %53, %52 : vector<128x64xf32>
    %cst_25 = arith.constant 1.000000e+00 : f32
    %55 = vector.broadcast %cst_25 : f32 to vector<128x64xf32>
    %56 = arith.divf %55, %54 : vector<128x64xf32>
    %57 = arith.mulf %49, %56 : vector<128x64xf32>
    %58 = arith.truncf %57 : vector<128x64xf32> to vector<128x64xbf16>
    %c2_26 = arith.constant 2 : index
    %c0_27 = arith.constant 0 : index
    %c0_28 = arith.constant 0 : index
    %59 = vector.load %arg3[%c2_26, %c0_27, %c0_28] : memref<4x64x64xbf16, #tpu.memory_space<vmem>>, vector<1x64x64xbf16>
    %60 = vector.shape_cast %59 : vector<1x64x64xbf16> to vector<64x64xbf16>
    %cst_29 = arith.constant dense<0.000000e+00> : vector<128x64xf32>
    %61 = tpu.matmul %58, %60, %cst_29 {dimension_numbers = #tpu.dot_dimension_numbers<[1], [0], [0], [1], [0, 0, 1, 1], [], []>} : vector<128x64xbf16>, vector<64x64xbf16>, vector<128x64xf32> -> vector<128x64xf32>
    %c8 = arith.constant 8 : index
    %c0_30 = arith.constant 0 : index
    %62 = vector.load %arg2[%c8, %c0_30] : memref<12x64xf32, #tpu.memory_space<vmem>>, vector<1x64xf32>
    %63 = vector.broadcast %62 : vector<1x64xf32> to vector<128x64xf32>
    %64 = arith.addf %61, %63 : vector<128x64xf32>
    %c9 = arith.constant 9 : index
    %c0_31 = arith.constant 0 : index
    %65 = vector.load %arg2[%c9, %c0_31] : memref<12x64xf32, #tpu.memory_space<vmem>>, vector<1x64xf32>
    %c10 = arith.constant 10 : index
    %c0_32 = arith.constant 0 : index
    %66 = vector.load %arg2[%c10, %c0_32] : memref<12x64xf32, #tpu.memory_space<vmem>>, vector<1x64xf32>
    %67 = vector.broadcast %66 : vector<1x64xf32> to vector<128x64xf32>
    %68 = arith.mulf %67, %64 : vector<128x64xf32>
    %69 = vector.broadcast %65 : vector<1x64xf32> to vector<128x64xf32>
    %70 = arith.mulf %69, %68 : vector<128x64xf32>
    %cst_33 = arith.constant 0.000000e+00 : f32
    %71 = vector.broadcast %cst_33 : f32 to vector<128x64xf32>
    %72 = arith.subf %71, %68 : vector<128x64xf32>
    %73 = math.exp %72 : vector<128x64xf32>
    %cst_34 = arith.constant 1.000000e+00 : f32
    %74 = vector.broadcast %cst_34 : f32 to vector<128x64xf32>
    %75 = arith.addf %74, %73 : vector<128x64xf32>
    %cst_35 = arith.constant 1.000000e+00 : f32
    %76 = vector.broadcast %cst_35 : f32 to vector<128x64xf32>
    %77 = arith.divf %76, %75 : vector<128x64xf32>
    %78 = arith.mulf %70, %77 : vector<128x64xf32>
    %79 = arith.truncf %78 : vector<128x64xf32> to vector<128x64xbf16>
    %c3_36 = arith.constant 3 : index
    %c0_37 = arith.constant 0 : index
    %c0_38 = arith.constant 0 : index
    %80 = vector.load %arg3[%c3_36, %c0_37, %c0_38] : memref<4x64x64xbf16, #tpu.memory_space<vmem>>, vector<1x64x64xbf16>
    %81 = vector.shape_cast %80 : vector<1x64x64xbf16> to vector<64x64xbf16>
    %cst_39 = arith.constant dense<0.000000e+00> : vector<128x64xf32>
    %82 = tpu.matmul %79, %81, %cst_39 {dimension_numbers = #tpu.dot_dimension_numbers<[1], [0], [0], [1], [0, 0, 1, 1], [], []>} : vector<128x64xbf16>, vector<64x64xbf16>, vector<128x64xf32> -> vector<128x64xf32>
    %c11 = arith.constant 11 : index
    %c0_40 = arith.constant 0 : index
    %83 = vector.load %arg2[%c11, %c0_40] : memref<12x64xf32, #tpu.memory_space<vmem>>, vector<1x64xf32>
    %84 = vector.broadcast %83 : vector<1x64xf32> to vector<128x64xf32>
    %85 = arith.addf %82, %84 : vector<128x64xf32>
    %86 = arith.addf %43, %85 : vector<128x64xf32>
    %c0_41 = arith.constant 0 : index
    %c0_42 = arith.constant 0 : index
    %87 = vector.load %arg18[%c0_41, %c0_42] : memref<128x64xf32, #tpu.memory_space<vmem>>, vector<128x64xf32>
    tpu.vector_store %arg18[%c0_41, %c0_42], %86 {strides = array<i32>} : memref<128x64xf32, #tpu.memory_space<vmem>>, vector<128x64xf32>,
    %c0_43 = arith.constant 0 : index
    %c0_44 = arith.constant 0 : index
    %88 = vector.load %arg4[%c0_43, %c0_44] : memref<9x64xf32, #tpu.memory_space<vmem>>, vector<1x64xf32>
    %c1_45 = arith.constant 1 : index
    %c0_46 = arith.constant 0 : index
    %89 = vector.load %arg4[%c1_45, %c0_46] : memref<9x64xf32, #tpu.memory_space<vmem>>, vector<1x64xf32>
    %90 = vector.broadcast %89 : vector<1x64xf32> to vector<128x64xf32>
    %91 = arith.mulf %90, %86 : vector<128x64xf32>
    %92 = vector.broadcast %88 : vector<1x64xf32> to vector<128x64xf32>
    %93 = arith.mulf %92, %91 : vector<128x64xf32>
    %cst_47 = arith.constant 0.000000e+00 : f32
    %94 = vector.broadcast %cst_47 : f32 to vector<128x64xf32>
    %95 = arith.subf %94, %91 : vector<128x64xf32>
    %96 = math.exp %95 : vector<128x64xf32>
    %cst_48 = arith.constant 1.000000e+00 : f32
    %97 = vector.broadcast %cst_48 : f32 to vector<128x64xf32>
    %98 = arith.addf %97, %96 : vector<128x64xf32>
    %cst_49 = arith.constant 1.000000e+00 : f32
    %99 = vector.broadcast %cst_49 : f32 to vector<128x64xf32>
    %100 = arith.divf %99, %98 : vector<128x64xf32>
    %101 = arith.mulf %93, %100 : vector<128x64xf32>
    %102 = arith.truncf %101 : vector<128x64xf32> to vector<128x64xbf16>
    %c0_50 = arith.constant 0 : index
    %c0_51 = arith.constant 0 : index
    %c0_52 = arith.constant 0 : index
    %103 = vector.load %arg5[%c0_50, %c0_51, %c0_52] : memref<3x64x64xbf16, #tpu.memory_space<vmem>>, vector<1x64x64xbf16>
    %104 = vector.shape_cast %103 : vector<1x64x64xbf16> to vector<64x64xbf16>
    %cst_53 = arith.constant dense<0.000000e+00> : vector<128x64xf32>
    %105 = tpu.matmul %102, %104, %cst_53 {dimension_numbers = #tpu.dot_dimension_numbers<[1], [0], [0], [1], [0, 0, 1, 1], [], []>} : vector<128x64xbf16>, vector<64x64xbf16>, vector<128x64xf32> -> vector<128x64xf32>
    %c2_54 = arith.constant 2 : index
    %c0_55 = arith.constant 0 : index
    %106 = vector.load %arg4[%c2_54, %c0_55] : memref<9x64xf32, #tpu.memory_space<vmem>>, vector<1x64xf32>
    %107 = vector.broadcast %106 : vector<1x64xf32> to vector<128x64xf32>
    %108 = arith.addf %105, %107 : vector<128x64xf32>
    %c3_56 = arith.constant 3 : index
    %c0_57 = arith.constant 0 : index
    %109 = vector.load %arg4[%c3_56, %c0_57] : memref<9x64xf32, #tpu.memory_space<vmem>>, vector<1x64xf32>
    %c4_58 = arith.constant 4 : index
    %c0_59 = arith.constant 0 : index
    %110 = vector.load %arg4[%c4_58, %c0_59] : memref<9x64xf32, #tpu.memory_space<vmem>>, vector<1x64xf32>
    %111 = vector.broadcast %110 : vector<1x64xf32> to vector<128x64xf32>
    %112 = arith.mulf %111, %108 : vector<128x64xf32>
    %113 = vector.broadcast %109 : vector<1x64xf32> to vector<128x64xf32>
    %114 = arith.mulf %113, %112 : vector<128x64xf32>
    %cst_60 = arith.constant 0.000000e+00 : f32
    %115 = vector.broadcast %cst_60 : f32 to vector<128x64xf32>
    %116 = arith.subf %115, %112 : vector<128x64xf32>
    %117 = math.exp %116 : vector<128x64xf32>
    %cst_61 = arith.constant 1.000000e+00 : f32
    %118 = vector.broadcast %cst_61 : f32 to vector<128x64xf32>
    %119 = arith.addf %118, %117 : vector<128x64xf32>
    %cst_62 = arith.constant 1.000000e+00 : f32
    %120 = vector.broadcast %cst_62 : f32 to vector<128x64xf32>
    %121 = arith.divf %120, %119 : vector<128x64xf32>
    %122 = arith.mulf %114, %121 : vector<128x64xf32>
    %123 = arith.truncf %122 : vector<128x64xf32> to vector<128x64xbf16>
    %c1_63 = arith.constant 1 : index
    %c0_64 = arith.constant 0 : index
    %c0_65 = arith.constant 0 : index
    %124 = vector.load %arg5[%c1_63, %c0_64, %c0_65] : memref<3x64x64xbf16, #tpu.memory_space<vmem>>, vector<1x64x64xbf16>
    %125 = vector.shape_cast %124 : vector<1x64x64xbf16> to vector<64x64xbf16>
    %cst_66 = arith.constant dense<0.000000e+00> : vector<128x64xf32>
    %126 = tpu.matmul %123, %125, %cst_66 {dimension_numbers = #tpu.dot_dimension_numbers<[1], [0], [0], [1], [0, 0, 1, 1], [], []>} : vector<128x64xbf16>, vector<64x64xbf16>, vector<128x64xf32> -> vector<128x64xf32>
    %c5_67 = arith.constant 5 : index
    %c0_68 = arith.constant 0 : index
    %127 = vector.load %arg4[%c5_67, %c0_68] : memref<9x64xf32, #tpu.memory_space<vmem>>, vector<1x64xf32>
    %128 = vector.broadcast %127 : vector<1x64xf32> to vector<128x64xf32>
    %129 = arith.addf %126, %128 : vector<128x64xf32>
    %130 = arith.addf %86, %129 : vector<128x64xf32>
    %c6_69 = arith.constant 6 : index
    %c0_70 = arith.constant 0 : index
    %131 = vector.load %arg4[%c6_69, %c0_70] : memref<9x64xf32, #tpu.memory_space<vmem>>, vector<1x64xf32>
    %c7_71 = arith.constant 7 : index
    %c0_72 = arith.constant 0 : index
    %132 = vector.load %arg4[%c7_71, %c0_72] : memref<9x64xf32, #tpu.memory_space<vmem>>, vector<1x64xf32>
    %133 = vector.broadcast %132 : vector<1x64xf32> to vector<128x64xf32>
    %134 = arith.mulf %133, %130 : vector<128x64xf32>
    %135 = vector.broadcast %131 : vector<1x64xf32> to vector<128x64xf32>
    %136 = arith.mulf %135, %134 : vector<128x64xf32>
    %cst_73 = arith.constant 0.000000e+00 : f32
    %137 = vector.broadcast %cst_73 : f32 to vector<128x64xf32>
    %138 = arith.subf %137, %134 : vector<128x64xf32>
    %139 = math.exp %138 : vector<128x64xf32>
    %cst_74 = arith.constant 1.000000e+00 : f32
    %140 = vector.broadcast %cst_74 : f32 to vector<128x64xf32>
    %141 = arith.addf %140, %139 : vector<128x64xf32>
    %cst_75 = arith.constant 1.000000e+00 : f32
    %142 = vector.broadcast %cst_75 : f32 to vector<128x64xf32>
    %143 = arith.divf %142, %141 : vector<128x64xf32>
    %144 = arith.mulf %136, %143 : vector<128x64xf32>
    %145 = arith.truncf %144 : vector<128x64xf32> to vector<128x64xbf16>
    %c2_76 = arith.constant 2 : index
    %c0_77 = arith.constant 0 : index
    %c0_78 = arith.constant 0 : index
    %146 = vector.load %arg5[%c2_76, %c0_77, %c0_78] : memref<3x64x64xbf16, #tpu.memory_space<vmem>>, vector<1x64x64xbf16>
    %147 = vector.shape_cast %146 : vector<1x64x64xbf16> to vector<64x64xbf16>
    %cst_79 = arith.constant dense<0.000000e+00> : vector<128x64xf32>
    %148 = tpu.matmul %145, %147, %cst_79 {dimension_numbers = #tpu.dot_dimension_numbers<[1], [0], [0], [1], [0, 0, 1, 1], [], []>} : vector<128x64xbf16>, vector<64x64xbf16>, vector<128x64xf32> -> vector<128x64xf32>
    %c8_80 = arith.constant 8 : index
    %c0_81 = arith.constant 0 : index
    %149 = vector.load %arg4[%c8_80, %c0_81] : memref<9x64xf32, #tpu.memory_space<vmem>>, vector<1x64xf32>
    %150 = vector.broadcast %149 : vector<1x64xf32> to vector<128x64xf32>
    %151 = arith.addf %148, %150 : vector<128x64xf32>
    %c0_82 = arith.constant 0 : index
    %c0_83 = arith.constant 0 : index
    %152 = vector.load %arg6[%c0_82, %c0_83] : memref<9x64xf32, #tpu.memory_space<vmem>>, vector<1x64xf32>
    %c1_84 = arith.constant 1 : index
    %c0_85 = arith.constant 0 : index
    %153 = vector.load %arg6[%c1_84, %c0_85] : memref<9x64xf32, #tpu.memory_space<vmem>>, vector<1x64xf32>
    %154 = vector.broadcast %153 : vector<1x64xf32> to vector<128x64xf32>
    %155 = arith.mulf %154, %86 : vector<128x64xf32>
    %156 = vector.broadcast %152 : vector<1x64xf32> to vector<128x64xf32>
    %157 = arith.mulf %156, %155 : vector<128x64xf32>
    %cst_86 = arith.constant 0.000000e+00 : f32
    %158 = vector.broadcast %cst_86 : f32 to vector<128x64xf32>
    %159 = arith.subf %158, %155 : vector<128x64xf32>
    %160 = math.exp %159 : vector<128x64xf32>
    %cst_87 = arith.constant 1.000000e+00 : f32
    %161 = vector.broadcast %cst_87 : f32 to vector<128x64xf32>
    %162 = arith.addf %161, %160 : vector<128x64xf32>
    %cst_88 = arith.constant 1.000000e+00 : f32
    %163 = vector.broadcast %cst_88 : f32 to vector<128x64xf32>
    %164 = arith.divf %163, %162 : vector<128x64xf32>
    %165 = arith.mulf %157, %164 : vector<128x64xf32>
    %166 = arith.truncf %165 : vector<128x64xf32> to vector<128x64xbf16>
    %c0_89 = arith.constant 0 : index
    %c0_90 = arith.constant 0 : index
    %c0_91 = arith.constant 0 : index
    %167 = vector.load %arg7[%c0_89, %c0_90, %c0_91] : memref<3x64x64xbf16, #tpu.memory_space<vmem>>, vector<1x64x64xbf16>
    %168 = vector.shape_cast %167 : vector<1x64x64xbf16> to vector<64x64xbf16>
    %cst_92 = arith.constant dense<0.000000e+00> : vector<128x64xf32>
    %169 = tpu.matmul %166, %168, %cst_92 {dimension_numbers = #tpu.dot_dimension_numbers<[1], [0], [0], [1], [0, 0, 1, 1], [], []>} : vector<128x64xbf16>, vector<64x64xbf16>, vector<128x64xf32> -> vector<128x64xf32>
    %c2_93 = arith.constant 2 : index
    %c0_94 = arith.constant 0 : index
    %170 = vector.load %arg6[%c2_93, %c0_94] : memref<9x64xf32, #tpu.memory_space<vmem>>, vector<1x64xf32>
    %171 = vector.broadcast %170 : vector<1x64xf32> to vector<128x64xf32>
    %172 = arith.addf %169, %171 : vector<128x64xf32>
    %c3_95 = arith.constant 3 : index
    %c0_96 = arith.constant 0 : index
    %173 = vector.load %arg6[%c3_95, %c0_96] : memref<9x64xf32, #tpu.memory_space<vmem>>, vector<1x64xf32>
    %c4_97 = arith.constant 4 : index
    %c0_98 = arith.constant 0 : index
    %174 = vector.load %arg6[%c4_97, %c0_98] : memref<9x64xf32, #tpu.memory_space<vmem>>, vector<1x64xf32>
    %175 = vector.broadcast %174 : vector<1x64xf32> to vector<128x64xf32>
    %176 = arith.mulf %175, %172 : vector<128x64xf32>
    %177 = vector.broadcast %173 : vector<1x64xf32> to vector<128x64xf32>
    %178 = arith.mulf %177, %176 : vector<128x64xf32>
    %cst_99 = arith.constant 0.000000e+00 : f32
    %179 = vector.broadcast %cst_99 : f32 to vector<128x64xf32>
    %180 = arith.subf %179, %176 : vector<128x64xf32>
    %181 = math.exp %180 : vector<128x64xf32>
    %cst_100 = arith.constant 1.000000e+00 : f32
    %182 = vector.broadcast %cst_100 : f32 to vector<128x64xf32>
    %183 = arith.addf %182, %181 : vector<128x64xf32>
    %cst_101 = arith.constant 1.000000e+00 : f32
    %184 = vector.broadcast %cst_101 : f32 to vector<128x64xf32>
    %185 = arith.divf %184, %183 : vector<128x64xf32>
    %186 = arith.mulf %178, %185 : vector<128x64xf32>
    %187 = arith.truncf %186 : vector<128x64xf32> to vector<128x64xbf16>
    %c1_102 = arith.constant 1 : index
    %c0_103 = arith.constant 0 : index
    %c0_104 = arith.constant 0 : index
    %188 = vector.load %arg7[%c1_102, %c0_103, %c0_104] : memref<3x64x64xbf16, #tpu.memory_space<vmem>>, vector<1x64x64xbf16>
    %189 = vector.shape_cast %188 : vector<1x64x64xbf16> to vector<64x64xbf16>
    %cst_105 = arith.constant dense<0.000000e+00> : vector<128x64xf32>
    %190 = tpu.matmul %187, %189, %cst_105 {dimension_numbers = #tpu.dot_dimension_numbers<[1], [0], [0], [1], [0, 0, 1, 1], [], []>} : vector<128x64xbf16>, vector<64x64xbf16>, vector<128x64xf32> -> vector<128x64xf32>
    %c5_106 = arith.constant 5 : index
    %c0_107 = arith.constant 0 : index
    %191 = vector.load %arg6[%c5_106, %c0_107] : memref<9x64xf32, #tpu.memory_space<vmem>>, vector<1x64xf32>
    %192 = vector.broadcast %191 : vector<1x64xf32> to vector<128x64xf32>
    %193 = arith.addf %190, %192 : vector<128x64xf32>
    %194 = arith.addf %86, %193 : vector<128x64xf32>
    %c6_108 = arith.constant 6 : index
    %c0_109 = arith.constant 0 : index
    %195 = vector.load %arg6[%c6_108, %c0_109] : memref<9x64xf32, #tpu.memory_space<vmem>>, vector<1x64xf32>
    %c7_110 = arith.constant 7 : index
    %c0_111 = arith.constant 0 : index
    %196 = vector.load %arg6[%c7_110, %c0_111] : memref<9x64xf32, #tpu.memory_space<vmem>>, vector<1x64xf32>
    %197 = vector.broadcast %196 : vector<1x64xf32> to vector<128x64xf32>
    %198 = arith.mulf %197, %194 : vector<128x64xf32>
    %199 = vector.broadcast %195 : vector<1x64xf32> to vector<128x64xf32>
    %200 = arith.mulf %199, %198 : vector<128x64xf32>
    %cst_112 = arith.constant 0.000000e+00 : f32
    %201 = vector.broadcast %cst_112 : f32 to vector<128x64xf32>
    %202 = arith.subf %201, %198 : vector<128x64xf32>
    %203 = math.exp %202 : vector<128x64xf32>
    %cst_113 = arith.constant 1.000000e+00 : f32
    %204 = vector.broadcast %cst_113 : f32 to vector<128x64xf32>
    %205 = arith.addf %204, %203 : vector<128x64xf32>
    %cst_114 = arith.constant 1.000000e+00 : f32
    %206 = vector.broadcast %cst_114 : f32 to vector<128x64xf32>
    %207 = arith.divf %206, %205 : vector<128x64xf32>
    %208 = arith.mulf %200, %207 : vector<128x64xf32>
    %209 = arith.truncf %208 : vector<128x64xf32> to vector<128x64xbf16>
    %c2_115 = arith.constant 2 : index
    %c0_116 = arith.constant 0 : index
    %c0_117 = arith.constant 0 : index
    %210 = vector.load %arg7[%c2_115, %c0_116, %c0_117] : memref<3x64x64xbf16, #tpu.memory_space<vmem>>, vector<1x64x64xbf16>
    %211 = vector.shape_cast %210 : vector<1x64x64xbf16> to vector<64x64xbf16>
    %cst_118 = arith.constant dense<0.000000e+00> : vector<128x64xf32>
    %212 = tpu.matmul %209, %211, %cst_118 {dimension_numbers = #tpu.dot_dimension_numbers<[1], [0], [0], [1], [0, 0, 1, 1], [], []>} : vector<128x64xbf16>, vector<64x64xbf16>, vector<128x64xf32> -> vector<128x64xf32>
    %c8_119 = arith.constant 8 : index
    %c0_120 = arith.constant 0 : index
    %213 = vector.load %arg6[%c8_119, %c0_120] : memref<9x64xf32, #tpu.memory_space<vmem>>, vector<1x64xf32>
    %214 = vector.broadcast %213 : vector<1x64xf32> to vector<128x64xf32>
    %215 = arith.addf %212, %214 : vector<128x64xf32>
    %c0_121 = arith.constant 0 : index
    %c0_122 = arith.constant 0 : index
    %216 = vector.load %arg8[%c0_121, %c0_122] : memref<9x64xf32, #tpu.memory_space<vmem>>, vector<1x64xf32>
    %c1_123 = arith.constant 1 : index
    %c0_124 = arith.constant 0 : index
    %217 = vector.load %arg8[%c1_123, %c0_124] : memref<9x64xf32, #tpu.memory_space<vmem>>, vector<1x64xf32>
    %218 = vector.broadcast %217 : vector<1x64xf32> to vector<128x64xf32>
    %219 = arith.mulf %218, %86 : vector<128x64xf32>
    %220 = vector.broadcast %216 : vector<1x64xf32> to vector<128x64xf32>
    %221 = arith.mulf %220, %219 : vector<128x64xf32>
    %cst_125 = arith.constant 0.000000e+00 : f32
    %222 = vector.broadcast %cst_125 : f32 to vector<128x64xf32>
    %223 = arith.subf %222, %219 : vector<128x64xf32>
    %224 = math.exp %223 : vector<128x64xf32>
    %cst_126 = arith.constant 1.000000e+00 : f32
    %225 = vector.broadcast %cst_126 : f32 to vector<128x64xf32>
    %226 = arith.addf %225, %224 : vector<128x64xf32>
    %cst_127 = arith.constant 1.000000e+00 : f32
    %227 = vector.broadcast %cst_127 : f32 to vector<128x64xf32>
    %228 = arith.divf %227, %226 : vector<128x64xf32>
    %229 = arith.mulf %221, %228 : vector<128x64xf32>
    %230 = arith.truncf %229 : vector<128x64xf32> to vector<128x64xbf16>
    %c0_128 = arith.constant 0 : index
    %c0_129 = arith.constant 0 : index
    %c0_130 = arith.constant 0 : index
    %231 = vector.load %arg9[%c0_128, %c0_129, %c0_130] : memref<3x64x64xbf16, #tpu.memory_space<vmem>>, vector<1x64x64xbf16>
    %232 = vector.shape_cast %231 : vector<1x64x64xbf16> to vector<64x64xbf16>
    %cst_131 = arith.constant dense<0.000000e+00> : vector<128x64xf32>
    %233 = tpu.matmul %230, %232, %cst_131 {dimension_numbers = #tpu.dot_dimension_numbers<[1], [0], [0], [1], [0, 0, 1, 1], [], []>} : vector<128x64xbf16>, vector<64x64xbf16>, vector<128x64xf32> -> vector<128x64xf32>
    %c2_132 = arith.constant 2 : index
    %c0_133 = arith.constant 0 : index
    %234 = vector.load %arg8[%c2_132, %c0_133] : memref<9x64xf32, #tpu.memory_space<vmem>>, vector<1x64xf32>
    %235 = vector.broadcast %234 : vector<1x64xf32> to vector<128x64xf32>
    %236 = arith.addf %233, %235 : vector<128x64xf32>
    %c3_134 = arith.constant 3 : index
    %c0_135 = arith.constant 0 : index
    %237 = vector.load %arg8[%c3_134, %c0_135] : memref<9x64xf32, #tpu.memory_space<vmem>>, vector<1x64xf32>
    %c4_136 = arith.constant 4 : index
    %c0_137 = arith.constant 0 : index
    %238 = vector.load %arg8[%c4_136, %c0_137] : memref<9x64xf32, #tpu.memory_space<vmem>>, vector<1x64xf32>
    %239 = vector.broadcast %238 : vector<1x64xf32> to vector<128x64xf32>
    %240 = arith.mulf %239, %236 : vector<128x64xf32>
    %241 = vector.broadcast %237 : vector<1x64xf32> to vector<128x64xf32>
    %242 = arith.mulf %241, %240 : vector<128x64xf32>
    %cst_138 = arith.constant 0.000000e+00 : f32
    %243 = vector.broadcast %cst_138 : f32 to vector<128x64xf32>
    %244 = arith.subf %243, %240 : vector<128x64xf32>
    %245 = math.exp %244 : vector<128x64xf32>
    %cst_139 = arith.constant 1.000000e+00 : f32
    %246 = vector.broadcast %cst_139 : f32 to vector<128x64xf32>
    %247 = arith.addf %246, %245 : vector<128x64xf32>
    %cst_140 = arith.constant 1.000000e+00 : f32
    %248 = vector.broadcast %cst_140 : f32 to vector<128x64xf32>
    %249 = arith.divf %248, %247 : vector<128x64xf32>
    %250 = arith.mulf %242, %249 : vector<128x64xf32>
    %251 = arith.truncf %250 : vector<128x64xf32> to vector<128x64xbf16>
    %c1_141 = arith.constant 1 : index
    %c0_142 = arith.constant 0 : index
    %c0_143 = arith.constant 0 : index
    %252 = vector.load %arg9[%c1_141, %c0_142, %c0_143] : memref<3x64x64xbf16, #tpu.memory_space<vmem>>, vector<1x64x64xbf16>
    %253 = vector.shape_cast %252 : vector<1x64x64xbf16> to vector<64x64xbf16>
    %cst_144 = arith.constant dense<0.000000e+00> : vector<128x64xf32>
    %254 = tpu.matmul %251, %253, %cst_144 {dimension_numbers = #tpu.dot_dimension_numbers<[1], [0], [0], [1], [0, 0, 1, 1], [], []>} : vector<128x64xbf16>, vector<64x64xbf16>, vector<128x64xf32> -> vector<128x64xf32>
    %c5_145 = arith.constant 5 : index
    %c0_146 = arith.constant 0 : index
    %255 = vector.load %arg8[%c5_145, %c0_146] : memref<9x64xf32, #tpu.memory_space<vmem>>, vector<1x64xf32>
    %256 = vector.broadcast %255 : vector<1x64xf32> to vector<128x64xf32>
    %257 = arith.addf %254, %256 : vector<128x64xf32>
    %258 = arith.addf %86, %257 : vector<128x64xf32>
    %c6_147 = arith.constant 6 : index
    %c0_148 = arith.constant 0 : index
    %259 = vector.load %arg8[%c6_147, %c0_148] : memref<9x64xf32, #tpu.memory_space<vmem>>, vector<1x64xf32>
    %c7_149 = arith.constant 7 : index
    %c0_150 = arith.constant 0 : index
    %260 = vector.load %arg8[%c7_149, %c0_150] : memref<9x64xf32, #tpu.memory_space<vmem>>, vector<1x64xf32>
    %261 = vector.broadcast %260 : vector<1x64xf32> to vector<128x64xf32>
    %262 = arith.mulf %261, %258 : vector<128x64xf32>
    %263 = vector.broadcast %259 : vector<1x64xf32> to vector<128x64xf32>
    %264 = arith.mulf %263, %262 : vector<128x64xf32>
    %cst_151 = arith.constant 0.000000e+00 : f32
    %265 = vector.broadcast %cst_151 : f32 to vector<128x64xf32>
    %266 = arith.subf %265, %262 : vector<128x64xf32>
    %267 = math.exp %266 : vector<128x64xf32>
    %cst_152 = arith.constant 1.000000e+00 : f32
    %268 = vector.broadcast %cst_152 : f32 to vector<128x64xf32>
    %269 = arith.addf %268, %267 : vector<128x64xf32>
    %cst_153 = arith.constant 1.000000e+00 : f32
    %270 = vector.broadcast %cst_153 : f32 to vector<128x64xf32>
    %271 = arith.divf %270, %269 : vector<128x64xf32>
    %272 = arith.mulf %264, %271 : vector<128x64xf32>
    %273 = arith.truncf %272 : vector<128x64xf32> to vector<128x64xbf16>
    %c2_154 = arith.constant 2 : index
    %c0_155 = arith.constant 0 : index
    %c0_156 = arith.constant 0 : index
    %274 = vector.load %arg9[%c2_154, %c0_155, %c0_156] : memref<3x64x64xbf16, #tpu.memory_space<vmem>>, vector<1x64x64xbf16>
    %275 = vector.shape_cast %274 : vector<1x64x64xbf16> to vector<64x64xbf16>
    %cst_157 = arith.constant dense<0.000000e+00> : vector<128x64xf32>
    %276 = tpu.matmul %273, %275, %cst_157 {dimension_numbers = #tpu.dot_dimension_numbers<[1], [0], [0], [1], [0, 0, 1, 1], [], []>} : vector<128x64xbf16>, vector<64x64xbf16>, vector<128x64xf32> -> vector<128x64xf32>
    %c8_158 = arith.constant 8 : index
    %c0_159 = arith.constant 0 : index
    %277 = vector.load %arg8[%c8_158, %c0_159] : memref<9x64xf32, #tpu.memory_space<vmem>>, vector<1x64xf32>
    %278 = vector.broadcast %277 : vector<1x64xf32> to vector<128x64xf32>
    %279 = arith.addf %276, %278 : vector<128x64xf32>
    %c0_160 = arith.constant 0 : index
    %c0_161 = arith.constant 0 : index
    %280 = vector.load %arg10[%c0_160, %c0_161] : memref<9x64xf32, #tpu.memory_space<vmem>>, vector<1x64xf32>
    %c1_162 = arith.constant 1 : index
    %c0_163 = arith.constant 0 : index
    %281 = vector.load %arg10[%c1_162, %c0_163] : memref<9x64xf32, #tpu.memory_space<vmem>>, vector<1x64xf32>
    %282 = vector.broadcast %281 : vector<1x64xf32> to vector<128x64xf32>
    %283 = arith.mulf %282, %86 : vector<128x64xf32>
    %284 = vector.broadcast %280 : vector<1x64xf32> to vector<128x64xf32>
    %285 = arith.mulf %284, %283 : vector<128x64xf32>
    %cst_164 = arith.constant 0.000000e+00 : f32
    %286 = vector.broadcast %cst_164 : f32 to vector<128x64xf32>
    %287 = arith.subf %286, %283 : vector<128x64xf32>
    %288 = math.exp %287 : vector<128x64xf32>
    %cst_165 = arith.constant 1.000000e+00 : f32
    %289 = vector.broadcast %cst_165 : f32 to vector<128x64xf32>
    %290 = arith.addf %289, %288 : vector<128x64xf32>
    %cst_166 = arith.constant 1.000000e+00 : f32
    %291 = vector.broadcast %cst_166 : f32 to vector<128x64xf32>
    %292 = arith.divf %291, %290 : vector<128x64xf32>
    %293 = arith.mulf %285, %292 : vector<128x64xf32>
    %294 = arith.truncf %293 : vector<128x64xf32> to vector<128x64xbf16>
    %c0_167 = arith.constant 0 : index
    %c0_168 = arith.constant 0 : index
    %c0_169 = arith.constant 0 : index
    %295 = vector.load %arg11[%c0_167, %c0_168, %c0_169] : memref<3x64x64xbf16, #tpu.memory_space<vmem>>, vector<1x64x64xbf16>
    %296 = vector.shape_cast %295 : vector<1x64x64xbf16> to vector<64x64xbf16>
    %cst_170 = arith.constant dense<0.000000e+00> : vector<128x64xf32>
    %297 = tpu.matmul %294, %296, %cst_170 {dimension_numbers = #tpu.dot_dimension_numbers<[1], [0], [0], [1], [0, 0, 1, 1], [], []>} : vector<128x64xbf16>, vector<64x64xbf16>, vector<128x64xf32> -> vector<128x64xf32>
    %c2_171 = arith.constant 2 : index
    %c0_172 = arith.constant 0 : index
    %298 = vector.load %arg10[%c2_171, %c0_172] : memref<9x64xf32, #tpu.memory_space<vmem>>, vector<1x64xf32>
    %299 = vector.broadcast %298 : vector<1x64xf32> to vector<128x64xf32>
    %300 = arith.addf %297, %299 : vector<128x64xf32>
    %c3_173 = arith.constant 3 : index
    %c0_174 = arith.constant 0 : index
    %301 = vector.load %arg10[%c3_173, %c0_174] : memref<9x64xf32, #tpu.memory_space<vmem>>, vector<1x64xf32>
    %c4_175 = arith.constant 4 : index
    %c0_176 = arith.constant 0 : index
    %302 = vector.load %arg10[%c4_175, %c0_176] : memref<9x64xf32, #tpu.memory_space<vmem>>, vector<1x64xf32>
    %303 = vector.broadcast %302 : vector<1x64xf32> to vector<128x64xf32>
    %304 = arith.mulf %303, %300 : vector<128x64xf32>
    %305 = vector.broadcast %301 : vector<1x64xf32> to vector<128x64xf32>
    %306 = arith.mulf %305, %304 : vector<128x64xf32>
    %cst_177 = arith.constant 0.000000e+00 : f32
    %307 = vector.broadcast %cst_177 : f32 to vector<128x64xf32>
    %308 = arith.subf %307, %304 : vector<128x64xf32>
    %309 = math.exp %308 : vector<128x64xf32>
    %cst_178 = arith.constant 1.000000e+00 : f32
    %310 = vector.broadcast %cst_178 : f32 to vector<128x64xf32>
    %311 = arith.addf %310, %309 : vector<128x64xf32>
    %cst_179 = arith.constant 1.000000e+00 : f32
    %312 = vector.broadcast %cst_179 : f32 to vector<128x64xf32>
    %313 = arith.divf %312, %311 : vector<128x64xf32>
    %314 = arith.mulf %306, %313 : vector<128x64xf32>
    %315 = arith.truncf %314 : vector<128x64xf32> to vector<128x64xbf16>
    %c1_180 = arith.constant 1 : index
    %c0_181 = arith.constant 0 : index
    %c0_182 = arith.constant 0 : index
    %316 = vector.load %arg11[%c1_180, %c0_181, %c0_182] : memref<3x64x64xbf16, #tpu.memory_space<vmem>>, vector<1x64x64xbf16>
    %317 = vector.shape_cast %316 : vector<1x64x64xbf16> to vector<64x64xbf16>
    %cst_183 = arith.constant dense<0.000000e+00> : vector<128x64xf32>
    %318 = tpu.matmul %315, %317, %cst_183 {dimension_numbers = #tpu.dot_dimension_numbers<[1], [0], [0], [1], [0, 0, 1, 1], [], []>} : vector<128x64xbf16>, vector<64x64xbf16>, vector<128x64xf32> -> vector<128x64xf32>
    %c5_184 = arith.constant 5 : index
    %c0_185 = arith.constant 0 : index
    %319 = vector.load %arg10[%c5_184, %c0_185] : memref<9x64xf32, #tpu.memory_space<vmem>>, vector<1x64xf32>
    %320 = vector.broadcast %319 : vector<1x64xf32> to vector<128x64xf32>
    %321 = arith.addf %318, %320 : vector<128x64xf32>
    %322 = arith.addf %86, %321 : vector<128x64xf32>
    %c6_186 = arith.constant 6 : index
    %c0_187 = arith.constant 0 : index
    %323 = vector.load %arg10[%c6_186, %c0_187] : memref<9x64xf32, #tpu.memory_space<vmem>>, vector<1x64xf32>
    %c7_188 = arith.constant 7 : index
    %c0_189 = arith.constant 0 : index
    %324 = vector.load %arg10[%c7_188, %c0_189] : memref<9x64xf32, #tpu.memory_space<vmem>>, vector<1x64xf32>
    %325 = vector.broadcast %324 : vector<1x64xf32> to vector<128x64xf32>
    %326 = arith.mulf %325, %322 : vector<128x64xf32>
    %327 = vector.broadcast %323 : vector<1x64xf32> to vector<128x64xf32>
    %328 = arith.mulf %327, %326 : vector<128x64xf32>
    %cst_190 = arith.constant 0.000000e+00 : f32
    %329 = vector.broadcast %cst_190 : f32 to vector<128x64xf32>
    %330 = arith.subf %329, %326 : vector<128x64xf32>
    %331 = math.exp %330 : vector<128x64xf32>
    %cst_191 = arith.constant 1.000000e+00 : f32
    %332 = vector.broadcast %cst_191 : f32 to vector<128x64xf32>
    %333 = arith.addf %332, %331 : vector<128x64xf32>
    %cst_192 = arith.constant 1.000000e+00 : f32
    %334 = vector.broadcast %cst_192 : f32 to vector<128x64xf32>
    %335 = arith.divf %334, %333 : vector<128x64xf32>
    %336 = arith.mulf %328, %335 : vector<128x64xf32>
    %337 = arith.truncf %336 : vector<128x64xf32> to vector<128x64xbf16>
    %c2_193 = arith.constant 2 : index
    %c0_194 = arith.constant 0 : index
    %c0_195 = arith.constant 0 : index
    %338 = vector.load %arg11[%c2_193, %c0_194, %c0_195] : memref<3x64x64xbf16, #tpu.memory_space<vmem>>, vector<1x64x64xbf16>
    %339 = vector.shape_cast %338 : vector<1x64x64xbf16> to vector<64x64xbf16>
    %cst_196 = arith.constant dense<0.000000e+00> : vector<128x64xf32>
    %340 = tpu.matmul %337, %339, %cst_196 {dimension_numbers = #tpu.dot_dimension_numbers<[1], [0], [0], [1], [0, 0, 1, 1], [], []>} : vector<128x64xbf16>, vector<64x64xbf16>, vector<128x64xf32> -> vector<128x64xf32>
    %c8_197 = arith.constant 8 : index
    %c0_198 = arith.constant 0 : index
    %341 = vector.load %arg10[%c8_197, %c0_198] : memref<9x64xf32, #tpu.memory_space<vmem>>, vector<1x64xf32>
    %342 = vector.broadcast %341 : vector<1x64xf32> to vector<128x64xf32>
    %343 = arith.addf %340, %342 : vector<128x64xf32>
    %c0_199 = arith.constant 0 : index
    %c0_200 = arith.constant 0 : index
    %344 = vector.load %arg12[%c0_199, %c0_200] : memref<9x64xf32, #tpu.memory_space<vmem>>, vector<1x64xf32>
    %c1_201 = arith.constant 1 : index
    %c0_202 = arith.constant 0 : index
    %345 = vector.load %arg12[%c1_201, %c0_202] : memref<9x64xf32, #tpu.memory_space<vmem>>, vector<1x64xf32>
    %346 = vector.broadcast %345 : vector<1x64xf32> to vector<128x64xf32>
    %347 = arith.mulf %346, %86 : vector<128x64xf32>
    %348 = vector.broadcast %344 : vector<1x64xf32> to vector<128x64xf32>
    %349 = arith.mulf %348, %347 : vector<128x64xf32>
    %cst_203 = arith.constant 0.000000e+00 : f32
    %350 = vector.broadcast %cst_203 : f32 to vector<128x64xf32>
    %351 = arith.subf %350, %347 : vector<128x64xf32>
    %352 = math.exp %351 : vector<128x64xf32>
    %cst_204 = arith.constant 1.000000e+00 : f32
    %353 = vector.broadcast %cst_204 : f32 to vector<128x64xf32>
    %354 = arith.addf %353, %352 : vector<128x64xf32>
    %cst_205 = arith.constant 1.000000e+00 : f32
    %355 = vector.broadcast %cst_205 : f32 to vector<128x64xf32>
    %356 = arith.divf %355, %354 : vector<128x64xf32>
    %357 = arith.mulf %349, %356 : vector<128x64xf32>
    %358 = arith.truncf %357 : vector<128x64xf32> to vector<128x64xbf16>
    %c0_206 = arith.constant 0 : index
    %c0_207 = arith.constant 0 : index
    %c0_208 = arith.constant 0 : index
    %359 = vector.load %arg13[%c0_206, %c0_207, %c0_208] : memref<3x64x64xbf16, #tpu.memory_space<vmem>>, vector<1x64x64xbf16>
    %360 = vector.shape_cast %359 : vector<1x64x64xbf16> to vector<64x64xbf16>
    %cst_209 = arith.constant dense<0.000000e+00> : vector<128x64xf32>
    %361 = tpu.matmul %358, %360, %cst_209 {dimension_numbers = #tpu.dot_dimension_numbers<[1], [0], [0], [1], [0, 0, 1, 1], [], []>} : vector<128x64xbf16>, vector<64x64xbf16>, vector<128x64xf32> -> vector<128x64xf32>
    %c2_210 = arith.constant 2 : index
    %c0_211 = arith.constant 0 : index
    %362 = vector.load %arg12[%c2_210, %c0_211] : memref<9x64xf32, #tpu.memory_space<vmem>>, vector<1x64xf32>
    %363 = vector.broadcast %362 : vector<1x64xf32> to vector<128x64xf32>
    %364 = arith.addf %361, %363 : vector<128x64xf32>
    %c3_212 = arith.constant 3 : index
    %c0_213 = arith.constant 0 : index
    %365 = vector.load %arg12[%c3_212, %c0_213] : memref<9x64xf32, #tpu.memory_space<vmem>>, vector<1x64xf32>
    %c4_214 = arith.constant 4 : index
    %c0_215 = arith.constant 0 : index
    %366 = vector.load %arg12[%c4_214, %c0_215] : memref<9x64xf32, #tpu.memory_space<vmem>>, vector<1x64xf32>
    %367 = vector.broadcast %366 : vector<1x64xf32> to vector<128x64xf32>
    %368 = arith.mulf %367, %364 : vector<128x64xf32>
    %369 = vector.broadcast %365 : vector<1x64xf32> to vector<128x64xf32>
    %370 = arith.mulf %369, %368 : vector<128x64xf32>
    %cst_216 = arith.constant 0.000000e+00 : f32
    %371 = vector.broadcast %cst_216 : f32 to vector<128x64xf32>
    %372 = arith.subf %371, %368 : vector<128x64xf32>
    %373 = math.exp %372 : vector<128x64xf32>
    %cst_217 = arith.constant 1.000000e+00 : f32
    %374 = vector.broadcast %cst_217 : f32 to vector<128x64xf32>
    %375 = arith.addf %374, %373 : vector<128x64xf32>
    %cst_218 = arith.constant 1.000000e+00 : f32
    %376 = vector.broadcast %cst_218 : f32 to vector<128x64xf32>
    %377 = arith.divf %376, %375 : vector<128x64xf32>
    %378 = arith.mulf %370, %377 : vector<128x64xf32>
    %379 = arith.truncf %378 : vector<128x64xf32> to vector<128x64xbf16>
    %c1_219 = arith.constant 1 : index
    %c0_220 = arith.constant 0 : index
    %c0_221 = arith.constant 0 : index
    %380 = vector.load %arg13[%c1_219, %c0_220, %c0_221] : memref<3x64x64xbf16, #tpu.memory_space<vmem>>, vector<1x64x64xbf16>
    %381 = vector.shape_cast %380 : vector<1x64x64xbf16> to vector<64x64xbf16>
    %cst_222 = arith.constant dense<0.000000e+00> : vector<128x64xf32>
    %382 = tpu.matmul %379, %381, %cst_222 {dimension_numbers = #tpu.dot_dimension_numbers<[1], [0], [0], [1], [0, 0, 1, 1], [], []>} : vector<128x64xbf16>, vector<64x64xbf16>, vector<128x64xf32> -> vector<128x64xf32>
    %c5_223 = arith.constant 5 : index
    %c0_224 = arith.constant 0 : index
    %383 = vector.load %arg12[%c5_223, %c0_224] : memref<9x64xf32, #tpu.memory_space<vmem>>, vector<1x64xf32>
    %384 = vector.broadcast %383 : vector<1x64xf32> to vector<128x64xf32>
    %385 = arith.addf %382, %384 : vector<128x64xf32>
    %386 = arith.addf %86, %385 : vector<128x64xf32>
    %c6_225 = arith.constant 6 : index
    %c0_226 = arith.constant 0 : index
    %387 = vector.load %arg12[%c6_225, %c0_226] : memref<9x64xf32, #tpu.memory_space<vmem>>, vector<1x64xf32>
    %c7_227 = arith.constant 7 : index
    %c0_228 = arith.constant 0 : index
    %388 = vector.load %arg12[%c7_227, %c0_228] : memref<9x64xf32, #tpu.memory_space<vmem>>, vector<1x64xf32>
    %389 = vector.broadcast %388 : vector<1x64xf32> to vector<128x64xf32>
    %390 = arith.mulf %389, %386 : vector<128x64xf32>
    %391 = vector.broadcast %387 : vector<1x64xf32> to vector<128x64xf32>
    %392 = arith.mulf %391, %390 : vector<128x64xf32>
    %cst_229 = arith.constant 0.000000e+00 : f32
    %393 = vector.broadcast %cst_229 : f32 to vector<128x64xf32>
    %394 = arith.subf %393, %390 : vector<128x64xf32>
    %395 = math.exp %394 : vector<128x64xf32>
    %cst_230 = arith.constant 1.000000e+00 : f32
    %396 = vector.broadcast %cst_230 : f32 to vector<128x64xf32>
    %397 = arith.addf %396, %395 : vector<128x64xf32>
    %cst_231 = arith.constant 1.000000e+00 : f32
    %398 = vector.broadcast %cst_231 : f32 to vector<128x64xf32>
    %399 = arith.divf %398, %397 : vector<128x64xf32>
    %400 = arith.mulf %392, %399 : vector<128x64xf32>
    %401 = arith.truncf %400 : vector<128x64xf32> to vector<128x64xbf16>
    %c2_232 = arith.constant 2 : index
    %c0_233 = arith.constant 0 : index
    %c0_234 = arith.constant 0 : index
    %402 = vector.load %arg13[%c2_232, %c0_233, %c0_234] : memref<3x64x64xbf16, #tpu.memory_space<vmem>>, vector<1x64x64xbf16>
    %403 = vector.shape_cast %402 : vector<1x64x64xbf16> to vector<64x64xbf16>
    %cst_235 = arith.constant dense<0.000000e+00> : vector<128x64xf32>
    %404 = tpu.matmul %401, %403, %cst_235 {dimension_numbers = #tpu.dot_dimension_numbers<[1], [0], [0], [1], [0, 0, 1, 1], [], []>} : vector<128x64xbf16>, vector<64x64xbf16>, vector<128x64xf32> -> vector<128x64xf32>
    %c8_236 = arith.constant 8 : index
    %c0_237 = arith.constant 0 : index
    %405 = vector.load %arg12[%c8_236, %c0_237] : memref<9x64xf32, #tpu.memory_space<vmem>>, vector<1x64xf32>
    %406 = vector.broadcast %405 : vector<1x64xf32> to vector<128x64xf32>
    %407 = arith.addf %404, %406 : vector<128x64xf32>
    %c0_238 = arith.constant 0 : index
    %c0_239 = arith.constant 0 : index
    %408 = vector.load %arg14[%c0_238, %c0_239] : memref<9x64xf32, #tpu.memory_space<vmem>>, vector<1x64xf32>
    %c1_240 = arith.constant 1 : index
    %c0_241 = arith.constant 0 : index
    %409 = vector.load %arg14[%c1_240, %c0_241] : memref<9x64xf32, #tpu.memory_space<vmem>>, vector<1x64xf32>
    %410 = vector.broadcast %409 : vector<1x64xf32> to vector<128x64xf32>
    %411 = arith.mulf %410, %86 : vector<128x64xf32>
    %412 = vector.broadcast %408 : vector<1x64xf32> to vector<128x64xf32>
    %413 = arith.mulf %412, %411 : vector<128x64xf32>
    %cst_242 = arith.constant 0.000000e+00 : f32
    %414 = vector.broadcast %cst_242 : f32 to vector<128x64xf32>
    %415 = arith.subf %414, %411 : vector<128x64xf32>
    %416 = math.exp %415 : vector<128x64xf32>
    %cst_243 = arith.constant 1.000000e+00 : f32
    %417 = vector.broadcast %cst_243 : f32 to vector<128x64xf32>
    %418 = arith.addf %417, %416 : vector<128x64xf32>
    %cst_244 = arith.constant 1.000000e+00 : f32
    %419 = vector.broadcast %cst_244 : f32 to vector<128x64xf32>
    %420 = arith.divf %419, %418 : vector<128x64xf32>
    %421 = arith.mulf %413, %420 : vector<128x64xf32>
    %422 = arith.truncf %421 : vector<128x64xf32> to vector<128x64xbf16>
    %c0_245 = arith.constant 0 : index
    %c0_246 = arith.constant 0 : index
    %c0_247 = arith.constant 0 : index
    %423 = vector.load %arg15[%c0_245, %c0_246, %c0_247] : memref<3x64x64xbf16, #tpu.memory_space<vmem>>, vector<1x64x64xbf16>
    %424 = vector.shape_cast %423 : vector<1x64x64xbf16> to vector<64x64xbf16>
    %cst_248 = arith.constant dense<0.000000e+00> : vector<128x64xf32>
    %425 = tpu.matmul %422, %424, %cst_248 {dimension_numbers = #tpu.dot_dimension_numbers<[1], [0], [0], [1], [0, 0, 1, 1], [], []>} : vector<128x64xbf16>, vector<64x64xbf16>, vector<128x64xf32> -> vector<128x64xf32>
    %c2_249 = arith.constant 2 : index
    %c0_250 = arith.constant 0 : index
    %426 = vector.load %arg14[%c2_249, %c0_250] : memref<9x64xf32, #tpu.memory_space<vmem>>, vector<1x64xf32>
    %427 = vector.broadcast %426 : vector<1x64xf32> to vector<128x64xf32>
    %428 = arith.addf %425, %427 : vector<128x64xf32>
    %c3_251 = arith.constant 3 : index
    %c0_252 = arith.constant 0 : index
    %429 = vector.load %arg14[%c3_251, %c0_252] : memref<9x64xf32, #tpu.memory_space<vmem>>, vector<1x64xf32>
    %c4_253 = arith.constant 4 : index
    %c0_254 = arith.constant 0 : index
    %430 = vector.load %arg14[%c4_253, %c0_254] : memref<9x64xf32, #tpu.memory_space<vmem>>, vector<1x64xf32>
    %431 = vector.broadcast %430 : vector<1x64xf32> to vector<128x64xf32>
    %432 = arith.mulf %431, %428 : vector<128x64xf32>
    %433 = vector.broadcast %429 : vector<1x64xf32> to vector<128x64xf32>
    %434 = arith.mulf %433, %432 : vector<128x64xf32>
    %cst_255 = arith.constant 0.000000e+00 : f32
    %435 = vector.broadcast %cst_255 : f32 to vector<128x64xf32>
    %436 = arith.subf %435, %432 : vector<128x64xf32>
    %437 = math.exp %436 : vector<128x64xf32>
    %cst_256 = arith.constant 1.000000e+00 : f32
    %438 = vector.broadcast %cst_256 : f32 to vector<128x64xf32>
    %439 = arith.addf %438, %437 : vector<128x64xf32>
    %cst_257 = arith.constant 1.000000e+00 : f32
    %440 = vector.broadcast %cst_257 : f32 to vector<128x64xf32>
    %441 = arith.divf %440, %439 : vector<128x64xf32>
    %442 = arith.mulf %434, %441 : vector<128x64xf32>
    %443 = arith.truncf %442 : vector<128x64xf32> to vector<128x64xbf16>
    %c1_258 = arith.constant 1 : index
    %c0_259 = arith.constant 0 : index
    %c0_260 = arith.constant 0 : index
    %444 = vector.load %arg15[%c1_258, %c0_259, %c0_260] : memref<3x64x64xbf16, #tpu.memory_space<vmem>>, vector<1x64x64xbf16>
    %445 = vector.shape_cast %444 : vector<1x64x64xbf16> to vector<64x64xbf16>
    %cst_261 = arith.constant dense<0.000000e+00> : vector<128x64xf32>
    %446 = tpu.matmul %443, %445, %cst_261 {dimension_numbers = #tpu.dot_dimension_numbers<[1], [0], [0], [1], [0, 0, 1, 1], [], []>} : vector<128x64xbf16>, vector<64x64xbf16>, vector<128x64xf32> -> vector<128x64xf32>
    %c5_262 = arith.constant 5 : index
    %c0_263 = arith.constant 0 : index
    %447 = vector.load %arg14[%c5_262, %c0_263] : memref<9x64xf32, #tpu.memory_space<vmem>>, vector<1x64xf32>
    %448 = vector.broadcast %447 : vector<1x64xf32> to vector<128x64xf32>
    %449 = arith.addf %446, %448 : vector<128x64xf32>
    %450 = arith.addf %86, %449 : vector<128x64xf32>
    %c6_264 = arith.constant 6 : index
    %c0_265 = arith.constant 0 : index
    %451 = vector.load %arg14[%c6_264, %c0_265] : memref<9x64xf32, #tpu.memory_space<vmem>>, vector<1x64xf32>
    %c7_266 = arith.constant 7 : index
    %c0_267 = arith.constant 0 : index
    %452 = vector.load %arg14[%c7_266, %c0_267] : memref<9x64xf32, #tpu.memory_space<vmem>>, vector<1x64xf32>
    %453 = vector.broadcast %452 : vector<1x64xf32> to vector<128x64xf32>
    %454 = arith.mulf %453, %450 : vector<128x64xf32>
    %455 = vector.broadcast %451 : vector<1x64xf32> to vector<128x64xf32>
    %456 = arith.mulf %455, %454 : vector<128x64xf32>
    %cst_268 = arith.constant 0.000000e+00 : f32
    %457 = vector.broadcast %cst_268 : f32 to vector<128x64xf32>
    %458 = arith.subf %457, %454 : vector<128x64xf32>
    %459 = math.exp %458 : vector<128x64xf32>
    %cst_269 = arith.constant 1.000000e+00 : f32
    %460 = vector.broadcast %cst_269 : f32 to vector<128x64xf32>
    %461 = arith.addf %460, %459 : vector<128x64xf32>
    %cst_270 = arith.constant 1.000000e+00 : f32
    %462 = vector.broadcast %cst_270 : f32 to vector<128x64xf32>
    %463 = arith.divf %462, %461 : vector<128x64xf32>
    %464 = arith.mulf %456, %463 : vector<128x64xf32>
    %465 = arith.truncf %464 : vector<128x64xf32> to vector<128x64xbf16>
    %c2_271 = arith.constant 2 : index
    %c0_272 = arith.constant 0 : index
    %c0_273 = arith.constant 0 : index
    %466 = vector.load %arg15[%c2_271, %c0_272, %c0_273] : memref<3x64x64xbf16, #tpu.memory_space<vmem>>, vector<1x64x64xbf16>
    %467 = vector.shape_cast %466 : vector<1x64x64xbf16> to vector<64x64xbf16>
    %cst_274 = arith.constant dense<0.000000e+00> : vector<128x64xf32>
    %468 = tpu.matmul %465, %467, %cst_274 {dimension_numbers = #tpu.dot_dimension_numbers<[1], [0], [0], [1], [0, 0, 1, 1], [], []>} : vector<128x64xbf16>, vector<64x64xbf16>, vector<128x64xf32> -> vector<128x64xf32>
    %c8_275 = arith.constant 8 : index
    %c0_276 = arith.constant 0 : index
    %469 = vector.load %arg14[%c8_275, %c0_276] : memref<9x64xf32, #tpu.memory_space<vmem>>, vector<1x64xf32>
    %470 = vector.broadcast %469 : vector<1x64xf32> to vector<128x64xf32>
    %471 = arith.addf %468, %470 : vector<128x64xf32>
    %c0_277 = arith.constant 0 : index
    %c0_278 = arith.constant 0 : index
    %472 = vector.load %arg16[%c0_277, %c0_278] : memref<9x64xf32, #tpu.memory_space<vmem>>, vector<1x64xf32>
    %c1_279 = arith.constant 1 : index
    %c0_280 = arith.constant 0 : index
    %473 = vector.load %arg16[%c1_279, %c0_280] : memref<9x64xf32, #tpu.memory_space<vmem>>, vector<1x64xf32>
    %474 = vector.broadcast %473 : vector<1x64xf32> to vector<128x64xf32>
    %475 = arith.mulf %474, %86 : vector<128x64xf32>
    %476 = vector.broadcast %472 : vector<1x64xf32> to vector<128x64xf32>
    %477 = arith.mulf %476, %475 : vector<128x64xf32>
    %cst_281 = arith.constant 0.000000e+00 : f32
    %478 = vector.broadcast %cst_281 : f32 to vector<128x64xf32>
    %479 = arith.subf %478, %475 : vector<128x64xf32>
    %480 = math.exp %479 : vector<128x64xf32>
    %cst_282 = arith.constant 1.000000e+00 : f32
    %481 = vector.broadcast %cst_282 : f32 to vector<128x64xf32>
    %482 = arith.addf %481, %480 : vector<128x64xf32>
    %cst_283 = arith.constant 1.000000e+00 : f32
    %483 = vector.broadcast %cst_283 : f32 to vector<128x64xf32>
    %484 = arith.divf %483, %482 : vector<128x64xf32>
    %485 = arith.mulf %477, %484 : vector<128x64xf32>
    %486 = arith.truncf %485 : vector<128x64xf32> to vector<128x64xbf16>
    %c0_284 = arith.constant 0 : index
    %c0_285 = arith.constant 0 : index
    %c0_286 = arith.constant 0 : index
    %487 = vector.load %arg17[%c0_284, %c0_285, %c0_286] : memref<3x64x64xbf16, #tpu.memory_space<vmem>>, vector<1x64x64xbf16>
    %488 = vector.shape_cast %487 : vector<1x64x64xbf16> to vector<64x64xbf16>
    %cst_287 = arith.constant dense<0.000000e+00> : vector<128x64xf32>
    %489 = tpu.matmul %486, %488, %cst_287 {dimension_numbers = #tpu.dot_dimension_numbers<[1], [0], [0], [1], [0, 0, 1, 1], [], []>} : vector<128x64xbf16>, vector<64x64xbf16>, vector<128x64xf32> -> vector<128x64xf32>
    %c2_288 = arith.constant 2 : index
    %c0_289 = arith.constant 0 : index
    %490 = vector.load %arg16[%c2_288, %c0_289] : memref<9x64xf32, #tpu.memory_space<vmem>>, vector<1x64xf32>
    %491 = vector.broadcast %490 : vector<1x64xf32> to vector<128x64xf32>
    %492 = arith.addf %489, %491 : vector<128x64xf32>
    %c3_290 = arith.constant 3 : index
    %c0_291 = arith.constant 0 : index
    %493 = vector.load %arg16[%c3_290, %c0_291] : memref<9x64xf32, #tpu.memory_space<vmem>>, vector<1x64xf32>
    %c4_292 = arith.constant 4 : index
    %c0_293 = arith.constant 0 : index
    %494 = vector.load %arg16[%c4_292, %c0_293] : memref<9x64xf32, #tpu.memory_space<vmem>>, vector<1x64xf32>
    %495 = vector.broadcast %494 : vector<1x64xf32> to vector<128x64xf32>
    %496 = arith.mulf %495, %492 : vector<128x64xf32>
    %497 = vector.broadcast %493 : vector<1x64xf32> to vector<128x64xf32>
    %498 = arith.mulf %497, %496 : vector<128x64xf32>
    %cst_294 = arith.constant 0.000000e+00 : f32
    %499 = vector.broadcast %cst_294 : f32 to vector<128x64xf32>
    %500 = arith.subf %499, %496 : vector<128x64xf32>
    %501 = math.exp %500 : vector<128x64xf32>
    %cst_295 = arith.constant 1.000000e+00 : f32
    %502 = vector.broadcast %cst_295 : f32 to vector<128x64xf32>
    %503 = arith.addf %502, %501 : vector<128x64xf32>
    %cst_296 = arith.constant 1.000000e+00 : f32
    %504 = vector.broadcast %cst_296 : f32 to vector<128x64xf32>
    %505 = arith.divf %504, %503 : vector<128x64xf32>
    %506 = arith.mulf %498, %505 : vector<128x64xf32>
    %507 = arith.truncf %506 : vector<128x64xf32> to vector<128x64xbf16>
    %c1_297 = arith.constant 1 : index
    %c0_298 = arith.constant 0 : index
    %c0_299 = arith.constant 0 : index
    %508 = vector.load %arg17[%c1_297, %c0_298, %c0_299] : memref<3x64x64xbf16, #tpu.memory_space<vmem>>, vector<1x64x64xbf16>
    %509 = vector.shape_cast %508 : vector<1x64x64xbf16> to vector<64x64xbf16>
    %cst_300 = arith.constant dense<0.000000e+00> : vector<128x64xf32>
    %510 = tpu.matmul %507, %509, %cst_300 {dimension_numbers = #tpu.dot_dimension_numbers<[1], [0], [0], [1], [0, 0, 1, 1], [], []>} : vector<128x64xbf16>, vector<64x64xbf16>, vector<128x64xf32> -> vector<128x64xf32>
    %c5_301 = arith.constant 5 : index
    %c0_302 = arith.constant 0 : index
    %511 = vector.load %arg16[%c5_301, %c0_302] : memref<9x64xf32, #tpu.memory_space<vmem>>, vector<1x64xf32>
    %512 = vector.broadcast %511 : vector<1x64xf32> to vector<128x64xf32>
    %513 = arith.addf %510, %512 : vector<128x64xf32>
    %514 = arith.addf %86, %513 : vector<128x64xf32>
    %c6_303 = arith.constant 6 : index
    %c0_304 = arith.constant 0 : index
    %515 = vector.load %arg16[%c6_303, %c0_304] : memref<9x64xf32, #tpu.memory_space<vmem>>, vector<1x64xf32>
    %c7_305 = arith.constant 7 : index
    %c0_306 = arith.constant 0 : index
    %516 = vector.load %arg16[%c7_305, %c0_306] : memref<9x64xf32, #tpu.memory_space<vmem>>, vector<1x64xf32>
    %517 = vector.broadcast %516 : vector<1x64xf32> to vector<128x64xf32>
    %518 = arith.mulf %517, %514 : vector<128x64xf32>
    %519 = vector.broadcast %515 : vector<1x64xf32> to vector<128x64xf32>
    %520 = arith.mulf %519, %518 : vector<128x64xf32>
    %cst_307 = arith.constant 0.000000e+00 : f32
    %521 = vector.broadcast %cst_307 : f32 to vector<128x64xf32>
    %522 = arith.subf %521, %518 : vector<128x64xf32>
    %523 = math.exp %522 : vector<128x64xf32>
    %cst_308 = arith.constant 1.000000e+00 : f32
    %524 = vector.broadcast %cst_308 : f32 to vector<128x64xf32>
    %525 = arith.addf %524, %523 : vector<128x64xf32>
    %cst_309 = arith.constant 1.000000e+00 : f32
    %526 = vector.broadcast %cst_309 : f32 to vector<128x64xf32>
    %527 = arith.divf %526, %525 : vector<128x64xf32>
    %528 = arith.mulf %520, %527 : vector<128x64xf32>
    %529 = arith.truncf %528 : vector<128x64xf32> to vector<128x64xbf16>
    %c2_310 = arith.constant 2 : index
    %c0_311 = arith.constant 0 : index
    %c0_312 = arith.constant 0 : index
    %530 = vector.load %arg17[%c2_310, %c0_311, %c0_312] : memref<3x64x64xbf16, #tpu.memory_space<vmem>>, vector<1x64x64xbf16>
    %531 = vector.shape_cast %530 : vector<1x64x64xbf16> to vector<64x64xbf16>
    %cst_313 = arith.constant dense<0.000000e+00> : vector<128x64xf32>
    %532 = tpu.matmul %529, %531, %cst_313 {dimension_numbers = #tpu.dot_dimension_numbers<[1], [0], [0], [1], [0, 0, 1, 1], [], []>} : vector<128x64xbf16>, vector<64x64xbf16>, vector<128x64xf32> -> vector<128x64xf32>
    %c8_314 = arith.constant 8 : index
    %c0_315 = arith.constant 0 : index
    %533 = vector.load %arg16[%c8_314, %c0_315] : memref<9x64xf32, #tpu.memory_space<vmem>>, vector<1x64xf32>
    %534 = vector.broadcast %533 : vector<1x64xf32> to vector<128x64xf32>
    %535 = arith.addf %532, %534 : vector<128x64xf32>
    %536 = arith.truncf %151 : vector<128x64xf32> to vector<128x64xbf16>
    %c0_316 = arith.constant 0 : index
    %c0_317 = arith.constant 0 : index
    %537 = vector.load %arg19[%c0_316, %c0_317] : memref<128x256xbf16, #tpu.memory_space<vmem>>, vector<128x64xbf16>
    tpu.vector_store %arg19[%c0_316, %c0_317], %536 {strides = array<i32>} : memref<128x256xbf16, #tpu.memory_space<vmem>>, vector<128x64xbf16>,
    %538 = arith.truncf %215 : vector<128x64xf32> to vector<128x64xbf16>
    %c0_318 = arith.constant 0 : index
    %c64 = arith.constant 64 : index
    %539 = vector.load %arg19[%c0_318, %c64] : memref<128x256xbf16, #tpu.memory_space<vmem>>, vector<128x64xbf16>
    tpu.vector_store %arg19[%c0_318, %c64], %538 {strides = array<i32>} : memref<128x256xbf16, #tpu.memory_space<vmem>>, vector<128x64xbf16>,
    %540 = arith.truncf %279 : vector<128x64xf32> to vector<128x64xbf16>
    %c0_319 = arith.constant 0 : index
    %c128 = arith.constant 128 : index
    %541 = vector.load %arg19[%c0_319, %c128] : memref<128x256xbf16, #tpu.memory_space<vmem>>, vector<128x64xbf16>
    tpu.vector_store %arg19[%c0_319, %c128], %540 {strides = array<i32>} : memref<128x256xbf16, #tpu.memory_space<vmem>>, vector<128x64xbf16>,
    %542 = arith.truncf %343 : vector<128x64xf32> to vector<128x64xbf16>
    %c0_320 = arith.constant 0 : index
    %c192 = arith.constant 192 : index
    %543 = vector.load %arg19[%c0_320, %c192] : memref<128x256xbf16, #tpu.memory_space<vmem>>, vector<128x64xbf16>
    tpu.vector_store %arg19[%c0_320, %c192], %542 {strides = array<i32>} : memref<128x256xbf16, #tpu.memory_space<vmem>>, vector<128x64xbf16>,
    %544 = arith.truncf %407 : vector<128x64xf32> to vector<128x64xbf16>
    %c0_321 = arith.constant 0 : index
    %c0_322 = arith.constant 0 : index
    %545 = vector.load %arg20[%c0_321, %c0_322] : memref<128x64xbf16, #tpu.memory_space<vmem>>, vector<128x64xbf16>
    tpu.vector_store %arg20[%c0_321, %c0_322], %544 {strides = array<i32>} : memref<128x64xbf16, #tpu.memory_space<vmem>>, vector<128x64xbf16>,
    %546 = arith.truncf %471 : vector<128x64xf32> to vector<128x64xbf16>
    %c0_323 = arith.constant 0 : index
    %c0_324 = arith.constant 0 : index
    %547 = vector.load %arg21[%c0_323, %c0_324] : memref<128x128xbf16, #tpu.memory_space<vmem>>, vector<128x64xbf16>
    tpu.vector_store %arg21[%c0_323, %c0_324], %546 {strides = array<i32>} : memref<128x128xbf16, #tpu.memory_space<vmem>>, vector<128x64xbf16>,
    %548 = arith.truncf %535 : vector<128x64xf32> to vector<128x64xbf16>
    %c0_325 = arith.constant 0 : index
    %c64_326 = arith.constant 64 : index
    %549 = vector.load %arg21[%c0_325, %c64_326] : memref<128x128xbf16, #tpu.memory_space<vmem>>, vector<128x64xbf16>
    tpu.vector_store %arg21[%c0_325, %c64_326], %548 {strides = array<i32>} : memref<128x128xbf16, #tpu.memory_space<vmem>>, vector<128x64xbf16>,
    return
  }
  func.func @transform_0(%arg0: i32) -> (i32, i32) {
    %c0_i32 = arith.constant 0 : i32
    %c0_i32_0 = arith.constant 0 : i32
    return %arg0, %c0_i32 : i32, i32
  }
  func.func @transform_1(%arg0: i32) -> (i32, i32) {
    %c0_i32 = arith.constant 0 : i32
    %c0_i32_0 = arith.constant 0 : i32
    %c0_i32_1 = arith.constant 0 : i32
    return %c0_i32, %c0_i32_0 : i32, i32
  }
  func.func @transform_2(%arg0: i32) -> (i32, i32, i32) {
    %c0_i32 = arith.constant 0 : i32
    %c0_i32_0 = arith.constant 0 : i32
    %c0_i32_1 = arith.constant 0 : i32
    %c0_i32_2 = arith.constant 0 : i32
    return %c0_i32, %c0_i32_0, %c0_i32_1 : i32, i32, i32
  }
  func.func @transform_3(%arg0: i32) -> (i32, i32) {
    %c0_i32 = arith.constant 0 : i32
    %c0_i32_0 = arith.constant 0 : i32
    %c0_i32_1 = arith.constant 0 : i32
    return %c0_i32, %c0_i32_0 : i32, i32
  }
  func.func @transform_4(%arg0: i32) -> (i32, i32, i32) {
    %c0_i32 = arith.constant 0 : i32
    %c0_i32_0 = arith.constant 0 : i32
    %c0_i32_1 = arith.constant 0 : i32
    %c0_i32_2 = arith.constant 0 : i32
    return %c0_i32, %c0_i32_0, %c0_i32_1 : i32, i32, i32
  }
  func.func @transform_5(%arg0: i32) -> (i32, i32) {
    %c0_i32 = arith.constant 0 : i32
    %c0_i32_0 = arith.constant 0 : i32
    %c0_i32_1 = arith.constant 0 : i32
    return %c0_i32, %c0_i32_0 : i32, i32
  }
  func.func @transform_6(%arg0: i32) -> (i32, i32, i32) {
    %c0_i32 = arith.constant 0 : i32
    %c0_i32_0 = arith.constant 0 : i32
    %c0_i32_1 = arith.constant 0 : i32
    %c0_i32_2 = arith.constant 0 : i32
    return %c0_i32, %c0_i32_0, %c0_i32_1 : i32, i32, i32
  }
  func.func @transform_7(%arg0: i32) -> (i32, i32) {
    %c0_i32 = arith.constant 0 : i32
    %c0_i32_0 = arith.constant 0 : i32
    %c0_i32_1 = arith.constant 0 : i32
    return %c0_i32, %c0_i32_0 : i32, i32
  }
  func.func @transform_8(%arg0: i32) -> (i32, i32, i32) {
    %c0_i32 = arith.constant 0 : i32
    %c0_i32_0 = arith.constant 0 : i32
    %c0_i32_1 = arith.constant 0 : i32
    %c0_i32_2 = arith.constant 0 : i32
    return %c0_i32, %c0_i32_0, %c0_i32_1 : i32, i32, i32
  }
  func.func @transform_9(%arg0: i32) -> (i32, i32) {
    %c0_i32 = arith.constant 0 : i32
    %c0_i32_0 = arith.constant 0 : i32
    %c0_i32_1 = arith.constant 0 : i32
    return %c0_i32, %c0_i32_0 : i32, i32
  }
  func.func @transform_10(%arg0: i32) -> (i32, i32, i32) {
    %c0_i32 = arith.constant 0 : i32
    %c0_i32_0 = arith.constant 0 : i32
    %c0_i32_1 = arith.constant 0 : i32
    %c0_i32_2 = arith.constant 0 : i32
    return %c0_i32, %c0_i32_0, %c0_i32_1 : i32, i32, i32
  }
  func.func @transform_11(%arg0: i32) -> (i32, i32) {
    %c0_i32 = arith.constant 0 : i32
    %c0_i32_0 = arith.constant 0 : i32
    %c0_i32_1 = arith.constant 0 : i32
    return %c0_i32, %c0_i32_0 : i32, i32
  }
  func.func @transform_12(%arg0: i32) -> (i32, i32, i32) {
    %c0_i32 = arith.constant 0 : i32
    %c0_i32_0 = arith.constant 0 : i32
    %c0_i32_1 = arith.constant 0 : i32
    %c0_i32_2 = arith.constant 0 : i32
    return %c0_i32, %c0_i32_0, %c0_i32_1 : i32, i32, i32
  }
  func.func @transform_13(%arg0: i32) -> (i32, i32) {
    %c0_i32 = arith.constant 0 : i32
    %c0_i32_0 = arith.constant 0 : i32
    %c0_i32_1 = arith.constant 0 : i32
    return %c0_i32, %c0_i32_0 : i32, i32
  }
  func.func @transform_14(%arg0: i32) -> (i32, i32, i32) {
    %c0_i32 = arith.constant 0 : i32
    %c0_i32_0 = arith.constant 0 : i32
    %c0_i32_1 = arith.constant 0 : i32
    %c0_i32_2 = arith.constant 0 : i32
    return %c0_i32, %c0_i32_0, %c0_i32_1 : i32, i32, i32
  }
  func.func @transform_15(%arg0: i32) -> (i32, i32) {
    %c0_i32 = arith.constant 0 : i32
    %c0_i32_0 = arith.constant 0 : i32
    %c0_i32_1 = arith.constant 0 : i32
    return %c0_i32, %c0_i32_0 : i32, i32
  }
  func.func @transform_16(%arg0: i32) -> (i32, i32, i32) {
    %c0_i32 = arith.constant 0 : i32
    %c0_i32_0 = arith.constant 0 : i32
    %c0_i32_1 = arith.constant 0 : i32
    %c0_i32_2 = arith.constant 0 : i32
    return %c0_i32, %c0_i32_0, %c0_i32_1 : i32, i32, i32
  }
  func.func @transform_17(%arg0: i32) -> (i32, i32) {
    %c0_i32 = arith.constant 0 : i32
    %c0_i32_0 = arith.constant 0 : i32
    return %arg0, %c0_i32 : i32, i32
  }
  func.func @transform_18(%arg0: i32) -> (i32, i32) {
    %c0_i32 = arith.constant 0 : i32
    %c0_i32_0 = arith.constant 0 : i32
    return %arg0, %c0_i32 : i32, i32
  }
  func.func @transform_19(%arg0: i32) -> (i32, i32) {
    %c0_i32 = arith.constant 0 : i32
    %c0_i32_0 = arith.constant 0 : i32
    return %arg0, %c0_i32 : i32, i32
  }
  func.func @transform_20(%arg0: i32) -> (i32, i32) {
    %c0_i32 = arith.constant 0 : i32
    %c0_i32_0 = arith.constant 0 : i32
    return %arg0, %c0_i32 : i32, i32
  }
}

</mosaic_0001>

<bundles_post_ra>
// kernel: tpu_custom_call.1
= control target key start
LH: loop header
LB: loop body
LE: loop exit
PB: predicated region body
PF: predicated region fallthrough
CT: control target
= control target key end

     0   :  { %s17536_s0 = inlined_call_operand.hbm [shape: f32[128,64], index: 0, kind: input, shape index: {}]   ;;  %s17537_s1 = inlined_call_operand.hbm [shape: f32[12,64], index: 1, kind: input, shape index: {}]   ;;  %s17538_s2 = inlined_call_operand.hbm [shape: bf16[4,64,64], index: 2, kind: input, shape index: {}]   ;;  %s17539_s3 = inlined_call_operand.hbm [shape: f32[9,64], index: 3, kind: input, shape index: {}]   ;;  %s17540_s4 = inlined_call_operand.hbm [shape: bf16[3,64,64], index: 4, kind: input, shape index: {}]   ;;  %s17541_s5 = inlined_call_operand.hbm [shape: f32[9,64], index: 5, kind: input, shape index: {}]   ;;  %s17542_s6 = inlined_call_operand.hbm [shape: bf16[3,64,64], index: 6, kind: input, shape index: {}]   ;;  %s17543_s7 = inlined_call_operand.hbm [shape: f32[9,64], index: 7, kind: input, shape index: {}]   ;;  %s17544_s8 = inlined_call_operand.hbm [shape: bf16[3,64,64], index: 8, kind: input, shape index: {}]   ;;  %s17545_s9 = inlined_call_operand.hbm [shape: f32[9,64], index: 9, kind: input, shape index: {}]   ;;  %s17546_s10 = inlined_call_operand.hbm [shape: bf16[3,64,64], index: 10, kind: input, shape index: {}]   ;;  %s17547_s11 = inlined_call_operand.hbm [shape: f32[9,64], index: 11, kind: input, shape index: {}]   ;;  %s17548_s12 = inlined_call_operand.hbm [shape: bf16[3,64,64], index: 12, kind: input, shape index: {}]   ;;  %s17549_s13 = inlined_call_operand.hbm [shape: f32[9,64], index: 13, kind: input, shape index: {}]   ;;  %s17550_s14 = inlined_call_operand.hbm [shape: bf16[3,64,64], index: 14, kind: input, shape index: {}]   ;;  %s17551_s15 = inlined_call_operand.hbm [shape: f32[9,64], index: 15, kind: input, shape index: {}]   ;;  %s17552_s16 = inlined_call_operand.hbm [shape: bf16[3,64,64], index: 16, kind: input, shape index: {}]   ;;  %s17553_s17 = inlined_call_operand.hbm [shape: f32[128,64], index: 17, kind: output, shape index: {0}]   ;;  %s17554_s18 = inlined_call_operand.hbm [shape: bf16[128,256], index: 18, kind: output, shape index: {1}]   ;;  %s17555_s19 = inlined_call_operand.hbm [shape: bf16[128,64], index: 19, kind: output, shape index: {2}]   ;;  %s17556_s20 = inlined_call_operand.hbm [shape: bf16[128,128], index: 20, kind: output, shape index: {3}]  }
   0x1   :  { %17656 = sst [smem:[#allocation66_spill]] %s17536_s0 }
   0x2   :  { %17657 = sst [smem:[#allocation67_spill]] %s17537_s1 }
   0x3   :  { %17658 = sst [smem:[#allocation68_spill]] %s17538_s2 }
   0x4   :  { %17659 = sst [smem:[#allocation69_spill]] %s17539_s3 }
   0x5   :  { %17660 = sst [smem:[#allocation70_spill]] %s17540_s4 }
   0x6   :  { %17661 = sst [smem:[#allocation71_spill]] %s17555_s19 }
   0x7   :  { %17662 = sst [smem:[#allocation72_spill]] %s17556_s20 }
   0x8   :  { %26 = vsyncpa [#allocation3], 0 }
   0x9   :  { %27 = vsyncpa [#allocation6], 0 }
   0xa   :  { %28 = vsyncpa [#allocation9], 0 }
   0xb   :  { %29 = vsyncpa [#allocation12], 0 }
   0xc   :  { %30 = vsyncpa [#allocation15], 0 }
   0xd   :  { %31 = vsyncpa [#allocation18], 0 }
   0xe   :  { %32 = vsyncpa [#allocation21], 0 }
   0xf   :  { %33 = vsyncpa [#allocation24], 0 }
  0x10   :  { %34 = vsyncpa [#allocation27], 0 }
  0x11   :  { %35 = vsyncpa [#allocation4], 0 }
  0x12   :  { %36 = vsyncpa [#allocation31], 0 }
  0x13   :  { %37 = vsyncpa [#allocation34], 0  ;;  %s12954_s1 = smov [#allocation5]   ;;  %s12955_s23 = smov [#allocation8]  }
  0x14   :  { %s55_s22 = sshll.u32 %s12954_s1, 4  ;;  %s79_s24 = sshll.u32 %s12955_s23, 4  ;;  %s56_s22 = int_to_ptr.vmem [resolvable:$true] %s55_s22  ;;  %s13084_s24 = int_to_ptr.vmem [resolvable:$true] %s79_s24 }
  0x15   :  { %s17663_s3 = sld [smem:[#allocation67_spill]] }
  0x1b   :  { %s12468_s26 = scalar_lea.hbm %s17663_s3, 256 }
  0x1c   :  { %p12469_p0 = scmp.ne.s32.totalorder %s17663_s3, %s12468_s26  ;;  %p12472_p1 = scmp.lt.u32.totalorder %s12468_s26, %s17663_s3 }
  0x1e   :  { %p12474_p2 = pnand %p12472_p1, %p12469_p0 }
  0x20   :  { %12477 = shalt.err (!%p12474_p2)
}
  0x21   :  { %s12478_s30 = scalar_lea.vmem %s56_s22, 256  ;;  %p12483_p4 = scmp.lt.s32.totalorder %s56_s22, %s56_s22 }
  0x22   :  { %p12479_p3 = scmp.ne.s32.totalorder %s56_s22, %s12478_s30  ;;  %p12484_p5 = scmp.lt.s32.totalorder %s12478_s30, %s12478_s30 }
  0x24   :  { %p12485_p6 = por %p12484_p5, %p12483_p4 }
  0x26   :  { %p12486_p7 = pnand %p12485_p6, %p12479_p3 }
  0x28   :  { %12489 = shalt.err (!%p12486_p7)
}
  0x29   :  { %s12956_s0 = smov 128   ;;  %s12957_s21 = smov 8  }
  0x2a   :  { %61 = dma.hbm_to_vmem [thread:$0]  %s17663_s3, 256, %s56_s22, [#allocation6], %s12956_s0, %s12956_s0, %s12957_s21  }
  0x2b   :  { %s17664_s26 = sld [smem:[#allocation69_spill]] }
  0x31   :  { %s12490_s27 = scalar_lea.hbm %s17664_s26, 256 }
  0x32   :  { %p12491_p8 = scmp.ne.s32.totalorder %s17664_s26, %s12490_s27  ;;  %p12494_p9 = scmp.lt.u32.totalorder %s12490_s27, %s17664_s26 }
  0x34   :  { %p12496_p10 = pnand %p12494_p9, %p12491_p8 }
  0x36   :  { %12499 = shalt.err (!%p12496_p10)
}
  0x37   :  { %s12500_s20 = scalar_lea.vmem %s13084_s24, 256  ;;  %p12505_p12 = scmp.lt.s32.totalorder %s13084_s24, %s13084_s24 }
  0x38   :  { %p12501_p11 = scmp.ne.s32.totalorder %s13084_s24, %s12500_s20  ;;  %p12506_p13 = scmp.lt.s32.totalorder %s12500_s20, %s12500_s20 }
  0x3a   :  { %p12507_p0 = por %p12506_p13, %p12505_p12 }
  0x3c   :  { %p12508_p1 = pnand %p12507_p0, %p12501_p11 }
  0x3e   :  { %12511 = shalt.err (!%p12508_p1)
}
  0x3f   :  { %85 = dma.hbm_to_vmem [thread:$0]  %s17664_s26, 256, %s13084_s24, [#allocation9], %s12956_s0, %s12956_s0, %s12957_s21  }
  0x40   :  { %s12958_s1 = smov [#allocation11]   ;;  %s12959_s2 = smov [#allocation14]  }
  0x41   :  { %s103_s23 = sshll.u32 %s12958_s1, 4  ;;  %s127_s25 = sshll.u32 %s12959_s2, 4  ;;  %s104_s23 = int_to_ptr.vmem [resolvable:$true] %s103_s23  ;;  %s13121_s25 = int_to_ptr.vmem [resolvable:$true] %s127_s25 }
  0x42   :  { %s12512_s28 = scalar_lea.hbm %s17541_s5, 256 }
  0x43   :  { %p12513_p2 = scmp.ne.s32.totalorder %s17541_s5, %s12512_s28  ;;  %p12516_p3 = scmp.lt.u32.totalorder %s12512_s28, %s17541_s5 }
  0x45   :  { %p12518_p4 = pnand %p12516_p3, %p12513_p2 }
  0x47   :  { %12521 = shalt.err (!%p12518_p4)
}
  0x48   :  { %s12522_s24 = scalar_lea.vmem %s104_s23, 256  ;;  %p12527_p6 = scmp.lt.s32.totalorder %s104_s23, %s104_s23 }
  0x49   :  { %p12523_p5 = scmp.ne.s32.totalorder %s104_s23, %s12522_s24  ;;  %p12528_p7 = scmp.lt.s32.totalorder %s12522_s24, %s12522_s24 }
  0x4b   :  { %p12529_p8 = por %p12528_p7, %p12527_p6 }
  0x4d   :  { %p12530_p9 = pnand %p12529_p8, %p12523_p5 }
  0x4f   :  { %12533 = shalt.err (!%p12530_p9)
}
  0x50   :  { %109 = dma.hbm_to_vmem [thread:$0]  %s17541_s5, 256, %s104_s23, [#allocation12], %s12956_s0, %s12956_s0, %s12957_s21  }
  0x51   :  { %s12534_s19 = scalar_lea.hbm %s17543_s7, 256 }
  0x52   :  { %p12535_p10 = scmp.ne.s32.totalorder %s17543_s7, %s12534_s19  ;;  %p12538_p11 = scmp.lt.u32.totalorder %s12534_s19, %s17543_s7 }
  0x54   :  { %p12540_p12 = pnand %p12538_p11, %p12535_p10 }
  0x56   :  { %12543 = shalt.err (!%p12540_p12)
}
  0x57   :  { %s12544_s4 = scalar_lea.vmem %s13121_s25, 256  ;;  %p12549_p0 = scmp.lt.s32.totalorder %s13121_s25, %s13121_s25 }
  0x58   :  { %p12545_p13 = scmp.ne.s32.totalorder %s13121_s25, %s12544_s4  ;;  %p12550_p1 = scmp.lt.s32.totalorder %s12544_s4, %s12544_s4 }
  0x5a   :  { %p12551_p2 = por %p12550_p1, %p12549_p0 }
  0x5c   :  { %p12552_p3 = pnand %p12551_p2, %p12545_p13 }
  0x5e   :  { %12555 = shalt.err (!%p12552_p3)
}
  0x5f   :  { %133 = dma.hbm_to_vmem [thread:$0]  %s17543_s7, 256, %s13121_s25, [#allocation15], %s12956_s0, %s12956_s0, %s12957_s21  }
  0x60   :  { %s12960_s29 = smov [#allocation17]   ;;  %s12961_s24 = smov [#allocation20]  }
  0x61   :  { %s151_s30 = sshll.u32 %s12960_s29, 4  ;;  %s175_s26 = sshll.u32 %s12961_s24, 4  ;;  %s152_s30 = int_to_ptr.vmem [resolvable:$true] %s151_s30  ;;  %s13158_s26 = int_to_ptr.vmem [resolvable:$true] %s175_s26 }
  0x62   :  { %s12556_s1 = scalar_lea.hbm %s17545_s9, 256 }
  0x63   :  { %p12557_p4 = scmp.ne.s32.totalorder %s17545_s9, %s12556_s1  ;;  %p12560_p5 = scmp.lt.u32.totalorder %s12556_s1, %s17545_s9 }
  0x65   :  { %p12562_p6 = pnand %p12560_p5, %p12557_p4 }
  0x67   :  { %12565 = shalt.err (!%p12562_p6)
}
  0x68   :  { %s12566_s7 = scalar_lea.vmem %s152_s30, 256  ;;  %p12571_p8 = scmp.lt.s32.totalorder %s152_s30, %s152_s30 }
  0x69   :  { %p12567_p7 = scmp.ne.s32.totalorder %s152_s30, %s12566_s7  ;;  %p12572_p9 = scmp.lt.s32.totalorder %s12566_s7, %s12566_s7 }
  0x6b   :  { %p12573_p10 = por %p12572_p9, %p12571_p8 }
  0x6d   :  { %p12574_p11 = pnand %p12573_p10, %p12567_p7 }
  0x6f   :  { %12577 = shalt.err (!%p12574_p11)
}
  0x70   :  { %157 = dma.hbm_to_vmem [thread:$0]  %s17545_s9, 256, %s152_s30, [#allocation18], %s12956_s0, %s12956_s0, %s12957_s21  }
  0x71   :  { %s12578_s23 = scalar_lea.hbm %s17547_s11, 256 }
  0x72   :  { %p12579_p12 = scmp.ne.s32.totalorder %s17547_s11, %s12578_s23  ;;  %p12582_p13 = scmp.lt.u32.totalorder %s12578_s23, %s17547_s11 }
  0x74   :  { %p12584_p0 = pnand %p12582_p13, %p12579_p12 }
  0x76   :  { %12587 = shalt.err (!%p12584_p0)
}
  0x77   :  { %s12588_s1 = scalar_lea.vmem %s13158_s26, 256  ;;  %p12593_p2 = scmp.lt.s32.totalorder %s13158_s26, %s13158_s26 }
  0x78   :  { %p12589_p1 = scmp.ne.s32.totalorder %s13158_s26, %s12588_s1  ;;  %p12594_p3 = scmp.lt.s32.totalorder %s12588_s1, %s12588_s1 }
  0x7a   :  { %p12595_p4 = por %p12594_p3, %p12593_p2 }
  0x7c   :  { %p12596_p5 = pnand %p12595_p4, %p12589_p1 }
  0x7e   :  { %12599 = shalt.err (!%p12596_p5)
}
  0x7f   :  { %181 = dma.hbm_to_vmem [thread:$0]  %s17547_s11, 256, %s13158_s26, [#allocation21], %s12956_s0, %s12956_s0, %s12957_s21  }
  0x80   :  { %s12962_s19 = smov [#allocation23]   ;;  %s12963_s27 = smov [#allocation26]  }
  0x81   :  { %s199_s2 = sshll.u32 %s12962_s19, 4  ;;  %s223_s20 = sshll.u32 %s12963_s27, 4  ;;  %s200_s2 = int_to_ptr.vmem [resolvable:$true] %s199_s2  ;;  %s13195_s20 = int_to_ptr.vmem [resolvable:$true] %s223_s20 }
  0x82   :  { %s12600_s28 = scalar_lea.hbm %s17549_s13, 256 }
  0x83   :  { %p12601_p6 = scmp.ne.s32.totalorder %s17549_s13, %s12600_s28  ;;  %p12604_p7 = scmp.lt.u32.totalorder %s12600_s28, %s17549_s13 }
  0x85   :  { %p12606_p8 = pnand %p12604_p7, %p12601_p6 }
  0x87   :  { %12609 = shalt.err (!%p12606_p8)
}
  0x88   :  { %s12610_s11 = scalar_lea.vmem %s200_s2, 256  ;;  %p12615_p10 = scmp.lt.s32.totalorder %s200_s2, %s200_s2 }
  0x89   :  { %p12611_p9 = scmp.ne.s32.totalorder %s200_s2, %s12610_s11  ;;  %p12616_p11 = scmp.lt.s32.totalorder %s12610_s11, %s12610_s11 }
  0x8b   :  { %p12617_p12 = por %p12616_p11, %p12615_p10 }
  0x8d   :  { %p12618_p13 = pnand %p12617_p12, %p12611_p9 }
  0x8f   :  { %12621 = shalt.err (!%p12618_p13)
}
  0x90   :  { %205 = dma.hbm_to_vmem [thread:$0]  %s17549_s13, 256, %s200_s2, [#allocation24], %s12956_s0, %s12956_s0, %s12957_s21  }
  0x91   :  { %s12622_s1 = scalar_lea.hbm %s17551_s15, 256 }
  0x92   :  { %p12623_p0 = scmp.ne.s32.totalorder %s17551_s15, %s12622_s1  ;;  %p12626_p1 = scmp.lt.u32.totalorder %s12622_s1, %s17551_s15 }
  0x94   :  { %p12628_p2 = pnand %p12626_p1, %p12623_p0 }
  0x96   :  { %12631 = shalt.err (!%p12628_p2)
}
  0x97   :  { %s12632_s7 = scalar_lea.vmem %s13195_s20, 256  ;;  %p12637_p4 = scmp.lt.s32.totalorder %s13195_s20, %s13195_s20 }
  0x98   :  { %p12633_p3 = scmp.ne.s32.totalorder %s13195_s20, %s12632_s7  ;;  %p12638_p5 = scmp.lt.s32.totalorder %s12632_s7, %s12632_s7 }
  0x9a   :  { %p12639_p6 = por %p12638_p5, %p12637_p4 }
  0x9c   :  { %p12640_p7 = pnand %p12639_p6, %p12633_p3 }
  0x9e   :  { %12643 = shalt.err (!%p12640_p7)
}
  0x9f   :  { %229 = dma.hbm_to_vmem [thread:$0]  %s17551_s15, 256, %s13195_s20, [#allocation27], %s12956_s0, %s12956_s0, %s12957_s21  }
  0xa0   :  { %s12964_s25 = smov [#allocation2]   ;;  %s12965_s4 = smov [#allocation7]  }
  0xa1   :  { %s43_s28 = sshll.u32 %s12964_s25, 4  ;;  %s67_s5 = sshll.u32 %s12965_s4, 4  ;;  %s44_s28 = int_to_ptr.vmem [resolvable:$true] %s43_s28  ;;  %s13232_s5 = int_to_ptr.vmem [resolvable:$true] %s67_s5 }
  0xa2   :  { %s17665_s11 = sld [smem:[#allocation66_spill]] }
  0xa8   :  { %s12644_s26 = scalar_lea.hbm %s17665_s11, 2048 }
  0xa9   :  { %p12645_p8 = scmp.ne.s32.totalorder %s17665_s11, %s12644_s26  ;;  %p12648_p9 = scmp.lt.u32.totalorder %s12644_s26, %s17665_s11 }
  0xab   :  { %p12650_p10 = pnand %p12648_p9, %p12645_p8 }
  0xad   :  { %12653 = shalt.err (!%p12650_p10)
}
  0xae   :  { %s12654_s15 = scalar_lea.vmem %s44_s28, 2048  ;;  %p12659_p12 = scmp.lt.s32.totalorder %s44_s28, %s44_s28 }
  0xaf   :  { %p12655_p11 = scmp.ne.s32.totalorder %s44_s28, %s12654_s15  ;;  %p12660_p13 = scmp.lt.s32.totalorder %s12654_s15, %s12654_s15 }
  0xb1   :  { %p12661_p0 = por %p12660_p13, %p12659_p12 }
  0xb3   :  { %p12662_p1 = pnand %p12661_p0, %p12655_p11 }
  0xb5   :  { %12665 = shalt.err (!%p12662_p1)
}
  0xb6   :  { %49 = dma.hbm_to_vmem [thread:$0]  %s17665_s11, 2048, %s44_s28, [#allocation3], %s12956_s0, %s12956_s0, %s12957_s21  }
  0xb7   :  { %s17666_s27 = sld [smem:[#allocation68_spill]] }
  0xbd   :  { %s12666_s7 = scalar_lea.hbm %s17666_s27, 2048 }
  0xbe   :  { %p12667_p2 = scmp.ne.s32.totalorder %s17666_s27, %s12666_s7  ;;  %p12670_p3 = scmp.lt.u32.totalorder %s12666_s7, %s17666_s27 }
  0xc0   :  { %p12672_p4 = pnand %p12670_p3, %p12667_p2 }
  0xc2   :  { %12675 = shalt.err (!%p12672_p4)
}
  0xc3   :  { %s12676_s23 = scalar_lea.vmem %s13232_s5, 2048  ;;  %p12681_p6 = scmp.lt.s32.totalorder %s13232_s5, %s13232_s5 }
  0xc4   :  { %p12677_p5 = scmp.ne.s32.totalorder %s13232_s5, %s12676_s23  ;;  %p12682_p7 = scmp.lt.s32.totalorder %s12676_s23, %s12676_s23 }
  0xc6   :  { %p12683_p8 = por %p12682_p7, %p12681_p6 }
  0xc8   :  { %p12684_p9 = pnand %p12683_p8, %p12677_p5 }
  0xca   :  { %12687 = shalt.err (!%p12684_p9)
}
  0xcb   :  { %s12966_s28 = smov 64   ;;  %s12967_s29 = smov 4  }
  0xcc   :  { %73 = dma.hbm_to_vmem [thread:$0]  %s17666_s27, 2048, %s13232_s5, [#allocation6], %s12966_s28, %s12966_s28, %s12967_s29  }
  0xcd   :  { %s12968_s24 = smov [#allocation10]   ;;  %s12969_s3 = smov [#allocation13]  }
  0xce   :  { %s91_s22 = sshll.u32 %s12968_s24, 4  ;;  %s115_s1 = sshll.u32 %s12969_s3, 4  ;;  %s92_s22 = int_to_ptr.vmem [resolvable:$true] %s91_s22  ;;  %s13269_s1 = int_to_ptr.vmem [resolvable:$true] %s115_s1 }
  0xcf   :  { %s17667_s9 = sld [smem:[#allocation70_spill]] }
  0xd5   :  { %s12688_s30 = scalar_lea.hbm %s17667_s9, 1536 }
  0xd6   :  { %p12689_p10 = scmp.ne.s32.totalorder %s17667_s9, %s12688_s30  ;;  %p12692_p11 = scmp.lt.u32.totalorder %s12688_s30, %s17667_s9 }
  0xd8   :  { %p12694_p12 = pnand %p12692_p11, %p12689_p10 }
  0xda   :  { %12697 = shalt.err (!%p12694_p12)
}
  0xdb   :  { %s12698_s5 = scalar_lea.vmem %s92_s22, 1536  ;;  %p12703_p0 = scmp.lt.s32.totalorder %s92_s22, %s92_s22 }
  0xdc   :  { %p12699_p13 = scmp.ne.s32.totalorder %s92_s22, %s12698_s5  ;;  %p12704_p1 = scmp.lt.s32.totalorder %s12698_s5, %s12698_s5 }
  0xde   :  { %p12705_p2 = por %p12704_p1, %p12703_p0 }
  0xe0   :  { %p12706_p3 = pnand %p12705_p2, %p12699_p13 }
  0xe2   :  { %12709 = shalt.err (!%p12706_p3)
}
  0xe3   :  { %97 = dma.hbm_to_vmem [thread:$0]  %s17667_s9, 1536, %s92_s22, [#allocation9], %s12966_s28, %s12966_s28, %s12967_s29  }
  0xe4   :  { %s12710_s11 = scalar_lea.hbm %s17542_s6, 1536 }
  0xe5   :  { %p12711_p4 = scmp.ne.s32.totalorder %s17542_s6, %s12710_s11  ;;  %p12714_p5 = scmp.lt.u32.totalorder %s12710_s11, %s17542_s6 }
  0xe7   :  { %p12716_p6 = pnand %p12714_p5, %p12711_p4 }
  0xe9   :  { %12719 = shalt.err (!%p12716_p6)
}
  0xea   :  { %s12720_s20 = scalar_lea.vmem %s13269_s1, 1536  ;;  %p12725_p8 = scmp.lt.s32.totalorder %s13269_s1, %s13269_s1 }
  0xeb   :  { %p12721_p7 = scmp.ne.s32.totalorder %s13269_s1, %s12720_s20  ;;  %p12726_p9 = scmp.lt.s32.totalorder %s12720_s20, %s12720_s20 }
  0xed   :  { %p12727_p10 = por %p12726_p9, %p12725_p8 }
  0xef   :  { %p12728_p11 = pnand %p12727_p10, %p12721_p7 }
  0xf1   :  { %12731 = shalt.err (!%p12728_p11)
}
  0xf2   :  { %121 = dma.hbm_to_vmem [thread:$0]  %s17542_s6, 1536, %s13269_s1, [#allocation12], %s12966_s28, %s12966_s28, %s12967_s29  }
  0xf3   :  { %s12970_s30 = smov [#allocation16]   ;;  %s12971_s7 = smov [#allocation19]  }
  0xf4   :  { %s139_s19 = sshll.u32 %s12970_s30, 4  ;;  %s163_s13 = sshll.u32 %s12971_s7, 4  ;;  %s140_s19 = int_to_ptr.vmem [resolvable:$true] %s139_s19  ;;  %s13306_s13 = int_to_ptr.vmem [resolvable:$true] %s163_s13 }
  0xf5   :  { %s12732_s27 = scalar_lea.hbm %s17544_s8, 1536 }
  0xf6   :  { %p12733_p12 = scmp.ne.s32.totalorder %s17544_s8, %s12732_s27  ;;  %p12736_p13 = scmp.lt.u32.totalorder %s12732_s27, %s17544_s8 }
  0xf8   :  { %p12738_p0 = pnand %p12736_p13, %p12733_p12 }
  0xfa   :  { %12741 = shalt.err (!%p12738_p0)
}
  0xfb   :  { %s12742_s6 = scalar_lea.vmem %s140_s19, 1536  ;;  %p12747_p2 = scmp.lt.s32.totalorder %s140_s19, %s140_s19 }
  0xfc   :  { %p12743_p1 = scmp.ne.s32.totalorder %s140_s19, %s12742_s6  ;;  %p12748_p3 = scmp.lt.s32.totalorder %s12742_s6, %s12742_s6 }
  0xfe   :  { %p12749_p4 = por %p12748_p3, %p12747_p2 }
 0x100   :  { %p12750_p5 = pnand %p12749_p4, %p12743_p1 }
 0x102   :  { %12753 = shalt.err (!%p12750_p5)
}
 0x103   :  { %145 = dma.hbm_to_vmem [thread:$0]  %s17544_s8, 1536, %s140_s19, [#allocation15], %s12966_s28, %s12966_s28, %s12967_s29  }
 0x104   :  { %s12754_s15 = scalar_lea.hbm %s17546_s10, 1536 }
 0x105   :  { %p12755_p6 = scmp.ne.s32.totalorder %s17546_s10, %s12754_s15  ;;  %p12758_p7 = scmp.lt.u32.totalorder %s12754_s15, %s17546_s10 }
 0x107   :  { %p12760_p8 = pnand %p12758_p7, %p12755_p6 }
 0x109   :  { %12763 = shalt.err (!%p12760_p8)
}
 0x10a   :  { %s12764_s7 = scalar_lea.vmem %s13306_s13, 1536  ;;  %p12769_p10 = scmp.lt.s32.totalorder %s13306_s13, %s13306_s13 }
 0x10b   :  { %p12765_p9 = scmp.ne.s32.totalorder %s13306_s13, %s12764_s7  ;;  %p12770_p11 = scmp.lt.s32.totalorder %s12764_s7, %s12764_s7 }
 0x10d   :  { %p12771_p12 = por %p12770_p11, %p12769_p10 }
 0x10f   :  { %p12772_p13 = pnand %p12771_p12, %p12765_p9 }
 0x111   :  { %12775 = shalt.err (!%p12772_p13)
}
 0x112   :  { %169 = dma.hbm_to_vmem [thread:$0]  %s17546_s10, 1536, %s13306_s13, [#allocation18], %s12966_s28, %s12966_s28, %s12967_s29  }
 0x113   :  { %s12972_s2 = smov [#allocation22]   ;;  %s12973_s27 = smov [#allocation25]  }
 0x114   :  { %s187_s5 = sshll.u32 %s12972_s2, 4  ;;  %s211_s25 = sshll.u32 %s12973_s27, 4  ;;  %s188_s5 = int_to_ptr.vmem [resolvable:$true] %s187_s5  ;;  %s13343_s25 = int_to_ptr.vmem [resolvable:$true] %s211_s25 }
 0x115   :  { %s12776_s11 = scalar_lea.hbm %s17548_s12, 1536 }
 0x116   :  { %p12777_p0 = scmp.ne.s32.totalorder %s17548_s12, %s12776_s11  ;;  %p12780_p1 = scmp.lt.u32.totalorder %s12776_s11, %s17548_s12 }
 0x118   :  { %p12782_p2 = pnand %p12780_p1, %p12777_p0 }
 0x11a   :  { %12785 = shalt.err (!%p12782_p2)
}
 0x11b   :  { %s12786_s10 = scalar_lea.vmem %s188_s5, 1536  ;;  %p12791_p4 = scmp.lt.s32.totalorder %s188_s5, %s188_s5 }
 0x11c   :  { %p12787_p3 = scmp.ne.s32.totalorder %s188_s5, %s12786_s10  ;;  %p12792_p5 = scmp.lt.s32.totalorder %s12786_s10, %s12786_s10 }
 0x11e   :  { %p12793_p6 = por %p12792_p5, %p12791_p4 }
 0x120   :  { %p12794_p7 = pnand %p12793_p6, %p12787_p3 }
 0x122   :  { %12797 = shalt.err (!%p12794_p7)
}
 0x123   :  { %193 = dma.hbm_to_vmem [thread:$0]  %s17548_s12, 1536, %s188_s5, [#allocation21], %s12966_s28, %s12966_s28, %s12967_s29  }
 0x124   :  { %s12798_s22 = scalar_lea.hbm %s17550_s14, 1536 }
 0x125   :  { %p12799_p8 = scmp.ne.s32.totalorder %s17550_s14, %s12798_s22  ;;  %p12802_p9 = scmp.lt.u32.totalorder %s12798_s22, %s17550_s14 }
 0x127   :  { %p12804_p10 = pnand %p12802_p9, %p12799_p8 }
 0x129   :  { %12807 = shalt.err (!%p12804_p10)
}
 0x12a   :  { %s12808_s19 = scalar_lea.vmem %s13343_s25, 1536  ;;  %p12813_p12 = scmp.lt.s32.totalorder %s13343_s25, %s13343_s25 }
 0x12b   :  { %p12809_p11 = scmp.ne.s32.totalorder %s13343_s25, %s12808_s19  ;;  %p12814_p13 = scmp.lt.s32.totalorder %s12808_s19, %s12808_s19 }
 0x12d   :  { %p12815_p0 = por %p12814_p13, %p12813_p12 }
 0x12f   :  { %p12816_p1 = pnand %p12815_p0, %p12809_p11 }
 0x131   :  { %12819 = shalt.err (!%p12816_p1)
}
 0x132   :  { %217 = dma.hbm_to_vmem [thread:$0]  %s17550_s14, 1536, %s13343_s25, [#allocation24], %s12966_s28, %s12966_s28, %s12967_s29  }
 0x133   :  { %s12974_s5 = smov [#allocation28]   ;;  %s12820_s11 = scalar_lea.hbm %s17552_s16, 1536 }
 0x134   :  { %s235_s27 = sshll.u32 %s12974_s5, 4  ;;  %p12821_p2 = scmp.ne.s32.totalorder %s17552_s16, %s12820_s11  ;;  %s236_s27 = int_to_ptr.vmem [resolvable:$true] %s235_s27 }
 0x135   :  { %p12824_p3 = scmp.lt.u32.totalorder %s12820_s11, %s17552_s16 }
 0x137   :  { %p12826_p4 = pnand %p12824_p3, %p12821_p2 }
 0x139   :  { %12829 = shalt.err (!%p12826_p4)
}
 0x13a   :  { %s12830_s10 = scalar_lea.vmem %s236_s27, 1536  ;;  %p12835_p6 = scmp.lt.s32.totalorder %s236_s27, %s236_s27 }
 0x13b   :  { %p12831_p5 = scmp.ne.s32.totalorder %s236_s27, %s12830_s10  ;;  %p12836_p7 = scmp.lt.s32.totalorder %s12830_s10, %s12830_s10 }
 0x13d   :  { %p12837_p8 = por %p12836_p7, %p12835_p6 }
 0x13f   :  { %p12838_p9 = pnand %p12837_p8, %p12831_p5 }
 0x141   :  { %12841 = shalt.err (!%p12838_p9)
}
 0x142   :  { %241 = dma.hbm_to_vmem [thread:$0]  %s17552_s16, 1536, %s236_s27, [#allocation27], %s12966_s28, %s12966_s28, %s12967_s29  }
 0x143   :  { %12930 = dma.done.wait [#allocation3], 2048  }
 0x144   :  { %12931 = vsyncadd [#allocation3], 4294965248 }
 0x145   :  { %12932 = dma.done.wait [#allocation6], 2304  }
 0x146   :  { %12933 = vsyncadd [#allocation6], 4294964992 }
 0x147   :  { %12934 = dma.done.wait [#allocation9], 1792  }
 0x148   :  { %12935 = vsyncadd [#allocation9], 4294965504 }
 0x149   :  { %12936 = dma.done.wait [#allocation12], 1792  }
 0x14a   :  { %12937 = vsyncadd [#allocation12], 4294965504 }
 0x14b   :  { %12938 = dma.done.wait [#allocation15], 1792  }
 0x14c   :  { %12939 = vsyncadd [#allocation15], 4294965504 }
 0x14d   :  { %12940 = dma.done.wait [#allocation18], 1792  }
 0x14e   :  { %12941 = vsyncadd [#allocation18], 4294965504 }
 0x14f   :  { %12942 = dma.done.wait [#allocation21], 1792  }
 0x150   :  { %12943 = vsyncadd [#allocation21], 4294965504 }
 0x151   :  { %12944 = dma.done.wait [#allocation24], 1792  }
 0x152   :  { %12945 = vsyncadd [#allocation24], 4294965504 }
 0x153   :  { %12946 = dma.done.wait [#allocation27], 1792  }
 0x154   :  { %12947 = vsyncadd [#allocation27], 4294965504  ;;  %v10750_v0 = vld [vmem:[#allocation7] sm:$0xff]   ;;  %v10751_v1 = vld [vmem:[#allocation7 + $0x8] sm:$0xff]   ;;  %vm509_vm0 = vcmask 523264   ;;  %vm8552_vm1 = vcmask 519168  }
 0x155   :  { %10117 = vmatprep.subr.bf16.mxu0 %v10750_v0  ;;  %10717 = vmatprep.subr.bf16.mxu1 %v10750_v0  ;;  %v10752_v2 = vld [vmem:[#allocation7 + $0x10] sm:$0xff]   ;;  %v295_v4 = vld [vmem:[#allocation2 + $0x8] sm:$0xff]  ;;  %v296_v12 = vld [vmem:[#allocation2 + $0x10] sm:$0xff]  ;;  %vm8665_vm2 = vcmask 1043968   ;;  %s12975_s16 = smov [#allocation30]   ;;  %s12976_s3 = smov [#allocation29]  }
 0x156   :  { %10118 = vmatpush3.bf16.msra.mxu0 %v10750_v0  ;;  %10721 = vmatpush3.bf16.msra.mxu1 %v10750_v0  ;;  %v294_v3 = vld [vmem:[#allocation2] sm:$0xff]  ;;  %v303_v7 = vld [vmem:[#allocation2 + $0x48] sm:$0xff]  ;;  %v297_v13 = vld [vmem:[#allocation2 + $0x18] sm:$0xff]  ;;  %s9163_s13 = sshll.u32 %s12975_s16, 4  ;;  %s9151_s15 = sshll.u32 %s12976_s3, 4  ;;  %s9164_s13 = int_to_ptr.vmem [resolvable:$true] %s9163_s13  ;;  %s17444_s15 = int_to_ptr.vmem [resolvable:$true] %s9151_s15 }
 0x157   :  { %10119 = vmatprep.subr.bf16.mxu0 %v10751_v1  ;;  %10718 = vmatprep.subr.bf16.mxu1 %v10751_v1  ;;  %v13395_v5 = vld [vmem:[#allocation5 + $0x1] ss:$0 sm:$0xff]  ;;  %v304_v14 = vld [vmem:[#allocation2 + $0x50] sm:$0xff]  ;;  %v10753_v17 = vld [vmem:[#allocation7 + $0x18] sm:$0xff]   ;;  %s12842_s20 = scalar_lea.vmem %s9164_s13, 2048  ;;  %p12847_p11 = scmp.lt.s32.totalorder %s9164_s13, %s9164_s13 }
 0x158   :  { %v302_v6 = vld [vmem:[#allocation2 + $0x40] sm:$0xff]  ;;  %v13398_v8 = vmul.f32 %v13395_v5, %v294_v3  ;;  %v13401_v9 = vmul.f32 %v13395_v5, %v295_v4  ;;  %v13407_v11 = vmul.f32 %v13395_v5, %v303_v7  ;;  %v13410_v15 = vmul.f32 %v13395_v5, %v296_v12  ;;  %v305_v23 = vld [vmem:[#allocation2 + $0x58] sm:$0xff]  ;;  %v299_v27 = vld [vmem:[#allocation2 + $0x28] sm:$0xff]  ;;  %p12843_p10 = scmp.ne.s32.totalorder %s9164_s13, %s12842_s20  ;;  %p12848_p12 = scmp.lt.s32.totalorder %s12842_s20, %s12842_s20 }
 0x159   :  { %v13404_v10 = vmul.f32 %v13395_v5, %v302_v6  ;;  %v13413_v16 = vmul.f32 %v13395_v5, %v297_v13  ;;  %v13418_v20 = vmul.f32 %v13395_v5, %v304_v14  ;;  %v298_v24 = vld [vmem:[#allocation2 + $0x20] sm:$0xff]  ;;  %v13425_v33 = vmul.f32 %v13395_v5, %v305_v23  ;;  %v307_v35 = vld [vmem:[#allocation2 + $0x68] sm:$0xff]  ;;  %v300_v41 = vld [vmem:[#allocation2 + $0x30] sm:$0xff] }
 0x15a   :  { %10120 = vmatpush3.bf16.msra.mxu0 %v10751_v1  ;;  %10722 = vmatpush3.bf16.msra.mxu1 %v10751_v1  ;;  %v352_v18 = vsub.f32 0.0, %v13398_v8  ;;  %v353_v19 = vsub.f32 0.0, %v13401_v9  ;;  %v361_v22 = vsub.f32 0.0, %v13407_v11  ;;  %v354_v30 = vsub.f32 0.0, %v13410_v15  ;;  %v306_v32 = vld [vmem:[#allocation2 + $0x60] sm:$0xff]  ;;  %v301_v44 = vld [vmem:[#allocation2 + $0x38] sm:$0xff]  ;;  %p12849_p13 = por %p12848_p12, %p12847_p11 }
 0x15b   :  { %10121 = vmatprep.subr.bf16.mxu0 %v10752_v2  ;;  %10719 = vmatprep.subr.bf16.mxu1 %v10752_v2  ;;  %v360_v21 = vsub.f32 0.0, %v13404_v10  ;;  %v355_v31 = vsub.f32 0.0, %v13413_v16  ;;  %v362_v34 = vsub.f32 0.0, %v13418_v20  ;;  %v13429_v38 = vmul.f32 %v13395_v5, %v298_v24  ;;  %v308_v50 = vld [vmem:[#allocation2 + $0x70] sm:$0xff]  ;;  %v309_v55 = vld [vmem:[#allocation2 + $0x78] sm:$0xff] }
 0x15c   :  { %v368_v25 = vmul.f32 1.442695, %v352_v18  ;;  %v370_v26 = vmul.f32 1.442695, %v353_v19  ;;  %v386_v29 = vmul.f32 1.442695, %v361_v22  ;;  %v13433_v42 = vmul.f32 %v13395_v5, %v299_v27  ;;  %p12850_p0 = pnand %p12849_p13, %p12843_p10 }
 0x15d   :  { %v384_v28 = vmul.f32 1.442695, %v360_v21  ;;  %v372_v36 = vmul.f32 1.442695, %v354_v30  ;;  %v374_v37 = vmul.f32 1.442695, %v355_v31  ;;  %v13437_v46 = vmul.f32 %v13395_v5, %v306_v32 }
 0x15e   :  { %10122 = vmatpush3.bf16.msra.mxu0 %v10752_v2  ;;  %10723 = vmatpush3.bf16.msra.mxu1 %v10752_v2  ;;  %10850 = vpow2.f32 %v368_v25  ;;  %v363_v39 = vsub.f32 0.0, %v13425_v33  ;;  %v388_v40 = vmul.f32 1.442695, %v362_v34  ;;  %v356_v43 = vsub.f32 0.0, %v13429_v38  ;;  %v13461_v21 = vld [vmem:[#allocation5] ss:$0 sm:$0xff] }
 0x15f   :  { %10123 = vmatprep.subr.bf16.mxu0 %v10753_v17  ;;  %10720 = vmatprep.subr.bf16.mxu1 %v10753_v17  ;;  %10852 = vpow2.f32 %v370_v26  ;;  %v13440_v47 = vmul.f32 %v13395_v5, %v307_v35  ;;  %v357_v48 = vsub.f32 0.0, %v13433_v42  ;;  %v364_v51 = vsub.f32 0.0, %v13437_v46 }
 0x160   :  { %10854 = vpow2.f32 %v384_v28  ;;  %v390_v45 = vmul.f32 1.442695, %v363_v39  ;;  %v376_v49 = vmul.f32 1.442695, %v356_v43  ;;  %v13446_v54 = vmul.f32 %v13395_v5, %v300_v41 }
 0x161   :  { %10856 = vpow2.f32 %v386_v29  ;;  %v378_v52 = vmul.f32 1.442695, %v357_v48  ;;  %v365_v53 = vsub.f32 0.0, %v13440_v47  ;;  %v392_v56 = vmul.f32 1.442695, %v364_v51 }
 0x162   :  { %10124 = vmatpush3.bf16.msra.mxu0 %v10753_v17  ;;  %10724 = vmatpush3.bf16.msra.mxu1 %v10753_v17  ;;  %10858 = vpow2.f32 %v372_v36  ;;  %v13449_v57 = vmul.f32 %v13395_v5, %v301_v44  ;;  %v13452_v58 = vmul.f32 %v13395_v5, %v308_v50  ;;  %v358_v60 = vsub.f32 0.0, %v13446_v54 }
 0x163   :  { %10860 = vpow2.f32 %v374_v37  ;;  %v394_v59 = vmul.f32 1.442695, %v365_v53  ;;  %v13457_v63 = vmul.f32 %v13395_v5, %v309_v55  ;;  %v336_v34 = vmul.f32 %v13461_v21, %v13398_v8 }
 0x164   :  { %10862 = vpow2.f32 %v388_v40  ;;  %v359_v62 = vsub.f32 0.0, %v13449_v57  ;;  %v380_v2 = vmul.f32 1.442695, %v358_v60  ;;  %v366_v7 = vsub.f32 0.0, %v13452_v58 }
 0x165   :  { %10864 = vpow2.f32 %v390_v45  ;;  %v367_v14 = vsub.f32 0.0, %v13457_v63  ;;  %v337_v37 = vmul.f32 %v13461_v21, %v13401_v9  ;;  %v344_v40 = vmul.f32 %v13461_v21, %v13404_v10 }
 0x166   :  { %10866 = vpow2.f32 %v376_v49  ;;  %v382_v6 = vmul.f32 1.442695, %v359_v62  ;;  %v396_v19 = vmul.f32 1.442695, %v366_v7  ;;  %v345_v44 = vmul.f32 %v13461_v21, %v13407_v11 }
 0x167   :  { %10868 = vpow2.f32 %v378_v52  ;;  %v398_v23 = vmul.f32 1.442695, %v367_v14  ;;  %v338_v48 = vmul.f32 %v13461_v21, %v13410_v15  ;;  %v339_v50 = vmul.f32 %v13461_v21, %v13413_v16 }
 0x168   :  { %v10851_v61 = vpop.eup %10850  ;;  %10870 = vpow2.f32 %v392_v56  ;;  %v346_v52 = vmul.f32 %v13461_v21, %v13418_v20  ;;  %v347_v56 = vmul.f32 %v13461_v21, %v13425_v33  ;;  %v340_v60 = vmul.f32 %v13461_v21, %v13429_v38 }
 0x169   :  { %v10853_v0 = vpop.eup %10852  ;;  %v400_v1 = vadd.f32 1.0, %v10851_v61  ;;  %10872 = vpow2.f32 %v394_v59  ;;  %v341_v20 = vmul.f32 %v13461_v21, %v13433_v42  ;;  %v348_v33 = vmul.f32 %v13461_v21, %v13437_v46 }
 0x16a   :  { %v10855_v3 = vpop.eup %10854  ;;  %v401_v4 = vadd.f32 1.0, %v10853_v0  ;;  %v349_v38 = vmul.f32 %v13461_v21, %v13440_v47 }
 0x16b   :  { %v10857_v12 = vpop.eup %10856  ;;  %10874 = vrcp.f32 %v400_v1  ;;  %v408_v13 = vadd.f32 1.0, %v10855_v3 }
 0x16c   :  { %v10859_v17 = vpop.eup %10858  ;;  %10876 = vrcp.f32 %v401_v4  ;;  %v409_v18 = vadd.f32 1.0, %v10857_v12 }
 0x16d   :  { %v10861_v5 = vpop.eup %10860  ;;  %10878 = vrcp.f32 %v408_v13  ;;  %v402_v22 = vadd.f32 1.0, %v10859_v17 }
 0x16e   :  { %v10863_v24 = vpop.eup %10862  ;;  %10880 = vrcp.f32 %v409_v18  ;;  %v403_v25 = vadd.f32 1.0, %v10861_v5 }
 0x16f   :  { %v10865_v26 = vpop.eup %10864  ;;  %10882 = vrcp.f32 %v402_v22  ;;  %v410_v27 = vadd.f32 1.0, %v10863_v24 }
 0x170   :  { %v10867_v28 = vpop.eup %10866  ;;  %10884 = vrcp.f32 %v403_v25  ;;  %v411_v29 = vadd.f32 1.0, %v10865_v26 }
 0x171   :  { %v10869_v30 = vpop.eup %10868  ;;  %10886 = vrcp.f32 %v410_v27  ;;  %v404_v31 = vadd.f32 1.0, %v10867_v28  ;;  %v342_v28 = vmul.f32 %v13461_v21, %v13446_v54 }
 0x172   :  { %v10871_v32 = vpop.eup %10870  ;;  %10888 = vrcp.f32 %v411_v29  ;;  %v405_v35 = vadd.f32 1.0, %v10869_v30  ;;  %v343_v29 = vmul.f32 %v13461_v21, %v13449_v57  ;;  %v350_v30 = vmul.f32 %v13461_v21, %v13452_v58  ;;  %v10754_v57 = vld [vmem:[#allocation7 + $0x20] sm:$0xff]   ;;  %v10755_v58 = vld [vmem:[#allocation7 + $0x28] sm:$0xff]  }
 0x173   :  { %v10873_v36 = vpop.eup %10872  ;;  %10890 = vrcp.f32 %v404_v31  ;;  %v412_v39 = vadd.f32 1.0, %v10871_v32  ;;  %v351_v32 = vmul.f32 %v13461_v21, %v13457_v63  ;;  %10141 = vmatprep.subr.bf16.mxu1 %v10754_v57  ;;  %v10756_v63 = vld [vmem:[#allocation7 + $0x30] sm:$0xff]   ;;  %v10757_v21 = vld [vmem:[#allocation7 + $0x38] sm:$0xff]  }
 0x174   :  { %10892 = vrcp.f32 %v405_v35  ;;  %v413_v41 = vadd.f32 1.0, %v10873_v36 }
 0x175   :  { %v10875_v43 = vpop.eup %10874  ;;  %10894 = vrcp.f32 %v412_v39 }
 0x176   :  { %v10877_v8 = vpop.eup %10876  ;;  %v448_v45 = vmul.f32 %v10875_v43, %v336_v34  ;;  %10896 = vrcp.f32 %v413_v41 }
 0x177   :  { %v10879_v9 = vpop.eup %10878  ;;  %v449_v49 = vmul.f32 %v10877_v8, %v337_v37  ;;  %10898 = vpow2.f32 %v380_v2 }
 0x178   :  { %v10881_v10 = vpop.eup %10880  ;;  %v456_v51 = vmul.f32 %v10879_v9, %v344_v40  ;;  %10900 = vpow2.f32 %v382_v6 }
 0x179   :  { %v10883_v11 = vpop.eup %10882  ;;  %v464_v53 = vpack.c.bf16 %v449_v49, %v448_v45  ;;  %v457_v55 = vmul.f32 %v10881_v10, %v345_v44  ;;  %10902 = vpow2.f32 %v396_v19  ;;  %v13503_v44 = vld [vmem:[#allocation5 + $0x2] ss:$0 sm:$0xff]  ;;  %v13505_v45 = vld [vmem:[#allocation5 + $0x4] ss:$0 sm:$0xff] }
 0x17a   :  { %v10885_v15 = vpop.eup %10884  ;;  %v450_v59 = vmul.f32 %v10883_v11, %v338_v48  ;;  %10904 = vpow2.f32 %v398_v23 }
 0x17b   :  { %v10887_v16 = vpop.eup %10886  ;;  %10125 = vmatprep.mubr.msk.bf16.mxu0 %vm509_vm0, %v464_v53  ;;  %v468_v61 = vpack.c.bf16 %v457_v55, %v456_v51  ;;  %v451_v62 = vmul.f32 %v10885_v15, %v339_v50 }
 0x17c   :  { %v10889_v0 = vpop.eup %10888  ;;  %v458_v1 = vmul.f32 %v10887_v16, %v346_v52 }
 0x17d   :  { %v10891_v2 = vpop.eup %10890  ;;  %10133 = vmatprep.mubr.msk.bf16.mxu1 %vm509_vm0, %v468_v61  ;;  %v465_v3 = vpack.c.bf16 %v451_v62, %v450_v59  ;;  %v459_v4 = vmul.f32 %v10889_v0, %v347_v56 }
 0x17e   :  { %v10893_v6 = vpop.eup %10892  ;;  %v452_v7 = vmul.f32 %v10891_v2, %v340_v60 }
 0x17f   :  { %v10895_v12 = vpop.eup %10894  ;;  %10126 = vmatmul.mubr.msk.bf16.vlgmr.msra.gmra.mrb[0].mxu0 %vm509_vm0, %v465_v3  ;;  %v469_v13 = vpack.c.bf16 %v459_v4, %v458_v1  ;;  %v453_v42 = vmul.f32 %v10893_v6, %v341_v20 }
 0x180   :  { %v10897_v14 = vpop.eup %10896  ;;  %v460_v17 = vmul.f32 %v10895_v12, %v348_v33 }
 0x181   :  { %v10899_v18 = vpop.eup %10898  ;;  %10134 = vmatmul.mubr.msk.bf16.vlgmr.msra.gmra.mrb[0].mxu1 %vm509_vm0, %v469_v13  ;;  %v466_v46 = vpack.c.bf16 %v453_v42, %v452_v7  ;;  %v461_v19 = vmul.f32 %v10897_v14, %v349_v38 }
 0x182   :  { %v10901_v5 = vpop.eup %10900  ;;  %v406_v22 = vadd.f32 1.0, %v10899_v18  ;;  %10142 = vmatpush3.bf16.msra.mxu1 %v10754_v57 }
 0x183   :  { %v10903_v23 = vpop.eup %10902  ;;  %10129 = vmatprep.mubr.msk.bf16.mxu0 %vm509_vm0, %v466_v46  ;;  %v470_v47 = vpack.c.bf16 %v461_v19, %v460_v17  ;;  %v407_v24 = vadd.f32 1.0, %v10901_v5  ;;  %10143 = vmatprep.subr.bf16.mxu1 %v10755_v58 }
 0x184   :  { %v10905_v25 = vpop.eup %10904  ;;  %10906 = vrcp.f32 %v406_v22  ;;  %v414_v26 = vadd.f32 1.0, %v10903_v23 }
 0x185   :  { %10137 = vmatprep.mubr.msk.bf16.mxu1 %vm509_vm0, %v470_v47  ;;  %10908 = vrcp.f32 %v407_v24  ;;  %v415_v27 = vadd.f32 1.0, %v10905_v25 }
 0x186   :  { %10910 = vrcp.f32 %v414_v26  ;;  %10144 = vmatpush3.bf16.msra.mxu1 %v10755_v58 }
 0x187   :  { %10912 = vrcp.f32 %v415_v27  ;;  %10145 = vmatprep.subr.bf16.mxu1 %v10756_v63 }
 0x18a   :  { %10146 = vmatpush3.bf16.msra.mxu1 %v10756_v63 }
 0x18b   :  { %10147 = vmatprep.subr.bf16.mxu1 %v10757_v21 }
 0x18e   :  { %v10907_v31 = vpop.eup %10906  ;;  %10148 = vmatpush3.bf16.msra.mxu1 %v10757_v21 }
 0x18f   :  { %v10909_v34 = vpop.eup %10908  ;;  %v454_v35 = vmul.f32 %v10907_v31, %v342_v28 }
 0x190   :  { %v10911_v36 = vpop.eup %10910  ;;  %v455_v37 = vmul.f32 %v10909_v34, %v343_v29 }
 0x191   :  { %v10913_v39 = vpop.eup %10912  ;;  %v462_v40 = vmul.f32 %v10911_v36, %v350_v30 }
 0x192   :  { %v467_v41 = vpack.c.bf16 %v455_v37, %v454_v35  ;;  %v463_v43 = vmul.f32 %v10913_v39, %v351_v32 }
 0x194   :  { %10130 = vmatmul.mubr.msk.bf16.gmra.mrb[4].mxu0 %vm509_vm0, %v467_v41  ;;  %v471_v54 = vpack.c.bf16 %v463_v43, %v462_v40 }
 0x196   :  { %10138 = vmatmul.mubr.msk.bf16.gmra.mrb[4].mxu1 %vm509_vm0, %v471_v54 }
 0x252   :  { %v10127_v8 = vpop.f32.mrb[0].mxu0 }
 0x253   :  { %v577_v48 = vadd.f32 %v10127_v8, %v13503_v44  ;;  %v568_v9 = vpop.f32.mrb[1].mxu0 }
 0x254   :  { %v10135_v49 = vpop.f32.mrb[0].mxu1  ;;  %v569_v50 = vadd.f32 %v13503_v44, %v568_v9  ;;  %v10128_v10 = vpop.f32.mrb[2].mxu0 }
 0x255   :  { %v13510_v51 = vmul.f32 %v13505_v45, %v577_v48  ;;  %v609_v52 = vadd.f32 %v10135_v49, %v13503_v44  ;;  %v600_v11 = vpop.f32.mrb[1].mxu1  ;;  %v580_v53 = vadd.f32 %v10128_v10, %v13503_v44  ;;  %v571_v55 = vpop.f32.mrb[3].mxu0 }
 0x256   :  { %v13515_v56 = vmul.f32 %v13505_v45, %v569_v50  ;;  %v601_v15 = vadd.f32 %v13503_v44, %v600_v11  ;;  %v10136_v59 = vpop.f32.mrb[2].mxu1  ;;  %v572_v62 = vadd.f32 %v13503_v44, %v571_v55 }
 0x257   :  { %v675_v60 = vsub.f32 0.0, %v13510_v51  ;;  %v13520_v16 = vmul.f32 %v13505_v45, %v609_v52  ;;  %v13523_v61 = vmul.f32 %v13505_v45, %v580_v53  ;;  %v603_v20 = vpop.f32.mrb[3].mxu1  ;;  %v612_v33 = vadd.f32 %v10136_v59, %v13503_v44 }
 0x258   :  { %v673_v0 = vsub.f32 0.0, %v13515_v56  ;;  %v13528_v1 = vmul.f32 %v13505_v45, %v601_v15  ;;  %v13538_v13 = vmul.f32 %v13505_v45, %v572_v62  ;;  %v604_v17 = vadd.f32 %v13503_v44, %v603_v20 }
 0x259   :  { %v693_v2 = vmul.f32 1.442695, %v675_v60  ;;  %v683_v3 = vsub.f32 0.0, %v13520_v16  ;;  %v676_v6 = vsub.f32 0.0, %v13523_v61  ;;  %v13535_v12 = vmul.f32 %v13505_v45, %v612_v33 }
 0x25a   :  { %v689_v4 = vmul.f32 1.442695, %v673_v0  ;;  %v681_v38 = vsub.f32 0.0, %v13528_v1  ;;  %v674_v46 = vsub.f32 0.0, %v13538_v13  ;;  %v13544_v19 = vmul.f32 %v13505_v45, %v604_v17 }
 0x25b   :  { %10914 = vpow2.f32 %v693_v2  ;;  %v709_v7 = vmul.f32 1.442695, %v683_v3  ;;  %v695_v14 = vmul.f32 1.442695, %v676_v6  ;;  %v684_v18 = vsub.f32 0.0, %v13535_v12 }
 0x25c   :  { %10916 = vpow2.f32 %v689_v4  ;;  %v705_v42 = vmul.f32 1.442695, %v681_v38  ;;  %v691_v22 = vmul.f32 1.442695, %v674_v46  ;;  %v682_v23 = vsub.f32 0.0, %v13544_v19 }
 0x25d   :  { %10918 = vpow2.f32 %v709_v7  ;;  %v711_v5 = vmul.f32 1.442695, %v684_v18  ;;  %v13572_v38 = vld [vmem:[#allocation5 + $0x3] ss:$0 sm:$0xff] }
 0x25e   :  { %10920 = vpow2.f32 %v705_v42  ;;  %v707_v47 = vmul.f32 1.442695, %v682_v23 }
 0x25f   :  { %10922 = vpow2.f32 %v695_v14 }
 0x260   :  { %10924 = vpow2.f32 %v711_v5 }
 0x261   :  { %10926 = vpow2.f32 %v691_v22 }
 0x262   :  { %10928 = vpow2.f32 %v707_v47  ;;  %v659_v47 = vmul.f32 %v13572_v38, %v13510_v51 }
 0x265   :  { %v10915_v24 = vpop.eup %10914 }
 0x266   :  { %v10917_v25 = vpop.eup %10916  ;;  %v723_v26 = vadd.f32 1.0, %v10915_v24  ;;  %v660_v24 = vmul.f32 %v13572_v38, %v13523_v61 }
 0x267   :  { %v10919_v27 = vpop.eup %10918  ;;  %v721_v28 = vadd.f32 1.0, %v10917_v25  ;;  %v10131_v29 = vpop.f32.mrb[4].mxu0 }
 0x268   :  { %v10921_v30 = vpop.eup %10920  ;;  %v731_v31 = vadd.f32 1.0, %v10919_v27  ;;  %v593_v32 = vadd.f32 %v10131_v29, %v13503_v44  ;;  %v584_v34 = vpop.f32.mrb[5].mxu0  ;;  %10930 = vrcp.f32 %v723_v26  ;;  %v667_v26 = vmul.f32 %v13572_v38, %v13520_v16 }
 0x269   :  { %v10923_v35 = vpop.eup %10922  ;;  %v729_v36 = vadd.f32 1.0, %v10921_v30  ;;  %v10139_v37 = vpop.f32.mrb[4].mxu1  ;;  %v585_v39 = vadd.f32 %v13503_v44, %v584_v34  ;;  %10932 = vrcp.f32 %v721_v28  ;;  %v657_v27 = vmul.f32 %v13572_v38, %v13515_v56 }
 0x26a   :  { %v10132_v40 = vpop.f32.mrb[6].mxu0  ;;  %v724_v41 = vadd.f32 1.0, %v10923_v35  ;;  %v13550_v43 = vmul.f32 %v13505_v45, %v593_v32  ;;  %v625_v54 = vadd.f32 %v10139_v37, %v13503_v44  ;;  %v616_v57 = vpop.f32.mrb[5].mxu1  ;;  %10934 = vrcp.f32 %v731_v31 }
 0x26b   :  { %v587_v58 = vpop.f32.mrb[7].mxu0  ;;  %v10925_v63 = vpop.eup %10924  ;;  %v13554_v21 = vmul.f32 %v13505_v45, %v585_v39  ;;  %v617_v8 = vadd.f32 %v13503_v44, %v616_v57  ;;  %v596_v48 = vadd.f32 %v10132_v40, %v13503_v44  ;;  %v668_v28 = vmul.f32 %v13572_v38, %v13535_v12 }
 0x26c   :  { %v10140_v9 = vpop.f32.mrb[6].mxu1  ;;  %v10927_v49 = vpop.eup %10926  ;;  %10936 = vrcp.f32 %v724_v41  ;;  %v732_v50 = vadd.f32 1.0, %v10925_v63  ;;  %v679_v10 = vsub.f32 0.0, %v13550_v43  ;;  %v13560_v53 = vmul.f32 %v13505_v45, %v625_v54 }
 0x26d   :  { %v619_v52 = vpop.f32.mrb[7].mxu1  ;;  %10938 = vrcp.f32 %v729_v36  ;;  %v722_v11 = vadd.f32 1.0, %v10927_v49  ;;  %v677_v55 = vsub.f32 0.0, %v13554_v21  ;;  %v10929_v15 = vpop.eup %10928  ;;  %v13564_v60 = vmul.f32 %v13505_v45, %v617_v8 }
 0x26e   :  { %10940 = vrcp.f32 %v732_v50  ;;  %v701_v59 = vmul.f32 1.442695, %v679_v10  ;;  %v13567_v62 = vmul.f32 %v13505_v45, %v596_v48  ;;  %v730_v20 = vadd.f32 1.0, %v10929_v15 }
 0x26f   :  { %10942 = vrcp.f32 %v722_v11  ;;  %v687_v0 = vsub.f32 0.0, %v13560_v53  ;;  %v697_v33 = vmul.f32 1.442695, %v677_v55  ;;  %v685_v2 = vsub.f32 0.0, %v13564_v60 }
 0x270   :  { %10944 = vpow2.f32 %v701_v59  ;;  %v680_v4 = vsub.f32 0.0, %v13567_v62  ;;  %v628_v7 = vadd.f32 %v10140_v9, %v13503_v44  ;;  %v588_v42 = vadd.f32 %v13503_v44, %v587_v58 }
 0x271   :  { %10946 = vrcp.f32 %v730_v20  ;;  %v717_v3 = vmul.f32 1.442695, %v687_v0  ;;  %v713_v6 = vmul.f32 1.442695, %v685_v2  ;;  %v620_v18 = vadd.f32 %v13503_v44, %v619_v52 }
 0x272   :  { %10948 = vpow2.f32 %v697_v33  ;;  %v10931_v14 = vpop.eup %10930  ;;  %v703_v17 = vmul.f32 1.442695, %v680_v4  ;;  %v13578_v5 = vmul.f32 %v13505_v45, %v628_v7  ;;  %v13581_v22 = vmul.f32 %v13505_v45, %v588_v42 }
 0x273   :  { %10950 = vpow2.f32 %v717_v3  ;;  %v10933_v46 = vpop.eup %10932  ;;  %v13588_v25 = vmul.f32 %v13505_v45, %v620_v18  ;;  %v771_v30 = vmul.f32 %v10931_v14, %v659_v47  ;;  %v665_v16 = vmul.f32 %v13572_v38, %v13528_v1 }
 0x274   :  { %10952 = vpow2.f32 %v713_v6  ;;  %v10935_v23 = vpop.eup %10934  ;;  %v688_v29 = vsub.f32 0.0, %v13578_v5  ;;  %v678_v61 = vsub.f32 0.0, %v13581_v22  ;;  %v658_v56 = vmul.f32 %v13572_v38, %v13538_v13 }
 0x275   :  { %10954 = vpow2.f32 %v703_v17  ;;  %v686_v45 = vsub.f32 0.0, %v13588_v25  ;;  %v13599_v34 = vmul.f32 %v10935_v23, %v667_v26  ;;  %v769_v54 = vmul.f32 %v10933_v46, %v657_v27 }
 0x276   :  { %v10937_v44 = vpop.eup %10936  ;;  %v719_v35 = vmul.f32 1.442695, %v688_v29  ;;  %v699_v39 = vmul.f32 1.442695, %v678_v61  ;;  %v666_v58 = vmul.f32 %v13572_v38, %v13544_v19  ;;  %v663_v7 = vmul.f32 %v13572_v38, %v13550_v43 }
 0x277   :  { %v10939_v51 = vpop.eup %10938  ;;  %v772_v31 = vmul.f32 %v10937_v44, %v660_v24  ;;  %v715_v40 = vmul.f32 1.442695, %v686_v45  ;;  %v664_v42 = vmul.f32 %v13572_v38, %v13567_v62  ;;  %v671_v44 = vmul.f32 %v13572_v38, %v13560_v53 }
 0x278   :  { %v10941_v32 = vpop.eup %10940  ;;  %10956 = vpow2.f32 %v719_v35  ;;  %v13609_v8 = vmul.f32 %v10939_v51, %v665_v16  ;;  %v672_v26 = vmul.f32 %v13572_v38, %v13578_v5  ;;  %v661_v43 = vmul.f32 %v13572_v38, %v13554_v21 }
 0x279   :  { %v10943_v12 = vpop.eup %10942  ;;  %v786_v36 = vpack.c.bf16 %v772_v31, %v771_v30  ;;  %v13605_v37 = vmul.f32 %v10941_v32, %v668_v28  ;;  %10958 = vpow2.f32 %v699_v39  ;;  %v662_v62 = vmul.f32 %v13572_v38, %v13581_v22  ;;  %v10760_v22 = vld [vmem:[#allocation7 + $0x50] sm:$0xff]  }
 0x27a   :  { %v10945_v41 = vpop.eup %10944  ;;  %v770_v57 = vmul.f32 %v10943_v12, %v658_v56  ;;  %10960 = vpow2.f32 %v715_v40  ;;  %v669_v51 = vmul.f32 %v13572_v38, %v13564_v60  ;;  %v670_v31 = vmul.f32 %v13572_v38, %v13588_v25  ;;  %v10758_v60 = vld [vmem:[#allocation7 + $0x40] sm:$0xff]   ;;  %v10759_v38 = vld [vmem:[#allocation7 + $0x48] sm:$0xff]   ;;  %v10761_v25 = vld [vmem:[#allocation7 + $0x58] sm:$0xff]  }
 0x27b   :  { %v10947_v63 = vpop.eup %10946  ;;  %v790_v1 = vpack.c.bf16 %v13605_v37, %v13599_v34  ;;  %v727_v9 = vadd.f32 1.0, %v10945_v41  ;;  %10165 = vmatprep.subr.bf16.mxu0 %v10758_v60  ;;  %v13638_v56 = vld [vmem:[#allocation5 + $0x5] ss:$0 sm:$0xff]  ;;  %v13641_v37 = vld [vmem:[#allocation5 + $0x7] ss:$0 sm:$0xff]  ;;  %v12450_v41 = vld [vmem:[#allocation2 + $0x10] sm:$0xff] }
 0x27c   :  { %v10949_v13 = vpop.eup %10948  ;;  %v778_v48 = vmul.f32 %v10947_v63, %v666_v58  ;;  %v785_v49 = vpack.c.bf16 %v770_v57, %v769_v54  ;;  %10166 = vmatpush3.bf16.msra.mxu0 %v10758_v60  ;;  %v12451_v63 = vld [vmem:[#allocation2] sm:$0xff] }
 0x27d   :  { %v10951_v50 = vpop.eup %10950  ;;  %10962 = vrcp.f32 %v727_v9  ;;  %v725_v11 = vadd.f32 1.0, %v10949_v13  ;;  %10167 = vmatprep.subr.bf16.mxu0 %v10759_v38 }
 0x27e   :  { %v10953_v10 = vpop.eup %10952  ;;  %10149 = vmatprep.mubr.msk.bf16.mxu1 %vm509_vm0, %v785_v49  ;;  %v789_v52 = vpack.c.bf16 %v778_v48, %v13609_v8  ;;  %v735_v15 = vadd.f32 1.0, %v10951_v50  ;;  %v12452_v48 = vld [vmem:[#allocation2 + $0x18] sm:$0xff]  ;;  %v12453_v50 = vld [vmem:[#allocation2 + $0x8] sm:$0xff] }
 0x27f   :  { %v10955_v19 = vpop.eup %10954  ;;  %10150 = vmatmul.mubr.msk.bf16.vlgmr.msra.gmra.mrb[8].mxu1 %vm509_vm0, %v786_v36  ;;  %v733_v59 = vadd.f32 1.0, %v10953_v10 }
 0x280   :  { %v728_v55 = vadd.f32 1.0, %v10955_v19  ;;  %10168 = vmatpush3.bf16.msra.mxu0 %v10759_v38 }
 0x281   :  { %10169 = vmatprep.subr.bf16.mxu0 %v10760_v22 }
 0x282   :  { %10964 = vrcp.f32 %v728_v55  ;;  %v10957_v20 = vpop.eup %10956 }
 0x283   :  { %10966 = vrcp.f32 %v725_v11  ;;  %v10959_v0 = vpop.eup %10958  ;;  %v736_v33 = vadd.f32 1.0, %v10957_v20 }
 0x284   :  { %10968 = vrcp.f32 %v735_v15  ;;  %v10961_v2 = vpop.eup %10960  ;;  %v726_v3 = vadd.f32 1.0, %v10959_v0  ;;  %10170 = vmatpush3.bf16.msra.mxu0 %v10760_v22 }
 0x285   :  { %10970 = vrcp.f32 %v733_v59  ;;  %v734_v4 = vadd.f32 1.0, %v10961_v2  ;;  %10171 = vmatprep.subr.bf16.mxu0 %v10761_v25 }
 0x286   :  { %10972 = vrcp.f32 %v736_v33 }
 0x287   :  { %10974 = vrcp.f32 %v726_v3  ;;  %v10963_v6 = vpop.eup %10962 }
 0x288   :  { %10976 = vrcp.f32 %v734_v4  ;;  %v775_v17 = vmul.f32 %v10963_v6, %v663_v7  ;;  %10172 = vmatpush3.bf16.msra.mxu0 %v10761_v25 }
 0x28c   :  { %v10965_v14 = vpop.eup %10964 }
 0x28d   :  { %v776_v18 = vmul.f32 %v10965_v14, %v664_v42  ;;  %v10967_v46 = vpop.eup %10966 }
 0x28e   :  { %v10969_v23 = vpop.eup %10968  ;;  %v773_v61 = vmul.f32 %v10967_v46, %v661_v43 }
 0x28f   :  { %v788_v47 = vpack.c.bf16 %v776_v18, %v775_v17  ;;  %v10971_v24 = vpop.eup %10970  ;;  %v783_v29 = vmul.f32 %v10969_v23, %v671_v44 }
 0x290   :  { %v10973_v27 = vpop.eup %10972  ;;  %v781_v5 = vmul.f32 %v10971_v24, %v669_v51 }
 0x291   :  { %v10975_v28 = vpop.eup %10974  ;;  %v784_v30 = vmul.f32 %v10973_v27, %v672_v26  ;;  %v12454_v26 = vld [vmem:[#allocation2 + $0x30] sm:$0xff] }
 0x292   :  { %v10977_v53 = vpop.eup %10976  ;;  %v774_v45 = vmul.f32 %v10975_v28, %v662_v62  ;;  %v12455_v28 = vld [vmem:[#allocation2 + $0x20] sm:$0xff] }
 0x293   :  { %v782_v32 = vmul.f32 %v10977_v53, %v670_v31  ;;  %v792_v34 = vpack.c.bf16 %v784_v30, %v783_v29  ;;  %v13670_v30 = vld [vmem:[#allocation5 + $0x6] ss:$0 sm:$0xff]  ;;  %v12456_v53 = vld [vmem:[#allocation2 + $0x38] sm:$0xff] }
 0x294   :  { %v787_v16 = vpack.c.bf16 %v774_v45, %v773_v61 }
 0x295   :  { %v791_v21 = vpack.c.bf16 %v782_v32, %v781_v5  ;;  %v12457_v5 = vld [vmem:[#allocation2 + $0x28] sm:$0xff] }
 0x296   :  { %10153 = vmatprep.mubr.msk.bf16.mxu1 %vm509_vm0, %v787_v16 }
 0x297   :  { %10154 = vmatmul.mubr.msk.bf16.gmra.mrb[12].mxu1 %vm509_vm0, %v788_v47 }
 0x298   :  { %10157 = vmatprep.mubr.msk.bf16.mxu1 %vm509_vm0, %v789_v52 }
 0x29f   :  { %10158 = vmatmul.mubr.msk.bf16.gmra.mrb[16].mxu1 %vm509_vm0, %v790_v1 }
 0x2a0   :  { %10161 = vmatprep.mubr.msk.bf16.mxu1 %vm509_vm0, %v791_v21 }
 0x2a7   :  { %10162 = vmatmul.mubr.msk.bf16.gmra.mrb[20].mxu1 %vm509_vm0, %v792_v34 }
 0x352   :  { %v10151_v35 = vpop.f32.mrb[8].mxu1 }
 0x353   :  { %v898_v12 = vadd.f32 %v10151_v35, %v13638_v56  ;;  %v889_v36 = vpop.f32.mrb[9].mxu1 }
 0x354   :  { %v890_v39 = vadd.f32 %v13638_v56, %v889_v36  ;;  %v10152_v40 = vpop.f32.mrb[10].mxu1 }
 0x355   :  { %v13644_v54 = vadd.f32 %v12450_v41, %v898_v12  ;;  %v901_v57 = vadd.f32 %v10152_v40, %v13638_v56  ;;  %v892_v58 = vpop.f32.mrb[11].mxu1 }
 0x356   :  { %v13647_v8 = vadd.f32 %v12451_v63, %v890_v39  ;;  %v893_v1 = vadd.f32 %v13638_v56, %v892_v58 }
 0x357   :  { %v976_v13 = vmul.f32 %v13641_v37, %v13644_v54  ;;  %v13652_v9 = vadd.f32 %v12452_v48, %v901_v57 }
 0x358   :  { %v974_v49 = vmul.f32 %v13641_v37, %v13647_v8  ;;  %v13656_v10 = vadd.f32 %v12453_v50, %v893_v1 }
 0x359   :  { %v1012_v52 = vsub.f32 0.0, %v976_v13  ;;  %v977_v19 = vmul.f32 %v13641_v37, %v13652_v9  ;;  %v996_v21 = vmul.f32 %v13670_v30, %v976_v13 }
 0x35a   :  { %v1010_v11 = vsub.f32 0.0, %v974_v49  ;;  %v975_v55 = vmul.f32 %v13641_v37, %v13656_v10  ;;  %v994_v35 = vmul.f32 %v13670_v30, %v974_v49  ;;  %v12458_v49 = vld [vmem:[#allocation2 + $0x50] sm:$0xff] }
 0x35b   :  { %v1030_v15 = vmul.f32 1.442695, %v1012_v52  ;;  %v1013_v59 = vsub.f32 0.0, %v977_v19  ;;  %v997_v57 = vmul.f32 %v13670_v30, %v977_v19 }
 0x35c   :  { %v1026_v20 = vmul.f32 1.442695, %v1010_v11  ;;  %v1011_v0 = vsub.f32 0.0, %v975_v55  ;;  %v995_v58 = vmul.f32 %v13670_v30, %v975_v55 }
 0x35d   :  { %10978 = vpow2.f32 %v1030_v15  ;;  %v1032_v33 = vmul.f32 1.442695, %v1013_v59 }
 0x35e   :  { %10980 = vpow2.f32 %v1026_v20  ;;  %v1028_v2 = vmul.f32 1.442695, %v1011_v0 }
 0x35f   :  { %10982 = vpow2.f32 %v1032_v33 }
 0x360   :  { %10984 = vpow2.f32 %v1028_v2 }
 0x367   :  { %v10979_v3 = vpop.eup %10978 }
 0x368   :  { %v10981_v4 = vpop.eup %10980  ;;  %v1060_v6 = vadd.f32 1.0, %v10979_v3 }
 0x369   :  { %v10983_v7 = vpop.eup %10982  ;;  %v1058_v42 = vadd.f32 1.0, %v10981_v4  ;;  %v12459_v4 = vld [vmem:[#allocation2 + $0x40] sm:$0xff] }
 0x36a   :  { %v10985_v14 = vpop.eup %10984  ;;  %10986 = vrcp.f32 %v1060_v6  ;;  %v1061_v17 = vadd.f32 1.0, %v10983_v7  ;;  %v10155_v46 = vpop.f32.mrb[12].mxu1 }
 0x36b   :  { %10988 = vrcp.f32 %v1058_v42  ;;  %v1059_v18 = vadd.f32 1.0, %v10985_v14  ;;  %v914_v23 = vadd.f32 %v10155_v46, %v13638_v56  ;;  %v905_v47 = vpop.f32.mrb[13].mxu1  ;;  %v12460_v14 = vld [vmem:[#allocation2 + $0x58] sm:$0xff] }
 0x36c   :  { %10990 = vrcp.f32 %v1061_v17  ;;  %v906_v24 = vadd.f32 %v13638_v56, %v905_v47  ;;  %v10156_v44 = vpop.f32.mrb[14].mxu1  ;;  %v12461_v47 = vld [vmem:[#allocation2 + $0x48] sm:$0xff] }
 0x36d   :  { %10992 = vrcp.f32 %v1059_v18  ;;  %v13664_v27 = vadd.f32 %v12454_v26, %v914_v23  ;;  %v917_v43 = vadd.f32 %v10156_v44, %v13638_v56  ;;  %v908_v62 = vpop.f32.mrb[15].mxu1 }
 0x36e   :  { %v13667_v29 = vadd.f32 %v12455_v28, %v906_v24  ;;  %v909_v51 = vadd.f32 %v13638_v56, %v908_v62 }
 0x36f   :  { %v13674_v31 = vmul.f32 %v13641_v37, %v13664_v27  ;;  %v13676_v61 = vadd.f32 %v12456_v53, %v917_v43 }
 0x370   :  { %v13680_v45 = vmul.f32 %v13641_v37, %v13667_v29  ;;  %v13682_v32 = vadd.f32 %v12457_v5, %v909_v51 }
 0x371   :  { %v1016_v34 = vsub.f32 0.0, %v13674_v31  ;;  %v13687_v16 = vmul.f32 %v13641_v37, %v13676_v61 }
 0x372   :  { %v1014_v60 = vsub.f32 0.0, %v13680_v45  ;;  %v13693_v38 = vmul.f32 %v13641_v37, %v13682_v32  ;;  %v10159_v22 = vpop.f32.mrb[16].mxu1 }
 0x373   :  { %v1038_v12 = vmul.f32 1.442695, %v1016_v34  ;;  %v1017_v36 = vsub.f32 0.0, %v13687_v16  ;;  %v930_v39 = vadd.f32 %v10159_v22, %v13638_v56  ;;  %v921_v40 = vpop.f32.mrb[17].mxu1 }
 0x374   :  { %v10987_v25 = vpop.eup %10986  ;;  %v1034_v63 = vmul.f32 1.442695, %v1014_v60  ;;  %v1015_v1 = vsub.f32 0.0, %v13693_v38  ;;  %v10160_v13 = vpop.f32.mrb[18].mxu1  ;;  %v922_v19 = vadd.f32 %v13638_v56, %v921_v40  ;;  %v12462_v60 = vld [vmem:[#allocation2 + $0x70] sm:$0xff] }
 0x375   :  { %v10989_v41 = vpop.eup %10988  ;;  %10994 = vpow2.f32 %v1038_v12  ;;  %v1040_v52 = vmul.f32 1.442695, %v1017_v36  ;;  %v13701_v11 = vadd.f32 %v12458_v49, %v930_v39  ;;  %v924_v15 = vpop.f32.mrb[19].mxu1  ;;  %v933_v2 = vadd.f32 %v10160_v13, %v13638_v56  ;;  %v12463_v36 = vld [vmem:[#allocation2 + $0x60] sm:$0xff] }
 0x376   :  { %v10991_v48 = vpop.eup %10990  ;;  %v1106_v50 = vmul.f32 %v10989_v41, %v994_v35  ;;  %10996 = vpow2.f32 %v1034_v63  ;;  %v1036_v0 = vmul.f32 1.442695, %v1015_v1  ;;  %v1108_v3 = vmul.f32 %v10987_v25, %v996_v21 }
 0x377   :  { %v10993_v59 = vpop.eup %10992  ;;  %v1109_v20 = vmul.f32 %v10991_v48, %v997_v57  ;;  %10998 = vpow2.f32 %v1040_v52  ;;  %v13706_v55 = vmul.f32 %v13641_v37, %v13701_v11  ;;  %v13709_v6 = vadd.f32 %v12459_v4, %v922_v19  ;;  %v12465_v4 = vld [vmem:[#allocation2 + $0x68] sm:$0xff] }
 0x378   :  { %v1107_v33 = vmul.f32 %v10993_v59, %v995_v58  ;;  %11000 = vpow2.f32 %v1036_v0  ;;  %v925_v7 = vadd.f32 %v13638_v56, %v924_v15  ;;  %v13713_v17 = vadd.f32 %v12460_v14, %v933_v2 }
 0x379   :  { %v1020_v42 = vsub.f32 0.0, %v13706_v55  ;;  %v1123_v46 = vpack.c.bf16 %v1109_v20, %v1108_v3  ;;  %v13717_v23 = vmul.f32 %v13641_v37, %v13709_v6 }
 0x37a   :  { %v1122_v18 = vpack.c.bf16 %v1107_v33, %v1106_v50  ;;  %v13719_v24 = vadd.f32 %v12461_v47, %v925_v7  ;;  %v10163_v44 = vpop.f32.mrb[20].mxu1  ;;  %v13723_v43 = vmul.f32 %v13641_v37, %v13713_v17  ;;  %v12464_v33 = vld [vmem:[#allocation2 + $0x78] sm:$0xff] }
 0x37b   :  { %v1046_v26 = vmul.f32 1.442695, %v1020_v42  ;;  %v946_v62 = vadd.f32 %v10163_v44, %v13638_v56  ;;  %v937_v28 = vpop.f32.mrb[21].mxu1  ;;  %v1018_v51 = vsub.f32 0.0, %v13717_v23 }
 0x37c   :  { %10173 = vmatprep.mubr.msk.bf16.mxu0 %vm509_vm0, %v1122_v18  ;;  %v13730_v53 = vmul.f32 %v13641_v37, %v13719_v24  ;;  %v938_v5 = vadd.f32 %v13638_v56, %v937_v28  ;;  %v10164_v34 = vpop.f32.mrb[22].mxu1  ;;  %v1021_v21 = vsub.f32 0.0, %v13723_v43 }
 0x37d   :  { %10174 = vmatmul.mubr.msk.bf16.vlgmr.msra.gmra.mrb[8].mxu0 %vm509_vm0, %v1123_v46  ;;  %v13735_v22 = vadd.f32 %v12462_v60, %v946_v62  ;;  %v940_v25 = vpop.f32.mrb[23].mxu1  ;;  %v1042_v35 = vmul.f32 1.442695, %v1018_v51  ;;  %11002 = vpow2.f32 %v1046_v26  ;;  %v949_v58 = vadd.f32 %v10164_v34, %v13638_v56 }
 0x37e   :  { %v1019_v12 = vsub.f32 0.0, %v13730_v53  ;;  %v13738_v39 = vadd.f32 %v12463_v36, %v938_v5  ;;  %v1048_v41 = vmul.f32 1.442695, %v1021_v21  ;;  %v941_v48 = vadd.f32 %v13638_v56, %v940_v25 }
 0x37f   :  { %v10995_v40 = vpop.eup %10994  ;;  %v13742_v57 = vmul.f32 %v13641_v37, %v13735_v22  ;;  %11004 = vpow2.f32 %v1042_v35  ;;  %v13752_v2 = vadd.f32 %v12464_v33, %v949_v58  ;;  %v998_v25 = vmul.f32 %v13670_v30, %v13680_v45 }
 0x380   :  { %v10997_v63 = vpop.eup %10996  ;;  %v1064_v1 = vadd.f32 1.0, %v10995_v40  ;;  %v13747_v13 = vmul.f32 %v13641_v37, %v13738_v39  ;;  %11006 = vpow2.f32 %v1048_v41  ;;  %v1044_v20 = vmul.f32 1.442695, %v1019_v12 }
 0x381   :  { %v10999_v50 = vpop.eup %10998  ;;  %v1062_v52 = vadd.f32 1.0, %v10997_v63  ;;  %v1024_v49 = vsub.f32 0.0, %v13742_v57  ;;  %v13754_v56 = vadd.f32 %v12465_v4, %v941_v48  ;;  %v13758_v42 = vmul.f32 %v13641_v37, %v13752_v2 }
 0x382   :  { %v11001_v15 = vpop.eup %11000  ;;  %11008 = vrcp.f32 %v1064_v1  ;;  %v1065_v59 = vadd.f32 1.0, %v10999_v50  ;;  %v1022_v0 = vsub.f32 0.0, %v13747_v13  ;;  %v999_v35 = vmul.f32 %v13670_v30, %v13693_v38 }
 0x383   :  { %11010 = vrcp.f32 %v1062_v52  ;;  %v1063_v19 = vadd.f32 1.0, %v11001_v15  ;;  %v1054_v7 = vmul.f32 1.442695, %v1024_v49  ;;  %v13762_v14 = vmul.f32 %v13641_v37, %v13754_v56 }
 0x384   :  { %11012 = vrcp.f32 %v1065_v59  ;;  %v1050_v3 = vmul.f32 1.442695, %v1022_v0  ;;  %v1025_v18 = vsub.f32 0.0, %v13758_v42  ;;  %v1001_v37 = vmul.f32 %v13670_v30, %v13687_v16 }
 0x385   :  { %11014 = vrcp.f32 %v1063_v19  ;;  %v1023_v46 = vsub.f32 0.0, %v13762_v14  ;;  %v1000_v40 = vmul.f32 %v13670_v30, %v13674_v31 }
 0x386   :  { %11016 = vpow2.f32 %v1044_v20  ;;  %v1056_v44 = vmul.f32 1.442695, %v1025_v18  ;;  %v1003_v18 = vmul.f32 %v13670_v30, %v13730_v53 }
 0x387   :  { %11018 = vpow2.f32 %v1050_v3  ;;  %v11003_v47 = vpop.eup %11002  ;;  %v1052_v62 = vmul.f32 1.442695, %v1023_v46  ;;  %v1005_v3 = vmul.f32 %v13670_v30, %v13723_v43  ;;  %v1006_v43 = vmul.f32 %v13670_v30, %v13747_v13 }
 0x388   :  { %11020 = vpow2.f32 %v1054_v7  ;;  %v1068_v12 = vadd.f32 1.0, %v11003_v47  ;;  %v1002_v7 = vmul.f32 %v13670_v30, %v13717_v23  ;;  %v1004_v47 = vmul.f32 %v13670_v30, %v13706_v55 }
 0x389   :  { %v11005_v26 = vpop.eup %11004  ;;  %11022 = vpow2.f32 %v1056_v44  ;;  %v1007_v23 = vmul.f32 %v13670_v30, %v13762_v14  ;;  %v1009_v55 = vmul.f32 %v13670_v30, %v13758_v42  ;;  %v10763_v42 = vld [vmem:[#allocation7 + $0x68] sm:$0xff]  }
 0x38a   :  { %v11007_v28 = vpop.eup %11006  ;;  %11024 = vpow2.f32 %v1052_v62  ;;  %v1066_v21 = vadd.f32 1.0, %v11005_v26 }
 0x38b   :  { %v1069_v5 = vadd.f32 1.0, %v11007_v28 }
 0x38c   :  { %v11009_v51 = vpop.eup %11008 }
 0x38d   :  { %v11011_v34 = vpop.eup %11010  ;;  %11026 = vrcp.f32 %v1069_v5  ;;  %v1112_v48 = vmul.f32 %v11009_v51, %v1000_v40  ;;  %v10762_v40 = vld [vmem:[#allocation7 + $0x60] sm:$0xff]  }
 0x38e   :  { %v11013_v60 = vpop.eup %11012  ;;  %v1110_v63 = vmul.f32 %v11011_v34, %v998_v25  ;;  %11028 = vrcp.f32 %v1066_v21  ;;  %10189 = vmatprep.subr.bf16.mxu1 %v10762_v40 }
 0x38f   :  { %v11015_v36 = vpop.eup %11014  ;;  %v1113_v41 = vmul.f32 %v11013_v60, %v1001_v37  ;;  %11030 = vrcp.f32 %v1068_v12  ;;  %10190 = vmatpush3.bf16.msra.mxu1 %v10762_v40 }
 0x390   :  { %v11017_v58 = vpop.eup %11016  ;;  %v1111_v1 = vmul.f32 %v11015_v36, %v999_v35  ;;  %v1008_v35 = vmul.f32 %v13670_v30, %v13742_v57  ;;  %10191 = vmatprep.subr.bf16.mxu1 %v10763_v42  ;;  %v13796_v30 = vld [vmem:[#allocation5 + $0x8] ss:$0 sm:$0xff] }
 0x391   :  { %v1067_v16 = vadd.f32 1.0, %v11017_v58  ;;  %v11019_v50 = vpop.eup %11018  ;;  %v1125_v38 = vpack.c.bf16 %v1113_v41, %v1112_v48  ;;  %v10764_v41 = vld [vmem:[#allocation7 + $0x70] sm:$0xff]   ;;  %v10765_v58 = vld [vmem:[#allocation7 + $0x78] sm:$0xff]  }
 0x392   :  { %v1124_v52 = vpack.c.bf16 %v1111_v1, %v1110_v63  ;;  %v11021_v45 = vpop.eup %11020  ;;  %v1070_v49 = vadd.f32 1.0, %v11019_v50  ;;  %v13798_v63 = vld [vmem:[#allocation5 + $0xa] ss:$0 sm:$0xff] }
 0x393   :  { %11032 = vrcp.f32 %v1067_v16  ;;  %v11023_v15 = vpop.eup %11022  ;;  %v1072_v59 = vadd.f32 1.0, %v11021_v45  ;;  %10192 = vmatpush3.bf16.msra.mxu1 %v10763_v42 }
 0x394   :  { %10177 = vmatprep.mubr.msk.bf16.mxu0 %vm509_vm0, %v1124_v52  ;;  %v11025_v31 = vpop.eup %11024  ;;  %v1073_v20 = vadd.f32 1.0, %v11023_v15  ;;  %11034 = vrcp.f32 %v1070_v49  ;;  %10193 = vmatprep.subr.bf16.mxu1 %v10764_v41 }
 0x395   :  { %10178 = vmatmul.mubr.msk.bf16.gmra.mrb[12].mxu0 %vm509_vm0, %v1125_v38  ;;  %v1071_v0 = vadd.f32 1.0, %v11025_v31 }
 0x396   :  { %11036 = vrcp.f32 %v1073_v20 }
 0x397   :  { %11038 = vrcp.f32 %v1071_v0  ;;  %v11027_v19 = vpop.eup %11026  ;;  %10194 = vmatpush3.bf16.msra.mxu1 %v10764_v41 }
 0x398   :  { %11040 = vrcp.f32 %v1072_v59  ;;  %v11029_v33 = vpop.eup %11028  ;;  %v1117_v44 = vmul.f32 %v11027_v19, %v1005_v3  ;;  %10195 = vmatprep.subr.bf16.mxu1 %v10765_v58 }
 0x399   :  { %v11031_v4 = vpop.eup %11030  ;;  %v1114_v26 = vmul.f32 %v11029_v33, %v1002_v7 }
 0x39a   :  { %v1116_v28 = vmul.f32 %v11031_v4, %v1004_v47 }
 0x39b   :  { %10196 = vmatpush3.bf16.msra.mxu1 %v10765_v58 }
 0x39c   :  { %v1127_v34 = vpack.c.bf16 %v1117_v44, %v1116_v28 }
 0x39d   :  { %v11033_v46 = vpop.eup %11032 }
 0x39e   :  { %v1115_v62 = vmul.f32 %v11033_v46, %v1003_v18  ;;  %v11035_v5 = vpop.eup %11034 }
 0x39f   :  { %v1118_v60 = vmul.f32 %v11035_v5, %v1006_v43 }
 0x3a0   :  { %v1126_v51 = vpack.c.bf16 %v1115_v62, %v1114_v26  ;;  %v11037_v37 = vpop.eup %11036 }
 0x3a1   :  { %v11039_v53 = vpop.eup %11038  ;;  %v1121_v12 = vmul.f32 %v11037_v37, %v1009_v55 }
 0x3a2   :  { %10181 = vmatprep.mubr.msk.bf16.mxu0 %vm509_vm0, %v1126_v51  ;;  %v11041_v21 = vpop.eup %11040  ;;  %v1119_v25 = vmul.f32 %v11039_v53, %v1007_v23 }
 0x3a3   :  { %10182 = vmatmul.mubr.msk.bf16.gmra.mrb[16].mxu0 %vm509_vm0, %v1127_v34  ;;  %v1120_v13 = vmul.f32 %v11041_v21, %v1008_v35 }
 0x3a4   :  { %v1128_v36 = vpack.c.bf16 %v1119_v25, %v1118_v60 }
 0x3a5   :  { %v1129_v14 = vpack.c.bf16 %v1121_v12, %v1120_v13  ;;  %v13818_v12 = vld [vmem:[#allocation5 + $0x9] ss:$0 sm:$0xff] }
 0x3a6   :  { %10185 = vmatprep.mubr.msk.bf16.mxu0 %vm509_vm0, %v1128_v36 }
 0x3ab   :  { %10186 = vmatmul.mubr.msk.bf16.gmra.mrb[20].mxu0 %vm509_vm0, %v1129_v14 }
 0x450   :  { %v10175_v57 = vpop.f32.mrb[8].mxu0 }
 0x451   :  { %v1235_v1 = vadd.f32 %v10175_v57, %v13796_v30  ;;  %v1226_v48 = vpop.f32.mrb[9].mxu0 }
 0x452   :  { %v1227_v16 = vadd.f32 %v13796_v30, %v1226_v48  ;;  %v10176_v50 = vpop.f32.mrb[10].mxu0 }
 0x453   :  { %v1297_v52 = vmul.f32 %v13798_v63, %v1235_v1  ;;  %v1238_v45 = vadd.f32 %v10176_v50, %v13796_v30  ;;  %v1229_v49 = vpop.f32.mrb[11].mxu0 }
 0x454   :  { %v1295_v38 = vmul.f32 %v13798_v63, %v1227_v16  ;;  %v1230_v15 = vadd.f32 %v13796_v30, %v1229_v49 }
 0x455   :  { %v1333_v31 = vsub.f32 0.0, %v1297_v52  ;;  %v1298_v59 = vmul.f32 %v13798_v63, %v1238_v45  ;;  %v1317_v1 = vmul.f32 %v13818_v12, %v1297_v52 }
 0x456   :  { %v1331_v20 = vsub.f32 0.0, %v1295_v38  ;;  %v1296_v0 = vmul.f32 %v13798_v63, %v1230_v15  ;;  %v1315_v49 = vmul.f32 %v13818_v12, %v1295_v38 }
 0x457   :  { %v1351_v19 = vmul.f32 1.442695, %v1333_v31  ;;  %v1334_v33 = vsub.f32 0.0, %v1298_v59  ;;  %v1318_v48 = vmul.f32 %v13818_v12, %v1298_v59 }
 0x458   :  { %v1347_v3 = vmul.f32 1.442695, %v1331_v20  ;;  %v1332_v4 = vsub.f32 0.0, %v1296_v0  ;;  %v1316_v15 = vmul.f32 %v13818_v12, %v1296_v0 }
 0x459   :  { %11042 = vpow2.f32 %v1351_v19  ;;  %v1353_v7 = vmul.f32 1.442695, %v1334_v33 }
 0x45a   :  { %11044 = vpow2.f32 %v1347_v3  ;;  %v1349_v18 = vmul.f32 1.442695, %v1332_v4 }
 0x45b   :  { %11046 = vpow2.f32 %v1353_v7 }
 0x45c   :  { %11048 = vpow2.f32 %v1349_v18 }
 0x463   :  { %v11043_v46 = vpop.eup %11042 }
 0x464   :  { %v11045_v47 = vpop.eup %11044  ;;  %v1381_v44 = vadd.f32 1.0, %v11043_v46 }
 0x465   :  { %v11047_v26 = vpop.eup %11046  ;;  %v1379_v62 = vadd.f32 1.0, %v11045_v47 }
 0x466   :  { %v11049_v28 = vpop.eup %11048  ;;  %11050 = vrcp.f32 %v1381_v44  ;;  %v1382_v51 = vadd.f32 1.0, %v11047_v26 }
 0x467   :  { %11052 = vrcp.f32 %v1379_v62  ;;  %v1380_v5 = vadd.f32 1.0, %v11049_v28 }
 0x468   :  { %11054 = vrcp.f32 %v1382_v51  ;;  %v10179_v34 = vpop.f32.mrb[12].mxu0 }
 0x469   :  { %11056 = vrcp.f32 %v1380_v5  ;;  %v1251_v37 = vadd.f32 %v10179_v34, %v13796_v30  ;;  %v1242_v43 = vpop.f32.mrb[13].mxu0 }
 0x46a   :  { %v1243_v23 = vadd.f32 %v13796_v30, %v1242_v43  ;;  %v10180_v53 = vpop.f32.mrb[14].mxu0 }
 0x46b   :  { %v13811_v55 = vmul.f32 %v13798_v63, %v1251_v37  ;;  %v1254_v21 = vadd.f32 %v10180_v53, %v13796_v30  ;;  %v1245_v60 = vpop.f32.mrb[15].mxu0 }
 0x46c   :  { %v13815_v25 = vmul.f32 %v13798_v63, %v1243_v23  ;;  %v1246_v35 = vadd.f32 %v13796_v30, %v1245_v60 }
 0x46d   :  { %v1337_v36 = vsub.f32 0.0, %v13811_v55  ;;  %v13822_v13 = vmul.f32 %v13798_v63, %v1254_v21 }
 0x46e   :  { %v1335_v14 = vsub.f32 0.0, %v13815_v25  ;;  %v13826_v40 = vmul.f32 %v13798_v63, %v1246_v35 }
 0x46f   :  { %v1359_v41 = vmul.f32 1.442695, %v1337_v36  ;;  %v1338_v58 = vsub.f32 0.0, %v13822_v13 }
 0x470   :  { %v11051_v42 = vpop.eup %11050  ;;  %v1355_v16 = vmul.f32 1.442695, %v1335_v14  ;;  %v1336_v50 = vsub.f32 0.0, %v13826_v40 }
 0x471   :  { %v11053_v57 = vpop.eup %11052  ;;  %11058 = vpow2.f32 %v1359_v41  ;;  %v1361_v31 = vmul.f32 1.442695, %v1338_v58  ;;  %v1429_v19 = vmul.f32 %v11051_v42, %v1317_v1 }
 0x472   :  { %v11055_v45 = vpop.eup %11054  ;;  %11060 = vpow2.f32 %v1355_v16  ;;  %v1357_v3 = vmul.f32 1.442695, %v1336_v50  ;;  %v1427_v4 = vmul.f32 %v11053_v57, %v1315_v49 }
 0x473   :  { %v11057_v20 = vpop.eup %11056  ;;  %v1430_v33 = vmul.f32 %v11055_v45, %v1318_v48  ;;  %11062 = vpow2.f32 %v1361_v31 }
 0x474   :  { %v1428_v7 = vmul.f32 %v11057_v20, %v1316_v15  ;;  %11064 = vpow2.f32 %v1357_v3 }
 0x475   :  { %v1444_v52 = vpack.c.bf16 %v1430_v33, %v1429_v19 }
 0x476   :  { %v1443_v59 = vpack.c.bf16 %v1428_v7, %v1427_v4  ;;  %v10183_v18 = vpop.f32.mrb[16].mxu0 }
 0x477   :  { %v1267_v46 = vadd.f32 %v10183_v18, %v13796_v30  ;;  %v1258_v47 = vpop.f32.mrb[17].mxu0 }
 0x478   :  { %10197 = vmatprep.mubr.msk.bf16.mxu1 %vm509_vm0, %v1443_v59  ;;  %v1259_v38 = vadd.f32 %v13796_v30, %v1258_v47  ;;  %v10184_v0 = vpop.f32.mrb[18].mxu0 }
 0x479   :  { %10198 = vmatmul.mubr.msk.bf16.vlgmr.msra.gmra.mrb[24].mxu1 %vm509_vm0, %v1444_v52  ;;  %v13839_v44 = vmul.f32 %v13798_v63, %v1267_v46  ;;  %v1270_v26 = vadd.f32 %v10184_v0, %v13796_v30  ;;  %v1261_v62 = vpop.f32.mrb[19].mxu0 }
 0x47a   :  { %v13843_v28 = vmul.f32 %v13798_v63, %v1259_v38  ;;  %v1262_v51 = vadd.f32 %v13796_v30, %v1261_v62 }
 0x47b   :  { %v11059_v5 = vpop.eup %11058  ;;  %v1341_v34 = vsub.f32 0.0, %v13839_v44  ;;  %v13848_v37 = vmul.f32 %v13798_v63, %v1270_v26 }
 0x47c   :  { %v11061_v43 = vpop.eup %11060  ;;  %v1385_v23 = vadd.f32 1.0, %v11059_v5  ;;  %v1339_v53 = vsub.f32 0.0, %v13843_v28  ;;  %v13852_v21 = vmul.f32 %v13798_v63, %v1262_v51  ;;  %v1321_v51 = vmul.f32 %v13818_v12, %v13811_v55 }
 0x47d   :  { %v11063_v60 = vpop.eup %11062  ;;  %v1383_v35 = vadd.f32 1.0, %v11061_v43  ;;  %v1342_v36 = vsub.f32 0.0, %v13848_v37  ;;  %v1367_v41 = vmul.f32 1.442695, %v1341_v34  ;;  %v1322_v5 = vmul.f32 %v13818_v12, %v13822_v13 }
 0x47e   :  { %v11065_v14 = vpop.eup %11064  ;;  %11066 = vrcp.f32 %v1385_v23  ;;  %v1386_v42 = vadd.f32 1.0, %v11063_v60  ;;  %v10187_v58 = vpop.f32.mrb[20].mxu0  ;;  %v1363_v1 = vmul.f32 1.442695, %v1339_v53  ;;  %v1340_v48 = vsub.f32 0.0, %v13852_v21 }
 0x47f   :  { %11068 = vrcp.f32 %v1383_v35  ;;  %v1384_v57 = vadd.f32 1.0, %v11065_v14  ;;  %v1274_v16 = vpop.f32.mrb[21].mxu0  ;;  %v1369_v50 = vmul.f32 1.442695, %v1342_v36  ;;  %v1283_v45 = vadd.f32 %v10187_v58, %v13796_v30 }
 0x480   :  { %11070 = vrcp.f32 %v1386_v42  ;;  %v1275_v49 = vadd.f32 %v13796_v30, %v1274_v16  ;;  %v10188_v15 = vpop.f32.mrb[22].mxu0  ;;  %v1365_v31 = vmul.f32 1.442695, %v1340_v48  ;;  %v1319_v43 = vmul.f32 %v13818_v12, %v13815_v25 }
 0x481   :  { %11072 = vrcp.f32 %v1384_v57  ;;  %v1286_v20 = vadd.f32 %v10188_v15, %v13796_v30  ;;  %v1277_v19 = vpop.f32.mrb[23].mxu0  ;;  %v13860_v33 = vmul.f32 %v13798_v63, %v1283_v45 }
 0x482   :  { %11074 = vpow2.f32 %v1367_v41  ;;  %v13863_v3 = vmul.f32 %v13798_v63, %v1275_v49  ;;  %v1278_v4 = vadd.f32 %v13796_v30, %v1277_v19 }
 0x483   :  { %11076 = vpow2.f32 %v1363_v1  ;;  %v13867_v7 = vmul.f32 %v13798_v63, %v1286_v20  ;;  %v1345_v52 = vsub.f32 0.0, %v13860_v33 }
 0x484   :  { %11078 = vpow2.f32 %v1369_v50  ;;  %v1343_v59 = vsub.f32 0.0, %v13863_v3  ;;  %v13873_v47 = vmul.f32 %v13798_v63, %v1278_v4  ;;  %v1320_v63 = vmul.f32 %v13818_v12, %v13826_v40 }
 0x485   :  { %11080 = vpow2.f32 %v1365_v31  ;;  %v1346_v18 = vsub.f32 0.0, %v13867_v7  ;;  %v1375_v46 = vmul.f32 1.442695, %v1345_v52 }
 0x486   :  { %v1371_v38 = vmul.f32 1.442695, %v1343_v59  ;;  %v1344_v30 = vsub.f32 0.0, %v13873_v47  ;;  %v1325_v59 = vmul.f32 %v13818_v12, %v13839_v44  ;;  %v1329_v44 = vmul.f32 %v13818_v12, %v13860_v33 }
 0x487   :  { %v1377_v0 = vmul.f32 1.442695, %v1346_v18  ;;  %11082 = vpow2.f32 %v1375_v46  ;;  %v1326_v18 = vmul.f32 %v13818_v12, %v13848_v37  ;;  %v1330_v37 = vmul.f32 %v13818_v12, %v13867_v7  ;;  %v10766_v7 = vld [vmem:[#allocation10] sm:$0xff]  }
 0x488   :  { %v11067_v26 = vpop.eup %11066  ;;  %11084 = vpow2.f32 %v1371_v38  ;;  %v1373_v23 = vmul.f32 1.442695, %v1344_v30  ;;  %v1323_v38 = vmul.f32 %v13818_v12, %v13843_v28  ;;  %10213 = vmatprep.subr.bf16.mxu0 %v10766_v7 }
 0x489   :  { %v11069_v62 = vpop.eup %11068  ;;  %11086 = vpow2.f32 %v1377_v0  ;;  %v1433_v60 = vmul.f32 %v11067_v26, %v1321_v51  ;;  %v1324_v0 = vmul.f32 %v13818_v12, %v13852_v21  ;;  %v1327_v21 = vmul.f32 %v13818_v12, %v13863_v3  ;;  %10214 = vmatpush3.bf16.msra.mxu0 %v10766_v7  ;;  %v10768_v3 = vld [vmem:[#allocation10 + $0x10] sm:$0xff]  }
 0x48a   :  { %v11071_v34 = vpop.eup %11070  ;;  %v1431_v14 = vmul.f32 %v11069_v62, %v1319_v43  ;;  %11088 = vpow2.f32 %v1373_v23 }
 0x48b   :  { %v11073_v53 = vpop.eup %11072  ;;  %v1434_v35 = vmul.f32 %v11071_v34, %v1322_v5 }
 0x48c   :  { %v11075_v36 = vpop.eup %11074  ;;  %v1432_v42 = vmul.f32 %v11073_v53, %v1320_v63 }
 0x48d   :  { %v11077_v55 = vpop.eup %11076  ;;  %v1389_v41 = vadd.f32 1.0, %v11075_v36  ;;  %v1446_v13 = vpack.c.bf16 %v1434_v35, %v1433_v60  ;;  %v1328_v35 = vmul.f32 %v13818_v12, %v13873_v47  ;;  %v13906_v12 = vld [vmem:[#allocation5 + $0xb] ss:$0 sm:$0xff] }
 0x48e   :  { %v11079_v58 = vpop.eup %11078  ;;  %v1387_v57 = vadd.f32 1.0, %v11077_v55  ;;  %v1445_v1 = vpack.c.bf16 %v1432_v42, %v1431_v14 }
 0x48f   :  { %v11081_v48 = vpop.eup %11080  ;;  %11090 = vrcp.f32 %v1389_v41  ;;  %v1390_v25 = vadd.f32 1.0, %v11079_v58  ;;  %v10767_v41 = vld [vmem:[#allocation10 + $0x8] sm:$0xff]  }
 0x490   :  { %11092 = vrcp.f32 %v1387_v57  ;;  %v1388_v40 = vadd.f32 1.0, %v11081_v48  ;;  %10201 = vmatprep.mubr.msk.bf16.mxu1 %vm509_vm0, %v1445_v1  ;;  %10215 = vmatprep.subr.bf16.mxu0 %v10767_v41 }
 0x491   :  { %11094 = vrcp.f32 %v1390_v25  ;;  %10202 = vmatmul.mubr.msk.bf16.gmra.mrb[28].mxu1 %vm509_vm0, %v1446_v13  ;;  %v11083_v16 = vpop.eup %11082  ;;  %10216 = vmatpush3.bf16.msra.mxu0 %v10767_v41  ;;  %v10769_v13 = vld [vmem:[#allocation10 + $0x18] sm:$0xff]   ;;  %v13910_v25 = vld [vmem:[#allocation8 + $0x1] ss:$0 sm:$0xff] }
 0x492   :  { %11096 = vrcp.f32 %v1388_v40  ;;  %v11085_v50 = vpop.eup %11084  ;;  %v1393_v45 = vadd.f32 1.0, %v11083_v16  ;;  %10217 = vmatprep.subr.bf16.mxu0 %v10768_v3 }
 0x493   :  { %v11087_v49 = vpop.eup %11086  ;;  %v1391_v15 = vadd.f32 1.0, %v11085_v50 }
 0x494   :  { %11098 = vrcp.f32 %v1393_v45  ;;  %v1394_v31 = vadd.f32 1.0, %v11087_v49  ;;  %v11089_v20 = vpop.eup %11088 }
 0x495   :  { %11100 = vrcp.f32 %v1391_v15  ;;  %v1392_v19 = vadd.f32 1.0, %v11089_v20  ;;  %10218 = vmatpush3.bf16.msra.mxu0 %v10768_v3 }
 0x496   :  { %11102 = vrcp.f32 %v1394_v31  ;;  %10219 = vmatprep.subr.bf16.mxu0 %v10769_v13 }
 0x497   :  { %11104 = vrcp.f32 %v1392_v19 }
 0x499   :  { %v11091_v4 = vpop.eup %11090  ;;  %10220 = vmatpush3.bf16.msra.mxu0 %v10769_v13 }
 0x49a   :  { %v11093_v52 = vpop.eup %11092  ;;  %v1437_v30 = vmul.f32 %v11091_v4, %v1325_v59 }
 0x49b   :  { %v11095_v46 = vpop.eup %11094  ;;  %v1435_v51 = vmul.f32 %v11093_v52, %v1323_v38 }
 0x49c   :  { %v11097_v26 = vpop.eup %11096  ;;  %v1438_v62 = vmul.f32 %v11095_v46, %v1326_v18 }
 0x49d   :  { %v1436_v5 = vmul.f32 %v11097_v26, %v1324_v0 }
 0x49e   :  { %v1448_v34 = vpack.c.bf16 %v1438_v62, %v1437_v30  ;;  %v11099_v43 = vpop.eup %11098 }
 0x49f   :  { %v1447_v63 = vpack.c.bf16 %v1436_v5, %v1435_v51  ;;  %v11101_v23 = vpop.eup %11100  ;;  %v1441_v28 = vmul.f32 %v11099_v43, %v1329_v44 }
 0x4a0   :  { %v11103_v53 = vpop.eup %11102  ;;  %v1439_v14 = vmul.f32 %v11101_v23, %v1327_v21 }
 0x4a1   :  { %10205 = vmatprep.mubr.msk.bf16.mxu1 %vm509_vm0, %v1447_v63  ;;  %v1442_v60 = vmul.f32 %v11103_v53, %v1330_v37  ;;  %v11105_v36 = vpop.eup %11104 }
 0x4a2   :  { %10206 = vmatmul.mubr.msk.bf16.gmra.mrb[32].mxu1 %vm509_vm0, %v1448_v34  ;;  %v1440_v42 = vmul.f32 %v11105_v36, %v1328_v35 }
 0x4a3   :  { %v1450_v33 = vpack.c.bf16 %v1442_v60, %v1441_v28 }
 0x4a4   :  { %v1449_v55 = vpack.c.bf16 %v1440_v42, %v1439_v14 }
 0x4a6   :  { %10209 = vmatprep.mubr.msk.bf16.mxu1 %vm509_vm0, %v1449_v55  ;;  %v13982_v55 = vld [vmem:[#allocation8] ss:$0 sm:$0xff] }
 0x4aa   :  { %10210 = vmatmul.mubr.msk.bf16.gmra.mrb[36].mxu1 %vm509_vm0, %v1450_v33 }
 0x54c   :  { %v10199_v47 = vpop.f32.mrb[24].mxu1 }
 0x54d   :  { %v1556_v58 = vadd.f32 %v10199_v47, %v13906_v12  ;;  %v1547_v57 = vpop.f32.mrb[25].mxu1 }
 0x54e   :  { %v1548_v1 = vadd.f32 %v13906_v12, %v1547_v57  ;;  %v10200_v48 = vpop.f32.mrb[26].mxu1 }
 0x54f   :  { %v13913_v40 = vadd.f32 %v1556_v58, %v13644_v54  ;;  %v1559_v16 = vadd.f32 %v10200_v48, %v13906_v12  ;;  %v1550_v50 = vpop.f32.mrb[27].mxu1 }
 0x550   :  { %v13917_v45 = vadd.f32 %v1548_v1, %v13647_v8  ;;  %v1551_v49 = vadd.f32 %v13906_v12, %v1550_v50 }
 0x551   :  { %17668 = vst [vmem:[#allocation47_spill] sm:$0xff] %v13913_v40  ;;  %1628 = vst.msk [vmem:[#allocation29 + $0x10] sm:$0xff] %vm509_vm0, %v13913_v40  ;;  %v13923_v15 = vadd.f32 %v1559_v16, %v13652_v9  ;;  %v13927_v31 = vmul.f32 %v13910_v25, %v13913_v40 }
 0x552   :  { %17669 = vst [vmem:[#allocation48_spill] sm:$0xff] %v13917_v45  ;;  %1626 = vst.msk [vmem:[#allocation29] sm:$0xff] %vm509_vm0, %v13917_v45  ;;  %v13932_v54 = vadd.f32 %v1551_v49, %v13656_v10  ;;  %v1648_v8 = vmul.f32 %v13910_v25, %v13917_v45 }
 0x553   :  { %17670 = vst [vmem:[#allocation49_spill] sm:$0xff] %v13923_v15  ;;  %1629 = vst.msk [vmem:[#allocation29 + $0x18] sm:$0xff] %vm509_vm0, %v13923_v15  ;;  %v1651_v9 = vmul.f32 %v13910_v25, %v13923_v15  ;;  %v1686_v20 = vsub.f32 0.0, %v13927_v31 }
 0x554   :  { %17671 = vst [vmem:[#allocation50_spill] sm:$0xff] %v13932_v54  ;;  %1627 = vst.msk [vmem:[#allocation29 + $0x8] sm:$0xff] %vm509_vm0, %v13932_v54  ;;  %v1649_v19 = vmul.f32 %v13910_v25, %v13932_v54  ;;  %v1684_v4 = vsub.f32 0.0, %v1648_v8  ;;  %v1668_v16 = vmul.f32 %v13982_v55, %v1648_v8 }
 0x555   :  { %v1687_v10 = vsub.f32 0.0, %v1651_v9  ;;  %v1704_v52 = vmul.f32 1.442695, %v1686_v20  ;;  %v1671_v58 = vmul.f32 %v13982_v55, %v1651_v9 }
 0x556   :  { %v1685_v59 = vsub.f32 0.0, %v1649_v19  ;;  %v1700_v18 = vmul.f32 1.442695, %v1684_v4  ;;  %v1669_v50 = vmul.f32 %v13982_v55, %v1649_v19  ;;  %v1670_v4 = vmul.f32 %v13982_v55, %v13927_v31 }
 0x557   :  { %11106 = vpow2.f32 %v1704_v52  ;;  %v1706_v46 = vmul.f32 1.442695, %v1687_v10 }
 0x558   :  { %11108 = vpow2.f32 %v1700_v18  ;;  %v1702_v38 = vmul.f32 1.442695, %v1685_v59 }
 0x559   :  { %11110 = vpow2.f32 %v1706_v46 }
 0x55a   :  { %11112 = vpow2.f32 %v1702_v38 }
 0x561   :  { %v11107_v0 = vpop.eup %11106 }
 0x562   :  { %v11109_v26 = vpop.eup %11108  ;;  %v1734_v30 = vadd.f32 1.0, %v11107_v0 }
 0x563   :  { %v11111_v62 = vpop.eup %11110  ;;  %v1732_v51 = vadd.f32 1.0, %v11109_v26 }
 0x564   :  { %v11113_v5 = vpop.eup %11112  ;;  %v1735_v34 = vadd.f32 1.0, %v11111_v62  ;;  %11114 = vrcp.f32 %v1734_v30  ;;  %v10203_v43 = vpop.f32.mrb[28].mxu1 }
 0x565   :  { %v1733_v63 = vadd.f32 1.0, %v11113_v5  ;;  %11116 = vrcp.f32 %v1732_v51  ;;  %v1572_v23 = vadd.f32 %v10203_v43, %v13906_v12  ;;  %v1563_v44 = vpop.f32.mrb[29].mxu1 }
 0x566   :  { %11118 = vrcp.f32 %v1735_v34  ;;  %v1564_v37 = vadd.f32 %v13906_v12, %v1563_v44  ;;  %v10204_v53 = vpop.f32.mrb[30].mxu1 }
 0x567   :  { %11120 = vrcp.f32 %v1733_v63  ;;  %v13948_v28 = vadd.f32 %v1572_v23, %v13664_v27  ;;  %v1575_v21 = vadd.f32 %v10204_v53, %v13906_v12  ;;  %v1566_v60 = vpop.f32.mrb[31].mxu1 }
 0x568   :  { %v13952_v35 = vadd.f32 %v1564_v37, %v13667_v29  ;;  %v1567_v36 = vadd.f32 %v13906_v12, %v1566_v60 }
 0x569   :  { %17672 = vst [vmem:[#allocation51_spill] sm:$0xff] %v13948_v28  ;;  %1632 = vst.msk [vmem:[#allocation29 + $0x30] sm:$0xff] %vm509_vm0, %v13948_v28  ;;  %v13958_v14 = vadd.f32 %v1575_v21, %v13676_v61  ;;  %v13962_v42 = vmul.f32 %v13910_v25, %v13948_v28 }
 0x56a   :  { %17673 = vst [vmem:[#allocation52_spill] sm:$0xff] %v13952_v35  ;;  %1630 = vst.msk [vmem:[#allocation29 + $0x20] sm:$0xff] %vm509_vm0, %v13952_v35  ;;  %v13967_v27 = vadd.f32 %v1567_v36, %v13682_v32  ;;  %v13971_v29 = vmul.f32 %v13910_v25, %v13952_v35 }
 0x56b   :  { %17674 = vst [vmem:[#allocation53_spill] sm:$0xff] %v13958_v14  ;;  %1633 = vst.msk [vmem:[#allocation29 + $0x38] sm:$0xff] %vm509_vm0, %v13958_v14  ;;  %v13977_v61 = vmul.f32 %v13910_v25, %v13958_v14  ;;  %v1690_v33 = vsub.f32 0.0, %v13962_v42 }
 0x56c   :  { %17675 = vst [vmem:[#allocation54_spill] sm:$0xff] %v13967_v27  ;;  %1631 = vst.msk [vmem:[#allocation29 + $0x28] sm:$0xff] %vm509_vm0, %v13967_v27  ;;  %v13986_v32 = vmul.f32 %v13910_v25, %v13967_v27  ;;  %v1688_v7 = vsub.f32 0.0, %v13971_v29 }
 0x56d   :  { %v1691_v3 = vsub.f32 0.0, %v13977_v61  ;;  %v1712_v13 = vmul.f32 1.442695, %v1690_v33 }
 0x56e   :  { %v11115_v41 = vpop.eup %11114  ;;  %v1689_v57 = vsub.f32 0.0, %v13986_v32  ;;  %v1708_v1 = vmul.f32 1.442695, %v1688_v7 }
 0x56f   :  { %v11117_v47 = vpop.eup %11116  ;;  %11122 = vpow2.f32 %v1712_v13  ;;  %v1714_v49 = vmul.f32 1.442695, %v1691_v3  ;;  %v1782_v9 = vmul.f32 %v11115_v41, %v1670_v4 }
 0x570   :  { %v11119_v48 = vpop.eup %11118  ;;  %11124 = vpow2.f32 %v1708_v1  ;;  %v1710_v52 = vmul.f32 1.442695, %v1689_v57  ;;  %v1780_v59 = vmul.f32 %v11117_v47, %v1668_v16 }
 0x571   :  { %v11121_v20 = vpop.eup %11120  ;;  %v1783_v10 = vmul.f32 %v11119_v48, %v1671_v58  ;;  %11126 = vpow2.f32 %v1714_v49 }
 0x572   :  { %v1781_v18 = vmul.f32 %v11121_v20, %v1669_v50  ;;  %11128 = vpow2.f32 %v1710_v52 }
 0x573   :  { %v1797_v38 = vpack.c.bf16 %v1783_v10, %v1782_v9 }
 0x574   :  { %v1796_v46 = vpack.c.bf16 %v1781_v18, %v1780_v59 }
 0x575   :  { %v10207_v0 = vpop.f32.mrb[32].mxu1 }
 0x576   :  { %10221 = vmatprep.mubr.msk.bf16.mxu0 %vm509_vm0, %v1796_v46  ;;  %v1588_v8 = vadd.f32 %v10207_v0, %v13906_v12  ;;  %v1579_v19 = vpop.f32.mrb[33].mxu1 }
 0x577   :  { %10222 = vmatmul.mubr.msk.bf16.vlgmr.msra.gmra.mrb[24].mxu0 %vm509_vm0, %v1797_v38  ;;  %v1580_v31 = vadd.f32 %v13906_v12, %v1579_v19  ;;  %v10208_v26 = vpop.f32.mrb[34].mxu1 }
 0x578   :  { %v14001_v30 = vadd.f32 %v1588_v8, %v13701_v11  ;;  %v1591_v62 = vadd.f32 %v10208_v26, %v13906_v12  ;;  %v1582_v51 = vpop.f32.mrb[35].mxu1  ;;  %v1675_v26 = vmul.f32 %v13982_v55, %v13977_v61 }
 0x579   :  { %v11123_v5 = vpop.eup %11122  ;;  %v14005_v34 = vadd.f32 %v1580_v31, %v13709_v6  ;;  %v1583_v43 = vadd.f32 %v13906_v12, %v1582_v51 }
 0x57a   :  { %v11125_v63 = vpop.eup %11124  ;;  %1636 = vst.msk [vmem:[#allocation29 + $0x50] sm:$0xff] %vm509_vm0, %v14001_v30  ;;  %v14011_v23 = vadd.f32 %v1591_v62, %v13713_v17  ;;  %v1738_v44 = vadd.f32 1.0, %v11123_v5  ;;  %v14026_v17 = vmul.f32 %v13910_v25, %v14001_v30 }
 0x57b   :  { %17676 = vst [vmem:[#allocation55_spill] sm:$0xff] %v14005_v34  ;;  %v11127_v37 = vpop.eup %11126  ;;  %1634 = vst.msk [vmem:[#allocation29 + $0x40] sm:$0xff] %vm509_vm0, %v14005_v34  ;;  %v14016_v11 = vadd.f32 %v1583_v43, %v13719_v24  ;;  %v1736_v53 = vadd.f32 1.0, %v11125_v63  ;;  %v14020_v6 = vmul.f32 %v13910_v25, %v14005_v34  ;;  %v1672_v43 = vmul.f32 %v13982_v55, %v13971_v29 }
 0x57c   :  { %17677 = vst [vmem:[#allocation56_spill] sm:$0xff] %v14011_v23  ;;  %v11129_v21 = vpop.eup %11128  ;;  %1637 = vst.msk [vmem:[#allocation29 + $0x58] sm:$0xff] %vm509_vm0, %v14011_v23  ;;  %v1739_v60 = vadd.f32 1.0, %v11127_v37  ;;  %11130 = vrcp.f32 %v1738_v44  ;;  %v14036_v7 = vmul.f32 %v13910_v25, %v14011_v23  ;;  %v1694_v49 = vsub.f32 0.0, %v14026_v17 }
 0x57d   :  { %17678 = vst [vmem:[#allocation57_spill] sm:$0xff] %v14016_v11  ;;  %1635 = vst.msk [vmem:[#allocation29 + $0x48] sm:$0xff] %vm509_vm0, %v14016_v11  ;;  %v10211_v24 = vpop.f32.mrb[36].mxu1  ;;  %v1737_v36 = vadd.f32 1.0, %v11129_v21  ;;  %11132 = vrcp.f32 %v1736_v53  ;;  %v14032_v33 = vmul.f32 %v13910_v25, %v14016_v11  ;;  %v1692_v13 = vsub.f32 0.0, %v14020_v6 }
 0x57e   :  { %v1604_v41 = vadd.f32 %v10211_v24, %v13906_v12  ;;  %v1595_v3 = vpop.f32.mrb[37].mxu1  ;;  %11134 = vrcp.f32 %v1739_v60  ;;  %v1695_v52 = vsub.f32 0.0, %v14036_v7  ;;  %v1720_v59 = vmul.f32 1.442695, %v1694_v49 }
 0x57f   :  { %v1596_v47 = vadd.f32 %v13906_v12, %v1595_v3  ;;  %v10212_v58 = vpop.f32.mrb[38].mxu1  ;;  %11136 = vrcp.f32 %v1737_v36  ;;  %v1693_v57 = vsub.f32 0.0, %v14032_v33  ;;  %v1716_v50 = vmul.f32 1.442695, %v1692_v13 }
 0x580   :  { %v14043_v1 = vadd.f32 %v1604_v41, %v13735_v22  ;;  %v1607_v48 = vadd.f32 %v10212_v58, %v13906_v12  ;;  %v1598_v16 = vpop.f32.mrb[39].mxu1  ;;  %v1674_v37 = vmul.f32 %v13982_v55, %v13962_v42 }
 0x581   :  { %v14048_v20 = vadd.f32 %v1596_v47, %v13738_v39  ;;  %v1599_v4 = vadd.f32 %v13906_v12, %v1598_v16  ;;  %v1718_v10 = vmul.f32 1.442695, %v1693_v57  ;;  %11138 = vpow2.f32 %v1716_v50 }
 0x582   :  { %17679 = vst [vmem:[#allocation58_spill] sm:$0xff] %v14043_v1  ;;  %1640 = vst.msk [vmem:[#allocation29 + $0x70] sm:$0xff] %vm509_vm0, %v14043_v1  ;;  %v14055_v22 = vadd.f32 %v1607_v48, %v13752_v2  ;;  %v14059_v18 = vmul.f32 %v13910_v25, %v14043_v1  ;;  %v1722_v12 = vmul.f32 1.442695, %v1695_v52 }
 0x583   :  { %17680 = vst [vmem:[#allocation59_spill] sm:$0xff] %v14048_v20  ;;  %1638 = vst.msk [vmem:[#allocation29 + $0x60] sm:$0xff] %vm509_vm0, %v14048_v20  ;;  %v14064_v39 = vadd.f32 %v1599_v4, %v13754_v56  ;;  %11140 = vpow2.f32 %v1718_v10  ;;  %v14068_v9 = vmul.f32 %v13910_v25, %v14048_v20 }
 0x584   :  { %17681 = vst [vmem:[#allocation60_spill] sm:$0xff] %v14055_v22  ;;  %1641 = vst.msk [vmem:[#allocation29 + $0x78] sm:$0xff] %vm509_vm0, %v14055_v22  ;;  %11142 = vpow2.f32 %v1720_v59  ;;  %v14074_v2 = vmul.f32 %v13910_v25, %v14055_v22  ;;  %v1698_v46 = vsub.f32 0.0, %v14059_v18 }
 0x585   :  { %17682 = vst [vmem:[#allocation61_spill] sm:$0xff] %v14064_v39  ;;  %1639 = vst.msk [vmem:[#allocation29 + $0x68] sm:$0xff] %vm509_vm0, %v14064_v39  ;;  %11144 = vpow2.f32 %v1722_v12  ;;  %v14081_v56 = vmul.f32 %v13910_v25, %v14064_v39  ;;  %v1696_v38 = vsub.f32 0.0, %v14068_v9  ;;  %v1673_v25 = vmul.f32 %v13982_v55, %v13986_v32 }
 0x586   :  { %v11131_v0 = vpop.eup %11130  ;;  %v1699_v8 = vsub.f32 0.0, %v14074_v2  ;;  %v1728_v19 = vmul.f32 1.442695, %v1698_v46  ;;  %v1676_v46 = vmul.f32 %v13982_v55, %v14020_v6 }
 0x587   :  { %v11133_v31 = vpop.eup %11132  ;;  %v1697_v62 = vsub.f32 0.0, %v14081_v56  ;;  %v1724_v51 = vmul.f32 1.442695, %v1696_v38  ;;  %v1786_v24 = vmul.f32 %v11131_v0, %v1674_v37  ;;  %v1677_v38 = vmul.f32 %v13982_v55, %v14032_v33 }
 0x588   :  { %v11135_v5 = vpop.eup %11134  ;;  %11146 = vpow2.f32 %v1728_v19  ;;  %v1730_v63 = vmul.f32 1.442695, %v1699_v8  ;;  %v1784_v61 = vmul.f32 %v11133_v31, %v1672_v43  ;;  %v1680_v37 = vmul.f32 %v13982_v55, %v14068_v9  ;;  %v10770_v9 = vld [vmem:[#allocation10 + $0x20] sm:$0xff]  }
 0x589   :  { %v11137_v44 = vpop.eup %11136  ;;  %v1787_v53 = vmul.f32 %v11135_v5, %v1675_v26  ;;  %11148 = vpow2.f32 %v1724_v51  ;;  %v1726_v21 = vmul.f32 1.442695, %v1697_v62  ;;  %v1678_v26 = vmul.f32 %v13982_v55, %v14026_v17  ;;  %10237 = vmatprep.subr.bf16.mxu1 %v10770_v9 }
 0x58a   :  { %v1785_v60 = vmul.f32 %v11137_v44, %v1673_v25  ;;  %11150 = vpow2.f32 %v1730_v63  ;;  %v1679_v62 = vmul.f32 %v13982_v55, %v14036_v7  ;;  %v1681_v17 = vmul.f32 %v13982_v55, %v14081_v56  ;;  %10238 = vmatpush3.bf16.msra.mxu1 %v10770_v9  ;;  %v10771_v56 = vld [vmem:[#allocation10 + $0x28] sm:$0xff]  }
 0x58b   :  { %11152 = vpow2.f32 %v1726_v21  ;;  %v11139_v36 = vpop.eup %11138  ;;  %v1799_v3 = vpack.c.bf16 %v1787_v53, %v1786_v24  ;;  %v1683_v7 = vmul.f32 %v13982_v55, %v14074_v2  ;;  %10239 = vmatprep.subr.bf16.mxu1 %v10771_v56  ;;  %v10772_v2 = vld [vmem:[#allocation10 + $0x30] sm:$0xff]  }
 0x58c   :  { %v1798_v41 = vpack.c.bf16 %v1785_v60, %v1784_v61  ;;  %v1740_v13 = vadd.f32 1.0, %v11139_v36  ;;  %v1682_v60 = vmul.f32 %v13982_v55, %v14059_v18  ;;  %v14116_v55 = vld [vmem:[#allocation13] sm:$0xff]  }
 0x58d   :  { %v11141_v29 = vpop.eup %11140  ;;  %v14119_v18 = vld [vmem:[#allocation8 + $0x2] ss:$0 sm:$0xff] }
 0x58e   :  { %v11143_v32 = vpop.eup %11142  ;;  %10225 = vmatprep.mubr.msk.bf16.mxu0 %vm509_vm0, %v1798_v41  ;;  %v1741_v47 = vadd.f32 1.0, %v11141_v29  ;;  %11154 = vrcp.f32 %v1740_v13  ;;  %10240 = vmatpush3.bf16.msra.mxu1 %v10771_v56 }
 0x58f   :  { %v11145_v58 = vpop.eup %11144  ;;  %10226 = vmatmul.mubr.msk.bf16.gmra.mrb[28].mxu0 %vm509_vm0, %v1799_v3  ;;  %v1742_v42 = vadd.f32 1.0, %v11143_v32  ;;  %10241 = vmatprep.subr.bf16.mxu1 %v10772_v2  ;;  %v10773_v3 = vld [vmem:[#allocation10 + $0x38] sm:$0xff]   ;;  %v14121_v32 = vld [vmem:[#allocation8 + $0x4] ss:$0 sm:$0xff] }
 0x590   :  { %11156 = vrcp.f32 %v1741_v47  ;;  %v1743_v57 = vadd.f32 1.0, %v11145_v58 }
 0x591   :  { %11158 = vrcp.f32 %v1742_v42 }
 0x592   :  { %v11147_v48 = vpop.eup %11146  ;;  %11160 = vrcp.f32 %v1743_v57  ;;  %10242 = vmatpush3.bf16.msra.mxu1 %v10772_v2 }
 0x593   :  { %v11149_v16 = vpop.eup %11148  ;;  %v1746_v50 = vadd.f32 1.0, %v11147_v48  ;;  %10243 = vmatprep.subr.bf16.mxu1 %v10773_v3 }
 0x594   :  { %v11151_v49 = vpop.eup %11150  ;;  %v1744_v4 = vadd.f32 1.0, %v11149_v16 }
 0x595   :  { %v11153_v10 = vpop.eup %11152  ;;  %v1747_v52 = vadd.f32 1.0, %v11151_v49  ;;  %11162 = vrcp.f32 %v1746_v50 }
 0x596   :  { %v1745_v59 = vadd.f32 1.0, %v11153_v10  ;;  %11164 = vrcp.f32 %v1744_v4  ;;  %10244 = vmatpush3.bf16.msra.mxu1 %v10773_v3 }
 0x597   :  { %11166 = vrcp.f32 %v1747_v52  ;;  %10285 = vmatprep.subr.bf16.mxu1 %v14116_v55 }
 0x598   :  { %11168 = vrcp.f32 %v1745_v59  ;;  %v11155_v12 = vpop.eup %11154 }
 0x599   :  { %v1788_v19 = vmul.f32 %v11155_v12, %v1676_v46 }
 0x59a   :  { %v11157_v0 = vpop.eup %11156 }
 0x59b   :  { %v11159_v8 = vpop.eup %11158  ;;  %v1789_v31 = vmul.f32 %v11157_v0, %v1677_v38 }
 0x59c   :  { %v11161_v51 = vpop.eup %11160  ;;  %v1790_v43 = vmul.f32 %v11159_v8, %v1678_v26  ;;  %v14140_v26 = vld [vmem:[#allocation11 + $0x1] ss:$0 sm:$0xff] }
 0x59d   :  { %v1800_v5 = vpack.c.bf16 %v1789_v31, %v1788_v19  ;;  %v1791_v25 = vmul.f32 %v11161_v51, %v1679_v62  ;;  %v14144_v62 = vmul.f32 %v14140_v26, %v13917_v45  ;;  %v14148_v51 = vmul.f32 %v14140_v26, %v13932_v54 }
 0x59f   :  { %v11163_v63 = vpop.eup %11162  ;;  %10229 = vmatprep.mubr.msk.bf16.mxu0 %vm509_vm0, %v1800_v5  ;;  %v1801_v6 = vpack.c.bf16 %v1791_v25, %v1790_v43  ;;  %v2662_v43 = vsub.f32 0.0, %v14144_v62  ;;  %v14153_v25 = vmul.f32 %v14140_v26, %v13913_v40 }
 0x5a0   :  { %v11165_v44 = vpop.eup %11164  ;;  %v1794_v41 = vmul.f32 %v11163_v63, %v1682_v60 }
 0x5a1   :  { %v11167_v33 = vpop.eup %11166  ;;  %10230 = vmatmul.mubr.msk.bf16.gmra.mrb[32].mxu0 %vm509_vm0, %v1801_v6  ;;  %v1792_v21 = vmul.f32 %v11165_v44, %v1680_v37  ;;  %v2663_v44 = vsub.f32 0.0, %v14148_v51 }
 0x5a2   :  { %v11169_v53 = vpop.eup %11168  ;;  %v1795_v24 = vmul.f32 %v11167_v33, %v1683_v7 }
 0x5a3   :  { %v1793_v61 = vmul.f32 %v11169_v53, %v1681_v17  ;;  %v2680_v60 = vmul.f32 1.442695, %v2663_v44 }
 0x5a4   :  { %v1803_v29 = vpack.c.bf16 %v1795_v24, %v1794_v41 }
 0x5a5   :  { %v1802_v36 = vpack.c.bf16 %v1793_v61, %v1792_v21  ;;  %v2678_v21 = vmul.f32 1.442695, %v2662_v43  ;;  %v2664_v61 = vsub.f32 0.0, %v14153_v25 }
 0x5a7   :  { %10233 = vmatprep.mubr.msk.bf16.mxu0 %vm509_vm0, %v1802_v36  ;;  %v2682_v56 = vmul.f32 1.442695, %v2664_v61 }
 0x5a9   :  { %10234 = vmatmul.mubr.msk.bf16.gmra.mrb[36].mxu0 %vm509_vm0, %v1803_v29 }
 0x64a   :  { %v10223_v13 = vpop.f32.mrb[24].mxu0 }
 0x64b   :  { %v1908_v47 = vadd.f32 %v10223_v13, %v14119_v18  ;;  %v1899_v58 = vpop.f32.mrb[25].mxu0 }
 0x64c   :  { %v1900_v42 = vadd.f32 %v14119_v18, %v1899_v58  ;;  %v10224_v57 = vpop.f32.mrb[26].mxu0 }
 0x64d   :  { %v14126_v48 = vmul.f32 %v14121_v32, %v1908_v47  ;;  %v1911_v16 = vadd.f32 %v10224_v57, %v14119_v18  ;;  %v1902_v50 = vpop.f32.mrb[27].mxu0  ;;  %v14165_v47 = vmul.f32 %v14140_v26, %v13923_v15  ;;  %v14171_v57 = vld [vmem:[#allocation8 + $0x3] ss:$0 sm:$0xff] }
 0x64e   :  { %v14130_v49 = vmul.f32 %v14121_v32, %v1900_v42  ;;  %v1903_v4 = vadd.f32 %v14119_v18, %v1902_v50 }
 0x64f   :  { %v2006_v10 = vsub.f32 0.0, %v14126_v48  ;;  %v1971_v52 = vmul.f32 %v14121_v32, %v1911_v16 }
 0x650   :  { %v2004_v59 = vsub.f32 0.0, %v14130_v49  ;;  %v14137_v12 = vmul.f32 %v14121_v32, %v1903_v4 }
 0x651   :  { %v2024_v46 = vmul.f32 1.442695, %v2006_v10  ;;  %v2007_v38 = vsub.f32 0.0, %v1971_v52 }
 0x652   :  { %v2020_v0 = vmul.f32 1.442695, %v2004_v59  ;;  %v2005_v8 = vsub.f32 0.0, %v14137_v12  ;;  %v1989_v44 = vmul.f32 %v14171_v57, %v14137_v12 }
 0x653   :  { %11170 = vpow2.f32 %v2024_v46  ;;  %v2026_v19 = vmul.f32 1.442695, %v2007_v38 }
 0x654   :  { %11172 = vpow2.f32 %v2020_v0  ;;  %v2022_v31 = vmul.f32 1.442695, %v2005_v8  ;;  %v2665_v0 = vsub.f32 0.0, %v14165_v47 }
 0x655   :  { %11174 = vpow2.f32 %v2026_v19  ;;  %v1990_v19 = vmul.f32 %v14171_v57, %v14126_v48 }
 0x656   :  { %11176 = vpow2.f32 %v2022_v31  ;;  %v1991_v31 = vmul.f32 %v14171_v57, %v1971_v52 }
 0x65d   :  { %v11171_v5 = vpop.eup %11170 }
 0x65e   :  { %v11173_v63 = vpop.eup %11172  ;;  %v2054_v6 = vadd.f32 1.0, %v11171_v5 }
 0x65f   :  { %v11175_v33 = vpop.eup %11174  ;;  %v2052_v37 = vadd.f32 1.0, %v11173_v63 }
 0x660   :  { %v11177_v17 = vpop.eup %11176  ;;  %11178 = vrcp.f32 %v2054_v6  ;;  %v2055_v7 = vadd.f32 1.0, %v11175_v33  ;;  %v1988_v6 = vmul.f32 %v14171_v57, %v14130_v49  ;;  %v2684_v49 = vmul.f32 1.442695, %v2665_v0 }
 0x661   :  { %11180 = vrcp.f32 %v2052_v37  ;;  %v2053_v53 = vadd.f32 1.0, %v11177_v17 }
 0x662   :  { %11182 = vrcp.f32 %v2055_v7  ;;  %v10227_v24 = vpop.f32.mrb[28].mxu0 }
 0x663   :  { %11184 = vrcp.f32 %v2053_v53  ;;  %v1924_v36 = vadd.f32 %v10227_v24, %v14119_v18  ;;  %v1915_v41 = vpop.f32.mrb[29].mxu0 }
 0x664   :  { %v1916_v29 = vadd.f32 %v14119_v18, %v1915_v41  ;;  %v10228_v9 = vpop.f32.mrb[30].mxu0  ;;  %11186 = vpow2.f32 %v2678_v21 }
 0x665   :  { %v14160_v2 = vmul.f32 %v14121_v32, %v1924_v36  ;;  %v1927_v3 = vadd.f32 %v10228_v9, %v14119_v18  ;;  %v1918_v13 = vpop.f32.mrb[31].mxu0  ;;  %11188 = vpow2.f32 %v2680_v60  ;;  %v10775_v36 = vld [vmem:[#allocation13 + $0x8] sm:$0xff]   ;;  %v14196_v9 = vmul.f32 %v14140_v26, %v13967_v27 }
 0x666   :  { %v14168_v58 = vmul.f32 %v14121_v32, %v1916_v29  ;;  %v1919_v42 = vadd.f32 %v14119_v18, %v1918_v13  ;;  %11190 = vpow2.f32 %v2682_v56 }
 0x667   :  { %v2010_v16 = vsub.f32 0.0, %v14160_v2  ;;  %v14175_v50 = vmul.f32 %v14121_v32, %v1927_v3  ;;  %v10776_v3 = vld [vmem:[#allocation13 + $0x10] sm:$0xff]  }
 0x668   :  { %v2008_v4 = vsub.f32 0.0, %v14168_v58  ;;  %v14179_v10 = vmul.f32 %v14121_v32, %v1919_v42 }
 0x669   :  { %v2032_v46 = vmul.f32 1.442695, %v2010_v16  ;;  %v2011_v38 = vsub.f32 0.0, %v14175_v50 }
 0x66a   :  { %v11179_v59 = vpop.eup %11178  ;;  %v2028_v5 = vmul.f32 1.442695, %v2008_v4  ;;  %v2009_v43 = vsub.f32 0.0, %v14179_v10 }
 0x66b   :  { %v11181_v8 = vpop.eup %11180  ;;  %11192 = vpow2.f32 %v2032_v46  ;;  %v2034_v33 = vmul.f32 1.442695, %v2011_v38  ;;  %v2102_v17 = vmul.f32 %v11179_v59, %v1990_v19 }
 0x66c   :  { %v11183_v63 = vpop.eup %11182  ;;  %11194 = vpow2.f32 %v2028_v5  ;;  %v2030_v53 = vmul.f32 1.442695, %v2009_v43  ;;  %v2100_v48 = vmul.f32 %v11181_v8, %v1988_v6 }
 0x66d   :  { %v11185_v37 = vpop.eup %11184  ;;  %v2103_v7 = vmul.f32 %v11183_v63, %v1991_v31  ;;  %11196 = vpow2.f32 %v2034_v33  ;;  %v2667_v63 = vsub.f32 0.0, %v14196_v9 }
 0x66e   :  { %v2101_v21 = vmul.f32 %v11185_v37, %v1989_v44  ;;  %v11187_v52 = vpop.eup %11186  ;;  %11198 = vpow2.f32 %v2030_v53 }
 0x66f   :  { %v2117_v61 = vpack.c.bf16 %v2103_v7, %v2102_v17  ;;  %v11189_v60 = vpop.eup %11188  ;;  %v2710_v12 = vadd.f32 1.0, %v11187_v52  ;;  %11200 = vpow2.f32 %v2684_v49  ;;  %v10777_v17 = vld [vmem:[#allocation13 + $0x18] sm:$0xff]  }
 0x670   :  { %v2116_v24 = vpack.c.bf16 %v2101_v21, %v2100_v48  ;;  %v11191_v41 = vpop.eup %11190  ;;  %v2711_v29 = vadd.f32 1.0, %v11189_v60  ;;  %v14216_v48 = vmul.f32 %v14140_v26, %v13948_v28 }
 0x671   :  { %11202 = vrcp.f32 %v2710_v12  ;;  %v2712_v4 = vadd.f32 1.0, %v11191_v41 }
 0x672   :  { %10245 = vmatprep.mubr.msk.bf16.mxu1 %vm509_vm0, %v2116_v24  ;;  %11204 = vrcp.f32 %v2711_v29  ;;  %v2688_v24 = vmul.f32 1.442695, %v2667_v63 }
 0x673   :  { %10246 = vmatmul.mubr.msk.bf16.vlgmr.msra.gmra.mrb[40].mxu1 %vm509_vm0, %v2117_v61 }
 0x674   :  { %10286 = vmatpush3.bf16.msra.mxu1 %v14116_v55  ;;  %v10231_v56 = vpop.f32.mrb[32].mxu0  ;;  %v14202_v55 = vmul.f32 %v14140_v26, %v13952_v35 }
 0x675   :  { %10287 = vmatprep.subr.bf16.mxu1 %v10775_v36  ;;  %v11193_v13 = vpop.eup %11192  ;;  %v1940_v42 = vadd.f32 %v10231_v56, %v14119_v18  ;;  %v1931_v16 = vpop.f32.mrb[33].mxu0 }
 0x676   :  { %v11195_v59 = vpop.eup %11194  ;;  %v2058_v46 = vadd.f32 1.0, %v11193_v13  ;;  %v1932_v38 = vadd.f32 %v14119_v18, %v1931_v16  ;;  %v10232_v0 = vpop.f32.mrb[34].mxu0  ;;  %v2666_v41 = vsub.f32 0.0, %v14202_v55 }
 0x677   :  { %v11197_v8 = vpop.eup %11196  ;;  %v2056_v19 = vadd.f32 1.0, %v11195_v59  ;;  %v14205_v31 = vmul.f32 %v14121_v32, %v1940_v42  ;;  %v1943_v5 = vadd.f32 %v10232_v0, %v14119_v18  ;;  %v1934_v43 = vpop.f32.mrb[35].mxu0  ;;  %v2668_v42 = vsub.f32 0.0, %v14216_v48 }
 0x678   :  { %10288 = vmatpush3.bf16.msra.mxu1 %v10775_v36  ;;  %v11199_v6 = vpop.eup %11198  ;;  %11206 = vrcp.f32 %v2058_v46  ;;  %v2059_v44 = vadd.f32 1.0, %v11197_v8  ;;  %v14210_v33 = vmul.f32 %v14121_v32, %v1932_v38  ;;  %v1935_v37 = vadd.f32 %v14119_v18, %v1934_v43 }
 0x679   :  { %10289 = vmatprep.subr.bf16.mxu1 %v10776_v3  ;;  %11208 = vrcp.f32 %v2056_v19  ;;  %v2057_v7 = vadd.f32 1.0, %v11199_v6  ;;  %v2014_v53 = vsub.f32 0.0, %v14205_v31  ;;  %v14220_v52 = vmul.f32 %v14121_v32, %v1943_v5  ;;  %v14230_v16 = vpop.eup %11200 }
 0x67a   :  { %11210 = vrcp.f32 %v2059_v44  ;;  %v2012_v21 = vsub.f32 0.0, %v14210_v33  ;;  %v14223_v60 = vmul.f32 %v14121_v32, %v1935_v37  ;;  %v2686_v44 = vmul.f32 1.442695, %v2666_v41 }
 0x67b   :  { %11212 = vrcp.f32 %v2057_v7  ;;  %v2040_v61 = vmul.f32 1.442695, %v2014_v53  ;;  %v2015_v49 = vsub.f32 0.0, %v14220_v52  ;;  %v14237_v38 = vpop.eup %11202  ;;  %v2690_v53 = vmul.f32 1.442695, %v2668_v42 }
 0x67c   :  { %10290 = vmatpush3.bf16.msra.mxu1 %v10776_v3  ;;  %v2036_v36 = vmul.f32 1.442695, %v2012_v21  ;;  %v10235_v12 = vpop.f32.mrb[36].mxu0  ;;  %11214 = vrcp.f32 %v2712_v4  ;;  %v2013_v29 = vsub.f32 0.0, %v14223_v60  ;;  %v14235_v4 = vmul.f32 %v14140_v26, %v13958_v14  ;;  %v14243_v43 = vpop.eup %11204 }
 0x67d   :  { %10291 = vmatprep.subr.bf16.mxu1 %v10777_v17  ;;  %11216 = vpow2.f32 %v2040_v61  ;;  %v1956_v56 = vadd.f32 %v10235_v12, %v14119_v18  ;;  %v1947_v13 = vpop.f32.mrb[37].mxu0  ;;  %v2042_v3 = vmul.f32 1.442695, %v2015_v49  ;;  %v1994_v49 = vmul.f32 %v14171_v57, %v14160_v2 }
 0x67e   :  { %11218 = vpow2.f32 %v2036_v36  ;;  %v1948_v59 = vadd.f32 %v14119_v18, %v1947_v13  ;;  %v10236_v46 = vpop.f32.mrb[38].mxu0  ;;  %v2038_v0 = vmul.f32 1.442695, %v2013_v29  ;;  %v1995_v12 = vmul.f32 %v14171_v57, %v14175_v50 }
 0x67f   :  { %v14240_v8 = vmul.f32 %v14121_v32, %v1956_v56  ;;  %v1959_v19 = vadd.f32 %v10236_v46, %v14119_v18  ;;  %v1950_v5 = vpop.f32.mrb[39].mxu0  ;;  %11220 = vpow2.f32 %v2688_v24  ;;  %v14259_v24 = vmul.f32 %v14140_v26, %v14005_v34 }
 0x680   :  { %10292 = vmatpush3.bf16.msra.mxu1 %v10777_v17  ;;  %11222 = vpow2.f32 %v2042_v3  ;;  %v14246_v63 = vmul.f32 %v14121_v32, %v1948_v59  ;;  %v1951_v6 = vadd.f32 %v14119_v18, %v1950_v5  ;;  %v14263_v18 = vmul.f32 %v14140_v26, %v14016_v11 }
 0x681   :  { %11224 = vpow2.f32 %v2038_v0  ;;  %v2018_v37 = vsub.f32 0.0, %v14240_v8  ;;  %v14251_v7 = vmul.f32 %v14121_v32, %v1959_v19  ;;  %v1992_v56 = vmul.f32 %v14171_v57, %v14168_v58 }
 0x682   :  { %v11207_v21 = vpop.eup %11206  ;;  %v2016_v17 = vsub.f32 0.0, %v14246_v63  ;;  %v14255_v61 = vmul.f32 %v14121_v32, %v1951_v6  ;;  %v1993_v13 = vmul.f32 %v14171_v57, %v14179_v10  ;;  %v2669_v11 = vsub.f32 0.0, %v14235_v4 }
 0x683   :  { %v11209_v36 = vpop.eup %11208  ;;  %v2048_v41 = vmul.f32 1.442695, %v2018_v37  ;;  %v2019_v29 = vsub.f32 0.0, %v14251_v7  ;;  %v2106_v46 = vmul.f32 %v11207_v21, %v1994_v49  ;;  %v2670_v21 = vsub.f32 0.0, %v14259_v24 }
 0x684   :  { %v11211_v32 = vpop.eup %11210  ;;  %v2044_v42 = vmul.f32 1.442695, %v2016_v17  ;;  %v2017_v3 = vsub.f32 0.0, %v14255_v61  ;;  %v2104_v50 = vmul.f32 %v11209_v36, %v1992_v56  ;;  %v2692_v56 = vmul.f32 1.442695, %v2669_v11 }
 0x685   :  { %v11213_v59 = vpop.eup %11212  ;;  %v2107_v0 = vmul.f32 %v11211_v32, %v1995_v12  ;;  %11226 = vpow2.f32 %v2048_v41  ;;  %v2050_v2 = vmul.f32 1.442695, %v2019_v29  ;;  %v2671_v41 = vsub.f32 0.0, %v14263_v18 }
 0x686   :  { %v14275_v19 = vpop.eup %11214  ;;  %v2105_v5 = vmul.f32 %v11213_v59, %v1993_v13  ;;  %11228 = vpow2.f32 %v2044_v42  ;;  %v2046_v6 = vmul.f32 1.442695, %v2017_v3  ;;  %v2694_v42 = vmul.f32 1.442695, %v2670_v21 }
 0x687   :  { %v11217_v37 = vpop.eup %11216  ;;  %11230 = vpow2.f32 %v2050_v2  ;;  %v2119_v58 = vpack.c.bf16 %v2107_v0, %v2106_v46  ;;  %v2696_v3 = vmul.f32 1.442695, %v2671_v41  ;;  %v14292_v11 = vmul.f32 %v14140_v26, %v14001_v30 }
 0x688   :  { %v11219_v10 = vpop.eup %11218  ;;  %v2062_v17 = vadd.f32 1.0, %v11217_v37  ;;  %11232 = vpow2.f32 %v2046_v6  ;;  %v2118_v34 = vpack.c.bf16 %v2105_v5, %v2104_v50  ;;  %v14296_v50 = vmul.f32 %v14140_v26, %v14048_v20 }
 0x689   :  { %v11221_v49 = vpop.eup %11220  ;;  %v2060_v12 = vadd.f32 1.0, %v11219_v10  ;;  %11234 = vpow2.f32 %v2686_v44  ;;  %v14284_v44 = vmul.f32 %v14140_v26, %v14011_v23  ;;  %v2672_v41 = vsub.f32 0.0, %v14292_v11 }
 0x68a   :  { %v11223_v36 = vpop.eup %11222  ;;  %10249 = vmatprep.mubr.msk.bf16.mxu1 %vm509_vm0, %v2118_v34  ;;  %11236 = vpow2.f32 %v2690_v53  ;;  %v14288_v34 = vmul.f32 %v14140_v26, %v14064_v39 }
 0x68b   :  { %v11225_v29 = vpop.eup %11224  ;;  %11238 = vrcp.f32 %v2062_v17  ;;  %v2063_v32 = vadd.f32 1.0, %v11223_v36  ;;  %10250 = vmatmul.mubr.msk.bf16.gmra.mrb[44].mxu1 %vm509_vm0, %v2119_v58  ;;  %v2673_v37 = vsub.f32 0.0, %v14284_v44 }
 0x68c   :  { %11240 = vrcp.f32 %v2060_v12  ;;  %v2061_v13 = vadd.f32 1.0, %v11225_v29  ;;  %v2675_v17 = vsub.f32 0.0, %v14288_v34  ;;  %v2713_v12 = vadd.f32 1.0, %v14230_v16 }
 0x68d   :  { %11242 = vrcp.f32 %v2063_v32  ;;  %v2715_v29 = vadd.f32 1.0, %v11221_v49  ;;  %v2674_v32 = vsub.f32 0.0, %v14296_v50  ;;  %v1997_v49 = vmul.f32 %v14171_v57, %v14223_v60 }
 0x68e   :  { %11244 = vrcp.f32 %v2061_v13  ;;  %v1998_v13 = vmul.f32 %v14171_v57, %v14205_v31 }
 0x68f   :  { %v11227_v59 = vpop.eup %11226  ;;  %11246 = vpow2.f32 %v2692_v56  ;;  %v2702_v39 = vmul.f32 1.442695, %v2674_v32 }
 0x690   :  { %v11229_v53 = vpop.eup %11228  ;;  %v2066_v46 = vadd.f32 1.0, %v11227_v59  ;;  %11248 = vpow2.f32 %v2694_v42  ;;  %v1999_v42 = vmul.f32 %v14171_v57, %v14220_v52  ;;  %v14311_v59 = vmul.f32 %v14140_v26, %v14055_v22 }
 0x691   :  { %v11231_v0 = vpop.eup %11230  ;;  %v2064_v2 = vadd.f32 1.0, %v11229_v53  ;;  %11250 = vpow2.f32 %v2696_v3  ;;  %v2700_v3 = vmul.f32 1.442695, %v2673_v37  ;;  %v1996_v53 = vmul.f32 %v14171_v57, %v14210_v33 }
 0x692   :  { %v11233_v5 = vpop.eup %11232  ;;  %11252 = vrcp.f32 %v2066_v46  ;;  %v2067_v6 = vadd.f32 1.0, %v11231_v0  ;;  %v2704_v46 = vmul.f32 1.442695, %v2675_v17  ;;  %v14319_v0 = vmul.f32 %v14140_v26, %v14043_v1 }
 0x693   :  { %v11235_v58 = vpop.eup %11234  ;;  %11254 = vrcp.f32 %v2064_v2  ;;  %v2065_v10 = vadd.f32 1.0, %v11233_v5  ;;  %v2698_v5 = vmul.f32 1.442695, %v2672_v41  ;;  %v2677_v60 = vsub.f32 0.0, %v14311_v59 }
 0x694   :  { %v14300_v21 = vpop.eup %11236  ;;  %11256 = vrcp.f32 %v2067_v6  ;;  %v2714_v20 = vadd.f32 1.0, %v11235_v58  ;;  %v2676_v26 = vsub.f32 0.0, %v14319_v0  ;;  %v2002_v41 = vmul.f32 %v14171_v57, %v14240_v8  ;;  %v14328_v58 = vld [vmem:[#allocation11] ss:$0 sm:$0xff] }
 0x695   :  { %v11239_v36 = vpop.eup %11238  ;;  %11258 = vrcp.f32 %v2065_v10  ;;  %v2708_v8 = vmul.f32 1.442695, %v2677_v60  ;;  %v2648_v60 = vmul.f32 %v14328_v58, %v14153_v25 }
 0x696   :  { %v11241_v56 = vpop.eup %11240  ;;  %v2110_v2 = vmul.f32 %v11239_v36, %v1998_v13  ;;  %11260 = vrcp.f32 %v2713_v12  ;;  %v2000_v13 = vmul.f32 %v14171_v57, %v14246_v63 }
 0x697   :  { %v11243_v16 = vpop.eup %11242  ;;  %v2108_v37 = vmul.f32 %v11241_v56, %v1996_v53  ;;  %11262 = vrcp.f32 %v2715_v29  ;;  %v2003_v29 = vmul.f32 %v14171_v57, %v14251_v7  ;;  %v2706_v53 = vmul.f32 1.442695, %v2676_v26 }
 0x698   :  { %v11245_v31 = vpop.eup %11244  ;;  %v2111_v52 = vmul.f32 %v11243_v16, %v1999_v42  ;;  %11264 = vpow2.f32 %v2700_v3  ;;  %v2001_v42 = vmul.f32 %v14171_v57, %v14255_v61  ;;  %v2716_v61 = vadd.f32 1.0, %v14300_v21 }
 0x699   :  { %v11247_v6 = vpop.eup %11246  ;;  %v2109_v10 = vmul.f32 %v11245_v31, %v1997_v49  ;;  %11266 = vpow2.f32 %v2704_v46  ;;  %v2646_v46 = vmul.f32 %v14328_v58, %v14144_v62 }
 0x69a   :  { %v11249_v22 = vpop.eup %11248  ;;  %v2121_v33 = vpack.c.bf16 %v2111_v52, %v2110_v2  ;;  %11268 = vpow2.f32 %v2698_v5  ;;  %v2717_v32 = vadd.f32 1.0, %v11247_v6 }
 0x69b   :  { %v11251_v17 = vpop.eup %11250  ;;  %v2120_v23 = vpack.c.bf16 %v2109_v10, %v2108_v37  ;;  %11270 = vpow2.f32 %v2702_v39  ;;  %v2718_v52 = vadd.f32 1.0, %v11249_v22 }
 0x69c   :  { %v11253_v36 = vpop.eup %11252  ;;  %11272 = vrcp.f32 %v2714_v20  ;;  %v2719_v63 = vadd.f32 1.0, %v11251_v17 }
 0x69d   :  { %v11255_v12 = vpop.eup %11254  ;;  %10253 = vmatprep.mubr.msk.bf16.mxu1 %vm509_vm0, %v2120_v23  ;;  %v2114_v16 = vmul.f32 %v11253_v36, %v2002_v41  ;;  %v2647_v23 = vmul.f32 %v14328_v58, %v14148_v51  ;;  %11274 = vrcp.f32 %v2717_v32  ;;  %v2758_v51 = vmul.f32 %v14237_v38, %v2646_v46 }
 0x69e   :  { %v11257_v56 = vpop.eup %11256  ;;  %10254 = vmatmul.mubr.msk.bf16.gmra.mrb[48].mxu1 %vm509_vm0, %v2121_v33  ;;  %v2112_v49 = vmul.f32 %v11255_v12, %v2000_v13  ;;  %11276 = vpow2.f32 %v2708_v8  ;;  %v2651_v38 = vmul.f32 %v14328_v58, %v14196_v9  ;;  %v2650_v36 = vmul.f32 %v14328_v58, %v14202_v55 }
 0x69f   :  { %v11259_v3 = vpop.eup %11258  ;;  %v2115_v7 = vmul.f32 %v11257_v56, %v2003_v29  ;;  %v2759_v57 = vmul.f32 %v14243_v43, %v2647_v23  ;;  %11278 = vpow2.f32 %v2706_v53  ;;  %v2649_v43 = vmul.f32 %v14328_v58, %v14165_v47 }
 0x6a0   :  { %v2113_v39 = vmul.f32 %v11259_v3, %v2001_v42  ;;  %v11261_v20 = vpop.eup %11260  ;;  %11280 = vrcp.f32 %v2719_v63  ;;  %v2760_v47 = vmul.f32 %v14275_v19, %v2648_v60  ;;  %v2653_v55 = vmul.f32 %v14328_v58, %v14235_v4  ;;  %v10779_v60 = vld [vmem:[#allocation10 + $0x48] sm:$0xff]  }
 0x6a1   :  { %v2123_v31 = vpack.c.bf16 %v2115_v7, %v2114_v16  ;;  %v11263_v5 = vpop.eup %11262  ;;  %v2774_v37 = vpack.c.bf16 %v2759_v57, %v2758_v51  ;;  %11282 = vrcp.f32 %v2716_v61  ;;  %v2761_v17 = vmul.f32 %v11261_v20, %v2649_v43 }
 0x6a2   :  { %v2122_v2 = vpack.c.bf16 %v2113_v39, %v2112_v49  ;;  %v11265_v6 = vpop.eup %11264  ;;  %11284 = vrcp.f32 %v2718_v52  ;;  %v2763_v12 = vmul.f32 %v11263_v5, %v2651_v38  ;;  %v2655_v19 = vmul.f32 %v14328_v58, %v14263_v18 }
 0x6a3   :  { %v11267_v62 = vpop.eup %11266  ;;  %v2721_v21 = vadd.f32 1.0, %v11265_v6  ;;  %v2775_v9 = vpack.c.bf16 %v2761_v17, %v2760_v47  ;;  %v2652_v23 = vmul.f32 %v14328_v58, %v14216_v48  ;;  %v2654_v49 = vmul.f32 %v14328_v58, %v14259_v24  ;;  %v10780_v17 = vld [vmem:[#allocation10 + $0x50] sm:$0xff]  }
 0x6a4   :  { %10257 = vmatprep.mubr.msk.bf16.mxu1 %vm509_vm0, %v2122_v2  ;;  %v11269_v10 = vpop.eup %11268  ;;  %v2723_v26 = vadd.f32 1.0, %v11267_v62  ;;  %v2657_v18 = vmul.f32 %v14328_v58, %v14284_v44  ;;  %v2659_v24 = vmul.f32 %v14328_v58, %v14288_v34  ;;  %v2656_v52 = vmul.f32 %v14328_v58, %v14292_v11 }
 0x6a5   :  { %v11271_v22 = vpop.eup %11270  ;;  %v2720_v41 = vadd.f32 1.0, %v11269_v10  ;;  %11286 = vrcp.f32 %v2721_v21  ;;  %v2658_v51 = vmul.f32 %v14328_v58, %v14296_v50  ;;  %v2660_v11 = vmul.f32 %v14328_v58, %v14319_v0  ;;  %v14384_v0 = vld [vmem:[#allocation8 + $0x5] ss:$0 sm:$0xff] }
 0x6a6   :  { %10258 = vmatmul.mubr.msk.bf16.gmra.mrb[52].mxu1 %vm509_vm0, %v2123_v31  ;;  %v11273_v33 = vpop.eup %11272  ;;  %v2722_v29 = vadd.f32 1.0, %v11271_v22  ;;  %11288 = vrcp.f32 %v2723_v26  ;;  %v2661_v22 = vmul.f32 %v14328_v58, %v14311_v59  ;;  %v10781_v59 = vld [vmem:[#allocation10 + $0x58] sm:$0xff]   ;;  %v14381_v26 = vld [vmem:[#allocation13 + $0x20] sm:$0xff]  }
 0x6a7   :  { %10293 = vmatprep.mubr.msk.bf16.mxu1 %vm509_vm0, %v2774_v37  ;;  %v11275_v32 = vpop.eup %11274  ;;  %v2762_v56 = vmul.f32 %v11273_v33, %v2650_v36  ;;  %11290 = vrcp.f32 %v2720_v41  ;;  %v10778_v33 = vld [vmem:[#allocation10 + $0x40] sm:$0xff]   ;;  %v14387_v41 = vld [vmem:[#allocation8 + $0x7] ss:$0 sm:$0xff] }
 0x6a8   :  { %v11277_v13 = vpop.eup %11276  ;;  %11292 = vrcp.f32 %v2722_v29  ;;  %v2765_v53 = vmul.f32 %v11275_v32, %v2653_v55  ;;  %10261 = vmatprep.subr.bf16.mxu0 %v10778_v33 }
 0x6a9   :  { %v11279_v42 = vpop.eup %11278  ;;  %v2776_v8 = vpack.c.bf16 %v2763_v12, %v2762_v56  ;;  %v2725_v16 = vadd.f32 1.0, %v11277_v13  ;;  %10262 = vmatpush3.bf16.msra.mxu0 %v10778_v33 }
 0x6aa   :  { %v11281_v25 = vpop.eup %11280  ;;  %v2724_v46 = vadd.f32 1.0, %v11279_v42  ;;  %10263 = vmatprep.subr.bf16.mxu0 %v10779_v60 }
 0x6ab   :  { %v11283_v3 = vpop.eup %11282  ;;  %v2767_v39 = vmul.f32 %v11281_v25, %v2655_v19  ;;  %11294 = vrcp.f32 %v2725_v16 }
 0x6ac   :  { %v11285_v7 = vpop.eup %11284  ;;  %v2764_v63 = vmul.f32 %v11283_v3, %v2652_v23  ;;  %11296 = vrcp.f32 %v2724_v46 }
 0x6ad   :  { %v2766_v4 = vmul.f32 %v11285_v7, %v2654_v49  ;;  %10264 = vmatpush3.bf16.msra.mxu0 %v10779_v60 }
 0x6ae   :  { %10294 = vmatmul.mubr.msk.bf16.vlgmr.msra.gmra.mrb[56].mxu1 %vm509_vm0, %v2775_v9  ;;  %v2777_v31 = vpack.c.bf16 %v2765_v53, %v2764_v63  ;;  %10265 = vmatprep.subr.bf16.mxu0 %v10780_v17 }
 0x6af   :  { %10297 = vmatprep.mubr.msk.bf16.mxu1 %vm509_vm0, %v2776_v8  ;;  %v11287_v57 = vpop.eup %11286  ;;  %v2778_v61 = vpack.c.bf16 %v2767_v39, %v2766_v4 }
 0x6b0   :  { %v11289_v20 = vpop.eup %11288  ;;  %v2769_v5 = vmul.f32 %v11287_v57, %v2657_v18 }
 0x6b1   :  { %v11291_v48 = vpop.eup %11290  ;;  %v2771_v6 = vmul.f32 %v11289_v20, %v2659_v24  ;;  %10266 = vmatpush3.bf16.msra.mxu0 %v10780_v17 }
 0x6b2   :  { %v11293_v2 = vpop.eup %11292  ;;  %v2768_v62 = vmul.f32 %v11291_v48, %v2656_v52  ;;  %10267 = vmatprep.subr.bf16.mxu0 %v10781_v59 }
 0x6b3   :  { %v2770_v37 = vmul.f32 %v11293_v2, %v2658_v51 }
 0x6b4   :  { %v2779_v10 = vpack.c.bf16 %v2769_v5, %v2768_v62 }
 0x6b5   :  { %v11295_v43 = vpop.eup %11294  ;;  %v2780_v44 = vpack.c.bf16 %v2771_v6, %v2770_v37  ;;  %10268 = vmatpush3.bf16.msra.mxu0 %v10781_v59 }
 0x6b6   :  { %10298 = vmatmul.mubr.msk.bf16.gmra.mrb[60].mxu1 %vm509_vm0, %v2777_v31  ;;  %v11297_v34 = vpop.eup %11296  ;;  %v2773_v38 = vmul.f32 %v11295_v43, %v2661_v22  ;;  %10309 = vmatprep.subr.bf16.mxu0 %v14381_v26 }
 0x6b7   :  { %10301 = vmatprep.mubr.msk.bf16.mxu1 %vm509_vm0, %v2778_v61  ;;  %v2772_v21 = vmul.f32 %v11297_v34, %v2660_v11 }
 0x6b9   :  { %v2781_v50 = vpack.c.bf16 %v2773_v38, %v2772_v21  ;;  %v14410_v38 = vld [vmem:[#allocation14 + $0x1] ss:$0 sm:$0xff]  ;;  %v14412_v21 = vld [vmem:[#allocation8 + $0x6] ss:$0 sm:$0xff] }
 0x6be   :  { %10302 = vmatmul.mubr.msk.bf16.gmra.mrb[64].mxu1 %vm509_vm0, %v2779_v10 }
 0x6bf   :  { %10305 = vmatprep.mubr.msk.bf16.mxu1 %vm509_vm0, %v2780_v44 }
 0x6c6   :  { %10306 = vmatmul.mubr.msk.bf16.gmra.mrb[68].mxu1 %vm509_vm0, %v2781_v50 }
 0x746   :  { %v10247_v58 = vpop.f32.mrb[40].mxu1 }
 0x747   :  { %v2229_v36 = vadd.f32 %v10247_v58, %v14384_v0  ;;  %v2220_v12 = vpop.f32.mrb[41].mxu1  ;;  %v14424_v58 = vmul.f32 %v14410_v38, %v13917_v45 }
 0x748   :  { %v2221_v47 = vadd.f32 %v14384_v0, %v2220_v12  ;;  %v10248_v29 = vpop.f32.mrb[42].mxu1 }
 0x749   :  { %v2285_v32 = vadd.f32 %v2229_v36, %v13913_v40  ;;  %v2232_v56 = vadd.f32 %v10248_v29, %v14384_v0  ;;  %v2223_v13 = vpop.f32.mrb[43].mxu1  ;;  %17683 = vst [vmem:[#allocation62_spill] sm:$0xff] %v14424_v58  ;;  %v14428_v36 = vmul.f32 %v14410_v38, %v13932_v54 }
 0x74a   :  { %v2283_v9 = vadd.f32 %v2221_v47, %v13917_v45  ;;  %v2224_v42 = vadd.f32 %v14384_v0, %v2223_v13 }
 0x74b   :  { %v2307_v8 = vmul.f32 %v14387_v41, %v2285_v32  ;;  %v2286_v25 = vadd.f32 %v2232_v56, %v13923_v15  ;;  %17684 = vst [vmem:[#allocation63_spill] sm:$0xff] %v14428_v36 }
 0x74c   :  { %v2305_v55 = vmul.f32 %v14387_v41, %v2283_v9  ;;  %v2284_v3 = vadd.f32 %v2224_v42, %v13932_v54 }
 0x74d   :  { %v2343_v19 = vsub.f32 0.0, %v2307_v8  ;;  %v2308_v16 = vmul.f32 %v14387_v41, %v2286_v25  ;;  %v2327_v47 = vmul.f32 %v14412_v21, %v2307_v8 }
 0x74e   :  { %v2341_v7 = vsub.f32 0.0, %v2305_v55  ;;  %v2306_v23 = vmul.f32 %v14387_v41, %v2284_v3  ;;  %v2325_v9 = vmul.f32 %v14412_v21, %v2305_v55  ;;  %v14442_v55 = vmul.f32 %v14410_v38, %v13913_v40 }
 0x74f   :  { %v2361_v53 = vmul.f32 1.442695, %v2343_v19  ;;  %v2344_v49 = vsub.f32 0.0, %v2308_v16  ;;  %v2328_v29 = vmul.f32 %v14412_v21, %v2308_v16 }
 0x750   :  { %v2357_v39 = vmul.f32 1.442695, %v2341_v7  ;;  %v2342_v46 = vsub.f32 0.0, %v2306_v23  ;;  %v2326_v42 = vmul.f32 %v14412_v21, %v2306_v23  ;;  %17685 = vst [vmem:[#allocation64_spill] sm:$0xff] %v14442_v55 }
 0x751   :  { %11298 = vpow2.f32 %v2361_v53  ;;  %v2363_v63 = vmul.f32 1.442695, %v2344_v49 }
 0x752   :  { %11300 = vpow2.f32 %v2357_v39  ;;  %v2359_v4 = vmul.f32 1.442695, %v2342_v46  ;;  %v3640_v46 = vsub.f32 0.0, %v14424_v58 }
 0x753   :  { %11302 = vpow2.f32 %v2363_v63 }
 0x754   :  { %11304 = vpow2.f32 %v2359_v4  ;;  %v3641_v4 = vsub.f32 0.0, %v14428_v36 }
 0x75b   :  { %v11299_v31 = vpop.eup %11298 }
 0x75c   :  { %v11301_v57 = vpop.eup %11300  ;;  %v2391_v61 = vadd.f32 1.0, %v11299_v31 }
 0x75d   :  { %v11303_v20 = vpop.eup %11302  ;;  %v2389_v18 = vadd.f32 1.0, %v11301_v57  ;;  %v10783_v57 = vld [vmem:[#allocation13 + $0x28] sm:$0xff]  }
 0x75e   :  { %v11305_v48 = vpop.eup %11304  ;;  %11306 = vrcp.f32 %v2391_v61  ;;  %v2392_v24 = vadd.f32 1.0, %v11303_v20  ;;  %v10251_v52 = vpop.f32.mrb[44].mxu1  ;;  %v14448_v61 = vmul.f32 %v14410_v38, %v13923_v15  ;;  %v3656_v20 = vmul.f32 1.442695, %v3640_v46 }
 0x75f   :  { %11308 = vrcp.f32 %v2389_v18  ;;  %v2390_v2 = vadd.f32 1.0, %v11305_v48  ;;  %v2245_v5 = vadd.f32 %v10251_v52, %v14384_v0  ;;  %v2236_v51 = vpop.f32.mrb[45].mxu1  ;;  %v3642_v18 = vsub.f32 0.0, %v14442_v55 }
 0x760   :  { %11310 = vrcp.f32 %v2392_v24  ;;  %v2237_v6 = vadd.f32 %v14384_v0, %v2236_v51  ;;  %v10252_v62 = vpop.f32.mrb[46].mxu1  ;;  %17686 = vst [vmem:[#allocation65_spill] sm:$0xff] %v14448_v61  ;;  %v3658_v24 = vmul.f32 1.442695, %v3641_v4  ;;  %v10784_v51 = vld [vmem:[#allocation13 + $0x30] sm:$0xff]  }
 0x761   :  { %11312 = vrcp.f32 %v2390_v2  ;;  %v2289_v37 = vadd.f32 %v2245_v5, %v13948_v28  ;;  %v2248_v10 = vadd.f32 %v10252_v62, %v14384_v0  ;;  %v2239_v43 = vpop.f32.mrb[47].mxu1  ;;  %v14479_v4 = vld [vmem:[#allocation16] sm:$0xff]  }
 0x762   :  { %v2287_v44 = vadd.f32 %v2237_v6, %v13952_v35  ;;  %v2240_v22 = vadd.f32 %v14384_v0, %v2239_v43  ;;  %v3643_v6 = vsub.f32 0.0, %v14448_v61 }
 0x763   :  { %v14415_v50 = vmul.f32 %v14387_v41, %v2289_v37  ;;  %v2290_v33 = vadd.f32 %v2248_v10, %v13958_v14 }
 0x764   :  { %v14407_v34 = vmul.f32 %v14387_v41, %v2287_v44  ;;  %v2288_v11 = vadd.f32 %v2240_v22, %v13967_v27 }
 0x765   :  { %v2347_v25 = vsub.f32 0.0, %v14415_v50  ;;  %v14437_v3 = vmul.f32 %v14387_v41, %v2290_v33  ;;  %v17687_v33 = vld [vmem:[#allocation55_spill] sm:$0xff] }
 0x766   :  { %v2345_v60 = vsub.f32 0.0, %v14407_v34  ;;  %v14420_v17 = vmul.f32 %v14387_v41, %v2288_v11 }
 0x767   :  { %v2369_v23 = vmul.f32 1.442695, %v2347_v25  ;;  %v2348_v31 = vsub.f32 0.0, %v14437_v3  ;;  %v17689_v25 = vld [vmem:[#allocation57_spill] sm:$0xff] }
 0x768   :  { %v11307_v59 = vpop.eup %11306  ;;  %v2365_v32 = vmul.f32 1.442695, %v2345_v60  ;;  %v2346_v56 = vsub.f32 0.0, %v14420_v17 }
 0x769   :  { %v11309_v12 = vpop.eup %11308  ;;  %v2439_v7 = vmul.f32 %v11307_v59, %v2327_v47  ;;  %v2371_v2 = vmul.f32 1.442695, %v2348_v31 }
 0x76a   :  { %v11311_v13 = vpop.eup %11310  ;;  %11314 = vpow2.f32 %v2365_v32  ;;  %v2367_v8 = vmul.f32 1.442695, %v2346_v56  ;;  %v2437_v49 = vmul.f32 %v11309_v12, %v2325_v9  ;;  %v10785_v56 = vld [vmem:[#allocation13 + $0x38] sm:$0xff]  }
 0x76b   :  { %v11313_v19 = vpop.eup %11312  ;;  %v2440_v53 = vmul.f32 %v11311_v13, %v2328_v29  ;;  %v17688_v29 = vld [vmem:[#allocation56_spill] sm:$0xff]  ;;  %v3662_v13 = vmul.f32 1.442695, %v3643_v6 }
 0x76c   :  { %v2438_v16 = vmul.f32 %v11313_v19, %v2326_v42  ;;  %11316 = vpow2.f32 %v2367_v8 }
 0x76d   :  { %v2454_v39 = vpack.c.bf16 %v2440_v53, %v2439_v7  ;;  %11318 = vpow2.f32 %v2369_v23 }
 0x76e   :  { %v2453_v63 = vpack.c.bf16 %v2438_v16, %v2437_v49  ;;  %11320 = vpow2.f32 %v3656_v20 }
 0x76f   :  { %11322 = vpow2.f32 %v3658_v24  ;;  %v14485_v24 = vmul.f32 %v14410_v38, %v13952_v35 }
 0x770   :  { %10269 = vmatprep.mubr.msk.bf16.mxu0 %vm509_vm0, %v2453_v63  ;;  %11324 = vpow2.f32 %v2371_v2 }
 0x771   :  { %10270 = vmatmul.mubr.msk.bf16.vlgmr.msra.gmra.mrb[40].mxu0 %vm509_vm0, %v2454_v39  ;;  %v10255_v48 = vpop.f32.mrb[48].mxu1 }
 0x772   :  { %10310 = vmatpush3.bf16.msra.mxu0 %v14381_v26  ;;  %v2261_v52 = vadd.f32 %v10255_v48, %v14384_v0  ;;  %v2252_v5 = vpop.f32.mrb[49].mxu1  ;;  %v3660_v26 = vmul.f32 1.442695, %v3642_v18 }
 0x773   :  { %10311 = vmatprep.subr.bf16.mxu0 %v10783_v57  ;;  %v2253_v62 = vadd.f32 %v14384_v0, %v2252_v5  ;;  %v10256_v37 = vpop.f32.mrb[50].mxu1 }
 0x774   :  { %v11315_v10 = vpop.eup %11314  ;;  %v2293_v43 = vadd.f32 %v2261_v52, %v14001_v30  ;;  %v2264_v44 = vadd.f32 %v10256_v37, %v14384_v0  ;;  %v2255_v22 = vpop.f32.mrb[51].mxu1 }
 0x775   :  { %v2393_v11 = vadd.f32 1.0, %v11315_v10  ;;  %v2291_v60 = vadd.f32 %v2253_v62, %v17687_v33  ;;  %v2256_v59 = vadd.f32 %v14384_v0, %v2255_v22  ;;  %v17690_v62 = vld [vmem:[#allocation59_spill] sm:$0xff] }
 0x776   :  { %10312 = vmatpush3.bf16.msra.mxu0 %v10783_v57  ;;  %v11317_v12 = vpop.eup %11316  ;;  %v14462_v47 = vmul.f32 %v14387_v41, %v2293_v43  ;;  %v2294_v32 = vadd.f32 %v2264_v44, %v17688_v29 }
 0x777   :  { %10313 = vmatprep.subr.bf16.mxu0 %v10784_v51  ;;  %11326 = vrcp.f32 %v2393_v11  ;;  %v2394_v9 = vadd.f32 1.0, %v11317_v12  ;;  %v14466_v42 = vmul.f32 %v14387_v41, %v2291_v60  ;;  %v2292_v19 = vadd.f32 %v2256_v59, %v17689_v25  ;;  %v11319_v31 = vpop.eup %11318  ;;  %v17692_v12 = vld [vmem:[#allocation61_spill] sm:$0xff] }
 0x778   :  { %v2351_v7 = vsub.f32 0.0, %v14462_v47  ;;  %v14471_v53 = vmul.f32 %v14387_v41, %v2294_v32  ;;  %11328 = vpow2.f32 %v3660_v26  ;;  %v14491_v43 = vpop.eup %11320  ;;  %v2395_v44 = vadd.f32 1.0, %v11319_v31  ;;  %v17691_v26 = vld [vmem:[#allocation60_spill] sm:$0xff] }
 0x779   :  { %11330 = vrcp.f32 %v2394_v9  ;;  %v2349_v8 = vsub.f32 0.0, %v14466_v42  ;;  %v14475_v49 = vmul.f32 %v14387_v41, %v2292_v19  ;;  %v10259_v16 = vpop.f32.mrb[52].mxu1  ;;  %v14498_v60 = vpop.eup %11322  ;;  %v14510_v9 = vmul.f32 %v14410_v38, %v13967_v27 }
 0x77a   :  { %10314 = vmatpush3.bf16.msra.mxu0 %v10784_v51  ;;  %v2377_v39 = vmul.f32 1.442695, %v2351_v7  ;;  %v2352_v46 = vsub.f32 0.0, %v14471_v53  ;;  %v2277_v23 = vadd.f32 %v10259_v16, %v14384_v0  ;;  %v2268_v63 = vpop.f32.mrb[53].mxu1  ;;  %11332 = vpow2.f32 %v3662_v13  ;;  %v11325_v32 = vpop.eup %11324 }
 0x77b   :  { %10315 = vmatprep.subr.bf16.mxu0 %v10785_v56  ;;  %v2373_v57 = vmul.f32 1.442695, %v2349_v8  ;;  %v2350_v20 = vsub.f32 0.0, %v14475_v49  ;;  %v2269_v18 = vadd.f32 %v14384_v0, %v2268_v63  ;;  %v10260_v48 = vpop.f32.mrb[54].mxu1  ;;  %v14515_v8 = vmul.f32 %v14412_v21, %v14415_v50  ;;  %v14523_v63 = vld [vmem:[#allocation11 + $0x2] ss:$0 sm:$0xff] }
 0x77c   :  { %11334 = vpow2.f32 %v2377_v39  ;;  %v2379_v2 = vmul.f32 1.442695, %v2352_v46  ;;  %v2297_v52 = vadd.f32 %v2277_v23, %v14043_v1  ;;  %v2280_v5 = vadd.f32 %v10260_v48, %v14384_v0  ;;  %v2271_v51 = vpop.f32.mrb[55].mxu1 }
 0x77d   :  { %11336 = vpow2.f32 %v2373_v57  ;;  %v2375_v6 = vmul.f32 1.442695, %v2350_v20  ;;  %v2295_v37 = vadd.f32 %v2269_v18, %v17690_v62  ;;  %v2272_v10 = vadd.f32 %v14384_v0, %v2271_v51  ;;  %v14530_v18 = vld [vmem:[#allocation11 + $0x4] ss:$0 sm:$0xff] }
 0x77e   :  { %10316 = vmatpush3.bf16.msra.mxu0 %v10785_v56  ;;  %11338 = vpow2.f32 %v2379_v2  ;;  %v14494_v22 = vmul.f32 %v14387_v41, %v2297_v52  ;;  %v2298_v11 = vadd.f32 %v2280_v5, %v17691_v26  ;;  %v2329_v16 = vmul.f32 %v14412_v21, %v14407_v34 }
 0x77f   :  { %10357 = vmatprep.subr.bf16.mxu0 %v14479_v4  ;;  %11340 = vpow2.f32 %v2375_v6  ;;  %v14501_v59 = vmul.f32 %v14387_v41, %v2295_v37  ;;  %v2296_v0 = vadd.f32 %v2272_v10, %v17692_v12  ;;  %v2330_v57 = vmul.f32 %v14412_v21, %v14420_v17 }
 0x780   :  { %v2355_v56 = vsub.f32 0.0, %v14494_v22  ;;  %v14506_v13 = vmul.f32 %v14387_v41, %v2298_v11  ;;  %11342 = vrcp.f32 %v2395_v44  ;;  %v2396_v52 = vadd.f32 1.0, %v11325_v32 }
 0x781   :  { %v11327_v7 = vpop.eup %11326  ;;  %v2353_v39 = vsub.f32 0.0, %v14501_v59  ;;  %v14521_v46 = vmul.f32 %v14387_v41, %v2296_v0  ;;  %v10295_v23 = vpop.f32.mrb[56].mxu1  ;;  %v14602_v15 = vmul.f32 %v14412_v21, %v14501_v59 }
 0x782   :  { %v14525_v31 = vpop.eup %11328  ;;  %v2385_v20 = vmul.f32 1.442695, %v2355_v56  ;;  %v2356_v50 = vsub.f32 0.0, %v14506_v13  ;;  %v2877_v34 = vpop.f32.mrb[57].mxu1  ;;  %v2441_v2 = vmul.f32 %v11327_v7, %v2329_v16  ;;  %v2886_v17 = vadd.f32 %v10295_v23, %v14523_v63 }
 0x783   :  { %v11331_v48 = vpop.eup %11330  ;;  %v2381_v41 = vmul.f32 1.442695, %v2353_v39  ;;  %v2354_v5 = vsub.f32 0.0, %v14521_v46  ;;  %v10296_v51 = vpop.f32.mrb[58].mxu1  ;;  %v2878_v0 = vadd.f32 %v14523_v63, %v2877_v34  ;;  %v2338_v55 = vmul.f32 %v14412_v21, %v14521_v46 }
 0x784   :  { %v14533_v6 = vpop.eup %11332  ;;  %v2442_v37 = vmul.f32 %v11331_v48, %v2330_v57  ;;  %11344 = vpow2.f32 %v2385_v20  ;;  %v2387_v10 = vmul.f32 1.442695, %v2356_v50  ;;  %v2880_v44 = vpop.f32.mrb[59].mxu1  ;;  %v2889_v56 = vadd.f32 %v10296_v51, %v14523_v63 }
 0x785   :  { %11346 = vpow2.f32 %v2381_v41  ;;  %v2383_v11 = vmul.f32 1.442695, %v2354_v5  ;;  %v14539_v32 = vmul.f32 %v14530_v18, %v2886_v17  ;;  %v2881_v16 = vadd.f32 %v14523_v63, %v2880_v44 }
 0x786   :  { %v11335_v7 = vpop.eup %11334  ;;  %11348 = vpow2.f32 %v2387_v10  ;;  %v2455_v39 = vpack.c.bf16 %v2442_v37, %v2441_v2  ;;  %v14543_v23 = vmul.f32 %v14530_v18, %v2878_v0  ;;  %v14546_v50 = vmul.f32 %v14530_v18, %v2889_v56 }
 0x787   :  { %v11337_v57 = vpop.eup %11336  ;;  %v2399_v20 = vadd.f32 1.0, %v11335_v7  ;;  %11350 = vpow2.f32 %v2383_v11  ;;  %v2984_v41 = vsub.f32 0.0, %v14539_v32  ;;  %v14550_v5 = vmul.f32 %v14530_v18, %v2881_v16 }
 0x788   :  { %v11339_v34 = vpop.eup %11338  ;;  %11352 = vrcp.f32 %v2396_v52  ;;  %v2397_v48 = vadd.f32 1.0, %v11337_v57  ;;  %10273 = vmatprep.mubr.msk.bf16.mxu0 %vm509_vm0, %v2455_v39  ;;  %v14555_v51 = vmul.f32 %v14412_v21, %v14437_v3  ;;  %v2982_v10 = vsub.f32 0.0, %v14543_v23 }
 0x789   :  { %v11341_v2 = vpop.eup %11340  ;;  %11354 = vrcp.f32 %v2399_v20  ;;  %v2400_v37 = vadd.f32 1.0, %v11339_v34  ;;  %v10299_v17 = vpop.f32.mrb[60].mxu1  ;;  %v14560_v52 = vmul.f32 %v14412_v21, %v14462_v47  ;;  %v3002_v11 = vmul.f32 1.442695, %v2984_v41 }
 0x78a   :  { %11356 = vrcp.f32 %v2397_v48  ;;  %v2398_v44 = vadd.f32 1.0, %v11341_v2  ;;  %v2893_v0 = vpop.f32.mrb[61].mxu1  ;;  %v14564_v56 = vmul.f32 %v14412_v21, %v14466_v42  ;;  %v2998_v3 = vmul.f32 1.442695, %v2982_v10  ;;  %v11343_v39 = vpop.eup %11342 }
 0x78b   :  { %11358 = vrcp.f32 %v2400_v37  ;;  %v2985_v7 = vsub.f32 0.0, %v14546_v50  ;;  %v10300_v16 = vpop.f32.mrb[62].mxu1  ;;  %v2983_v57 = vsub.f32 0.0, %v14550_v5  ;;  %v2902_v47 = vadd.f32 %v10299_v17, %v14523_v63 }
 0x78c   :  { %11360 = vrcp.f32 %v2398_v44  ;;  %v2894_v20 = vadd.f32 %v14523_v63, %v2893_v0  ;;  %v2896_v34 = vpop.f32.mrb[63].mxu1  ;;  %v2905_v41 = vadd.f32 %v10300_v16, %v14523_v63  ;;  %v14580_v17 = vmul.f32 %v14412_v21, %v14471_v53 }
 0x78d   :  { %11362 = vpow2.f32 %v3002_v11  ;;  %v3004_v48 = vmul.f32 1.442695, %v2985_v7  ;;  %v2897_v42 = vadd.f32 %v14523_v63, %v2896_v34  ;;  %v3000_v37 = vmul.f32 1.442695, %v2983_v57 }
 0x78e   :  { %v11345_v2 = vpop.eup %11344  ;;  %11364 = vpow2.f32 %v2998_v3  ;;  %v14573_v10 = vmul.f32 %v14530_v18, %v2902_v47  ;;  %v14576_v44 = vmul.f32 %v14530_v18, %v2894_v20  ;;  %v14583_v0 = vmul.f32 %v14530_v18, %v2905_v41 }
 0x78f   :  { %v11347_v19 = vpop.eup %11346  ;;  %v2403_v11 = vadd.f32 1.0, %v11345_v2  ;;  %11366 = vpow2.f32 %v3004_v48  ;;  %v14587_v57 = vmul.f32 %v14530_v18, %v2897_v42  ;;  %v14591_v20 = vmul.f32 %v14412_v21, %v14475_v49 }
 0x790   :  { %v11349_v7 = vpop.eup %11348  ;;  %v2401_v16 = vadd.f32 1.0, %v11347_v19  ;;  %11368 = vpow2.f32 %v3000_v37  ;;  %v2988_v3 = vsub.f32 0.0, %v14573_v10  ;;  %v2986_v34 = vsub.f32 0.0, %v14576_v44 }
 0x791   :  { %v11351_v47 = vpop.eup %11350  ;;  %11370 = vrcp.f32 %v2403_v11  ;;  %v2404_v53 = vadd.f32 1.0, %v11349_v7  ;;  %v10303_v48 = vpop.f32.mrb[64].mxu1  ;;  %v14596_v19 = vmul.f32 %v14412_v21, %v14494_v22  ;;  %v2443_v35 = vmul.f32 %v11343_v39, %v14515_v8  ;;  %v14610_v39 = vld [vmem:[#allocation11 + $0x3] ss:$0 sm:$0xff] }
 0x792   :  { %v11353_v41 = vpop.eup %11352  ;;  %11372 = vrcp.f32 %v2401_v16  ;;  %v2402_v2 = vadd.f32 1.0, %v11351_v47  ;;  %v3010_v37 = vmul.f32 1.442695, %v2988_v3  ;;  %v2909_v42 = vpop.f32.mrb[65].mxu1  ;;  %v3006_v49 = vmul.f32 1.442695, %v2986_v34 }
 0x793   :  { %v11355_v27 = vpop.eup %11354  ;;  %11374 = vrcp.f32 %v2404_v53  ;;  %v2989_v11 = vsub.f32 0.0, %v14583_v0  ;;  %v10304_v7 = vpop.f32.mrb[66].mxu1  ;;  %v2987_v22 = vsub.f32 0.0, %v14587_v57  ;;  %v2918_v16 = vadd.f32 %v10303_v48, %v14523_v63 }
 0x794   :  { %v11357_v54 = vpop.eup %11356  ;;  %11376 = vrcp.f32 %v2402_v2  ;;  %v2912_v3 = vpop.f32.mrb[67].mxu1  ;;  %v14608_v8 = vmul.f32 %v14412_v21, %v14506_v13  ;;  %v2910_v34 = vadd.f32 %v14523_v63, %v2909_v42  ;;  %v2444_v59 = vmul.f32 %v11353_v41, %v14555_v51 }
 0x795   :  { %v11359_v47 = vpop.eup %11358  ;;  %11378 = vpow2.f32 %v3010_v37  ;;  %v3012_v53 = vmul.f32 1.442695, %v2989_v11  ;;  %v3008_v2 = vmul.f32 1.442695, %v2987_v22  ;;  %v14615_v40 = vmul.f32 %v14530_v18, %v2918_v16 }
 0x796   :  { %v11361_v45 = vpop.eup %11360  ;;  %11380 = vpow2.f32 %v3006_v49  ;;  %v14620_v13 = vmul.f32 %v14530_v18, %v2910_v34  ;;  %v2921_v37 = vadd.f32 %v10304_v7, %v14523_v63  ;;  %v14625_v42 = vmul.f32 %v14610_v39, %v14539_v32 }
 0x797   :  { %v11363_v48 = vpop.eup %11362  ;;  %11382 = vpow2.f32 %v3012_v53  ;;  %v2992_v41 = vsub.f32 0.0, %v14615_v40  ;;  %v14630_v22 = vmul.f32 %v14610_v39, %v14543_v23  ;;  %v14638_v58 = vmul.f32 %v14610_v39, %v14546_v50 }
 0x798   :  { %v11365_v11 = vpop.eup %11364  ;;  %v3032_v51 = vadd.f32 1.0, %v11363_v48  ;;  %11384 = vpow2.f32 %v3008_v2  ;;  %v2990_v46 = vsub.f32 0.0, %v14620_v13  ;;  %v14634_v16 = vmul.f32 %v14530_v18, %v2921_v37 }
 0x799   :  { %v11367_v49 = vpop.eup %11366  ;;  %v3030_v21 = vadd.f32 1.0, %v11365_v11  ;;  %v10307_v7 = vpop.f32.mrb[68].mxu1  ;;  %v3018_v34 = vmul.f32 1.442695, %v2992_v41  ;;  %v2456_v48 = vpack.c.bf16 %v2444_v59, %v2443_v35  ;;  %v2447_v37 = vmul.f32 %v11355_v27, %v14560_v52 }
 0x79a   :  { %v11369_v53 = vpop.eup %11368  ;;  %11386 = vrcp.f32 %v3032_v51  ;;  %v3033_v32 = vadd.f32 1.0, %v11367_v49  ;;  %v2925_v2 = vpop.f32.mrb[69].mxu1  ;;  %v3014_v11 = vmul.f32 1.442695, %v2990_v46  ;;  %v2993_v1 = vsub.f32 0.0, %v14634_v16 }
 0x79b   :  { %v11371_v61 = vpop.eup %11370  ;;  %11388 = vrcp.f32 %v3030_v21  ;;  %v3031_v23 = vadd.f32 1.0, %v11369_v53  ;;  %v10308_v36 = vpop.f32.mrb[70].mxu1  ;;  %10274 = vmatmul.mubr.msk.bf16.gmra.mrb[44].mxu0 %vm509_vm0, %v2456_v48  ;;  %v2913_v35 = vadd.f32 %v14523_v63, %v2912_v3  ;;  %v2445_v41 = vmul.f32 %v11357_v54, %v14564_v56 }
 0x79c   :  { %v11373_v26 = vpop.eup %11372  ;;  %11390 = vrcp.f32 %v3033_v32  ;;  %v2928_v59 = vpop.f32.mrb[71].mxu1  ;;  %v2934_v50 = vadd.f32 %v10307_v7, %v14523_v63  ;;  %v2926_v49 = vadd.f32 %v14523_v63, %v2925_v2  ;;  %v2448_v46 = vmul.f32 %v11359_v47, %v14580_v17 }
 0x79d   :  { %v11375_v51 = vpop.eup %11374  ;;  %11392 = vrcp.f32 %v3031_v23  ;;  %v3020_v27 = vmul.f32 1.442695, %v2993_v1  ;;  %v14649_v52 = vmul.f32 %v14530_v18, %v2913_v35  ;;  %v2446_v3 = vmul.f32 %v11361_v45, %v14591_v20 }
 0x79e   :  { %v11377_v21 = vpop.eup %11376  ;;  %11394 = vpow2.f32 %v3018_v34  ;;  %v14653_v32 = vmul.f32 %v14530_v18, %v2934_v50  ;;  %v14656_v54 = vmul.f32 %v14530_v18, %v2926_v49  ;;  %v14659_v7 = vmul.f32 %v11371_v61, %v14596_v19 }
 0x79f   :  { %v11379_v53 = vpop.eup %11378  ;;  %11396 = vpow2.f32 %v3014_v11  ;;  %v2991_v1 = vsub.f32 0.0, %v14649_v52  ;;  %v14663_v34 = vmul.f32 %v11375_v51, %v14608_v8  ;;  %v2450_v45 = vmul.f32 %v11377_v21, %v2338_v55 }
 0x7a0   :  { %v11381_v56 = vpop.eup %11380  ;;  %v3036_v17 = vadd.f32 1.0, %v11379_v53  ;;  %11398 = vpow2.f32 %v3020_v27  ;;  %v2996_v48 = vsub.f32 0.0, %v14653_v32  ;;  %v2994_v35 = vsub.f32 0.0, %v14656_v54 }
 0x7a1   :  { %v11383_v47 = vpop.eup %11382  ;;  %v3034_v20 = vadd.f32 1.0, %v11381_v56  ;;  %v3016_v11 = vmul.f32 1.442695, %v2991_v1  ;;  %v2449_v61 = vmul.f32 %v11373_v26, %v14602_v15  ;;  %v2457_v50 = vpack.c.bf16 %v2446_v3, %v2445_v41 }
 0x7a2   :  { %v11385_v2 = vpop.eup %11384  ;;  %11400 = vrcp.f32 %v3036_v17  ;;  %v3037_v23 = vadd.f32 1.0, %v11383_v47  ;;  %v3026_v27 = vmul.f32 1.442695, %v2996_v48  ;;  %v2937_v8 = vadd.f32 %v10308_v36, %v14523_v63 }
 0x7a3   :  { %11402 = vrcp.f32 %v3034_v20  ;;  %v3035_v19 = vadd.f32 1.0, %v11385_v2  ;;  %v2458_v55 = vpack.c.bf16 %v2448_v46, %v2447_v37  ;;  %v3022_v21 = vmul.f32 1.442695, %v2994_v35  ;;  %10277 = vmatprep.mubr.msk.bf16.mxu0 %vm509_vm0, %v2457_v50 }
 0x7a4   :  { %v11387_v49 = vpop.eup %11386  ;;  %11404 = vrcp.f32 %v3037_v23  ;;  %v2929_v53 = vadd.f32 %v14523_v63, %v2928_v59  ;;  %v2459_v56 = vpack.c.bf16 %v2450_v45, %v2449_v61  ;;  %v2967_v15 = vmul.f32 %v14610_v39, %v14550_v5 }
 0x7a5   :  { %v11389_v51 = vpop.eup %11388  ;;  %11406 = vrcp.f32 %v3035_v19  ;;  %v14674_v26 = vmul.f32 %v14530_v18, %v2937_v8  ;;  %10278 = vmatmul.mubr.msk.bf16.gmra.mrb[48].mxu0 %vm509_vm0, %v2458_v55  ;;  %v2460_v36 = vpack.c.bf16 %v14663_v34, %v14659_v7  ;;  %v14680_v41 = vmul.f32 %v11387_v49, %v14625_v42 }
 0x7a6   :  { %v11391_v17 = vpop.eup %11390  ;;  %11408 = vpow2.f32 %v3016_v11  ;;  %v14686_v59 = vmul.f32 %v14530_v18, %v2929_v53  ;;  %10281 = vmatprep.mubr.msk.bf16.mxu0 %vm509_vm0, %v2459_v56  ;;  %v3645_v5 = vsub.f32 0.0, %v14510_v9  ;;  %v3078_v3 = vmul.f32 %v11389_v51, %v14630_v22 }
 0x7a7   :  { %v11393_v37 = vpop.eup %11392  ;;  %v14683_v63 = vmul.f32 %v11391_v17, %v14638_v58  ;;  %11410 = vpow2.f32 %v3026_v27  ;;  %v2997_v7 = vsub.f32 0.0, %v14674_v26  ;;  %v3688_v48 = vadd.f32 1.0, %v14491_v43 }
 0x7a8   :  { %v11395_v46 = vpop.eup %11394  ;;  %v3079_v1 = vmul.f32 %v11393_v37, %v2967_v15  ;;  %11412 = vpow2.f32 %v3022_v21  ;;  %v2995_v18 = vsub.f32 0.0, %v14686_v59  ;;  %v14698_v22 = vmul.f32 %v14410_v38, %v13948_v28 }
 0x7a9   :  { %v11397_v47 = vpop.eup %11396  ;;  %v3095_v42 = vpack.c.bf16 %v14683_v63, %v14680_v41  ;;  %v3040_v58 = vadd.f32 1.0, %v11395_v46  ;;  %v3028_v45 = vmul.f32 1.442695, %v2997_v7  ;;  %v14702_v11 = vmul.f32 %v14410_v38, %v13958_v14 }
 0x7aa   :  { %v11399_v34 = vpop.eup %11398  ;;  %v3094_v20 = vpack.c.bf16 %v3079_v1, %v3078_v3  ;;  %v3024_v23 = vmul.f32 1.442695, %v2995_v18  ;;  %v3689_v61 = vadd.f32 1.0, %v14498_v60  ;;  %v17693_v19 = vsub.f32 0.0, %v14485_v24 }
 0x7ab   :  { %11414 = vrcp.f32 %v3040_v58  ;;  %v3041_v2 = vadd.f32 1.0, %v11399_v34  ;;  %v3666_v49 = vmul.f32 1.442695, %v3645_v5  ;;  %v14709_v43 = vmul.f32 %v14410_v38, %v17689_v25  ;;  %v10787_v58 = vld [vmem:[#allocation16 + $0x8] sm:$0xff]  }
 0x7ac   :  { %v11401_v35 = vpop.eup %11400  ;;  %v3664_v50 = vmul.f32 1.442695, %v17693_v19  ;;  %v2972_v8 = vmul.f32 %v14610_v39, %v14573_v10  ;;  %v2973_v55 = vmul.f32 %v14610_v39, %v14583_v0  ;;  %v3038_v51 = vadd.f32 1.0, %v11397_v47 }
 0x7ad   :  { %v11403_v27 = vpop.eup %11402  ;;  %11416 = vrcp.f32 %v3041_v2  ;;  %v2970_v60 = vmul.f32 %v14610_v39, %v14576_v44  ;;  %v2971_v53 = vmul.f32 %v14610_v39, %v14587_v57  ;;  %10282 = vmatmul.mubr.msk.bf16.gmra.mrb[52].mxu0 %vm509_vm0, %v2460_v36  ;;  %v3646_v56 = vsub.f32 0.0, %v14698_v22 }
 0x7ae   :  { %v11405_v21 = vpop.eup %11404  ;;  %11418 = vpow2.f32 %v3028_v45  ;;  %v14721_v15 = vmul.f32 %v11401_v35, %v2972_v8  ;;  %10317 = vmatprep.mubr.msk.bf16.mxu0 %vm509_vm0, %v3094_v20  ;;  %v3647_v0 = vsub.f32 0.0, %v14702_v11  ;;  %v3649_v57 = vsub.f32 0.0, %v14709_v43 }
 0x7af   :  { %v11407_v17 = vpop.eup %11406  ;;  %v14723_v10 = vmul.f32 %v11405_v21, %v2973_v55  ;;  %11420 = vpow2.f32 %v3024_v23  ;;  %v3082_v44 = vmul.f32 %v11403_v27, %v2970_v60  ;;  %v14732_v5 = vmul.f32 %v14410_v38, %v17687_v33 }
 0x7b0   :  { %v11409_v37 = vpop.eup %11408  ;;  %v3083_v41 = vmul.f32 %v11407_v17, %v2971_v53  ;;  %11422 = vpow2.f32 %v3666_v49  ;;  %v3668_v1 = vmul.f32 1.442695, %v3646_v56  ;;  %v3670_v47 = vmul.f32 1.442695, %v3647_v0 }
 0x7b1   :  { %11424 = vrcp.f32 %v3038_v51  ;;  %v3039_v36 = vadd.f32 1.0, %v11409_v37  ;;  %v3097_v63 = vpack.c.bf16 %v14723_v10, %v14721_v15  ;;  %v11411_v46 = vpop.eup %11410  ;;  %v3674_v18 = vmul.f32 1.442695, %v3649_v57 }
 0x7b2   :  { %v3096_v3 = vpack.c.bf16 %v3083_v41, %v3082_v44  ;;  %11426 = vrcp.f32 %v3688_v48  ;;  %v11413_v7 = vpop.eup %11412  ;;  %v3044_v45 = vadd.f32 1.0, %v11411_v46  ;;  %v3648_v20 = vsub.f32 0.0, %v14732_v5 }
 0x7b3   :  { %11428 = vrcp.f32 %v3039_v36  ;;  %v14737_v2 = vmul.f32 %v14410_v38, %v17688_v29  ;;  %v2976_v23 = vmul.f32 %v14610_v39, %v14615_v40  ;;  %v2977_v48 = vmul.f32 %v14610_v39, %v14634_v16  ;;  %v10788_v16 = vld [vmem:[#allocation16 + $0x10] sm:$0xff]   ;;  %v10789_v36 = vld [vmem:[#allocation16 + $0x18] sm:$0xff]  }
 0x7b4   :  { %11430 = vrcp.f32 %v3689_v61  ;;  %v3042_v35 = vadd.f32 1.0, %v11413_v7  ;;  %v14748_v19 = vmul.f32 %v14410_v38, %v17692_v12  ;;  %v3672_v8 = vmul.f32 1.442695, %v3648_v20 }
 0x7b5   :  { %v11415_v34 = vpop.eup %11414  ;;  %11432 = vpow2.f32 %v3664_v50  ;;  %10318 = vmatmul.mubr.msk.bf16.vlgmr.msra.gmra.mrb[56].mxu0 %vm509_vm0, %v3095_v42  ;;  %v14756_v42 = vmul.f32 %v14410_v38, %v14001_v30  ;;  %v14760_v55 = vmul.f32 %v14410_v38, %v17690_v62  ;;  %v3651_v53 = vsub.f32 0.0, %v14737_v2 }
 0x7b6   :  { %11434 = vpow2.f32 %v3668_v1  ;;  %10358 = vmatpush3.bf16.msra.mxu0 %v14479_v4  ;;  %10321 = vmatprep.mubr.msk.bf16.mxu0 %vm509_vm0, %v3096_v3  ;;  %v14750_v49 = vmul.f32 %v11415_v34, %v2976_v23  ;;  %v3690_v17 = vadd.f32 1.0, %v14525_v31  ;;  %v3691_v0 = vadd.f32 1.0, %v14533_v6  ;;  %v17694_v6 = vld [vmem:[#allocation58_spill] sm:$0xff] }
 0x7b7   :  { %v11417_v61 = vpop.eup %11416  ;;  %11436 = vpow2.f32 %v3670_v47  ;;  %10359 = vmatprep.subr.bf16.mxu0 %v10787_v58  ;;  %v3653_v37 = vsub.f32 0.0, %v14748_v19  ;;  %v2974_v41 = vmul.f32 %v14610_v39, %v14620_v13  ;;  %v2975_v57 = vmul.f32 %v14610_v39, %v14649_v52 }
 0x7b8   :  { %v11419_v50 = vpop.eup %11418  ;;  %v14752_v40 = vmul.f32 %v11417_v61, %v2977_v48  ;;  %11438 = vpow2.f32 %v3674_v18  ;;  %v3650_v46 = vsub.f32 0.0, %v14756_v42  ;;  %v3652_v31 = vsub.f32 0.0, %v14760_v55  ;;  %v17695_v18 = vld [vmem:[#allocation60_spill] sm:$0xff] }
 0x7b9   :  { %v11421_v4 = vpop.eup %11420  ;;  %11440 = vrcp.f32 %v3044_v45  ;;  %v3045_v27 = vadd.f32 1.0, %v11419_v50  ;;  %v14778_v7 = vmul.f32 %v14410_v38, %v17694_v6  ;;  %v3678_v52 = vmul.f32 1.442695, %v3651_v53 }
 0x7ba   :  { %v11423_v51 = vpop.eup %11422  ;;  %11442 = vrcp.f32 %v3042_v35  ;;  %v3043_v21 = vadd.f32 1.0, %v11421_v4  ;;  %v3099_v60 = vpack.c.bf16 %v14752_v40, %v14750_v49  ;;  %10360 = vmatpush3.bf16.msra.mxu0 %v10787_v58  ;;  %v14786_v34 = vmul.f32 %v14410_v38, %v17695_v18 }
 0x7bb   :  { %v11425_v56 = vpop.eup %11424  ;;  %11444 = vrcp.f32 %v3045_v27  ;;  %10361 = vmatprep.subr.bf16.mxu0 %v10788_v16  ;;  %v3693_v1 = vadd.f32 1.0, %v11423_v51  ;;  %v3682_v20 = vmul.f32 1.442695, %v3653_v37  ;;  %v3676_v35 = vmul.f32 1.442695, %v3650_v46 }
 0x7bc   :  { %v14768_v44 = vpop.eup %11426  ;;  %11446 = vrcp.f32 %v3043_v21  ;;  %v3086_v58 = vmul.f32 %v11425_v56, %v2974_v41  ;;  %v3680_v50 = vmul.f32 1.442695, %v3652_v31  ;;  %v3654_v15 = vsub.f32 0.0, %v14778_v7  ;;  %v14799_v21 = vld [vmem:[#allocation14] ss:$0 sm:$0xff] }
 0x7bd   :  { %v11429_v3 = vpop.eup %11428  ;;  %11448 = vpow2.f32 %v3672_v8  ;;  %10322 = vmatmul.mubr.msk.bf16.gmra.mrb[60].mxu0 %vm509_vm0, %v3097_v63  ;;  %v3655_v38 = vsub.f32 0.0, %v14786_v34  ;;  %v2981_v4 = vmul.f32 %v14610_v39, %v14674_v26  ;;  %v2978_v8 = vmul.f32 %v14610_v39, %v14656_v54 }
 0x7be   :  { %v11431_v47 = vpop.eup %11430  ;;  %v3087_v13 = vmul.f32 %v11429_v3, %v2975_v57  ;;  %10362 = vmatpush3.bf16.msra.mxu0 %v10788_v16  ;;  %11450 = vrcp.f32 %v3690_v17  ;;  %v2980_v16 = vmul.f32 %v14610_v39, %v14653_v32  ;;  %v2979_v51 = vmul.f32 %v14610_v39, %v14686_v59  ;;  %v17696_v57 = vld [vmem:[#allocation63_spill] sm:$0xff]  ;;  %v17697_v39 = vld [vmem:[#allocation62_spill] sm:$0xff] }
 0x7bf   :  { %v11433_v45 = vpop.eup %11432  ;;  %10363 = vmatprep.subr.bf16.mxu0 %v10789_v36  ;;  %11452 = vrcp.f32 %v3691_v0  ;;  %v3684_v53 = vmul.f32 1.442695, %v3654_v15  ;;  %v3686_v32 = vmul.f32 1.442695, %v3655_v38  ;;  %v3625_v54 = vmul.f32 %v14799_v21, %v17696_v57  ;;  %v17699_v38 = vld [vmem:[#allocation64_spill] sm:$0xff] }
 0x7c0   :  { %v11435_v23 = vpop.eup %11434  ;;  %v3098_v48 = vpack.c.bf16 %v3087_v13, %v3086_v58  ;;  %11454 = vrcp.f32 %v3693_v1  ;;  %v3692_v63 = vadd.f32 1.0, %v11433_v45  ;;  %v3624_v59 = vmul.f32 %v14799_v21, %v17697_v39 }
 0x7c1   :  { %v11437_v61 = vpop.eup %11436  ;;  %11456 = vpow2.f32 %v3678_v52  ;;  %v3737_v58 = vmul.f32 %v11431_v47, %v3625_v54  ;;  %v3694_v13 = vadd.f32 1.0, %v11435_v23  ;;  %v17698_v47 = vld [vmem:[#allocation65_spill] sm:$0xff]  ;;  %v3633_v57 = vmul.f32 %v14799_v21, %v14709_v43 }
 0x7c2   :  { %v11439_v10 = vpop.eup %11438  ;;  %10325 = vmatprep.mubr.msk.bf16.mxu0 %vm509_vm0, %v3098_v48  ;;  %10364 = vmatpush3.bf16.msra.mxu0 %v10789_v36  ;;  %11458 = vpow2.f32 %v3682_v20  ;;  %v3695_v36 = vadd.f32 1.0, %v11437_v61  ;;  %v3736_v20 = vmul.f32 %v14768_v44, %v3624_v59  ;;  %v3627_v23 = vmul.f32 %v14799_v21, %v17698_v47 }
 0x7c3   :  { %v11441_v49 = vpop.eup %11440  ;;  %11460 = vpow2.f32 %v3676_v35  ;;  %v3697_v3 = vadd.f32 1.0, %v11439_v10  ;;  %v3629_v10 = vmul.f32 %v14799_v21, %v14510_v9  ;;  %v3632_v59 = vmul.f32 %v14799_v21, %v14732_v5 }
 0x7c4   :  { %v11443_v40 = vpop.eup %11442  ;;  %11462 = vpow2.f32 %v3680_v50  ;;  %v3092_v17 = vmul.f32 %v11441_v49, %v2980_v16  ;;  %v3752_v61 = vpack.c.bf16 %v3737_v58, %v3736_v20  ;;  %v3626_v49 = vmul.f32 %v14799_v21, %v17699_v38  ;;  %v10790_v38 = vld [vmem:[#allocation13 + $0x40] sm:$0xff]  }
 0x7c5   :  { %v11445_v27 = vpop.eup %11444  ;;  %10326 = vmatmul.mubr.msk.bf16.gmra.mrb[64].mxu0 %vm509_vm0, %v3099_v60  ;;  %11464 = vrcp.f32 %v3692_v63  ;;  %v3090_v37 = vmul.f32 %v11443_v40, %v2978_v8  ;;  %v3635_v43 = vmul.f32 %v14799_v21, %v14737_v2  ;;  %v3637_v5 = vmul.f32 %v14799_v21, %v14748_v19  ;;  %10333 = vmatprep.subr.bf16.mxu1 %v10790_v38 }
 0x7c6   :  { %v11447_v56 = vpop.eup %11446  ;;  %v3093_v0 = vmul.f32 %v11445_v27, %v2981_v4  ;;  %11466 = vpow2.f32 %v3684_v53  ;;  %v3628_v4 = vmul.f32 %v14799_v21, %v14485_v24  ;;  %v3634_v20 = vmul.f32 %v14799_v21, %v14756_v42  ;;  %10334 = vmatpush3.bf16.msra.mxu1 %v10790_v38  ;;  %v14880_v38 = vld [vmem:[#allocation11 + $0x5] ss:$0 sm:$0xff] }
 0x7c7   :  { %v11449_v26 = vpop.eup %11448  ;;  %v3091_v41 = vmul.f32 %v11447_v56, %v2979_v51  ;;  %11468 = vpow2.f32 %v3686_v32  ;;  %v3638_v42 = vmul.f32 %v14799_v21, %v14778_v7 }
 0x7c8   :  { %v3101_v46 = vpack.c.bf16 %v3093_v0, %v3092_v17  ;;  %v11451_v1 = vpop.eup %11450  ;;  %v3696_v52 = vadd.f32 1.0, %v11449_v26  ;;  %11470 = vrcp.f32 %v3695_v36 }
 0x7c9   :  { %v3100_v31 = vpack.c.bf16 %v3091_v41, %v3090_v37  ;;  %v11453_v60 = vpop.eup %11452  ;;  %11472 = vrcp.f32 %v3697_v3  ;;  %v3738_v51 = vmul.f32 %v11451_v1, %v3626_v49  ;;  %v3631_v41 = vmul.f32 %v14799_v21, %v14702_v11  ;;  %v10791_v49 = vld [vmem:[#allocation13 + $0x48] sm:$0xff]  }
 0x7ca   :  { %v11455_v45 = vpop.eup %11454  ;;  %11474 = vrcp.f32 %v3694_v13  ;;  %v3739_v40 = vmul.f32 %v11453_v60, %v3627_v23  ;;  %10335 = vmatprep.subr.bf16.mxu1 %v10791_v49 }
 0x7cb   :  { %10329 = vmatprep.mubr.msk.bf16.mxu0 %vm509_vm0, %v3100_v31  ;;  %v11457_v48 = vpop.eup %11456  ;;  %11476 = vrcp.f32 %v3696_v52  ;;  %v3741_v27 = vmul.f32 %v11455_v45, %v3629_v10  ;;  %v3639_v10 = vmul.f32 %v14799_v21, %v14786_v34  ;;  %10336 = vmatpush3.bf16.msra.mxu1 %v10791_v49 }
 0x7cc   :  { %v11459_v35 = vpop.eup %11458  ;;  %v3699_v44 = vadd.f32 1.0, %v11457_v48  ;;  %v3753_v32 = vpack.c.bf16 %v3739_v40, %v3738_v51  ;;  %v14845_v40 = vld [vmem:[#allocation8 + $0x8] ss:$0 sm:$0xff] }
 0x7cd   :  { %v11461_v50 = vpop.eup %11460  ;;  %10330 = vmatmul.mubr.msk.bf16.gmra.mrb[68].mxu0 %vm509_vm0, %v3101_v46  ;;  %v3701_v16 = vadd.f32 1.0, %v11459_v35  ;;  %v3630_v46 = vmul.f32 %v14799_v21, %v14698_v22  ;;  %v3636_v35 = vmul.f32 %v14799_v21, %v14760_v55 }
 0x7ce   :  { %v11463_v15 = vpop.eup %11462  ;;  %10365 = vmatprep.mubr.msk.bf16.mxu0 %vm509_vm0, %v3752_v61  ;;  %v3698_v8 = vadd.f32 1.0, %v11461_v50  ;;  %11478 = vrcp.f32 %v3699_v44 }
 0x7cf   :  { %v11465_v63 = vpop.eup %11464  ;;  %v3700_v53 = vadd.f32 1.0, %v11463_v15  ;;  %11480 = vrcp.f32 %v3701_v16 }
 0x7d0   :  { %v11467_v56 = vpop.eup %11466  ;;  %v3740_v17 = vmul.f32 %v11465_v63, %v3628_v4  ;;  %11482 = vrcp.f32 %v3698_v8 }
 0x7d1   :  { %v11469_v0 = vpop.eup %11468  ;;  %11484 = vrcp.f32 %v3700_v53  ;;  %v3702_v1 = vadd.f32 1.0, %v11467_v56 }
 0x7d2   :  { %v11471_v9 = vpop.eup %11470  ;;  %v3754_v26 = vpack.c.bf16 %v3741_v27, %v3740_v17  ;;  %v3703_v54 = vadd.f32 1.0, %v11469_v0  ;;  %v10792_v0 = vld [vmem:[#allocation13 + $0x50] sm:$0xff]  }
 0x7d3   :  { %v11473_v37 = vpop.eup %11472  ;;  %v3743_v39 = vmul.f32 %v11471_v9, %v3631_v41  ;;  %10337 = vmatprep.subr.bf16.mxu1 %v10792_v0  ;;  %v10793_v9 = vld [vmem:[#allocation13 + $0x58] sm:$0xff]  }
 0x7d4   :  { %v11475_v24 = vpop.eup %11474  ;;  %v3745_v3 = vmul.f32 %v11473_v37, %v3633_v57  ;;  %11486 = vrcp.f32 %v3703_v54  ;;  %10338 = vmatpush3.bf16.msra.mxu1 %v10792_v0 }
 0x7d5   :  { %10366 = vmatmul.mubr.msk.bf16.vlgmr.msra.gmra.mrb[72].mxu0 %vm509_vm0, %v3753_v32  ;;  %v11477_v36 = vpop.eup %11476  ;;  %v3742_v31 = vmul.f32 %v11475_v24, %v3630_v46  ;;  %11488 = vrcp.f32 %v3702_v1  ;;  %10339 = vmatprep.subr.bf16.mxu1 %v10793_v9 }
 0x7d6   :  { %10369 = vmatprep.mubr.msk.bf16.mxu0 %vm509_vm0, %v3754_v26  ;;  %v3744_v11 = vmul.f32 %v11477_v36, %v3632_v59  ;;  %v14855_v26 = vld [vmem:[#allocation16 + $0x20] sm:$0xff]  }
 0x7d7   :  { %v3755_v58 = vpack.c.bf16 %v3743_v39, %v3742_v31 }
 0x7d8   :  { %v11479_v13 = vpop.eup %11478  ;;  %v3756_v60 = vpack.c.bf16 %v3745_v3, %v3744_v11  ;;  %10340 = vmatpush3.bf16.msra.mxu1 %v10793_v9  ;;  %v17702_v9 = vld [vmem:[#allocation49_spill] sm:$0xff] }
 0x7d9   :  { %v11481_v52 = vpop.eup %11480  ;;  %v3747_v48 = vmul.f32 %v11479_v13, %v3635_v43  ;;  %10381 = vmatprep.subr.bf16.mxu1 %v14855_v26 }
 0x7da   :  { %v11483_v22 = vpop.eup %11482  ;;  %v3749_v61 = vmul.f32 %v11481_v52, %v3637_v5 }
 0x7db   :  { %v11485_v45 = vpop.eup %11484  ;;  %v3746_v50 = vmul.f32 %v11483_v22, %v3634_v20 }
 0x7dc   :  { %v3748_v47 = vmul.f32 %v11485_v45, %v3636_v35 }
 0x7dd   :  { %10370 = vmatmul.mubr.msk.bf16.gmra.mrb[76].mxu0 %vm509_vm0, %v3755_v58  ;;  %v3757_v23 = vpack.c.bf16 %v3747_v48, %v3746_v50 }
 0x7de   :  { %10373 = vmatprep.mubr.msk.bf16.mxu0 %vm509_vm0, %v3756_v60  ;;  %v11487_v15 = vpop.eup %11486  ;;  %v3758_v2 = vpack.c.bf16 %v3749_v61, %v3748_v47 }
 0x7df   :  { %v11489_v19 = vpop.eup %11488  ;;  %v3751_v44 = vmul.f32 %v11487_v15, %v3639_v10 }
 0x7e0   :  { %v3750_v63 = vmul.f32 %v11489_v19, %v3638_v42 }
 0x7e2   :  { %v3759_v55 = vpack.c.bf16 %v3751_v44, %v3750_v63 }
 0x7e5   :  { %10374 = vmatmul.mubr.msk.bf16.gmra.mrb[80].mxu0 %vm509_vm0, %v3757_v23 }
 0x7e6   :  { %10377 = vmatprep.mubr.msk.bf16.mxu0 %vm509_vm0, %v3758_v2 }
 0x7ed   :  { %10378 = vmatmul.mubr.msk.bf16.gmra.mrb[84].mxu0 %vm509_vm0, %v3759_v55 }
 0x844   :  { %v10271_v34 = vpop.f32.mrb[40].mxu0 }
 0x845   :  { %v2566_v16 = vadd.f32 %v10271_v34, %v14845_v40  ;;  %v2557_v4 = vpop.f32.mrb[41].mxu0 }
 0x846   :  { %v2558_v7 = vadd.f32 %v14845_v40, %v2557_v4  ;;  %v10272_v21 = vpop.f32.mrb[42].mxu0  ;;  %v14885_v4 = vld [vmem:[#allocation11 + $0x7] ss:$0 sm:$0xff] }
 0x847   :  { %v9707_v27 = vpack.c.bf16 %v2566_v16, %v2566_v16  ;;  %v2569_v8 = vadd.f32 %v10272_v21, %v14845_v40  ;;  %v2560_v51 = vpop.f32.mrb[43].mxu0  ;;  %v17700_v21 = vld [vmem:[#allocation47_spill] sm:$0xff] }
 0x848   :  { %v9705_v53 = vpack.c.bf16 %v2558_v7, %v2558_v7  ;;  %v2561_v56 = vadd.f32 %v14845_v40, %v2560_v51 }
 0x849   :  { %8555 = vst.msk [vmem:[#allocation30 + $0x10] sm:$0xf] %vm8552_vm1, %v9707_v27  ;;  %v9708_v17 = vpack.c.bf16 %v2569_v8, %v2569_v8 }
 0x84a   :  { %8553 = vst.msk [vmem:[#allocation30] sm:$0xf] %vm8552_vm1, %v9705_v53  ;;  %v9706_v32 = vpack.c.bf16 %v2561_v56, %v2561_v56  ;;  %v14890_v53 = vld [vmem:[#allocation17 + $0x1] ss:$0 sm:$0xff]  ;;  %v17701_v56 = vld [vmem:[#allocation48_spill] sm:$0xff] }
 0x84b   :  { %8556 = vst.msk [vmem:[#allocation30 + $0x18] sm:$0xf] %vm8552_vm1, %v9708_v17 }
 0x84c   :  { %8554 = vst.msk [vmem:[#allocation30 + $0x8] sm:$0xf] %vm8552_vm1, %v9706_v32 }
 0x86e   :  { %v10275_v37 = vpop.f32.mrb[44].mxu0 }
 0x86f   :  { %v2582_v41 = vadd.f32 %v10275_v37, %v14845_v40  ;;  %v2573_v24 = vpop.f32.mrb[45].mxu0 }
 0x870   :  { %v2574_v57 = vadd.f32 %v14845_v40, %v2573_v24  ;;  %v10276_v54 = vpop.f32.mrb[46].mxu0  ;;  %v17703_v24 = vld [vmem:[#allocation50_spill] sm:$0xff] }
 0x871   :  { %v9711_v36 = vpack.c.bf16 %v2582_v41, %v2582_v41  ;;  %v2585_v46 = vadd.f32 %v10276_v54, %v14845_v40  ;;  %v2576_v39 = vpop.f32.mrb[47].mxu0  ;;  %v14904_v54 = vmul.f32 %v14890_v53, %v17701_v56 }
 0x872   :  { %v9709_v59 = vpack.c.bf16 %v2574_v57, %v2574_v57  ;;  %v2577_v3 = vadd.f32 %v14845_v40, %v2576_v39 }
 0x873   :  { %8559 = vst.msk [vmem:[#allocation30 + $0x30] sm:$0xf] %vm8552_vm1, %v9711_v36  ;;  %v9712_v1 = vpack.c.bf16 %v2585_v46, %v2585_v46  ;;  %17704 = vst [vmem:[#allocation55_spill] sm:$0xff] %v14904_v54 }
 0x874   :  { %8557 = vst.msk [vmem:[#allocation30 + $0x20] sm:$0xf] %vm8552_vm1, %v9709_v59  ;;  %v9710_v31 = vpack.c.bf16 %v2577_v3, %v2577_v3 }
 0x875   :  { %8560 = vst.msk [vmem:[#allocation30 + $0x38] sm:$0xf] %vm8552_vm1, %v9712_v1  ;;  %v14916_v1 = vmul.f32 %v14890_v53, %v17703_v24 }
 0x876   :  { %8558 = vst.msk [vmem:[#allocation30 + $0x28] sm:$0xf] %vm8552_vm1, %v9710_v31 }
 0x877   :  { %17705 = vst [vmem:[#allocation56_spill] sm:$0xff] %v14916_v1 }
 0x878   :  { %v10279_v11 = vpop.f32.mrb[48].mxu0 }
 0x879   :  { %v2598_v58 = vadd.f32 %v10279_v11, %v14845_v40  ;;  %v2589_v13 = vpop.f32.mrb[49].mxu0 }
 0x87a   :  { %v2590_v60 = vadd.f32 %v14845_v40, %v2589_v13  ;;  %v10280_v52 = vpop.f32.mrb[50].mxu0 }
 0x87b   :  { %v9715_v43 = vpack.c.bf16 %v2598_v58, %v2598_v58  ;;  %v2601_v22 = vadd.f32 %v10280_v52, %v14845_v40  ;;  %v2592_v5 = vpop.f32.mrb[51].mxu0 }
 0x87c   :  { %v9713_v45 = vpack.c.bf16 %v2590_v60, %v2590_v60  ;;  %v2593_v20 = vadd.f32 %v14845_v40, %v2592_v5  ;;  %v14922_v60 = vmul.f32 %v14890_v53, %v17700_v21 }
 0x87d   :  { %8563 = vst.msk [vmem:[#allocation30 + $0x50] sm:$0xf] %vm8552_vm1, %v9715_v43  ;;  %v9716_v48 = vpack.c.bf16 %v2601_v22, %v2601_v22 }
 0x87e   :  { %8561 = vst.msk [vmem:[#allocation30 + $0x40] sm:$0xf] %vm8552_vm1, %v9713_v45  ;;  %v9714_v35 = vpack.c.bf16 %v2593_v20, %v2593_v20  ;;  %17706 = vst [vmem:[#allocation57_spill] sm:$0xff] %v14922_v60  ;;  %v4618_v45 = vsub.f32 0.0, %v14904_v54 }
 0x87f   :  { %8564 = vst.msk [vmem:[#allocation30 + $0x58] sm:$0xf] %vm8552_vm1, %v9716_v48 }
 0x880   :  { %8562 = vst.msk [vmem:[#allocation30 + $0x48] sm:$0xf] %vm8552_vm1, %v9714_v35  ;;  %v10283_v61 = vpop.f32.mrb[52].mxu0 }
 0x881   :  { %v2614_v50 = vadd.f32 %v10283_v61, %v14845_v40  ;;  %v2605_v47 = vpop.f32.mrb[53].mxu0 }
 0x882   :  { %v2606_v23 = vadd.f32 %v14845_v40, %v2605_v47  ;;  %v10284_v15 = vpop.f32.mrb[54].mxu0  ;;  %v17707_v47 = vld [vmem:[#allocation52_spill] sm:$0xff] }
 0x883   :  { %v9719_v2 = vpack.c.bf16 %v2614_v50, %v2614_v50  ;;  %v2617_v10 = vadd.f32 %v10284_v15, %v14845_v40  ;;  %v2608_v19 = vpop.f32.mrb[55].mxu0 }
 0x884   :  { %v9717_v42 = vpack.c.bf16 %v2606_v23, %v2606_v23  ;;  %v2609_v44 = vadd.f32 %v14845_v40, %v2608_v19 }
 0x885   :  { %8567 = vst.msk [vmem:[#allocation30 + $0x70] sm:$0xf] %vm8552_vm1, %v9719_v2  ;;  %v9720_v63 = vpack.c.bf16 %v2617_v10, %v2617_v10  ;;  %v4619_v2 = vsub.f32 0.0, %v14916_v1 }
 0x886   :  { %8565 = vst.msk [vmem:[#allocation30 + $0x60] sm:$0xf] %vm8552_vm1, %v9717_v42  ;;  %v9718_v55 = vpack.c.bf16 %v2609_v44, %v2609_v44  ;;  %v14938_v42 = vmul.f32 %v14890_v53, %v17702_v9 }
 0x887   :  { %8568 = vst.msk [vmem:[#allocation30 + $0x78] sm:$0xf] %vm8552_vm1, %v9720_v63  ;;  %v17709_v63 = vld [vmem:[#allocation54_spill] sm:$0xff] }
 0x888   :  { %8566 = vst.msk [vmem:[#allocation30 + $0x68] sm:$0xf] %vm8552_vm1, %v9718_v55  ;;  %v10319_v49 = vpop.f32.mrb[56].mxu0  ;;  %17708 = vst [vmem:[#allocation59_spill] sm:$0xff] %v14938_v42 }
 0x889   :  { %v3207_v34 = vadd.f32 %v10319_v49, %v14880_v38  ;;  %v3198_v16 = vpop.f32.mrb[57].mxu0 }
 0x88a   :  { %v3199_v40 = vadd.f32 %v14880_v38, %v3198_v16  ;;  %v10320_v7 = vpop.f32.mrb[58].mxu0  ;;  %v4634_v16 = vmul.f32 1.442695, %v4618_v45 }
 0x88b   :  { %v3263_v27 = vadd.f32 %v3207_v34, %v17700_v21  ;;  %v3210_v8 = vadd.f32 %v10320_v7, %v14880_v38  ;;  %v3201_v51 = vpop.f32.mrb[59].mxu0 }
 0x88c   :  { %v3261_v17 = vadd.f32 %v3199_v40, %v17701_v56  ;;  %v3202_v0 = vadd.f32 %v14880_v38, %v3201_v51  ;;  %v4620_v51 = vsub.f32 0.0, %v14922_v60 }
 0x88d   :  { %v14895_v32 = vmul.f32 %v14885_v4, %v3263_v27  ;;  %v3264_v37 = vadd.f32 %v3210_v8, %v17702_v9  ;;  %v14952_v8 = vmul.f32 1.442695, %v4619_v2 }
 0x88e   :  { %v14899_v41 = vmul.f32 %v14885_v4, %v3261_v17  ;;  %v3262_v57 = vadd.f32 %v3202_v0, %v17703_v24 }
 0x88f   :  { %v3321_v36 = vsub.f32 0.0, %v14895_v32  ;;  %v14908_v46 = vmul.f32 %v14885_v4, %v3264_v37 }
 0x890   :  { %v3319_v39 = vsub.f32 0.0, %v14899_v41  ;;  %v14912_v59 = vmul.f32 %v14885_v4, %v3262_v57  ;;  %v10323_v3 = vpop.f32.mrb[60].mxu0 }
 0x891   :  { %v3339_v31 = vmul.f32 1.442695, %v3321_v36  ;;  %v3322_v11 = vsub.f32 0.0, %v14908_v46  ;;  %v3223_v58 = vadd.f32 %v10323_v3, %v14880_v38  ;;  %v3214_v13 = vpop.f32.mrb[61].mxu0  ;;  %v4621_v36 = vsub.f32 0.0, %v14938_v42 }
 0x892   :  { %v3335_v52 = vmul.f32 1.442695, %v3319_v39  ;;  %v3320_v43 = vsub.f32 0.0, %v14912_v59  ;;  %v3215_v22 = vadd.f32 %v14880_v38, %v3214_v13  ;;  %v10324_v5 = vpop.f32.mrb[62].mxu0 }
 0x893   :  { %11490 = vpow2.f32 %v3339_v31  ;;  %v3341_v20 = vmul.f32 1.442695, %v3322_v11  ;;  %v3267_v48 = vadd.f32 %v3223_v58, %v13948_v28  ;;  %v3226_v35 = vadd.f32 %v10324_v5, %v14880_v38  ;;  %v3217_v61 = vpop.f32.mrb[63].mxu0 }
 0x894   :  { %v3337_v50 = vmul.f32 1.442695, %v3320_v43  ;;  %v3265_v23 = vadd.f32 %v3215_v22, %v17707_v47  ;;  %v3218_v15 = vadd.f32 %v14880_v38, %v3217_v61  ;;  %v14962_v58 = vmul.f32 %v14890_v53, %v17707_v47 }
 0x895   :  { %11492 = vpow2.f32 %v3341_v20  ;;  %v14933_v10 = vmul.f32 %v14885_v4, %v3267_v48  ;;  %v3268_v19 = vadd.f32 %v3226_v35, %v13958_v14 }
 0x896   :  { %11494 = vpow2.f32 %v3337_v50  ;;  %v14941_v44 = vmul.f32 %v14885_v4, %v3265_v23  ;;  %v3266_v55 = vadd.f32 %v3218_v15, %v17709_v63  ;;  %17710 = vst [vmem:[#allocation63_spill] sm:$0xff] %v14962_v58  ;;  %v14974_v50 = vmul.f32 %v14890_v53, %v17709_v63 }
 0x897   :  { %11496 = vpow2.f32 %v3335_v52  ;;  %v3325_v49 = vsub.f32 0.0, %v14933_v10  ;;  %v14946_v34 = vmul.f32 %v14885_v4, %v3268_v19 }
 0x898   :  { %v3323_v40 = vsub.f32 0.0, %v14941_v44  ;;  %v14950_v7 = vmul.f32 %v14885_v4, %v3266_v55  ;;  %v10327_v27 = vpop.f32.mrb[64].mxu0 }
 0x899   :  { %v3347_v17 = vmul.f32 1.442695, %v3325_v49  ;;  %v3326_v0 = vsub.f32 0.0, %v14946_v34  ;;  %v3239_v37 = vadd.f32 %v10327_v27, %v14880_v38  ;;  %v3230_v57 = vpop.f32.mrb[65].mxu0  ;;  %v14986_v27 = vmul.f32 1.442695, %v4621_v36 }
 0x89a   :  { %v3343_v39 = vmul.f32 1.442695, %v3323_v40  ;;  %v3324_v3 = vsub.f32 0.0, %v14950_v7  ;;  %v3231_v31 = vadd.f32 %v14880_v38, %v3230_v57  ;;  %v10328_v11 = vpop.f32.mrb[66].mxu0  ;;  %v14984_v40 = vmul.f32 1.442695, %v4620_v51 }
 0x89b   :  { %11498 = vpow2.f32 %v3347_v17  ;;  %v3349_v13 = vmul.f32 1.442695, %v3326_v0  ;;  %v3271_v52 = vadd.f32 %v3239_v37, %v14001_v30  ;;  %v3242_v43 = vadd.f32 %v10328_v11, %v14880_v38  ;;  %v3233_v22 = vpop.f32.mrb[67].mxu0 }
 0x89c   :  { %11500 = vpow2.f32 %v3343_v39  ;;  %v3345_v5 = vmul.f32 1.442695, %v3324_v3  ;;  %v3269_v45 = vadd.f32 %v3231_v31, %v17687_v33  ;;  %v3234_v20 = vadd.f32 %v14880_v38, %v3233_v22 }
 0x89d   :  { %v11491_v48 = vpop.eup %11490  ;;  %11502 = vpow2.f32 %v3349_v13  ;;  %v14969_v35 = vmul.f32 %v14885_v4, %v3271_v52  ;;  %v3272_v61 = vadd.f32 %v3242_v43, %v17688_v29  ;;  %v4622_v39 = vsub.f32 0.0, %v14962_v58 }
 0x89e   :  { %v3369_v23 = vadd.f32 1.0, %v11491_v48  ;;  %11504 = vpow2.f32 %v3345_v5  ;;  %v14977_v15 = vmul.f32 %v14885_v4, %v3269_v45  ;;  %v3270_v2 = vadd.f32 %v3234_v20, %v17689_v25 }
 0x89f   :  { %v11493_v19 = vpop.eup %11492  ;;  %v3329_v55 = vsub.f32 0.0, %v14969_v35  ;;  %v14982_v49 = vmul.f32 %v14885_v4, %v3272_v61 }
 0x8a0   :  { %v11495_v17 = vpop.eup %11494  ;;  %11506 = vrcp.f32 %v3369_v23  ;;  %v3370_v0 = vadd.f32 1.0, %v11493_v19  ;;  %v3327_v37 = vsub.f32 0.0, %v14977_v15  ;;  %v10331_v57 = vpop.f32.mrb[68].mxu0  ;;  %v14993_v43 = vmul.f32 %v14885_v4, %v3270_v2 }
 0x8a1   :  { %v11497_v3 = vpop.eup %11496  ;;  %v3368_v31 = vadd.f32 1.0, %v11495_v17  ;;  %v3355_v11 = vmul.f32 1.442695, %v3329_v55  ;;  %v3246_v13 = vpop.f32.mrb[69].mxu0  ;;  %11508 = vpow2.f32 %v4634_v16  ;;  %v3330_v36 = vsub.f32 0.0, %v14982_v49 }
 0x8a2   :  { %11510 = vrcp.f32 %v3370_v0  ;;  %v3351_v51 = vmul.f32 1.442695, %v3327_v37  ;;  %v10332_v22 = vpop.f32.mrb[70].mxu0  ;;  %v3255_v5 = vadd.f32 %v10331_v57, %v14880_v38  ;;  %v3247_v45 = vadd.f32 %v14880_v38, %v3246_v13  ;;  %v15002_v37 = vld [vmem:[#allocation11 + $0x6] ss:$0 sm:$0xff] }
 0x8a3   :  { %11512 = vrcp.f32 %v3368_v31  ;;  %v3258_v20 = vadd.f32 %v10332_v22, %v14880_v38  ;;  %v3249_v48 = vpop.f32.mrb[71].mxu0  ;;  %v3367_v61 = vadd.f32 1.0, %v11497_v3  ;;  %v3357_v16 = vmul.f32 1.442695, %v3330_v36 }
 0x8a4   :  { %11514 = vpow2.f32 %v3355_v11  ;;  %v3328_v23 = vsub.f32 0.0, %v14993_v43  ;;  %v3275_v55 = vadd.f32 %v3255_v5, %v17694_v6  ;;  %v3273_v2 = vadd.f32 %v3247_v45, %v17690_v62 }
 0x8a5   :  { %v11499_v19 = vpop.eup %11498  ;;  %11516 = vpow2.f32 %v3351_v51  ;;  %v3276_v17 = vadd.f32 %v3258_v20, %v17695_v18  ;;  %v3250_v31 = vadd.f32 %v14880_v38, %v3249_v48  ;;  %v15005_v3 = vmul.f32 1.442695, %v4622_v39 }
 0x8a6   :  { %v11501_v0 = vpop.eup %11500  ;;  %v3373_v57 = vadd.f32 1.0, %v11499_v19  ;;  %11518 = vpow2.f32 %v3357_v16  ;;  %v15008_v36 = vmul.f32 %v14885_v4, %v3275_v55  ;;  %v15011_v51 = vmul.f32 %v14885_v4, %v3273_v2 }
 0x8a7   :  { %v11503_v11 = vpop.eup %11502  ;;  %v3371_v13 = vadd.f32 1.0, %v11501_v0  ;;  %v15014_v22 = vmul.f32 %v14885_v4, %v3276_v17  ;;  %11520 = vrcp.f32 %v3367_v61  ;;  %v3353_v45 = vmul.f32 1.442695, %v3328_v23  ;;  %v15032_v0 = vld [vmem:[#allocation14 + $0x2] ss:$0 sm:$0xff] }
 0x8a8   :  { %v11505_v5 = vpop.eup %11504  ;;  %v3274_v20 = vadd.f32 %v3250_v31, %v17692_v12  ;;  %v10367_v16 = vpop.f32.mrb[72].mxu0  ;;  %v15019_v38 = vmul.f32 %v14890_v53, %v13948_v28  ;;  %v3305_v39 = vmul.f32 %v15002_v37, %v14895_v32  ;;  %v15025_v48 = vmul.f32 %v15002_v37, %v14899_v41 }
 0x8a9   :  { %v3333_v19 = vsub.f32 0.0, %v15008_v36  ;;  %v3855_v55 = vpop.f32.mrb[73].mxu0  ;;  %11522 = vpow2.f32 %v14952_v8  ;;  %v3306_v23 = vmul.f32 %v15002_v37, %v14908_v46  ;;  %v3374_v2 = vadd.f32 1.0, %v11503_v11  ;;  %v15042_v11 = vld [vmem:[#allocation14 + $0x4] ss:$0 sm:$0xff] }
 0x8aa   :  { %v11507_v61 = vpop.eup %11506  ;;  %11524 = vrcp.f32 %v3373_v57  ;;  %v3331_v17 = vsub.f32 0.0, %v15011_v51  ;;  %v10368_v32 = vpop.f32.mrb[74].mxu0  ;;  %v3372_v41 = vadd.f32 1.0, %v11505_v5  ;;  %v3334_v63 = vsub.f32 0.0, %v15014_v22 }
 0x8ab   :  { %v15034_v31 = vpop.eup %11508  ;;  %11526 = vrcp.f32 %v3371_v13  ;;  %v3363_v52 = vmul.f32 1.442695, %v3333_v19  ;;  %v3858_v47 = vpop.f32.mrb[75].mxu0  ;;  %v15037_v28 = vmul.f32 %v11507_v61, %v3305_v39  ;;  %v15040_v57 = vmul.f32 %v14885_v4, %v3274_v20 }
 0x8ac   :  { %17711 = vst [vmem:[#allocation62_spill] sm:$0xff] %v15034_v31  ;;  %v11511_v8 = vpop.eup %11510  ;;  %11528 = vpow2.f32 %v3353_v45  ;;  %v3359_v46 = vmul.f32 1.442695, %v3331_v17  ;;  %v3365_v13 = vmul.f32 1.442695, %v3334_v63  ;;  %v3864_v5 = vadd.f32 %v10367_v16, %v15032_v0 }
 0x8ad   :  { %v11513_v24 = vpop.eup %11512  ;;  %v15044_v9 = vmul.f32 %v11511_v8, %v3306_v23  ;;  %11530 = vpow2.f32 %v3363_v52  ;;  %v3304_v56 = vmul.f32 %v15002_v37, %v14912_v59  ;;  %v15051_v45 = vmul.f32 %v15002_v37, %v14933_v10 }
 0x8ae   :  { %v11515_v19 = vpop.eup %11514  ;;  %11532 = vpow2.f32 %v3359_v46  ;;  %v3332_v4 = vsub.f32 0.0, %v15040_v57  ;;  %v15057_v63 = vmul.f32 %v15042_v11, %v3864_v5  ;;  %v3856_v59 = vadd.f32 %v15032_v0, %v3855_v55 }
 0x8af   :  { %v11517_v20 = vpop.eup %11516  ;;  %v3377_v61 = vadd.f32 1.0, %v11515_v19  ;;  %11534 = vpow2.f32 %v3365_v13  ;;  %v3867_v10 = vadd.f32 %v10368_v32, %v15032_v0  ;;  %v3416_v17 = vmul.f32 %v11513_v24, %v3304_v56 }
 0x8b0   :  { %v11519_v52 = vpop.eup %11518  ;;  %11536 = vrcp.f32 %v3374_v2  ;;  %v3361_v16 = vmul.f32 1.442695, %v3332_v4  ;;  %v10371_v23 = vpop.f32.mrb[76].mxu0  ;;  %v15063_v8 = vmul.f32 %v15002_v37, %v14941_v44  ;;  %v3962_v46 = vsub.f32 0.0, %v15057_v63 }
 0x8b1   :  { %11538 = vrcp.f32 %v3372_v41  ;;  %v3871_v13 = vpop.f32.mrb[77].mxu0  ;;  %v11521_v19 = vpop.eup %11520  ;;  %v3375_v5 = vadd.f32 1.0, %v11517_v20  ;;  %v15067_v39 = vmul.f32 %v15042_v11, %v3856_v59  ;;  %v15070_v2 = vmul.f32 %v15042_v11, %v3867_v10 }
 0x8b2   :  { %v3859_v55 = vadd.f32 %v15032_v0, %v3858_v47  ;;  %v10372_v32 = vpop.f32.mrb[78].mxu0  ;;  %11540 = vrcp.f32 %v3377_v61  ;;  %v3378_v24 = vadd.f32 1.0, %v11519_v52  ;;  %v3980_v44 = vmul.f32 1.442695, %v3962_v46 }
 0x8b3   :  { %v15073_v56 = vpop.eup %11522  ;;  %v3880_v41 = vadd.f32 %v10371_v23, %v15032_v0  ;;  %v3874_v4 = vpop.f32.mrb[79].mxu0  ;;  %v15080_v20 = vmul.f32 %v15002_v37, %v14946_v34  ;;  %v3308_v59 = vmul.f32 %v15002_v37, %v14950_v7  ;;  %11542 = vpow2.f32 %v3361_v16 }
 0x8b4   :  { %v15076_v21 = vpop.eup %11524  ;;  %v3960_v47 = vsub.f32 0.0, %v15067_v39  ;;  %v3415_v61 = vmul.f32 %v11521_v19, %v15025_v48  ;;  %v15090_v52 = vmul.f32 %v15002_v37, %v14969_v35  ;;  %11544 = vpow2.f32 %v3980_v44 }
 0x8b5   :  { %v15085_v10 = vpop.eup %11526  ;;  %v3963_v23 = vsub.f32 0.0, %v15070_v2  ;;  %11546 = vrcp.f32 %v3375_v5  ;;  %v15094_v58 = vmul.f32 %v15042_v11, %v3859_v55  ;;  %v15097_v7 = vmul.f32 %v15042_v11, %v3880_v41 }
 0x8b6   :  { %v11529_v46 = vpop.eup %11528  ;;  %v3976_v34 = vmul.f32 1.442695, %v3960_v47  ;;  %11548 = vrcp.f32 %v3378_v24  ;;  %v3872_v48 = vadd.f32 %v15032_v0, %v3871_v13  ;;  %v3431_v19 = vpack.c.bf16 %v3416_v17, %v3415_v61  ;;  %v10795_v47 = vld [vmem:[#allocation16 + $0x28] sm:$0xff]  }
 0x8b7   :  { %v11531_v16 = vpop.eup %11530  ;;  %v3376_v60 = vadd.f32 1.0, %v11529_v46  ;;  %v15102_v44 = vmul.f32 %v15002_v37, %v14977_v15  ;;  %v3961_v5 = vsub.f32 0.0, %v15094_v58  ;;  %v3982_v1 = vmul.f32 1.442695, %v3963_v23 }
 0x8b8   :  { %v11533_v35 = vpop.eup %11532  ;;  %v3381_v42 = vadd.f32 1.0, %v11531_v16  ;;  %11550 = vpow2.f32 %v3976_v34  ;;  %v10375_v55 = vpop.f32.mrb[80].mxu0  ;;  %v3966_v24 = vsub.f32 0.0, %v15097_v7  ;;  %10341 = vmatprep.mubr.msk.bf16.mxu1 %vm509_vm0, %v3431_v19  ;;  %v15108_v46 = vmul.f32 %v15042_v11, %v3872_v48  ;;  %v10796_v48 = vld [vmem:[#allocation16 + $0x30] sm:$0xff]  }
 0x8b9   :  { %v11535_v54 = vpop.eup %11534  ;;  %11552 = vrcp.f32 %v3376_v60  ;;  %v3379_v41 = vadd.f32 1.0, %v11533_v35  ;;  %v3887_v17 = vpop.f32.mrb[81].mxu0  ;;  %v3978_v15 = vmul.f32 1.442695, %v3961_v5  ;;  %v17712_v34 = vpack.c.bf16 %v15044_v9, %v15037_v28 }
 0x8ba   :  { %v11537_v13 = vpop.eup %11536  ;;  %11554 = vrcp.f32 %v3381_v42  ;;  %v3382_v61 = vadd.f32 1.0, %v11535_v54  ;;  %v10376_v60 = vpop.f32.mrb[82].mxu0  ;;  %v3988_v23 = vmul.f32 1.442695, %v3966_v24  ;;  %v3883_v35 = vadd.f32 %v10372_v32, %v15032_v0 }
 0x8bb   :  { %10342 = vmatmul.mubr.msk.bf16.vlgmr.msra.gmra.mrb[72].mxu1 %vm509_vm0, %v17712_v34  ;;  %v11539_v16 = vpop.eup %11538  ;;  %11556 = vrcp.f32 %v3379_v41  ;;  %v3875_v19 = vadd.f32 %v15032_v0, %v3874_v4  ;;  %v15117_v54 = vpop.f32.mrb[83].mxu0  ;;  %v15121_v42 = vmul.f32 %v15002_v37, %v14982_v49  ;;  %v3312_v28 = vmul.f32 %v15002_v37, %v14993_v43 }
 0x8bc   :  { %10382 = vmatpush3.bf16.msra.mxu1 %v14855_v26  ;;  %11558 = vrcp.f32 %v3382_v61  ;;  %v3964_v9 = vsub.f32 0.0, %v15108_v46  ;;  %v11541_v5 = vpop.eup %11540  ;;  %v15128_v32 = vmul.f32 %v15002_v37, %v15008_v36  ;;  %v15131_v26 = vmul.f32 %v15042_v11, %v3883_v35 }
 0x8bd   :  { %10383 = vmatprep.subr.bf16.mxu1 %v10795_v47  ;;  %11560 = vpow2.f32 %v3982_v1  ;;  %v15134_v49 = vmul.f32 %v15042_v11, %v3875_v19  ;;  %v11543_v4 = vpop.eup %11542  ;;  %v3420_v41 = vmul.f32 %v11539_v16, %v3308_v59  ;;  %v3896_v24 = vadd.f32 %v10375_v55, %v15032_v0  ;;  %v10797_v16 = vld [vmem:[#allocation16 + $0x38] sm:$0xff]  }
 0x8be   :  { %11562 = vpow2.f32 %v3978_v15  ;;  %v3984_v43 = vmul.f32 1.442695, %v3964_v9  ;;  %v11545_v61 = vpop.eup %11544  ;;  %v15139_v34 = vmul.f32 %v15002_v37, %v15011_v51  ;;  %v3380_v36 = vadd.f32 1.0, %v11543_v4 }
 0x8bf   :  { %11564 = vpow2.f32 %v3988_v23  ;;  %v3967_v1 = vsub.f32 0.0, %v15131_v26  ;;  %v11547_v35 = vpop.eup %11546  ;;  %v3419_v19 = vmul.f32 %v15085_v10, %v15063_v8  ;;  %v3422_v59 = vmul.f32 %v11537_v13, %v15080_v20 }
 0x8c0   :  { %10384 = vmatpush3.bf16.msra.mxu1 %v10795_v47  ;;  %11566 = vpow2.f32 %v3984_v43  ;;  %v3965_v15 = vsub.f32 0.0, %v15134_v49  ;;  %v10379_v55 = vpop.f32.mrb[84].mxu0  ;;  %v11549_v9 = vpop.eup %11548  ;;  %v15147_v23 = vmul.f32 %v15042_v11, %v3896_v24  ;;  %v3888_v47 = vadd.f32 %v15032_v0, %v3887_v17 }
 0x8c1   :  { %10385 = vmatprep.subr.bf16.mxu1 %v10796_v48  ;;  %11568 = vrcp.f32 %v3380_v36  ;;  %v3990_v51 = vmul.f32 1.442695, %v3967_v1  ;;  %v3903_v4 = vpop.f32.mrb[85].mxu0  ;;  %v4010_v6 = vadd.f32 1.0, %v11545_v61  ;;  %v3433_v10 = vpack.c.bf16 %v3420_v41, %v3419_v19 }
 0x8c2   :  { %v11551_v18 = vpop.eup %11550  ;;  %v3986_v8 = vmul.f32 1.442695, %v3965_v15  ;;  %v3899_v20 = vadd.f32 %v10376_v60, %v15032_v0  ;;  %v15151_v13 = vpop.f32.mrb[86].mxu0  ;;  %v3421_v31 = vmul.f32 %v15076_v21, %v15051_v45  ;;  %v3970_v24 = vsub.f32 0.0, %v15147_v23  ;;  %v15169_v15 = vld [vmem:[#allocation19] sm:$0xff]  }
 0x8c3   :  { %v11553_v43 = vpop.eup %11552  ;;  %v4008_v36 = vadd.f32 1.0, %v11551_v18  ;;  %11570 = vpow2.f32 %v3990_v51  ;;  %v15156_v1 = vpop.f32.mrb[87].mxu0  ;;  %v3318_v61 = vmul.f32 %v15002_v37, %v15014_v22  ;;  %v15161_v60 = vmul.f32 %v15042_v11, %v3888_v47  ;;  %10345 = vmatprep.mubr.msk.bf16.mxu1 %vm509_vm0, %v3433_v10 }
 0x8c4   :  { %10386 = vmatpush3.bf16.msra.mxu1 %v10796_v48  ;;  %v11555_v17 = vpop.eup %11554  ;;  %11572 = vpow2.f32 %v3986_v8  ;;  %v15165_v41 = vmul.f32 %v15042_v11, %v3899_v20  ;;  %v3424_v21 = vmul.f32 %v11553_v43, %v3312_v28  ;;  %v3316_v45 = vmul.f32 %v15002_v37, %v15040_v57 }
 0x8c5   :  { %10387 = vmatprep.subr.bf16.mxu1 %v10797_v16  ;;  %v11557_v18 = vpop.eup %11556  ;;  %v3996_v48 = vmul.f32 1.442695, %v3970_v24  ;;  %v3434_v19 = vpack.c.bf16 %v3422_v59, %v3421_v31  ;;  %v3425_v51 = vmul.f32 %v11541_v5, %v15090_v52  ;;  %v3423_v47 = vmul.f32 %v11547_v35, %v15102_v44 }
 0x8c6   :  { %v11559_v22 = vpop.eup %11558  ;;  %11574 = vrcp.f32 %v4010_v6  ;;  %v3968_v8 = vsub.f32 0.0, %v15161_v60  ;;  %v3426_v20 = vmul.f32 %v11549_v9, %v15121_v42  ;;  %v3971_v28 = vsub.f32 0.0, %v15165_v41 }
 0x8c7   :  { %v11561_v10 = vpop.eup %11560  ;;  %11576 = vrcp.f32 %v4008_v36  ;;  %10346 = vmatmul.mubr.msk.bf16.gmra.mrb[76].mxu1 %vm509_vm0, %v3434_v19  ;;  %v3891_v37 = vadd.f32 %v15032_v0, %v15117_v54  ;;  %v3912_v52 = vadd.f32 %v10379_v55, %v15032_v0  ;;  %v3904_v6 = vadd.f32 %v15032_v0, %v3903_v4 }
 0x8c8   :  { %v11563_v31 = vpop.eup %11562  ;;  %v4011_v57 = vadd.f32 1.0, %v11561_v10  ;;  %11578 = vpow2.f32 %v3996_v48  ;;  %10388 = vmatpush3.bf16.msra.mxu1 %v10797_v16  ;;  %v3992_v35 = vmul.f32 1.442695, %v3968_v8  ;;  %v3435_v59 = vpack.c.bf16 %v3424_v21, %v3423_v47 }
 0x8c9   :  { %v11565_v44 = vpop.eup %11564  ;;  %v4009_v5 = vadd.f32 1.0, %v11563_v31  ;;  %v15182_v42 = vmul.f32 %v15042_v11, %v3891_v37  ;;  %10429 = vmatprep.subr.bf16.mxu1 %v15169_v15  ;;  %v15186_v43 = vmul.f32 %v15042_v11, %v3912_v52  ;;  %v15189_v55 = vmul.f32 %v15042_v11, %v3904_v6 }
 0x8ca   :  { %v11567_v9 = vpop.eup %11566  ;;  %11580 = vrcp.f32 %v4011_v57  ;;  %v4014_v54 = vadd.f32 1.0, %v11565_v44  ;;  %v3998_v36 = vmul.f32 1.442695, %v3971_v28  ;;  %10349 = vmatprep.mubr.msk.bf16.mxu1 %vm509_vm0, %v3435_v59  ;;  %v15194_v21 = vmul.f32 %v11555_v17, %v15128_v32 }
 0x8cb   :  { %v11569_v4 = vpop.eup %11568  ;;  %11582 = vrcp.f32 %v4009_v5  ;;  %v4012_v16 = vadd.f32 1.0, %v11567_v9  ;;  %v3969_v24 = vsub.f32 0.0, %v15182_v42  ;;  %v3427_v48 = vmul.f32 %v11557_v18, %v15139_v34  ;;  %v15203_v18 = vld [vmem:[#allocation14 + $0x3] ss:$0 sm:$0xff] }
 0x8cc   :  { %11584 = vrcp.f32 %v4014_v54  ;;  %v3974_v19 = vsub.f32 0.0, %v15186_v43  ;;  %v15198_v8 = vmul.f32 %v11559_v22, %v3318_v61  ;;  %v3428_v10 = vmul.f32 %v11569_v4, %v3316_v45 }
 0x8cd   :  { %v11571_v47 = vpop.eup %11570  ;;  %11586 = vrcp.f32 %v4012_v16  ;;  %v3994_v37 = vmul.f32 1.442695, %v3969_v24  ;;  %v3972_v52 = vsub.f32 0.0, %v15189_v55  ;;  %v3915_v32 = vadd.f32 %v15151_v13, %v15032_v0 }
 0x8ce   :  { %v11573_v31 = vpop.eup %11572  ;;  %v4015_v28 = vadd.f32 1.0, %v11571_v47  ;;  %11588 = vpow2.f32 %v3992_v35  ;;  %v4004_v57 = vmul.f32 1.442695, %v3974_v19  ;;  %v3436_v34 = vpack.c.bf16 %v3426_v20, %v3425_v51 }
 0x8cf   :  { %v4013_v6 = vadd.f32 1.0, %v11573_v31  ;;  %11590 = vpow2.f32 %v3998_v36  ;;  %v4000_v61 = vmul.f32 1.442695, %v3972_v52  ;;  %v3907_v45 = vadd.f32 %v15032_v0, %v15156_v1 }
 0x8d0   :  { %v11575_v17 = vpop.eup %11574  ;;  %11592 = vrcp.f32 %v4015_v28  ;;  %v17713_v22 = vsub.f32 0.0, %v14974_v50  ;;  %v15212_v35 = vmul.f32 %v15042_v11, %v3915_v32  ;;  %10350 = vmatmul.mubr.msk.bf16.gmra.mrb[80].mxu1 %vm509_vm0, %v3436_v34  ;;  %v3437_v13 = vpack.c.bf16 %v3428_v10, %v3427_v48 }
 0x8d1   :  { %v11577_v5 = vpop.eup %11576  ;;  %11594 = vrcp.f32 %v4013_v6  ;;  %v3438_v51 = vpack.c.bf16 %v15198_v8, %v15194_v21  ;;  %v15218_v59 = vmul.f32 %v15042_v11, %v3907_v45  ;;  %v15222_v0 = vmul.f32 %v14890_v53, %v13958_v14 }
 0x8d2   :  { %v15209_v44 = vmul.f32 1.442695, %v17713_v22  ;;  %v11579_v20 = vpop.eup %11578  ;;  %11596 = vpow2.f32 %v3994_v37  ;;  %v4624_v1 = vsub.f32 0.0, %v15019_v38  ;;  %v3946_v9 = vmul.f32 %v15203_v18, %v15057_v63  ;;  %10353 = vmatprep.mubr.msk.bf16.mxu1 %vm509_vm0, %v3437_v13 }
 0x8d3   :  { %v3947_v54 = vmul.f32 %v15203_v18, %v15070_v2  ;;  %11598 = vpow2.f32 %v4004_v57  ;;  %v3975_v4 = vsub.f32 0.0, %v15212_v35  ;;  %v3944_v11 = vmul.f32 %v15203_v18, %v15067_v39 }
 0x8d4   :  { %v11581_v16 = vpop.eup %11580  ;;  %v3945_v36 = vmul.f32 %v15203_v18, %v15094_v58  ;;  %v3973_v24 = vsub.f32 0.0, %v15218_v59  ;;  %11600 = vpow2.f32 %v14984_v40  ;;  %v4058_v21 = vmul.f32 %v11575_v17, %v3946_v9 }
 0x8d5   :  { %v11583_v63 = vpop.eup %11582  ;;  %v4059_v48 = vmul.f32 %v11581_v16, %v3947_v54  ;;  %11602 = vpow2.f32 %v4000_v61  ;;  %v4006_v2 = vmul.f32 1.442695, %v3975_v4  ;;  %v4056_v47 = vmul.f32 %v11577_v5, %v3944_v11 }
 0x8d6   :  { %v11585_v19 = vpop.eup %11584  ;;  %v4057_v8 = vmul.f32 %v11583_v63, %v3945_v36  ;;  %v4018_v10 = vadd.f32 1.0, %v11579_v20  ;;  %v4002_v37 = vmul.f32 1.442695, %v3973_v24  ;;  %v4625_v39 = vsub.f32 0.0, %v15222_v0 }
 0x8d7   :  { %v11587_v31 = vpop.eup %11586  ;;  %v4073_v28 = vpack.c.bf16 %v4059_v48, %v4058_v21  ;;  %11604 = vpow2.f32 %v4006_v2  ;;  %v15240_v58 = vmul.f32 %v14890_v53, %v17687_v33  ;;  %v4646_v52 = vmul.f32 1.442695, %v4624_v1  ;;  %v10799_v21 = vld [vmem:[#allocation19 + $0x8] sm:$0xff]  }
 0x8d8   :  { %v11589_v40 = vpop.eup %11588  ;;  %11606 = vpow2.f32 %v4002_v37  ;;  %v4072_v57 = vpack.c.bf16 %v4057_v8, %v4056_v47  ;;  %v15244_v6 = vmul.f32 %v14890_v53, %v17689_v25  ;;  %v3950_v34 = vmul.f32 %v15203_v18, %v15097_v7  ;;  %10354 = vmatmul.mubr.msk.bf16.gmra.mrb[84].mxu1 %vm509_vm0, %v3438_v51 }
 0x8d9   :  { %v11591_v32 = vpop.eup %11590  ;;  %v3951_v17 = vmul.f32 %v15203_v18, %v15131_v26  ;;  %v4016_v61 = vadd.f32 1.0, %v11589_v40  ;;  %11608 = vpow2.f32 %v14986_v27  ;;  %v3948_v22 = vmul.f32 %v15203_v18, %v15108_v46 }
 0x8da   :  { %v11593_v45 = vpop.eup %11592  ;;  %v3949_v5 = vmul.f32 %v15203_v18, %v15134_v49  ;;  %11610 = vrcp.f32 %v4018_v10  ;;  %v4019_v13 = vadd.f32 1.0, %v11591_v32  ;;  %10389 = vmatprep.mubr.msk.bf16.mxu1 %vm509_vm0, %v4072_v57  ;;  %v15257_v20 = vmul.f32 %v11585_v19, %v3950_v34  ;;  %v10800_v57 = vld [vmem:[#allocation19 + $0x10] sm:$0xff]   ;;  %v17714_v34 = vld [vmem:[#allocation62_spill] sm:$0xff] }
 0x8db   :  { %v11595_v7 = vpop.eup %11594  ;;  %v15259_v26 = vmul.f32 %v11593_v45, %v3951_v17  ;;  %11612 = vpow2.f32 %v15005_v3  ;;  %v4648_v51 = vmul.f32 1.442695, %v4625_v39  ;;  %v4060_v1 = vmul.f32 %v11587_v31, %v3948_v22 }
 0x8dc   :  { %v11597_v27 = vpop.eup %11596  ;;  %v4061_v9 = vmul.f32 %v11595_v7, %v3949_v5  ;;  %11614 = vrcp.f32 %v4019_v13  ;;  %v15264_v46 = vmul.f32 %v14890_v53, %v14001_v30  ;;  %v4627_v16 = vsub.f32 0.0, %v15244_v6 }
 0x8dd   :  { %v11599_v49 = vpop.eup %11598  ;;  %11616 = vrcp.f32 %v4016_v61  ;;  %v4017_v54 = vadd.f32 1.0, %v11597_v27  ;;  %v4075_v4 = vpack.c.bf16 %v15259_v26, %v15257_v20  ;;  %v15272_v24 = vmul.f32 %v14890_v53, %v17688_v29 }
 0x8de   :  { %v11601_v11 = vpop.eup %11600  ;;  %v4022_v36 = vadd.f32 1.0, %v11599_v49  ;;  %v4074_v3 = vpack.c.bf16 %v4061_v9, %v4060_v1  ;;  %11618 = vpow2.f32 %v15209_v44  ;;  %v4626_v2 = vsub.f32 0.0, %v15240_v58  ;;  %v10801_v9 = vld [vmem:[#allocation19 + $0x18] sm:$0xff]  }
 0x8df   :  { %v11603_v63 = vpop.eup %11602  ;;  %11620 = vrcp.f32 %v4017_v54  ;;  %v4628_v19 = vsub.f32 0.0, %v15264_v46  ;;  %v4652_v8 = vmul.f32 1.442695, %v4627_v16  ;;  %v15279_v44 = vmul.f32 %v14890_v53, %v17692_v12 }
 0x8e0   :  { %v4020_v48 = vadd.f32 1.0, %v11603_v63  ;;  %11622 = vpow2.f32 %v4646_v52  ;;  %10390 = vmatmul.mubr.msk.bf16.vlgmr.msra.gmra.mrb[88].mxu1 %vm509_vm0, %v4073_v28  ;;  %v4629_v31 = vsub.f32 0.0, %v15272_v24  ;;  %v15286_v39 = vmul.f32 %v14890_v53, %v17690_v62 }
 0x8e1   :  { %v11605_v47 = vpop.eup %11604  ;;  %11624 = vpow2.f32 %v4648_v51  ;;  %10430 = vmatpush3.bf16.msra.mxu1 %v15169_v15  ;;  %10393 = vmatprep.mubr.msk.bf16.mxu1 %vm509_vm0, %v4074_v3  ;;  %v4667_v52 = vadd.f32 1.0, %v15073_v56  ;;  %v4666_v17 = vadd.f32 1.0, %v17714_v34  ;;  %v4650_v15 = vmul.f32 1.442695, %v4626_v2 }
 0x8e2   :  { %v11607_v10 = vpop.eup %11606  ;;  %11626 = vrcp.f32 %v4022_v36  ;;  %v4023_v37 = vadd.f32 1.0, %v11605_v47  ;;  %10431 = vmatprep.subr.bf16.mxu1 %v10799_v21  ;;  %v4654_v61 = vmul.f32 1.442695, %v4628_v19  ;;  %v3954_v22 = vmul.f32 %v15203_v18, %v15147_v23  ;;  %v17715_v23 = vld [vmem:[#allocation58_spill] sm:$0xff] }
 0x8e3   :  { %v11609_v28 = vpop.eup %11608  ;;  %11628 = vrcp.f32 %v4020_v48  ;;  %v4021_v40 = vadd.f32 1.0, %v11607_v10  ;;  %v3955_v5 = vmul.f32 %v15203_v18, %v15165_v41  ;;  %v4631_v13 = vsub.f32 0.0, %v15279_v44 }
 0x8e4   :  { %v11611_v32 = vpop.eup %11610  ;;  %11630 = vrcp.f32 %v4023_v37  ;;  %v4668_v20 = vadd.f32 1.0, %v11601_v11  ;;  %v4656_v56 = vmul.f32 1.442695, %v4629_v31  ;;  %v4630_v26 = vsub.f32 0.0, %v15286_v39  ;;  %v17716_v11 = vld [vmem:[#allocation60_spill] sm:$0xff] }
 0x8e5   :  { %v11613_v45 = vpop.eup %11612  ;;  %11632 = vrcp.f32 %v4021_v40  ;;  %10432 = vmatpush3.bf16.msra.mxu1 %v10799_v21  ;;  %v4066_v27 = vmul.f32 %v11611_v32, %v3954_v22  ;;  %v15298_v49 = vmul.f32 %v14890_v53, %v17715_v23  ;;  %v3952_v54 = vmul.f32 %v15203_v18, %v15161_v60 }
 0x8e6   :  { %v11615_v7 = vpop.eup %11614  ;;  %11634 = vpow2.f32 %v4652_v8  ;;  %10433 = vmatprep.subr.bf16.mxu1 %v10800_v57  ;;  %v3953_v16 = vmul.f32 %v15203_v18, %v15182_v42  ;;  %v15306_v36 = vmul.f32 %v14890_v53, %v17716_v11  ;;  %v4660_v21 = vmul.f32 1.442695, %v4631_v13  ;;  %v15321_v13 = vld [vmem:[#allocation17] ss:$0 sm:$0xff] }
 0x8e7   :  { %v11617_v51 = vpop.eup %11616  ;;  %v4067_v1 = vmul.f32 %v11615_v7, %v3955_v5  ;;  %11636 = vrcp.f32 %v4667_v52  ;;  %v4669_v47 = vadd.f32 1.0, %v11609_v28  ;;  %v4658_v8 = vmul.f32 1.442695, %v4630_v26 }
 0x8e8   :  { %v11619_v41 = vpop.eup %11618  ;;  %11638 = vpow2.f32 %v4650_v15  ;;  %10394 = vmatmul.mubr.msk.bf16.gmra.mrb[92].mxu1 %vm509_vm0, %v4075_v4  ;;  %v4064_v2 = vmul.f32 %v11617_v51, %v3952_v54  ;;  %v4632_v37 = vsub.f32 0.0, %v15298_v49  ;;  %v4633_v4 = vsub.f32 0.0, %v15306_v36 }
 0x8e9   :  { %v11621_v3 = vpop.eup %11620  ;;  %v4077_v63 = vpack.c.bf16 %v4067_v1, %v4066_v27  ;;  %11640 = vrcp.f32 %v4666_v17  ;;  %10434 = vmatpush3.bf16.msra.mxu1 %v10800_v57  ;;  %v4671_v42 = vadd.f32 1.0, %v11619_v41  ;;  %v3958_v40 = vmul.f32 %v15203_v18, %v15186_v43 }
 0x8ea   :  { %v11623_v48 = vpop.eup %11622  ;;  %v4065_v19 = vmul.f32 %v11621_v3, %v3953_v16  ;;  %11642 = vrcp.f32 %v4668_v20  ;;  %10435 = vmatprep.subr.bf16.mxu1 %v10801_v9  ;;  %v3959_v28 = vmul.f32 %v15203_v18, %v15212_v35  ;;  %v4670_v57 = vadd.f32 1.0, %v11613_v45  ;;  %v17717_v20 = vld [vmem:[#allocation56_spill] sm:$0xff] }
 0x8eb   :  { %v11625_v60 = vpop.eup %11624  ;;  %11644 = vpow2.f32 %v4654_v61  ;;  %v3956_v32 = vmul.f32 %v15203_v18, %v15189_v55  ;;  %v3957_v34 = vmul.f32 %v15203_v18, %v15218_v59  ;;  %v4662_v45 = vmul.f32 1.442695, %v4632_v37 }
 0x8ec   :  { %v11627_v10 = vpop.eup %11626  ;;  %v4076_v53 = vpack.c.bf16 %v4065_v19, %v4064_v2  ;;  %11646 = vpow2.f32 %v4656_v56  ;;  %v4664_v18 = vmul.f32 1.442695, %v4633_v4  ;;  %v4603_v56 = vmul.f32 %v15321_v13, %v17717_v20 }
 0x8ed   :  { %v11629_v31 = vpop.eup %11628  ;;  %11648 = vpow2.f32 %v4660_v21  ;;  %10436 = vmatpush3.bf16.msra.mxu1 %v10801_v9  ;;  %v4070_v15 = vmul.f32 %v11627_v10, %v3958_v40  ;;  %v4673_v26 = vadd.f32 1.0, %v11625_v60  ;;  %v17718_v9 = vld [vmem:[#allocation55_spill] sm:$0xff]  ;;  %v4672_v16 = vadd.f32 1.0, %v11623_v48 }
 0x8ee   :  { %v11631_v52 = vpop.eup %11630  ;;  %10397 = vmatprep.mubr.msk.bf16.mxu1 %vm509_vm0, %v4076_v53  ;;  %11650 = vrcp.f32 %v4669_v47  ;;  %v4068_v22 = vmul.f32 %v11629_v31, %v3956_v32  ;;  %v4602_v41 = vmul.f32 %v15321_v13, %v17718_v9  ;;  %v4607_v53 = vmul.f32 %v15321_v13, %v14974_v50  ;;  %v17720_v31 = vld [vmem:[#allocation57_spill] sm:$0xff] }
 0x8ef   :  { %v11633_v17 = vpop.eup %11632  ;;  %v4071_v61 = vmul.f32 %v11631_v52, %v3959_v28  ;;  %11652 = vrcp.f32 %v4671_v42  ;;  %v4604_v40 = vmul.f32 %v15321_v13, %v17720_v31  ;;  %v17721_v52 = vld [vmem:[#allocation63_spill] sm:$0xff] }
 0x8f0   :  { %v11635_v43 = vpop.eup %11634  ;;  %v4069_v35 = vmul.f32 %v11633_v17, %v3957_v34  ;;  %11654 = vpow2.f32 %v4658_v8  ;;  %10398 = vmatmul.mubr.msk.bf16.gmra.mrb[96].mxu1 %vm509_vm0, %v4077_v63  ;;  %v17719_v8 = vld [vmem:[#allocation59_spill] sm:$0xff]  ;;  %v4606_v32 = vmul.f32 %v15321_v13, %v17721_v52 }
 0x8f1   :  { %v11637_v5 = vpop.eup %11636  ;;  %v4079_v55 = vpack.c.bf16 %v4071_v61, %v4070_v15  ;;  %11656 = vrcp.f32 %v4670_v57  ;;  %v4675_v27 = vadd.f32 1.0, %v11635_v43  ;;  %v4605_v10 = vmul.f32 %v15321_v13, %v17719_v8  ;;  %v10802_v31 = vld [vmem:[#allocation16 + $0x40] sm:$0xff]  }
 0x8f2   :  { %v11639_v59 = vpop.eup %11638  ;;  %v4078_v7 = vpack.c.bf16 %v4069_v35, %v4068_v22  ;;  %v4715_v54 = vmul.f32 %v11637_v5, %v4603_v56  ;;  %11658 = vpow2.f32 %v4662_v45  ;;  %10405 = vmatprep.subr.bf16.mxu0 %v10802_v31 }
 0x8f3   :  { %v11641_v51 = vpop.eup %11640  ;;  %v4674_v63 = vadd.f32 1.0, %v11639_v59  ;;  %11660 = vpow2.f32 %v4664_v18  ;;  %v4609_v18 = vmul.f32 %v15321_v13, %v15222_v0  ;;  %10406 = vmatpush3.bf16.msra.mxu0 %v10802_v31 }
 0x8f4   :  { %v11643_v1 = vpop.eup %11642  ;;  %10401 = vmatprep.mubr.msk.bf16.mxu1 %vm509_vm0, %v4078_v7  ;;  %v4714_v2 = vmul.f32 %v11641_v51, %v4602_v41  ;;  %11662 = vrcp.f32 %v4673_v26  ;;  %v4611_v7 = vmul.f32 %v15321_v13, %v15244_v6  ;;  %v4608_v26 = vmul.f32 %v15321_v13, %v15019_v38 }
 0x8f5   :  { %v11645_v3 = vpop.eup %11644  ;;  %11664 = vrcp.f32 %v4675_v27  ;;  %v4716_v15 = vmul.f32 %v11643_v1, %v4604_v40  ;;  %v4610_v27 = vmul.f32 %v15321_v13, %v15240_v58  ;;  %v4613_v6 = vmul.f32 %v15321_v13, %v15272_v24  ;;  %v10803_v40 = vld [vmem:[#allocation16 + $0x48] sm:$0xff]  }
 0x8f6   :  { %v11647_v21 = vpop.eup %11646  ;;  %v4730_v60 = vpack.c.bf16 %v4715_v54, %v4714_v2  ;;  %11666 = vrcp.f32 %v4672_v16  ;;  %v4676_v17 = vadd.f32 1.0, %v11645_v3  ;;  %v4615_v58 = vmul.f32 %v15321_v13, %v15279_v44  ;;  %10407 = vmatprep.subr.bf16.mxu0 %v10803_v40 }
 0x8f7   :  { %v11649_v19 = vpop.eup %11648  ;;  %11668 = vrcp.f32 %v4674_v63  ;;  %v4677_v37 = vadd.f32 1.0, %v11647_v21  ;;  %v4612_v2 = vmul.f32 %v15321_v13, %v15264_v46  ;;  %v4616_v46 = vmul.f32 %v15321_v13, %v15298_v49  ;;  %10408 = vmatpush3.bf16.msra.mxu0 %v10803_v40  ;;  %v9355_v49 = vld [vmem:[#allocation11 + $0x8] ss:$0 sm:$0xff] }
 0x8f8   :  { %v11651_v47 = vpop.eup %11650  ;;  %10402 = vmatmul.mubr.msk.bf16.gmra.mrb[100].mxu1 %vm509_vm0, %v4079_v55  ;;  %v4679_v57 = vadd.f32 1.0, %v11649_v19 }
 0x8f9   :  { %v11653_v42 = vpop.eup %11652  ;;  %10437 = vmatprep.mubr.msk.bf16.mxu1 %vm509_vm0, %v4730_v60  ;;  %v4717_v28 = vmul.f32 %v11651_v47, %v4605_v10  ;;  %11670 = vrcp.f32 %v4677_v37  ;;  %v4614_v47 = vmul.f32 %v15321_v13, %v15286_v39 }
 0x8fa   :  { %v11655_v48 = vpop.eup %11654  ;;  %v4719_v34 = vmul.f32 %v11653_v42, %v4607_v53  ;;  %11672 = vrcp.f32 %v4679_v57  ;;  %v4617_v53 = vmul.f32 %v15321_v13, %v15306_v36  ;;  %v10805_v36 = vld [vmem:[#allocation16 + $0x58] sm:$0xff]   ;;  %v15365_v57 = vld [vmem:[#allocation19 + $0x20] sm:$0xff]  }
 0x8fb   :  { %v11657_v4 = vpop.eup %11656  ;;  %v4678_v61 = vadd.f32 1.0, %v11655_v48  ;;  %v4731_v45 = vpack.c.bf16 %v4717_v28, %v4716_v15  ;;  %11674 = vrcp.f32 %v4676_v17  ;;  %v10804_v28 = vld [vmem:[#allocation16 + $0x50] sm:$0xff]  }
 0x8fc   :  { %v11659_v43 = vpop.eup %11658  ;;  %v4718_v22 = vmul.f32 %v11657_v4, %v4606_v32  ;;  %10409 = vmatprep.subr.bf16.mxu0 %v10804_v28 }
 0x8fd   :  { %v11661_v35 = vpop.eup %11660  ;;  %11676 = vrcp.f32 %v4678_v61  ;;  %v4680_v9 = vadd.f32 1.0, %v11659_v43  ;;  %10410 = vmatpush3.bf16.msra.mxu0 %v10804_v28 }
 0x8fe   :  { %v11663_v50 = vpop.eup %11662  ;;  %v4732_v5 = vpack.c.bf16 %v4719_v34, %v4718_v22  ;;  %v4681_v20 = vadd.f32 1.0, %v11661_v35  ;;  %10411 = vmatprep.subr.bf16.mxu0 %v10805_v36 }
 0x8ff   :  { %v11665_v55 = vpop.eup %11664  ;;  %v4721_v51 = vmul.f32 %v11663_v50, %v4609_v18 }
 0x900   :  { %10438 = vmatmul.mubr.msk.bf16.vlgmr.msra.gmra.mrb[104].mxu1 %vm509_vm0, %v4731_v45  ;;  %v11667_v59 = vpop.eup %11666  ;;  %v4723_v1 = vmul.f32 %v11665_v55, %v4611_v7  ;;  %11678 = vrcp.f32 %v4681_v20 }
 0x901   :  { %10441 = vmatprep.mubr.msk.bf16.mxu1 %vm509_vm0, %v4732_v5  ;;  %v11669_v56 = vpop.eup %11668  ;;  %v4720_v41 = vmul.f32 %v11667_v59, %v4608_v26  ;;  %11680 = vrcp.f32 %v4680_v9  ;;  %10412 = vmatpush3.bf16.msra.mxu0 %v10805_v36  ;;  %v15386_v36 = vld [vmem:[#allocation20 + $0x1] ss:$0 sm:$0xff] }
 0x902   :  { %v4722_v0 = vmul.f32 %v11669_v56, %v4610_v27  ;;  %10453 = vmatprep.subr.bf16.mxu0 %v15365_v57 }
 0x903   :  { %v4733_v54 = vpack.c.bf16 %v4721_v51, %v4720_v41  ;;  %v11671_v16 = vpop.eup %11670 }
 0x904   :  { %v4734_v3 = vpack.c.bf16 %v4723_v1, %v4722_v0  ;;  %v11673_v63 = vpop.eup %11672  ;;  %v4725_v19 = vmul.f32 %v11671_v16, %v4613_v6 }
 0x905   :  { %v11675_v38 = vpop.eup %11674  ;;  %v4727_v60 = vmul.f32 %v11673_v63, %v4615_v58 }
 0x906   :  { %v4724_v42 = vmul.f32 %v11675_v38, %v4612_v2 }
 0x907   :  { %v11677_v21 = vpop.eup %11676 }
 0x908   :  { %10442 = vmatmul.mubr.msk.bf16.gmra.mrb[108].mxu1 %vm509_vm0, %v4733_v54  ;;  %v4726_v8 = vmul.f32 %v11677_v21, %v4614_v47  ;;  %v4735_v10 = vpack.c.bf16 %v4725_v19, %v4724_v42 }
 0x909   :  { %10445 = vmatprep.mubr.msk.bf16.mxu1 %vm509_vm0, %v4734_v3 }
 0x90a   :  { %v11679_v48 = vpop.eup %11678  ;;  %v4736_v24 = vpack.c.bf16 %v4727_v60, %v4726_v8 }
 0x90b   :  { %v11681_v44 = vpop.eup %11680  ;;  %v4729_v37 = vmul.f32 %v11679_v48, %v4617_v53 }
 0x90c   :  { %v4728_v4 = vmul.f32 %v11681_v44, %v4616_v46 }
 0x90e   :  { %v4737_v39 = vpack.c.bf16 %v4729_v37, %v4728_v4  ;;  %v15381_v37 = vld [vmem:[#allocation14 + $0x5] ss:$0 sm:$0xff] }
 0x910   :  { %10446 = vmatmul.mubr.msk.bf16.gmra.mrb[112].mxu1 %vm509_vm0, %v4735_v10 }
 0x911   :  { %10449 = vmatprep.mubr.msk.bf16.mxu1 %vm509_vm0, %v4736_v24 }
 0x918   :  { %10450 = vmatmul.mubr.msk.bf16.gmra.mrb[116].mxu1 %vm509_vm0, %v4737_v39 }
 0x98e   :  { %v10343_v13 = vpop.f32.mrb[72].mxu1 }
 0x98f   :  { %v3535_v52 = vpop.f32.mrb[73].mxu1  ;;  %v3544_v32 = vadd.f32 %v10343_v13, %v9355_v49  ;;  %v15388_v13 = vld [vmem:[#allocation14 + $0x7] ss:$0 sm:$0xff] }
 0x990   :  { %v10344_v34 = vpop.f32.mrb[74].mxu1  ;;  %v3536_v17 = vadd.f32 %v9355_v49, %v3535_v52 }
 0x991   :  { %v3547_v15 = vadd.f32 %v10344_v34, %v9355_v49  ;;  %v3538_v61 = vpop.f32.mrb[75].mxu1  ;;  %v9723_v43 = vpack.c.bf16 %v3544_v32, %v3544_v32  ;;  %v17722_v32 = vld [vmem:[#allocation47_spill] sm:$0xff] }
 0x992   :  { %v3539_v22 = vadd.f32 %v9355_v49, %v3538_v61  ;;  %v9721_v35 = vpack.c.bf16 %v3536_v17, %v3536_v17  ;;  %v17723_v61 = vld [vmem:[#allocation48_spill] sm:$0xff] }
 0x993   :  { %8621 = vrot.lane.b32.xlu1 %v9723_v43, %s12966_s28  ;;  %v9724_v45 = vpack.c.bf16 %v3547_v15, %v3547_v15 }
 0x994   :  { %8617 = vrot.lane.b32.xlu0 %v9721_v35, %s12966_s28  ;;  %v9722_v50 = vpack.c.bf16 %v3539_v22, %v3539_v22  ;;  %v15398_v35 = vmul.f32 %v15386_v36, %v17723_v61 }
 0x996   :  { %17724 = vst [vmem:[#allocation65_spill] sm:$0xff] %v15398_v35 }
 0x997   :  { %8623 = vrot.lane.b32.xlu1 %v9724_v45, %s12966_s28 }
 0x998   :  { %8619 = vrot.lane.b32.xlu0 %v9722_v50, %s12966_s28  ;;  %v17725_v50 = vld [vmem:[#allocation49_spill] sm:$0xff] }
 0x99a   :  { %v10347_v5 = vpop.f32.mrb[76].mxu1 }
 0x99b   :  { %v3560_v55 = vadd.f32 %v10347_v5, %v9355_v49  ;;  %v3551_v18 = vpop.f32.mrb[77].mxu1 }
 0x99c   :  { %v10348_v59 = vpop.f32.mrb[78].mxu1  ;;  %v3552_v20 = vadd.f32 %v9355_v49, %v3551_v18 }
 0x99d   :  { %v9727_v7 = vpack.c.bf16 %v3560_v55, %v3560_v55  ;;  %v3563_v56 = vadd.f32 %v10348_v59, %v9355_v49  ;;  %v3554_v26 = vpop.f32.mrb[79].mxu1  ;;  %v17726_v55 = vld [vmem:[#allocation50_spill] sm:$0xff] }
 0x99e   :  { %v3555_v27 = vadd.f32 %v9355_v49, %v3554_v26  ;;  %v9725_v1 = vpack.c.bf16 %v3552_v20, %v3552_v20  ;;  %v15406_v18 = vmul.f32 %v15386_v36, %v17726_v55 }
 0x99f   :  { %v9728_v51 = vpack.c.bf16 %v3563_v56, %v3563_v56  ;;  %8629 = vrot.lane.b32.xlu0 %v9727_v7, %s12966_s28 }
 0x9a0   :  { %v9726_v9 = vpack.c.bf16 %v3555_v27, %v3555_v27  ;;  %17727 = vst [vmem:[#allocation64_spill] sm:$0xff] %v15406_v18 }
 0x9a1   :  { %8631 = vrot.lane.b32.xlu1 %v9728_v51, %s12966_s28 }
 0x9a3   :  { %8625 = vrot.lane.b32.xlu0 %v9725_v1, %s12966_s28  ;;  %v10351_v41 = vpop.f32.mrb[80].mxu1  ;;  %v5596_v1 = vsub.f32 0.0, %v15398_v35 }
 0x9a4   :  { %v3576_v0 = vadd.f32 %v10351_v41, %v9355_v49  ;;  %v3567_v54 = vpop.f32.mrb[81].mxu1 }
 0x9a5   :  { %8627 = vrot.lane.b32.xlu1 %v9726_v9, %s12966_s28  ;;  %v10352_v16 = vpop.f32.mrb[82].mxu1  ;;  %v3568_v63 = vadd.f32 %v9355_v49, %v3567_v54  ;;  %v15423_v9 = vmul.f32 %v15386_v36, %v17722_v32 }
 0x9a6   :  { %v9731_v3 = vpack.c.bf16 %v3576_v0, %v3576_v0  ;;  %v3579_v6 = vadd.f32 %v10352_v16, %v9355_v49  ;;  %v3570_v38 = vpop.f32.mrb[83].mxu1 }
 0x9a7   :  { %v3571_v21 = vadd.f32 %v9355_v49, %v3570_v38  ;;  %v9729_v2 = vpack.c.bf16 %v3568_v63, %v3568_v63  ;;  %17728 = vst [vmem:[#allocation62_spill] sm:$0xff] %v15423_v9 }
 0x9a8   :  { %v9732_v58 = vpack.c.bf16 %v3579_v6, %v3579_v6  ;;  %8637 = vrot.lane.b32.xlu0 %v9731_v3, %s12966_s28  ;;  %v5597_v3 = vsub.f32 0.0, %v15406_v18 }
 0x9a9   :  { %v9730_v47 = vpack.c.bf16 %v3571_v21, %v3571_v21  ;;  %v15432_v21 = vmul.f32 %v15386_v36, %v17725_v50 }
 0x9aa   :  { %8639 = vrot.lane.b32.xlu1 %v9732_v58, %s12966_s28 }
 0x9ab   :  { %v10355_v19 = vpop.f32.mrb[84].mxu1  ;;  %17729 = vst [vmem:[#allocation56_spill] sm:$0xff] %v15432_v21 }
 0x9ac   :  { %v3592_v60 = vadd.f32 %v10355_v19, %v9355_v49  ;;  %v3583_v42 = vpop.f32.mrb[85].mxu1  ;;  %8633 = vrot.lane.b32.xlu0 %v9729_v2, %s12966_s28  ;;  %v17730_v19 = vld [vmem:[#allocation51_spill] sm:$0xff] }
 0x9ad   :  { %v10356_v8 = vpop.f32.mrb[86].mxu1  ;;  %v3584_v48 = vadd.f32 %v9355_v49, %v3583_v42 }
 0x9ae   :  { %v9735_v10 = vpack.c.bf16 %v3592_v60, %v3592_v60  ;;  %v3595_v24 = vadd.f32 %v10356_v8, %v9355_v49  ;;  %v3586_v53 = vpop.f32.mrb[87].mxu1  ;;  %8635 = vrot.lane.b32.xlu1 %v9730_v47, %s12966_s28 }
 0x9af   :  { %v3587_v46 = vadd.f32 %v9355_v49, %v3586_v53  ;;  %v9733_v4 = vpack.c.bf16 %v3584_v48, %v3584_v48  ;;  %v5598_v53 = vsub.f32 0.0, %v15423_v9 }
 0x9b0   :  { %v9736_v44 = vpack.c.bf16 %v3595_v24, %v3595_v24  ;;  %8645 = vrot.lane.b32.xlu0 %v9735_v10, %s12966_s28  ;;  %v17731_v10 = vld [vmem:[#allocation52_spill] sm:$0xff] }
 0x9b1   :  { %v9734_v31 = vpack.c.bf16 %v3587_v46, %v3587_v46 }
 0x9b2   :  { %8647 = vrot.lane.b32.xlu1 %v9736_v44, %s12966_s28 }
 0x9b3   :  { %v10391_v39 = vpop.f32.mrb[88].mxu1 }
 0x9b4   :  { %v4185_v40 = vadd.f32 %v10391_v39, %v15381_v37  ;;  %v4176_v28 = vpop.f32.mrb[89].mxu1  ;;  %8641 = vrot.lane.b32.xlu0 %v9733_v4, %s12966_s28  ;;  %v5612_v4 = vmul.f32 1.442695, %v5596_v1 }
 0x9b5   :  { %v4177_v49 = vadd.f32 %v15381_v37, %v4176_v28  ;;  %v10392_v52 = vpop.f32.mrb[90].mxu1  ;;  %v5614_v28 = vmul.f32 1.442695, %v5597_v3 }
 0x9b6   :  { %v4241_v34 = vadd.f32 %v4185_v40, %v17722_v32  ;;  %v4188_v17 = vadd.f32 %v10392_v52, %v15381_v37  ;;  %v4179_v15 = vpop.f32.mrb[91].mxu1  ;;  %8643 = vrot.lane.b32.xlu1 %v9734_v31, %s12966_s28  ;;  %v17732_v31 = vld [vmem:[#allocation54_spill] sm:$0xff] }
 0x9b7   :  { %v4239_v43 = vadd.f32 %v4177_v49, %v17723_v61  ;;  %v4180_v22 = vadd.f32 %v15381_v37, %v4179_v15  ;;  %v15464_v1 = vmul.f32 %v15386_v36, %v17732_v31 }
 0x9b8   :  { %v15401_v45 = vmul.f32 %v15388_v13, %v4241_v34  ;;  %v4242_v5 = vadd.f32 %v4188_v17, %v17725_v50  ;;  %v5599_v34 = vsub.f32 0.0, %v15432_v21 }
 0x9b9   :  { %v15409_v59 = vmul.f32 %v15388_v13, %v4239_v43  ;;  %v4240_v7 = vadd.f32 %v4180_v22, %v17726_v55  ;;  %v5616_v22 = vmul.f32 1.442695, %v5598_v53  ;;  %17734 = vst [vmem:[#allocation59_spill] sm:$0xff] %v15464_v1 }
 0x9ba   :  { %v4299_v20 = vsub.f32 0.0, %v15401_v45  ;;  %v15414_v56 = vmul.f32 %v15388_v13, %v4242_v5  ;;  %v15458_v5 = vmul.f32 %v15386_v36, %v17731_v10 }
 0x9bb   :  { %v4297_v26 = vsub.f32 0.0, %v15409_v59  ;;  %v15418_v51 = vmul.f32 %v15388_v13, %v4240_v7  ;;  %v10395_v27 = vpop.f32.mrb[92].mxu1 }
 0x9bc   :  { %v4317_v41 = vmul.f32 1.442695, %v4299_v20  ;;  %v4300_v0 = vsub.f32 0.0, %v15414_v56  ;;  %v4201_v54 = vadd.f32 %v10395_v27, %v15381_v37  ;;  %v4192_v16 = vpop.f32.mrb[93].mxu1  ;;  %17733 = vst [vmem:[#allocation55_spill] sm:$0xff] %v15458_v5 }
 0x9bd   :  { %v4313_v63 = vmul.f32 1.442695, %v4297_v26  ;;  %v4298_v6 = vsub.f32 0.0, %v15418_v51  ;;  %v4193_v38 = vadd.f32 %v15381_v37, %v4192_v16  ;;  %v10396_v58 = vpop.f32.mrb[94].mxu1 }
 0x9be   :  { %11682 = vpow2.f32 %v4317_v41  ;;  %v4319_v2 = vmul.f32 1.442695, %v4300_v0  ;;  %v4245_v47 = vadd.f32 %v4201_v54, %v17730_v19  ;;  %v4204_v60 = vadd.f32 %v10396_v58, %v15381_v37  ;;  %v4195_v42 = vpop.f32.mrb[95].mxu1 }
 0x9bf   :  { %v4315_v8 = vmul.f32 1.442695, %v4298_v6  ;;  %v4243_v48 = vadd.f32 %v4193_v38, %v17731_v10  ;;  %v4196_v24 = vadd.f32 %v15381_v37, %v4195_v42 }
 0x9c0   :  { %11684 = vpow2.f32 %v4319_v2  ;;  %v15440_v44 = vmul.f32 %v15388_v13, %v4245_v47  ;;  %v4246_v46 = vadd.f32 %v4204_v60, %v13958_v14 }
 0x9c1   :  { %11686 = vpow2.f32 %v4315_v8  ;;  %v15444_v39 = vmul.f32 %v15388_v13, %v4243_v48  ;;  %v4244_v40 = vadd.f32 %v4196_v24, %v17732_v31  ;;  %v5600_v48 = vsub.f32 0.0, %v15458_v5 }
 0x9c2   :  { %11688 = vpow2.f32 %v4313_v63  ;;  %v4303_v49 = vsub.f32 0.0, %v15440_v44  ;;  %v15449_v52 = vmul.f32 %v15388_v13, %v4246_v46 }
 0x9c3   :  { %v4301_v17 = vsub.f32 0.0, %v15444_v39  ;;  %v15454_v15 = vmul.f32 %v15388_v13, %v4244_v40  ;;  %v10399_v43 = vpop.f32.mrb[96].mxu1  ;;  %11690 = vpow2.f32 %v5612_v4 }
 0x9c4   :  { %v4325_v7 = vmul.f32 1.442695, %v4303_v49  ;;  %v4304_v20 = vsub.f32 0.0, %v15449_v52  ;;  %v4217_v26 = vadd.f32 %v10399_v43, %v15381_v37  ;;  %v4208_v27 = vpop.f32.mrb[97].mxu1 }
 0x9c5   :  { %v4321_v41 = vmul.f32 1.442695, %v4301_v17  ;;  %v4302_v0 = vsub.f32 0.0, %v15454_v15  ;;  %v4209_v54 = vadd.f32 %v15381_v37, %v4208_v27  ;;  %v10400_v16 = vpop.f32.mrb[98].mxu1  ;;  %v5618_v17 = vmul.f32 1.442695, %v5599_v34 }
 0x9c6   :  { %11692 = vpow2.f32 %v4325_v7  ;;  %v4327_v3 = vmul.f32 1.442695, %v4304_v20  ;;  %v4249_v63 = vadd.f32 %v4217_v26, %v14001_v30  ;;  %v4220_v6 = vadd.f32 %v10400_v16, %v15381_v37  ;;  %v4211_v38 = vpop.f32.mrb[99].mxu1 }
 0x9c7   :  { %11694 = vpow2.f32 %v4321_v41  ;;  %v4323_v58 = vmul.f32 1.442695, %v4302_v0  ;;  %v4247_v2 = vadd.f32 %v4209_v54, %v17687_v33  ;;  %v4212_v47 = vadd.f32 %v15381_v37, %v4211_v38 }
 0x9c8   :  { %v11683_v60 = vpop.eup %11682  ;;  %11696 = vpow2.f32 %v4327_v3  ;;  %v15473_v42 = vmul.f32 %v15388_v13, %v4249_v63  ;;  %v4250_v8 = vadd.f32 %v4220_v6, %v17688_v29  ;;  %v5601_v27 = vsub.f32 0.0, %v15464_v1 }
 0x9c9   :  { %v4347_v24 = vadd.f32 1.0, %v11683_v60  ;;  %11698 = vpow2.f32 %v4323_v58  ;;  %v15478_v53 = vmul.f32 %v15388_v13, %v4247_v2  ;;  %v4248_v46 = vadd.f32 %v4212_v47, %v17689_v25 }
 0x9ca   :  { %v11685_v4 = vpop.eup %11684  ;;  %v4307_v40 = vsub.f32 0.0, %v15473_v42  ;;  %v15483_v49 = vmul.f32 %v15388_v13, %v4250_v8  ;;  %11700 = vpow2.f32 %v5614_v28  ;;  %v15487_v3 = vmul.f32 1.442695, %v5600_v48 }
 0x9cb   :  { %v11687_v43 = vpop.eup %11686  ;;  %11702 = vrcp.f32 %v4347_v24  ;;  %v4348_v7 = vadd.f32 1.0, %v11685_v4  ;;  %v4305_v20 = vsub.f32 0.0, %v15478_v53  ;;  %v10403_v26 = vpop.f32.mrb[100].mxu1  ;;  %v15491_v34 = vmul.f32 %v15388_v13, %v4248_v46 }
 0x9cc   :  { %v11689_v41 = vpop.eup %11688  ;;  %v4346_v0 = vadd.f32 1.0, %v11687_v43  ;;  %v4333_v54 = vmul.f32 1.442695, %v4307_v40  ;;  %v4224_v16 = vpop.f32.mrb[101].mxu1  ;;  %11704 = vpow2.f32 %v5616_v22  ;;  %v4308_v28 = vsub.f32 0.0, %v15483_v49 }
 0x9cd   :  { %11706 = vrcp.f32 %v4348_v7  ;;  %v4329_v63 = vmul.f32 1.442695, %v4305_v20  ;;  %v10404_v6 = vpop.f32.mrb[102].mxu1  ;;  %v4233_v38 = vadd.f32 %v10403_v26, %v15381_v37  ;;  %v4225_v58 = vadd.f32 %v15381_v37, %v4224_v16  ;;  %v15496_v60 = vpop.eup %11690  ;;  %v15502_v7 = vld [vmem:[#allocation14 + $0x6] ss:$0 sm:$0xff] }
 0x9ce   :  { %11708 = vrcp.f32 %v4346_v0  ;;  %v4236_v2 = vadd.f32 %v10404_v6, %v15381_v37  ;;  %v4227_v47 = vpop.f32.mrb[103].mxu1  ;;  %v4345_v22 = vadd.f32 1.0, %v11689_v41  ;;  %v4335_v8 = vmul.f32 1.442695, %v4308_v28 }
 0x9cf   :  { %11710 = vpow2.f32 %v4333_v54  ;;  %v4306_v48 = vsub.f32 0.0, %v15491_v34  ;;  %v4253_v46 = vadd.f32 %v4233_v38, %v17715_v23  ;;  %v4251_v4 = vadd.f32 %v4225_v58, %v17690_v62 }
 0x9d0   :  { %v11693_v24 = vpop.eup %11692  ;;  %11712 = vpow2.f32 %v4329_v63  ;;  %v4254_v40 = vadd.f32 %v4236_v2, %v17716_v11  ;;  %v4228_v26 = vadd.f32 %v15381_v37, %v4227_v47  ;;  %v15507_v41 = vmul.f32 %v15386_v36, %v17730_v19 }
 0x9d1   :  { %v11695_v43 = vpop.eup %11694  ;;  %v4351_v20 = vadd.f32 1.0, %v11693_v24  ;;  %11714 = vpow2.f32 %v4335_v8  ;;  %v15510_v16 = vmul.f32 %v15388_v13, %v4253_v46  ;;  %v15513_v63 = vmul.f32 %v15388_v13, %v4251_v4 }
 0x9d2   :  { %v11697_v0 = vpop.eup %11696  ;;  %v4349_v54 = vadd.f32 1.0, %v11695_v43  ;;  %v15516_v28 = vmul.f32 %v15388_v13, %v4254_v40  ;;  %11716 = vrcp.f32 %v4345_v22  ;;  %v4331_v38 = vmul.f32 1.442695, %v4306_v48  ;;  %v15533_v43 = vld [vmem:[#allocation17 + $0x2] ss:$0 sm:$0xff] }
 0x9d3   :  { %v11699_v6 = vpop.eup %11698  ;;  %v4252_v37 = vadd.f32 %v4228_v26, %v17692_v12  ;;  %v10439_v58 = vpop.f32.mrb[104].mxu1  ;;  %v15519_v2 = vmul.f32 1.442695, %v5601_v27  ;;  %v4283_v8 = vmul.f32 %v15502_v7, %v15401_v45  ;;  %v15527_v24 = vmul.f32 %v15502_v7, %v15409_v59 }
 0x9d4   :  { %v15521_v47 = vpop.eup %11700  ;;  %v4311_v46 = vsub.f32 0.0, %v15510_v16  ;;  %v4833_v4 = vpop.f32.mrb[105].mxu1  ;;  %11718 = vpow2.f32 %v5618_v17  ;;  %v4284_v48 = vmul.f32 %v15502_v7, %v15414_v56  ;;  %v4352_v27 = vadd.f32 1.0, %v11697_v0  ;;  %v15543_v0 = vld [vmem:[#allocation17 + $0x4] ss:$0 sm:$0xff] }
 0x9d5   :  { %v11703_v22 = vpop.eup %11702  ;;  %11720 = vrcp.f32 %v4351_v20  ;;  %v4309_v40 = vsub.f32 0.0, %v15513_v63  ;;  %v10440_v26 = vpop.f32.mrb[106].mxu1  ;;  %v4350_v59 = vadd.f32 1.0, %v11699_v6  ;;  %v4312_v10 = vsub.f32 0.0, %v15516_v28 }
 0x9d6   :  { %v15535_v45 = vpop.eup %11704  ;;  %11722 = vrcp.f32 %v4349_v54  ;;  %v4341_v31 = vmul.f32 1.442695, %v4311_v46  ;;  %v4836_v19 = vpop.f32.mrb[107].mxu1  ;;  %v15538_v55 = vmul.f32 %v11703_v22, %v4283_v8  ;;  %v15541_v20 = vmul.f32 %v15388_v13, %v4252_v37 }
 0x9d7   :  { %v11707_v17 = vpop.eup %11706  ;;  %11724 = vpow2.f32 %v4331_v38  ;;  %v4337_v56 = vmul.f32 1.442695, %v4309_v40  ;;  %v4343_v54 = vmul.f32 1.442695, %v4312_v10  ;;  %v4842_v6 = vadd.f32 %v10439_v58, %v15533_v43 }
 0x9d8   :  { %v11709_v50 = vpop.eup %11708  ;;  %v15545_v61 = vmul.f32 %v11707_v17, %v4284_v48  ;;  %11726 = vpow2.f32 %v4341_v31  ;;  %v4282_v32 = vmul.f32 %v15502_v7, %v15418_v51  ;;  %v15552_v38 = vmul.f32 %v15502_v7, %v15440_v44 }
 0x9d9   :  { %v11711_v46 = vpop.eup %11710  ;;  %11728 = vpow2.f32 %v4337_v56  ;;  %v4310_v13 = vsub.f32 0.0, %v15541_v20  ;;  %v15558_v10 = vmul.f32 %v15543_v0, %v4842_v6  ;;  %v4834_v51 = vadd.f32 %v15533_v43, %v4833_v4 }
 0x9da   :  { %v11713_v37 = vpop.eup %11712  ;;  %v4355_v22 = vadd.f32 1.0, %v11711_v46  ;;  %11730 = vpow2.f32 %v4343_v54  ;;  %v4845_v44 = vadd.f32 %v10440_v26, %v15533_v43  ;;  %v4394_v40 = vmul.f32 %v11709_v50, %v4282_v32 }
 0x9db   :  { %v11715_v31 = vpop.eup %11714  ;;  %11732 = vrcp.f32 %v4352_v27  ;;  %v4339_v58 = vmul.f32 1.442695, %v4310_v13  ;;  %v10443_v48 = vpop.f32.mrb[108].mxu1  ;;  %v15564_v17 = vmul.f32 %v15502_v7, %v15444_v39  ;;  %v4940_v56 = vsub.f32 0.0, %v15558_v10 }
 0x9dc   :  { %11734 = vrcp.f32 %v4350_v59  ;;  %v4849_v54 = vpop.f32.mrb[109].mxu1  ;;  %v11717_v46 = vpop.eup %11716  ;;  %v4353_v6 = vadd.f32 1.0, %v11713_v37  ;;  %v15568_v8 = vmul.f32 %v15543_v0, %v4834_v51  ;;  %v15571_v27 = vmul.f32 %v15543_v0, %v4845_v44 }
 0x9dd   :  { %v4837_v4 = vadd.f32 %v15533_v43, %v4836_v19  ;;  %v10444_v26 = vpop.f32.mrb[110].mxu1  ;;  %11736 = vrcp.f32 %v4355_v22  ;;  %v4356_v50 = vadd.f32 1.0, %v11715_v31  ;;  %v4958_v39 = vmul.f32 1.442695, %v4940_v56 }
 0x9de   :  { %v15574_v32 = vpop.eup %11718  ;;  %v4858_v59 = vadd.f32 %v10443_v48, %v15533_v43  ;;  %v4852_v13 = vpop.f32.mrb[111].mxu1  ;;  %v15581_v37 = vmul.f32 %v15502_v7, %v15449_v52  ;;  %v4286_v51 = vmul.f32 %v15502_v7, %v15454_v15  ;;  %11738 = vpow2.f32 %v4339_v58 }
 0x9df   :  { %17735 = vst [vmem:[#allocation57_spill] sm:$0xff] %v15574_v32  ;;  %v15577_v5 = vpop.eup %11720  ;;  %v4938_v19 = vsub.f32 0.0, %v15568_v8  ;;  %v4393_v22 = vmul.f32 %v11717_v46, %v15527_v24  ;;  %v15591_v31 = vmul.f32 %v15502_v7, %v15473_v42  ;;  %11740 = vpow2.f32 %v4958_v39 }
 0x9e0   :  { %v15586_v44 = vpop.eup %11722  ;;  %v4941_v48 = vsub.f32 0.0, %v15571_v27  ;;  %11742 = vrcp.f32 %v4353_v6  ;;  %v15595_v9 = vmul.f32 %v15543_v0, %v4837_v4  ;;  %v15598_v15 = vmul.f32 %v15543_v0, %v4858_v59 }
 0x9e1   :  { %v11725_v56 = vpop.eup %11724  ;;  %v4954_v52 = vmul.f32 1.442695, %v4938_v19  ;;  %11744 = vrcp.f32 %v4356_v50  ;;  %v4850_v24 = vadd.f32 %v15533_v43, %v4849_v54  ;;  %v4409_v46 = vpack.c.bf16 %v4394_v40, %v4393_v22  ;;  %v10807_v19 = vld [vmem:[#allocation19 + $0x28] sm:$0xff]  }
 0x9e2   :  { %v11727_v58 = vpop.eup %11726  ;;  %v4354_v1 = vadd.f32 1.0, %v11725_v56  ;;  %v15603_v39 = vmul.f32 %v15502_v7, %v15478_v53  ;;  %v4939_v6 = vsub.f32 0.0, %v15595_v9  ;;  %v4960_v18 = vmul.f32 1.442695, %v4941_v48 }
 0x9e3   :  { %v11729_v42 = vpop.eup %11728  ;;  %v4359_v21 = vadd.f32 1.0, %v11727_v58  ;;  %11746 = vpow2.f32 %v4954_v52  ;;  %v10447_v4 = vpop.f32.mrb[112].mxu1  ;;  %v4944_v50 = vsub.f32 0.0, %v15598_v15  ;;  %10413 = vmatprep.mubr.msk.bf16.mxu0 %vm509_vm0, %v4409_v46  ;;  %v15609_v56 = vmul.f32 %v15543_v0, %v4850_v24  ;;  %v10808_v24 = vld [vmem:[#allocation19 + $0x30] sm:$0xff]  }
 0x9e4   :  { %v11731_v35 = vpop.eup %11730  ;;  %11748 = vrcp.f32 %v4354_v1  ;;  %v4357_v59 = vadd.f32 1.0, %v11729_v42  ;;  %v4865_v40 = vpop.f32.mrb[113].mxu1  ;;  %v4956_v53 = vmul.f32 1.442695, %v4939_v6  ;;  %v17736_v52 = vpack.c.bf16 %v15545_v61, %v15538_v55 }
 0x9e5   :  { %v11733_v54 = vpop.eup %11732  ;;  %11750 = vrcp.f32 %v4359_v21  ;;  %v4360_v22 = vadd.f32 1.0, %v11731_v35  ;;  %v10448_v1 = vpop.f32.mrb[114].mxu1  ;;  %v4966_v48 = vmul.f32 1.442695, %v4944_v50  ;;  %v4861_v42 = vadd.f32 %v10444_v26, %v15533_v43 }
 0x9e6   :  { %10414 = vmatmul.mubr.msk.bf16.vlgmr.msra.gmra.mrb[88].mxu0 %vm509_vm0, %v17736_v52  ;;  %v11735_v58 = vpop.eup %11734  ;;  %11752 = vrcp.f32 %v4357_v59  ;;  %v4853_v46 = vadd.f32 %v15533_v43, %v4852_v13  ;;  %v15618_v35 = vpop.f32.mrb[115].mxu1  ;;  %v15622_v21 = vmul.f32 %v15502_v7, %v15483_v49  ;;  %v4290_v61 = vmul.f32 %v15502_v7, %v15491_v34 }
 0x9e7   :  { %10454 = vmatpush3.bf16.msra.mxu0 %v15365_v57  ;;  %11754 = vrcp.f32 %v4360_v22  ;;  %v4942_v55 = vsub.f32 0.0, %v15609_v56  ;;  %v11737_v6 = vpop.eup %11736  ;;  %v15629_v26 = vmul.f32 %v15502_v7, %v15510_v16  ;;  %v15632_v57 = vmul.f32 %v15543_v0, %v4861_v42 }
 0x9e8   :  { %10455 = vmatprep.subr.bf16.mxu0 %v10807_v19  ;;  %11756 = vpow2.f32 %v4960_v18  ;;  %v15635_v49 = vmul.f32 %v15543_v0, %v4853_v46  ;;  %v11739_v13 = vpop.eup %11738  ;;  %v4398_v59 = vmul.f32 %v11735_v58, %v4286_v51  ;;  %v4874_v50 = vadd.f32 %v10447_v4, %v15533_v43  ;;  %v10809_v58 = vld [vmem:[#allocation19 + $0x38] sm:$0xff]  }
 0x9e9   :  { %11758 = vpow2.f32 %v4956_v53  ;;  %v4962_v34 = vmul.f32 1.442695, %v4942_v55  ;;  %v11741_v22 = vpop.eup %11740  ;;  %v15640_v52 = vmul.f32 %v15502_v7, %v15513_v63  ;;  %v4358_v16 = vadd.f32 1.0, %v11739_v13 }
 0x9ea   :  { %11760 = vpow2.f32 %v4966_v48  ;;  %v4945_v18 = vsub.f32 0.0, %v15632_v57  ;;  %v11743_v42 = vpop.eup %11742  ;;  %v4397_v46 = vmul.f32 %v15586_v44, %v15564_v17  ;;  %v4400_v51 = vmul.f32 %v11733_v54, %v15581_v37 }
 0x9eb   :  { %10456 = vmatpush3.bf16.msra.mxu0 %v10807_v19  ;;  %11762 = vpow2.f32 %v4962_v34  ;;  %v4943_v53 = vsub.f32 0.0, %v15635_v49  ;;  %v10451_v4 = vpop.f32.mrb[116].mxu1  ;;  %v11745_v55 = vpop.eup %11744  ;;  %v15648_v48 = vmul.f32 %v15543_v0, %v4874_v50  ;;  %v4866_v19 = vadd.f32 %v15533_v43, %v4865_v40 }
 0x9ec   :  { %10457 = vmatprep.subr.bf16.mxu0 %v10808_v24  ;;  %11764 = vrcp.f32 %v4358_v16  ;;  %v4968_v63 = vmul.f32 1.442695, %v4945_v18  ;;  %v4881_v13 = vpop.f32.mrb[117].mxu1  ;;  %v4988_v11 = vadd.f32 1.0, %v11741_v22  ;;  %v4411_v44 = vpack.c.bf16 %v4398_v59, %v4397_v46 }
 0x9ed   :  { %v11747_v23 = vpop.eup %11746  ;;  %v4964_v17 = vmul.f32 1.442695, %v4943_v53  ;;  %v4877_v37 = vadd.f32 %v10448_v1, %v15533_v43  ;;  %v15652_v54 = vpop.f32.mrb[118].mxu1  ;;  %v4399_v32 = vmul.f32 %v15577_v5, %v15552_v38  ;;  %v4948_v50 = vsub.f32 0.0, %v15648_v48  ;;  %v15670_v53 = vld [vmem:[#allocation22] sm:$0xff]  }
 0x9ee   :  { %v11749_v34 = vpop.eup %11748  ;;  %v4986_v16 = vadd.f32 1.0, %v11747_v23  ;;  %11766 = vpow2.f32 %v4968_v63  ;;  %v15657_v18 = vpop.f32.mrb[119].mxu1  ;;  %v4296_v22 = vmul.f32 %v15502_v7, %v15516_v28  ;;  %v15662_v1 = vmul.f32 %v15543_v0, %v4866_v19  ;;  %10417 = vmatprep.mubr.msk.bf16.mxu0 %vm509_vm0, %v4411_v44 }
 0x9ef   :  { %10458 = vmatpush3.bf16.msra.mxu0 %v10808_v24  ;;  %v11751_v40 = vpop.eup %11750  ;;  %11768 = vpow2.f32 %v4964_v17  ;;  %v15666_v59 = vmul.f32 %v15543_v0, %v4877_v37  ;;  %v4402_v5 = vmul.f32 %v11749_v34, %v4290_v61  ;;  %v4294_v38 = vmul.f32 %v15502_v7, %v15541_v20 }
 0x9f0   :  { %10459 = vmatprep.subr.bf16.mxu0 %v10809_v58  ;;  %v11753_v23 = vpop.eup %11752  ;;  %v4974_v24 = vmul.f32 1.442695, %v4948_v50  ;;  %v4412_v46 = vpack.c.bf16 %v4400_v51, %v4399_v32  ;;  %v4403_v63 = vmul.f32 %v11737_v6, %v15591_v31  ;;  %v4401_v19 = vmul.f32 %v11743_v42, %v15603_v39 }
 0x9f1   :  { %v11755_v28 = vpop.eup %11754  ;;  %11770 = vrcp.f32 %v4988_v11  ;;  %v4946_v17 = vsub.f32 0.0, %v15662_v1  ;;  %v4404_v37 = vmul.f32 %v11745_v55, %v15622_v21  ;;  %v4949_v61 = vsub.f32 0.0, %v15666_v59 }
 0x9f2   :  { %v11757_v44 = vpop.eup %11756  ;;  %11772 = vrcp.f32 %v4986_v16  ;;  %10418 = vmatmul.mubr.msk.bf16.gmra.mrb[92].mxu0 %vm509_vm0, %v4412_v46  ;;  %v4869_v7 = vadd.f32 %v15533_v43, %v15618_v35  ;;  %v4890_v31 = vadd.f32 %v10451_v4, %v15533_v43  ;;  %v4882_v11 = vadd.f32 %v15533_v43, %v4881_v13 }
 0x9f3   :  { %v11759_v20 = vpop.eup %11758  ;;  %v4989_v32 = vadd.f32 1.0, %v11757_v44  ;;  %11774 = vpow2.f32 %v4974_v24  ;;  %10460 = vmatpush3.bf16.msra.mxu0 %v10809_v58  ;;  %v4970_v42 = vmul.f32 1.442695, %v4946_v17  ;;  %v4413_v51 = vpack.c.bf16 %v4402_v5, %v4401_v19 }
 0x9f4   :  { %v11761_v39 = vpop.eup %11760  ;;  %v4987_v6 = vadd.f32 1.0, %v11759_v20  ;;  %v15683_v21 = vmul.f32 %v15543_v0, %v4869_v7  ;;  %10501 = vmatprep.subr.bf16.mxu0 %v15670_v53  ;;  %v15687_v34 = vmul.f32 %v15543_v0, %v4890_v31  ;;  %v15690_v4 = vmul.f32 %v15543_v0, %v4882_v11 }
 0x9f5   :  { %v11763_v55 = vpop.eup %11762  ;;  %11776 = vrcp.f32 %v4989_v32  ;;  %v4992_v35 = vadd.f32 1.0, %v11761_v39  ;;  %v4976_v16 = vmul.f32 1.442695, %v4949_v61  ;;  %10421 = vmatprep.mubr.msk.bf16.mxu0 %vm509_vm0, %v4413_v51  ;;  %v15695_v5 = vmul.f32 %v11751_v40, %v15629_v26 }
 0x9f6   :  { %v11765_v13 = vpop.eup %11764  ;;  %11778 = vrcp.f32 %v4987_v6  ;;  %v4990_v58 = vadd.f32 1.0, %v11763_v55  ;;  %v4947_v50 = vsub.f32 0.0, %v15683_v21  ;;  %v4405_v24 = vmul.f32 %v11753_v23, %v15640_v52  ;;  %v15704_v23 = vld [vmem:[#allocation17 + $0x3] ss:$0 sm:$0xff] }
 0x9f7   :  { %11780 = vrcp.f32 %v4992_v35  ;;  %v4952_v46 = vsub.f32 0.0, %v15687_v34  ;;  %v15699_v17 = vmul.f32 %v11755_v28, %v4296_v22  ;;  %v4406_v44 = vmul.f32 %v11765_v13, %v4294_v38 }
 0x9f8   :  { %v11767_v19 = vpop.eup %11766  ;;  %11782 = vrcp.f32 %v4990_v58  ;;  %v4972_v7 = vmul.f32 1.442695, %v4947_v50  ;;  %v4950_v31 = vsub.f32 0.0, %v15690_v4  ;;  %v4893_v26 = vadd.f32 %v15652_v54, %v15533_v43 }
 0x9f9   :  { %v11769_v20 = vpop.eup %11768  ;;  %v4993_v61 = vadd.f32 1.0, %v11767_v19  ;;  %11784 = vpow2.f32 %v4970_v42  ;;  %v4982_v32 = vmul.f32 1.442695, %v4952_v46  ;;  %v4414_v52 = vpack.c.bf16 %v4404_v37, %v4403_v63 }
 0x9fa   :  { %v4991_v11 = vadd.f32 1.0, %v11769_v20  ;;  %11786 = vpow2.f32 %v4976_v16  ;;  %v4978_v22 = vmul.f32 1.442695, %v4950_v31  ;;  %v4885_v38 = vadd.f32 %v15533_v43, %v15657_v18 }
 0x9fb   :  { %v11771_v40 = vpop.eup %11770  ;;  %11788 = vrcp.f32 %v4993_v61  ;;  %v15710_v28 = vmul.f32 %v15386_v36, %v13958_v14  ;;  %v15713_v6 = vmul.f32 %v15543_v0, %v4893_v26  ;;  %10422 = vmatmul.mubr.msk.bf16.gmra.mrb[96].mxu0 %vm509_vm0, %v4414_v52  ;;  %v4415_v54 = vpack.c.bf16 %v4406_v44, %v4405_v24 }
 0x9fc   :  { %v11773_v39 = vpop.eup %11772  ;;  %11790 = vrcp.f32 %v4991_v11  ;;  %v4416_v63 = vpack.c.bf16 %v15699_v17, %v15695_v5  ;;  %v15719_v42 = vmul.f32 %v15543_v0, %v4885_v38  ;;  %v5602_v43 = vsub.f32 0.0, %v15507_v41 }
 0x9fd   :  { %v11775_v37 = vpop.eup %11774  ;;  %11792 = vpow2.f32 %v4972_v7  ;;  %v15724_v18 = vmul.f32 %v15386_v36, %v17689_v25  ;;  %v4924_v51 = vmul.f32 %v15704_v23, %v15558_v10  ;;  %v4925_v55 = vmul.f32 %v15704_v23, %v15571_v27  ;;  %10425 = vmatprep.mubr.msk.bf16.mxu0 %vm509_vm0, %v4415_v54 }
 0x9fe   :  { %11794 = vpow2.f32 %v4982_v32  ;;  %v4953_v35 = vsub.f32 0.0, %v15713_v6  ;;  %v4922_v0 = vmul.f32 %v15704_v23, %v15568_v8  ;;  %v4923_v58 = vmul.f32 %v15704_v23, %v15595_v9 }
 0x9ff   :  { %v11777_v13 = vpop.eup %11776  ;;  %v4951_v16 = vsub.f32 0.0, %v15719_v42  ;;  %v15737_v10 = vmul.f32 %v11771_v40, %v4924_v51  ;;  %11796 = vpow2.f32 %v4978_v22  ;;  %v4996_v17 = vadd.f32 1.0, %v11775_v37 }
 0xa00   :  { %v11779_v50 = vpop.eup %11778  ;;  %v15739_v5 = vmul.f32 %v11777_v13, %v4925_v55  ;;  %v4984_v27 = vmul.f32 1.442695, %v4953_v35  ;;  %v5034_v46 = vmul.f32 %v11773_v39, %v4922_v0  ;;  %v5603_v9 = vsub.f32 0.0, %v15710_v28 }
 0xa01   :  { %v11781_v24 = vpop.eup %11780  ;;  %v5035_v19 = vmul.f32 %v11779_v50, %v4923_v58  ;;  %v4980_v44 = vmul.f32 1.442695, %v4951_v16  ;;  %v5624_v20 = vmul.f32 1.442695, %v5602_v43  ;;  %v15746_v11 = vmul.f32 %v15386_v36, %v17687_v33 }
 0xa02   :  { %v11783_v7 = vpop.eup %11782  ;;  %v5051_v8 = vpack.c.bf16 %v15739_v5, %v15737_v10  ;;  %11798 = vpow2.f32 %v4984_v27  ;;  %v5605_v26 = vsub.f32 0.0, %v15724_v18  ;;  %v4928_v40 = vmul.f32 %v15704_v23, %v15598_v15 }
 0xa03   :  { %v11785_v61 = vpop.eup %11784  ;;  %11800 = vpow2.f32 %v4980_v44  ;;  %v5050_v32 = vpack.c.bf16 %v5035_v19, %v5034_v46  ;;  %v4929_v22 = vmul.f32 %v15704_v23, %v15632_v57  ;;  %10426 = vmatmul.mubr.msk.bf16.gmra.mrb[100].mxu0 %vm509_vm0, %v4416_v63  ;;  %v4926_v37 = vmul.f32 %v15704_v23, %v15609_v56  ;;  %v10811_v46 = vld [vmem:[#allocation22 + $0x8] sm:$0xff]  }
 0xa04   :  { %v11787_v52 = vpop.eup %11786  ;;  %v4994_v38 = vadd.f32 1.0, %v11785_v61  ;;  %11802 = vpow2.f32 %v15487_v3  ;;  %v4927_v43 = vmul.f32 %v15704_v23, %v15635_v49  ;;  %v15762_v63 = vmul.f32 %v11781_v24, %v4928_v40 }
 0xa05   :  { %v8622_v31 = vpop.permute.xlu1 %8621  ;;  %v11789_v54 = vpop.eup %11788  ;;  %11804 = vrcp.f32 %v4996_v17  ;;  %v4997_v15 = vadd.f32 1.0, %v11787_v52  ;;  %10461 = vmatprep.mubr.msk.bf16.mxu0 %vm509_vm0, %v5050_v32  ;;  %v5626_v3 = vmul.f32 1.442695, %v5603_v9  ;;  %v5038_v35 = vmul.f32 %v11783_v7, %v4926_v37 }
 0xa06   :  { %8668 = vst.msk [vmem:[#allocation30 + $0x10] sm:$0xf] %vm8665_vm2, %v8622_v31  ;;  %v8618_v39 = vpop.permute.xlu0 %8617  ;;  %v11791_v57 = vpop.eup %11790  ;;  %v15764_v51 = vmul.f32 %v11789_v54, %v4929_v22  ;;  %11806 = vpow2.f32 %v15519_v2  ;;  %v5604_v49 = vsub.f32 0.0, %v15746_v11  ;;  %v5630_v10 = vmul.f32 1.442695, %v5605_v26 }
 0xa07   :  { %8666 = vst.msk [vmem:[#allocation30] sm:$0xf] %vm8665_vm2, %v8618_v39  ;;  %v11793_v55 = vpop.eup %11792  ;;  %v5039_v56 = vmul.f32 %v11791_v57, %v4927_v43  ;;  %11808 = vrcp.f32 %v4997_v15  ;;  %v15774_v27 = vmul.f32 %v15386_v36, %v14001_v30  ;;  %v15778_v17 = vmul.f32 %v15386_v36, %v17688_v29 }
 0xa08   :  { %v11795_v0 = vpop.eup %11794  ;;  %11810 = vrcp.f32 %v4994_v38  ;;  %v4995_v58 = vadd.f32 1.0, %v11793_v55  ;;  %v5053_v16 = vpack.c.bf16 %v15764_v51, %v15762_v63  ;;  %v5628_v7 = vmul.f32 1.442695, %v5604_v49 }
 0xa09   :  { %v8624_v13 = vpop.permute.xlu1 %8623  ;;  %v5000_v5 = vadd.f32 1.0, %v11795_v0  ;;  %v5052_v2 = vpack.c.bf16 %v5039_v56, %v5038_v35  ;;  %11812 = vpow2.f32 %v5624_v20  ;;  %v11797_v24 = vpop.eup %11796  ;;  %v5606_v61 = vsub.f32 0.0, %v15774_v27  ;;  %v17737_v0 = vld [vmem:[#allocation57_spill] sm:$0xff] }
 0xa0a   :  { %8669 = vst.msk [vmem:[#allocation30 + $0x18] sm:$0xf] %vm8665_vm2, %v8624_v13  ;;  %v8620_v50 = vpop.permute.xlu0 %8619  ;;  %11814 = vrcp.f32 %v4995_v58  ;;  %v4998_v19 = vadd.f32 1.0, %v11797_v24  ;;  %v15786_v32 = vmul.f32 %v15386_v36, %v17692_v12  ;;  %v5645_v52 = vadd.f32 1.0, %v15521_v47 }
 0xa0b   :  { %8667 = vst.msk [vmem:[#allocation30 + $0x8] sm:$0xf] %vm8665_vm2, %v8620_v50  ;;  %11816 = vpow2.f32 %v5626_v3  ;;  %10462 = vmatmul.mubr.msk.bf16.vlgmr.msra.gmra.mrb[104].mxu0 %vm509_vm0, %v5051_v8  ;;  %v10812_v8 = vld [vmem:[#allocation22 + $0x10] sm:$0xff]   ;;  %v5607_v22 = vsub.f32 0.0, %v15778_v17  ;;  %v4932_v39 = vmul.f32 %v15704_v23, %v15648_v48  ;;  %v4933_v54 = vmul.f32 %v15704_v23, %v15666_v59  ;;  %v10813_v59 = vld [vmem:[#allocation22 + $0x18] sm:$0xff]  }
 0xa0c   :  { %v11799_v44 = vpop.eup %11798  ;;  %11818 = vpow2.f32 %v5630_v10  ;;  %10502 = vmatpush3.bf16.msra.mxu0 %v15670_v53  ;;  %10465 = vmatprep.mubr.msk.bf16.mxu0 %vm509_vm0, %v5052_v2  ;;  %v15792_v53 = vmul.f32 %v15386_v36, %v17690_v62  ;;  %v5644_v43 = vadd.f32 1.0, %v15496_v60  ;;  %v5632_v15 = vmul.f32 1.442695, %v5606_v61  ;;  %v17738_v2 = vld [vmem:[#allocation60_spill] sm:$0xff] }
 0xa0d   :  { %v11801_v9 = vpop.eup %11800  ;;  %11820 = vrcp.f32 %v5000_v5  ;;  %v5001_v20 = vadd.f32 1.0, %v11799_v44  ;;  %10503 = vmatprep.subr.bf16.mxu0 %v10811_v46  ;;  %v5609_v57 = vsub.f32 0.0, %v15786_v32  ;;  %v5646_v56 = vadd.f32 1.0, %v15535_v45 }
 0xa0e   :  { %v11803_v31 = vpop.eup %11802  ;;  %11822 = vrcp.f32 %v4998_v19  ;;  %v4999_v26 = vadd.f32 1.0, %v11801_v9  ;;  %v4930_v13 = vmul.f32 %v15704_v23, %v15662_v1  ;;  %v4931_v49 = vmul.f32 %v15704_v23, %v15683_v21  ;;  %v17739_v9 = vld [vmem:[#allocation58_spill] sm:$0xff] }
 0xa0f   :  { %v11805_v40 = vpop.eup %11804  ;;  %11824 = vrcp.f32 %v5001_v20  ;;  %v5647_v58 = vadd.f32 1.0, %v17737_v0  ;;  %v5608_v50 = vsub.f32 0.0, %v15792_v53  ;;  %v5634_v5 = vmul.f32 1.442695, %v5607_v22 }
 0xa10   :  { %v11807_v38 = vpop.eup %11806  ;;  %11826 = vrcp.f32 %v4999_v26  ;;  %10504 = vmatpush3.bf16.msra.mxu0 %v10811_v46  ;;  %v15801_v55 = vmul.f32 %v11805_v40, %v4932_v39  ;;  %v15823_v21 = vmul.f32 %v15386_v36, %v17738_v2  ;;  %v5638_v63 = vmul.f32 1.442695, %v5609_v57 }
 0xa11   :  { %v8630_v37 = vpop.permute.xlu0 %8629  ;;  %v11809_v47 = vpop.eup %11808  ;;  %11828 = vpow2.f32 %v5628_v7  ;;  %10505 = vmatprep.subr.bf16.mxu0 %v10812_v8  ;;  %v5649_v44 = vadd.f32 1.0, %v11807_v38  ;;  %v12466_v7 = vld [vmem:[#allocation20 + $0x1] ss:$0 sm:$0xff]  ;;  %v5648_v26 = vadd.f32 1.0, %v11803_v31  ;;  %v4936_v40 = vmul.f32 %v15704_v23, %v15687_v34 }
 0xa12   :  { %8672 = vst.msk [vmem:[#allocation30 + $0x30] sm:$0xf] %vm8665_vm2, %v8630_v37  ;;  %v11811_v3 = vpop.eup %11810  ;;  %v15803_v35 = vmul.f32 %v11809_v47, %v4933_v54  ;;  %11830 = vrcp.f32 %v5645_v52  ;;  %v15827_v20 = vmul.f32 %v12466_v7, %v17739_v9  ;;  %v4937_v22 = vmul.f32 %v15704_v23, %v15713_v6 }
 0xa13   :  { %v8632_v48 = vpop.permute.xlu1 %8631  ;;  %v15806_v60 = vpop.eup %11812  ;;  %10466 = vmatmul.mubr.msk.bf16.gmra.mrb[108].mxu0 %vm509_vm0, %v5053_v16  ;;  %11832 = vrcp.f32 %v5644_v43  ;;  %v5042_v46 = vmul.f32 %v11811_v3, %v4930_v13  ;;  %v5611_v38 = vsub.f32 0.0, %v15823_v21  ;;  %v4934_v54 = vmul.f32 %v15704_v23, %v15690_v4 }
 0xa14   :  { %8673 = vst.msk [vmem:[#allocation30 + $0x38] sm:$0xf] %vm8665_vm2, %v8632_v48  ;;  %v11815_v10 = vpop.eup %11814  ;;  %v5055_v45 = vpack.c.bf16 %v15803_v35, %v15801_v55  ;;  %10506 = vmatpush3.bf16.msra.mxu0 %v10812_v8  ;;  %11834 = vpow2.f32 %v5632_v15  ;;  %v5636_v8 = vmul.f32 1.442695, %v5608_v50  ;;  %v4935_v37 = vmul.f32 %v15704_v23, %v15719_v42  ;;  %v15843_v42 = vld [vmem:[#allocation20] ss:$0 sm:$0xff] }
 0xa15   :  { %v8626_v1 = vpop.permute.xlu0 %8625  ;;  %v11817_v24 = vpop.eup %11816  ;;  %v5043_v19 = vmul.f32 %v11815_v10, %v4931_v49  ;;  %10507 = vmatprep.subr.bf16.mxu0 %v10813_v59  ;;  %11836 = vrcp.f32 %v5646_v56  ;;  %v5610_v6 = vsub.f32 0.0, %v15827_v20  ;;  %v5642_v48 = vmul.f32 1.442695, %v5611_v38  ;;  %v17740_v56 = vld [vmem:[#allocation64_spill] sm:$0xff] }
 0xa16   :  { %8670 = vst.msk [vmem:[#allocation30 + $0x20] sm:$0xf] %vm8665_vm2, %v8626_v1  ;;  %v11819_v51 = vpop.eup %11818  ;;  %11838 = vrcp.f32 %v5647_v58  ;;  %v5651_v4 = vadd.f32 1.0, %v11817_v24  ;;  %v5581_v13 = vmul.f32 %v15843_v42, %v17740_v56  ;;  %v5650_v24 = vadd.f32 1.0, %v15806_v60  ;;  %v17742_v60 = vld [vmem:[#allocation56_spill] sm:$0xff] }
 0xa17   :  { %v8628_v16 = vpop.permute.xlu1 %8627  ;;  %v11821_v61 = vpop.eup %11820  ;;  %v5054_v36 = vpack.c.bf16 %v5043_v19, %v5042_v46  ;;  %11840 = vpow2.f32 %v5634_v5  ;;  %v5653_v49 = vadd.f32 1.0, %v11819_v51  ;;  %v5640_v50 = vmul.f32 1.442695, %v5610_v6  ;;  %v17745_v6 = vld [vmem:[#allocation55_spill] sm:$0xff] }
 0xa18   :  { %8671 = vst.msk [vmem:[#allocation30 + $0x28] sm:$0xf] %vm8665_vm2, %v8628_v16  ;;  %v11823_v52 = vpop.eup %11822  ;;  %10508 = vmatpush3.bf16.msra.mxu0 %v10813_v59  ;;  %11842 = vpow2.f32 %v5638_v63  ;;  %v5048_v43 = vmul.f32 %v11821_v61, %v4936_v40 }
 0xa19   :  { %v11825_v39 = vpop.eup %11824  ;;  %10469 = vmatprep.mubr.msk.bf16.mxu0 %vm509_vm0, %v5054_v36  ;;  %11844 = vrcp.f32 %v5649_v44  ;;  %v5046_v57 = vmul.f32 %v11823_v52, %v4934_v54 }
 0xa1a   :  { %v11827_v31 = vpop.eup %11826  ;;  %v5049_v34 = vmul.f32 %v11825_v39, %v4937_v22  ;;  %v8638_v47 = vpop.permute.xlu0 %8637  ;;  %11846 = vpow2.f32 %v5636_v8  ;;  %v5583_v8 = vmul.f32 %v15843_v42, %v17742_v60  ;;  %v17743_v22 = vld [vmem:[#allocation59_spill] sm:$0xff] }
 0xa1b   :  { %v11829_v15 = vpop.eup %11828  ;;  %v5047_v3 = vmul.f32 %v11827_v31, %v4935_v37  ;;  %8676 = vst.msk [vmem:[#allocation30 + $0x50] sm:$0xf] %vm8665_vm2, %v8638_v47  ;;  %10470 = vmatmul.mubr.msk.bf16.gmra.mrb[112].mxu0 %vm509_vm0, %v5055_v45  ;;  %11848 = vrcp.f32 %v5648_v26  ;;  %v17741_v45 = vld [vmem:[#allocation65_spill] sm:$0xff]  ;;  %v5585_v38 = vmul.f32 %v15843_v42, %v17743_v22  ;;  %v17744_v37 = vld [vmem:[#allocation62_spill] sm:$0xff] }
 0xa1c   :  { %v11831_v55 = vpop.eup %11830  ;;  %v5057_v23 = vpack.c.bf16 %v5049_v34, %v5048_v43  ;;  %v8640_v35 = vpop.permute.xlu1 %8639  ;;  %v5580_v1 = vmul.f32 %v15843_v42, %v17741_v45  ;;  %11850 = vrcp.f32 %v5651_v4  ;;  %v5652_v63 = vadd.f32 1.0, %v11829_v15 }
 0xa1d   :  { %v5056_v59 = vpack.c.bf16 %v5047_v3, %v5046_v57  ;;  %8677 = vst.msk [vmem:[#allocation30 + $0x58] sm:$0xf] %vm8665_vm2, %v8640_v35  ;;  %v11833_v0 = vpop.eup %11832  ;;  %v5693_v5 = vmul.f32 %v11831_v55, %v5581_v13  ;;  %11852 = vpow2.f32 %v5642_v48  ;;  %v5582_v31 = vmul.f32 %v15843_v42, %v17744_v37 }
 0xa1e   :  { %v8634_v58 = vpop.permute.xlu0 %8633  ;;  %v11835_v10 = vpop.eup %11834  ;;  %v5692_v16 = vmul.f32 %v11833_v0, %v5580_v1  ;;  %11854 = vrcp.f32 %v5653_v49  ;;  %v5584_v15 = vmul.f32 %v15843_v42, %v17745_v6  ;;  %v15895_v6 = vld [vmem:[#allocation22 + $0x20] sm:$0xff]  }
 0xa1f   :  { %10473 = vmatprep.mubr.msk.bf16.mxu0 %vm509_vm0, %v5056_v59  ;;  %8674 = vst.msk [vmem:[#allocation30 + $0x40] sm:$0xf] %vm8665_vm2, %v8634_v58  ;;  %v11837_v46 = vpop.eup %11836  ;;  %11856 = vpow2.f32 %v5640_v50  ;;  %v5654_v3 = vadd.f32 1.0, %v11835_v10  ;;  %v5587_v58 = vmul.f32 %v15843_v42, %v15710_v28  ;;  %v5589_v10 = vmul.f32 %v15843_v42, %v15724_v18 }
 0xa20   :  { %v8636_v19 = vpop.permute.xlu1 %8635  ;;  %v11839_v51 = vpop.eup %11838  ;;  %v5708_v36 = vpack.c.bf16 %v5693_v5, %v5692_v16  ;;  %11858 = vrcp.f32 %v5650_v24  ;;  %v5694_v4 = vmul.f32 %v11837_v46, %v5582_v31  ;;  %v5586_v5 = vmul.f32 %v15843_v42, %v15507_v41 }
 0xa21   :  { %8675 = vst.msk [vmem:[#allocation30 + $0x48] sm:$0xf] %vm8665_vm2, %v8636_v19  ;;  %v11841_v44 = vpop.eup %11840  ;;  %11860 = vrcp.f32 %v5652_v63  ;;  %v5695_v43 = vmul.f32 %v11839_v51, %v5583_v8  ;;  %v5588_v46 = vmul.f32 %v15843_v42, %v15746_v11  ;;  %v5591_v18 = vmul.f32 %v15843_v42, %v15778_v17 }
 0xa22   :  { %v8646_v7 = vpop.permute.xlu0 %8645  ;;  %v11843_v61 = vpop.eup %11842  ;;  %v5655_v39 = vadd.f32 1.0, %v11841_v44  ;;  %v5593_v11 = vmul.f32 %v15843_v42, %v15786_v32  ;;  %v5592_v8 = vmul.f32 %v15843_v42, %v15792_v53 }
 0xa23   :  { %8680 = vst.msk [vmem:[#allocation30 + $0x70] sm:$0xf] %vm8665_vm2, %v8646_v7  ;;  %v11845_v26 = vpop.eup %11844  ;;  %10474 = vmatmul.mubr.msk.bf16.gmra.mrb[116].mxu0 %vm509_vm0, %v5057_v23  ;;  %v5657_v47 = vadd.f32 1.0, %v11843_v61  ;;  %v5709_v56 = vpack.c.bf16 %v5695_v43, %v5694_v4  ;;  %v10814_v43 = vld [vmem:[#allocation19 + $0x40] sm:$0xff]  }
 0xa24   :  { %v8648_v52 = vpop.permute.xlu1 %8647  ;;  %v11847_v40 = vpop.eup %11846  ;;  %10509 = vmatprep.mubr.msk.bf16.mxu0 %vm509_vm0, %v5708_v36  ;;  %v5697_v57 = vmul.f32 %v11845_v26, %v5585_v38  ;;  %11862 = vrcp.f32 %v5655_v39  ;;  %v5590_v26 = vmul.f32 %v15843_v42, %v15774_v27  ;;  %v5594_v27 = vmul.f32 %v15843_v42, %v15827_v20  ;;  %10477 = vmatprep.subr.bf16.mxu1 %v10814_v43  ;;  %v9400_v20 = vld [vmem:[#allocation14 + $0x8] ss:$0 sm:$0xff] }
 0xa25   :  { %8681 = vst.msk [vmem:[#allocation30 + $0x78] sm:$0xf] %vm8665_vm2, %v8648_v52  ;;  %v11849_v54 = vpop.eup %11848  ;;  %v5656_v23 = vadd.f32 1.0, %v11847_v40  ;;  %11864 = vrcp.f32 %v5657_v47  ;;  %10478 = vmatpush3.bf16.msra.mxu1 %v10814_v43  ;;  %v10816_v47 = vld [vmem:[#allocation19 + $0x50] sm:$0xff]  }
 0xa26   :  { %v8642_v34 = vpop.permute.xlu0 %8641  ;;  %v11851_v35 = vpop.eup %11850  ;;  %v5696_v48 = vmul.f32 %v11849_v54, %v5584_v15  ;;  %11866 = vrcp.f32 %v5654_v3  ;;  %v5595_v54 = vmul.f32 %v15843_v42, %v15823_v21  ;;  %v10817_v21 = vld [vmem:[#allocation19 + $0x58] sm:$0xff]  }
 0xa27   :  { %8678 = vst.msk [vmem:[#allocation30 + $0x60] sm:$0xf] %vm8665_vm2, %v8642_v34  ;;  %v11853_v59 = vpop.eup %11852  ;;  %11868 = vrcp.f32 %v5656_v23  ;;  %v5699_v24 = vmul.f32 %v11851_v35, %v5587_v58  ;;  %v10815_v34 = vld [vmem:[#allocation19 + $0x48] sm:$0xff]  }
 0xa28   :  { %v8644_v55 = vpop.permute.xlu1 %8643  ;;  %v11855_v13 = vpop.eup %11854  ;;  %v5710_v49 = vpack.c.bf16 %v5697_v57, %v5696_v48  ;;  %v5659_v45 = vadd.f32 1.0, %v11853_v59  ;;  %10479 = vmatprep.subr.bf16.mxu1 %v10815_v34 }
 0xa29   :  { %8679 = vst.msk [vmem:[#allocation30 + $0x68] sm:$0xf] %vm8665_vm2, %v8644_v55  ;;  %v11857_v0 = vpop.eup %11856  ;;  %v5701_v19 = vmul.f32 %v11855_v13, %v5589_v10  ;;  %10480 = vmatpush3.bf16.msra.mxu1 %v10815_v34 }
 0xa2a   :  { %v11859_v50 = vpop.eup %11858  ;;  %v5658_v63 = vadd.f32 1.0, %v11857_v0  ;;  %11870 = vrcp.f32 %v5659_v45  ;;  %10481 = vmatprep.subr.bf16.mxu1 %v10816_v47 }
 0xa2b   :  { %10510 = vmatmul.mubr.msk.bf16.vlgmr.msra.gmra.mrb[120].mxu0 %vm509_vm0, %v5709_v56  ;;  %v11861_v1 = vpop.eup %11860  ;;  %v5698_v51 = vmul.f32 %v11859_v50, %v5586_v5 }
 0xa2c   :  { %10513 = vmatprep.mubr.msk.bf16.mxu0 %vm509_vm0, %v5710_v49  ;;  %v5700_v28 = vmul.f32 %v11861_v1, %v5588_v46  ;;  %11872 = vrcp.f32 %v5658_v63 }
 0xa2d   :  { %v5711_v16 = vpack.c.bf16 %v5699_v24, %v5698_v51  ;;  %10482 = vmatpush3.bf16.msra.mxu1 %v10816_v47 }
 0xa2e   :  { %v11863_v44 = vpop.eup %11862  ;;  %v5712_v7 = vpack.c.bf16 %v5701_v19, %v5700_v28  ;;  %10483 = vmatprep.subr.bf16.mxu1 %v10817_v21 }
 0xa2f   :  { %v11865_v61 = vpop.eup %11864  ;;  %v5703_v60 = vmul.f32 %v11863_v44, %v5591_v18 }
 0xa30   :  { %v11867_v41 = vpop.eup %11866  ;;  %v5705_v52 = vmul.f32 %v11865_v61, %v5593_v11 }
 0xa31   :  { %v11869_v36 = vpop.eup %11868  ;;  %v5702_v40 = vmul.f32 %v11867_v41, %v5590_v26  ;;  %10484 = vmatpush3.bf16.msra.mxu1 %v10817_v21  ;;  %v15917_v21 = vld [vmem:[#allocation23 + $0x1] ss:$0 sm:$0xff] }
 0xa32   :  { %v5704_v22 = vmul.f32 %v11869_v36, %v5592_v8  ;;  %10525 = vmatprep.subr.bf16.mxu1 %v15895_v6 }
 0xa33   :  { %10514 = vmatmul.mubr.msk.bf16.gmra.mrb[124].mxu0 %vm509_vm0, %v5711_v16  ;;  %v5713_v38 = vpack.c.bf16 %v5703_v60, %v5702_v40 }
 0xa34   :  { %10517 = vmatprep.mubr.msk.bf16.mxu0 %vm509_vm0, %v5712_v7  ;;  %v11871_v39 = vpop.eup %11870  ;;  %v5714_v17 = vpack.c.bf16 %v5705_v52, %v5704_v22 }
 0xa35   :  { %v5707_v37 = vmul.f32 %v11871_v39, %v5595_v54 }
 0xa36   :  { %v11873_v32 = vpop.eup %11872 }
 0xa37   :  { %v5706_v31 = vmul.f32 %v11873_v32, %v5594_v27 }
 0xa39   :  { %v5715_v53 = vpack.c.bf16 %v5707_v37, %v5706_v31 }
 0xa3b   :  { %10518 = vmatmul.mubr.msk.bf16.gmra.mrb[128].mxu0 %vm509_vm0, %v5713_v38 }
 0xa3c   :  { %10521 = vmatprep.mubr.msk.bf16.mxu0 %vm509_vm0, %v5714_v17 }
 0xa43   :  { %10522 = vmatmul.mubr.msk.bf16.gmra.mrb[132].mxu0 %vm509_vm0, %v5715_v53  ;;  %v15912_v53 = vld [vmem:[#allocation17 + $0x5] ss:$0 sm:$0xff] }
 0xab9   :  { %v10415_v42 = vpop.f32.mrb[88].mxu0 }
 0xaba   :  { %v4522_v15 = vadd.f32 %v10415_v42, %v9400_v20  ;;  %v4513_v57 = vpop.f32.mrb[89].mxu0  ;;  %v15919_v42 = vld [vmem:[#allocation17 + $0x7] ss:$0 sm:$0xff] }
 0xabb   :  { %v4514_v3 = vadd.f32 %v9400_v20, %v4513_v57  ;;  %v10416_v4 = vpop.f32.mrb[90].mxu0  ;;  %v17746_v57 = vld [vmem:[#allocation47_spill] sm:$0xff] }
 0xabc   :  { %v9739_v55 = vpack.c.bf16 %v4522_v15, %v4522_v15  ;;  %v4525_v23 = vadd.f32 %v10416_v4, %v9400_v20  ;;  %v4516_v35 = vpop.f32.mrb[91].mxu0 }
 0xabd   :  { %v9737_v48 = vpack.c.bf16 %v4514_v3, %v4514_v3  ;;  %v4517_v59 = vadd.f32 %v9400_v20, %v4516_v35 }
 0xabe   :  { %8748 = vst.msk [vmem:[#allocation30 + $0x14] sm:$0xf] %vm8552_vm1, %v9739_v55  ;;  %v9740_v56 = vpack.c.bf16 %v4525_v23, %v4525_v23  ;;  %v17747_v23 = vld [vmem:[#allocation48_spill] sm:$0xff] }
 0xabf   :  { %8746 = vst.msk [vmem:[#allocation30 + $0x4] sm:$0xf] %vm8552_vm1, %v9737_v48  ;;  %v9738_v13 = vpack.c.bf16 %v4517_v59, %v4517_v59  ;;  %v15928_v59 = vmul.f32 %v15917_v21, %v17747_v23 }
 0xac0   :  { %8749 = vst.msk [vmem:[#allocation30 + $0x1c] sm:$0xf] %vm8552_vm1, %v9740_v56 }
 0xac1   :  { %8747 = vst.msk [vmem:[#allocation30 + $0xc] sm:$0xf] %vm8552_vm1, %v9738_v13  ;;  %17748 = vst [vmem:[#allocation63_spill] sm:$0xff] %v15928_v59  ;;  %v17749_v13 = vld [vmem:[#allocation49_spill] sm:$0xff] }
 0xac5   :  { %v10419_v49 = vpop.f32.mrb[92].mxu0 }
 0xac6   :  { %v4538_v0 = vadd.f32 %v10419_v49, %v9400_v20  ;;  %v4529_v58 = vpop.f32.mrb[93].mxu0 }
 0xac7   :  { %v4530_v50 = vadd.f32 %v9400_v20, %v4529_v58  ;;  %v10420_v10 = vpop.f32.mrb[94].mxu0 }
 0xac8   :  { %v9743_v45 = vpack.c.bf16 %v4538_v0, %v4538_v0  ;;  %v4541_v1 = vadd.f32 %v10420_v10, %v9400_v20  ;;  %v4532_v5 = vpop.f32.mrb[95].mxu0  ;;  %v17750_v0 = vld [vmem:[#allocation50_spill] sm:$0xff] }
 0xac9   :  { %v9741_v24 = vpack.c.bf16 %v4530_v50, %v4530_v50  ;;  %v4533_v46 = vadd.f32 %v9400_v20, %v4532_v5  ;;  %v15936_v58 = vmul.f32 %v15917_v21, %v17750_v0 }
 0xaca   :  { %8752 = vst.msk [vmem:[#allocation30 + $0x34] sm:$0xf] %vm8552_vm1, %v9743_v45  ;;  %v9744_v19 = vpack.c.bf16 %v4541_v1, %v4541_v1  ;;  %v15944_v45 = vmul.f32 %v15917_v21, %v17746_v57 }
 0xacb   :  { %8750 = vst.msk [vmem:[#allocation30 + $0x24] sm:$0xf] %vm8552_vm1, %v9741_v24  ;;  %v9742_v63 = vpack.c.bf16 %v4533_v46, %v4533_v46  ;;  %17751 = vst [vmem:[#allocation57_spill] sm:$0xff] %v15936_v58 }
 0xacc   :  { %8753 = vst.msk [vmem:[#allocation30 + $0x3c] sm:$0xf] %vm8552_vm1, %v9744_v19  ;;  %17752 = vst [vmem:[#allocation64_spill] sm:$0xff] %v15944_v45 }
 0xacd   :  { %8751 = vst.msk [vmem:[#allocation30 + $0x2c] sm:$0xf] %vm8552_vm1, %v9742_v63  ;;  %v6574_v63 = vsub.f32 0.0, %v15928_v59 }
 0xace   :  { %v10423_v51 = vpop.f32.mrb[96].mxu0 }
 0xacf   :  { %v4554_v28 = vadd.f32 %v10423_v51, %v9400_v20  ;;  %v4545_v16 = vpop.f32.mrb[97].mxu0  ;;  %v15957_v51 = vmul.f32 %v15917_v21, %v17749_v13 }
 0xad0   :  { %v4546_v44 = vadd.f32 %v9400_v20, %v4545_v16  ;;  %v10424_v7 = vpop.f32.mrb[98].mxu0 }
 0xad1   :  { %v9747_v61 = vpack.c.bf16 %v4554_v28, %v4554_v28  ;;  %v4557_v18 = vadd.f32 %v10424_v7, %v9400_v20  ;;  %v4548_v41 = vpop.f32.mrb[99].mxu0  ;;  %17753 = vst [vmem:[#allocation65_spill] sm:$0xff] %v15957_v51 }
 0xad2   :  { %v9745_v11 = vpack.c.bf16 %v4546_v44, %v4546_v44  ;;  %v4549_v36 = vadd.f32 %v9400_v20, %v4548_v41 }
 0xad3   :  { %8756 = vst.msk [vmem:[#allocation30 + $0x54] sm:$0xf] %vm8552_vm1, %v9747_v61  ;;  %v9748_v26 = vpack.c.bf16 %v4557_v18, %v4557_v18  ;;  %v6575_v61 = vsub.f32 0.0, %v15936_v58 }
 0xad4   :  { %8754 = vst.msk [vmem:[#allocation30 + $0x44] sm:$0xf] %vm8552_vm1, %v9745_v11  ;;  %v9746_v60 = vpack.c.bf16 %v4549_v36, %v4549_v36 }
 0xad5   :  { %8757 = vst.msk [vmem:[#allocation30 + $0x5c] sm:$0xf] %vm8552_vm1, %v9748_v26  ;;  %v6576_v26 = vsub.f32 0.0, %v15944_v45 }
 0xad6   :  { %8755 = vst.msk [vmem:[#allocation30 + $0x4c] sm:$0xf] %vm8552_vm1, %v9746_v60  ;;  %v10427_v8 = vpop.f32.mrb[100].mxu0 }
 0xad7   :  { %v4570_v52 = vadd.f32 %v10427_v8, %v9400_v20  ;;  %v4561_v40 = vpop.f32.mrb[101].mxu0  ;;  %v17754_v8 = vld [vmem:[#allocation51_spill] sm:$0xff] }
 0xad8   :  { %v4562_v22 = vadd.f32 %v9400_v20, %v4561_v40  ;;  %v10428_v38 = vpop.f32.mrb[102].mxu0 }
 0xad9   :  { %v9751_v39 = vpack.c.bf16 %v4570_v52, %v4570_v52  ;;  %v4573_v17 = vadd.f32 %v10428_v38, %v9400_v20  ;;  %v4564_v54 = vpop.f32.mrb[103].mxu0 }
 0xada   :  { %v9749_v32 = vpack.c.bf16 %v4562_v22, %v4562_v22  ;;  %v4565_v27 = vadd.f32 %v9400_v20, %v4564_v54 }
 0xadb   :  { %8760 = vst.msk [vmem:[#allocation30 + $0x74] sm:$0xf] %vm8552_vm1, %v9751_v39  ;;  %v9752_v37 = vpack.c.bf16 %v4573_v17, %v4573_v17  ;;  %v17755_v39 = vld [vmem:[#allocation52_spill] sm:$0xff] }
 0xadc   :  { %8758 = vst.msk [vmem:[#allocation30 + $0x64] sm:$0xf] %vm8552_vm1, %v9749_v32  ;;  %v9750_v31 = vpack.c.bf16 %v4565_v27, %v4565_v27  ;;  %v6577_v32 = vsub.f32 0.0, %v15957_v51 }
 0xadd   :  { %8761 = vst.msk [vmem:[#allocation30 + $0x7c] sm:$0xf] %vm8552_vm1, %v9752_v37 }
 0xade   :  { %8759 = vst.msk [vmem:[#allocation30 + $0x6c] sm:$0xf] %vm8552_vm1, %v9750_v31  ;;  %v10463_v43 = vpop.f32.mrb[104].mxu0  ;;  %v6590_v31 = vmul.f32 1.442695, %v6574_v63 }
 0xadf   :  { %v5163_v34 = vadd.f32 %v10463_v43, %v15912_v53  ;;  %v5154_v47 = vpop.f32.mrb[105].mxu0 }
 0xae0   :  { %v5155_v20 = vadd.f32 %v15912_v53, %v5154_v47  ;;  %v10464_v15 = vpop.f32.mrb[106].mxu0 }
 0xae1   :  { %v5219_v3 = vadd.f32 %v5163_v34, %v17746_v57  ;;  %v5166_v4 = vadd.f32 %v10464_v15, %v15912_v53  ;;  %v5157_v55 = vpop.f32.mrb[107].mxu0  ;;  %v17756_v34 = vld [vmem:[#allocation54_spill] sm:$0xff] }
 0xae2   :  { %v5217_v35 = vadd.f32 %v5155_v20, %v17747_v23  ;;  %v5158_v48 = vadd.f32 %v15912_v53, %v5157_v55  ;;  %v6592_v20 = vmul.f32 1.442695, %v6575_v61 }
 0xae3   :  { %v15931_v56 = vmul.f32 %v15919_v42, %v5219_v3  ;;  %v5220_v49 = vadd.f32 %v5166_v4, %v17749_v13  ;;  %v15984_v4 = vmul.f32 %v15917_v21, %v17755_v39 }
 0xae4   :  { %v15939_v50 = vmul.f32 %v15919_v42, %v5217_v35  ;;  %v5218_v10 = vadd.f32 %v5158_v48, %v17750_v0 }
 0xae5   :  { %v5277_v1 = vsub.f32 0.0, %v15931_v56  ;;  %v15948_v5 = vmul.f32 %v15919_v42, %v5220_v49  ;;  %17757 = vst [vmem:[#allocation56_spill] sm:$0xff] %v15984_v4  ;;  %v6594_v49 = vmul.f32 1.442695, %v6576_v26 }
 0xae6   :  { %v5275_v24 = vsub.f32 0.0, %v15939_v50  ;;  %v15952_v46 = vmul.f32 %v15919_v42, %v5218_v10  ;;  %v10467_v19 = vpop.f32.mrb[108].mxu0  ;;  %v6596_v10 = vmul.f32 1.442695, %v6577_v32 }
 0xae7   :  { %v5295_v28 = vmul.f32 1.442695, %v5277_v1  ;;  %v5278_v16 = vsub.f32 0.0, %v15948_v5  ;;  %v5179_v44 = vadd.f32 %v10467_v19, %v15912_v53  ;;  %v5170_v7 = vpop.f32.mrb[109].mxu0 }
 0xae8   :  { %v5291_v18 = vmul.f32 1.442695, %v5275_v24  ;;  %v5276_v41 = vsub.f32 0.0, %v15952_v46  ;;  %v5171_v11 = vadd.f32 %v15912_v53, %v5170_v7  ;;  %v10468_v36 = vpop.f32.mrb[110].mxu0 }
 0xae9   :  { %11874 = vpow2.f32 %v5295_v28  ;;  %v5297_v60 = vmul.f32 1.442695, %v5278_v16  ;;  %v5223_v52 = vadd.f32 %v5179_v44, %v17754_v8  ;;  %v5182_v40 = vadd.f32 %v10468_v36, %v15912_v53  ;;  %v5173_v22 = vpop.f32.mrb[111].mxu0 }
 0xaea   :  { %v5293_v38 = vmul.f32 1.442695, %v5276_v41  ;;  %v5221_v17 = vadd.f32 %v5171_v11, %v17755_v39  ;;  %v5174_v54 = vadd.f32 %v15912_v53, %v5173_v22 }
 0xaeb   :  { %11876 = vpow2.f32 %v5297_v60  ;;  %v15971_v27 = vmul.f32 %v15919_v42, %v5223_v52  ;;  %v5224_v37 = vadd.f32 %v5182_v40, %v13958_v14 }
 0xaec   :  { %11878 = vpow2.f32 %v5293_v38  ;;  %v15975_v43 = vmul.f32 %v15919_v42, %v5221_v17  ;;  %v5222_v47 = vadd.f32 %v5174_v54, %v17756_v34  ;;  %v6578_v38 = vsub.f32 0.0, %v15984_v4 }
 0xaed   :  { %11880 = vpow2.f32 %v5291_v18  ;;  %v5281_v15 = vsub.f32 0.0, %v15971_v27  ;;  %v15980_v3 = vmul.f32 %v15919_v42, %v5224_v37 }
 0xaee   :  { %v5279_v55 = vsub.f32 0.0, %v15975_v43  ;;  %v15988_v35 = vmul.f32 %v15919_v42, %v5222_v47  ;;  %v10471_v48 = vpop.f32.mrb[112].mxu0  ;;  %11882 = vpow2.f32 %v6590_v31 }
 0xaef   :  { %v5303_v1 = vmul.f32 1.442695, %v5281_v15  ;;  %v5282_v24 = vsub.f32 0.0, %v15980_v3  ;;  %v5195_v19 = vadd.f32 %v10471_v48, %v15912_v53  ;;  %v5186_v63 = vpop.f32.mrb[113].mxu0  ;;  %11884 = vpow2.f32 %v6592_v20 }
 0xaf0   :  { %v5299_v28 = vmul.f32 1.442695, %v5279_v55  ;;  %v5280_v16 = vsub.f32 0.0, %v15988_v35  ;;  %v5187_v44 = vadd.f32 %v15912_v53, %v5186_v63  ;;  %v10472_v7 = vpop.f32.mrb[114].mxu0 }
 0xaf1   :  { %11886 = vpow2.f32 %v5303_v1  ;;  %v5305_v61 = vmul.f32 1.442695, %v5282_v24  ;;  %v5227_v18 = vadd.f32 %v5195_v19, %v14001_v30  ;;  %v5198_v41 = vadd.f32 %v10472_v7, %v15912_v53  ;;  %v5189_v11 = vpop.f32.mrb[115].mxu0 }
 0xaf2   :  { %11888 = vpow2.f32 %v5299_v28  ;;  %v5301_v36 = vmul.f32 1.442695, %v5280_v16  ;;  %v5225_v26 = vadd.f32 %v5187_v44, %v17687_v33  ;;  %v5190_v60 = vadd.f32 %v15912_v53, %v5189_v11 }
 0xaf3   :  { %v11875_v52 = vpop.eup %11874  ;;  %11890 = vpow2.f32 %v5305_v61  ;;  %v15999_v40 = vmul.f32 %v15919_v42, %v5227_v18  ;;  %v5228_v22 = vadd.f32 %v5198_v41, %v17688_v29  ;;  %v16014_v1 = vmul.f32 %v15917_v21, %v17756_v34 }
 0xaf4   :  { %v5325_v17 = vadd.f32 1.0, %v11875_v52  ;;  %11892 = vpow2.f32 %v5301_v36  ;;  %v16004_v54 = vmul.f32 %v15919_v42, %v5225_v26  ;;  %v5226_v32 = vadd.f32 %v5190_v60, %v17689_v25 }
 0xaf5   :  { %v11877_v37 = vpop.eup %11876  ;;  %v5285_v31 = vsub.f32 0.0, %v15999_v40  ;;  %v16009_v47 = vmul.f32 %v15919_v42, %v5228_v22  ;;  %11894 = vpow2.f32 %v6594_v49  ;;  %v6598_v16 = vmul.f32 1.442695, %v6578_v38 }
 0xaf6   :  { %v11879_v20 = vpop.eup %11878  ;;  %11896 = vrcp.f32 %v5325_v17  ;;  %v5326_v15 = vadd.f32 1.0, %v11877_v37  ;;  %v5283_v55 = vsub.f32 0.0, %v16004_v54  ;;  %v10475_v48 = vpop.f32.mrb[116].mxu0  ;;  %v16018_v7 = vmul.f32 %v15919_v42, %v5226_v32 }
 0xaf7   :  { %v11881_v24 = vpop.eup %11880  ;;  %v5324_v19 = vadd.f32 1.0, %v11879_v20  ;;  %v5311_v63 = vmul.f32 1.442695, %v5285_v31  ;;  %v5202_v28 = vpop.f32.mrb[117].mxu0  ;;  %11898 = vpow2.f32 %v6596_v10  ;;  %v5286_v49 = vsub.f32 0.0, %v16009_v47 }
 0xaf8   :  { %11900 = vrcp.f32 %v5326_v15  ;;  %v5307_v44 = vmul.f32 1.442695, %v5283_v55  ;;  %v10476_v61 = vpop.f32.mrb[118].mxu0  ;;  %v16020_v18 = vpop.eup %11882  ;;  %v5211_v41 = vadd.f32 %v10475_v48, %v15912_v53  ;;  %v5203_v11 = vadd.f32 %v15912_v53, %v5202_v28  ;;  %v16031_v20 = vld [vmem:[#allocation17 + $0x6] ss:$0 sm:$0xff] }
 0xaf9   :  { %11902 = vrcp.f32 %v5324_v19  ;;  %v5214_v36 = vadd.f32 %v10476_v61, %v15912_v53  ;;  %v5205_v26 = vpop.f32.mrb[119].mxu0  ;;  %v16025_v10 = vpop.eup %11884  ;;  %v5323_v60 = vadd.f32 1.0, %v11881_v24  ;;  %v5313_v52 = vmul.f32 1.442695, %v5286_v49 }
 0xafa   :  { %11904 = vpow2.f32 %v5311_v63  ;;  %v5284_v22 = vsub.f32 0.0, %v16018_v7  ;;  %v5231_v17 = vadd.f32 %v5211_v41, %v17739_v9  ;;  %v5229_v32 = vadd.f32 %v5203_v11, %v17690_v62 }
 0xafb   :  { %v11887_v38 = vpop.eup %11886  ;;  %11906 = vpow2.f32 %v5307_v44  ;;  %v5232_v37 = vadd.f32 %v5214_v36, %v17738_v2  ;;  %v5206_v55 = vadd.f32 %v15912_v53, %v5205_v26  ;;  %v16047_v53 = vmul.f32 %v15917_v21, %v17754_v8 }
 0xafc   :  { %v11889_v31 = vpop.eup %11888  ;;  %v5329_v15 = vadd.f32 1.0, %v11887_v38  ;;  %11908 = vpow2.f32 %v5313_v52  ;;  %v16036_v63 = vmul.f32 %v15919_v42, %v5231_v17  ;;  %v16039_v28 = vmul.f32 %v15919_v42, %v5229_v32 }
 0xafd   :  { %v11891_v24 = vpop.eup %11890  ;;  %v5327_v19 = vadd.f32 1.0, %v11889_v31  ;;  %v16042_v44 = vmul.f32 %v15919_v42, %v5232_v37  ;;  %11910 = vrcp.f32 %v5323_v60  ;;  %v5309_v61 = vmul.f32 1.442695, %v5284_v22  ;;  %v16061_v31 = vld [vmem:[#allocation20 + $0x2] ss:$0 sm:$0xff] }
 0xafe   :  { %v11893_v49 = vpop.eup %11892  ;;  %v5230_v41 = vadd.f32 %v5206_v55, %v17692_v12  ;;  %v10511_v11 = vpop.f32.mrb[120].mxu0  ;;  %v5261_v26 = vmul.f32 %v16031_v20, %v15931_v56  ;;  %v16055_v52 = vmul.f32 %v16031_v20, %v15939_v50  ;;  %v5289_v38 = vsub.f32 0.0, %v16036_v63 }
 0xaff   :  { %v16049_v36 = vpop.eup %11894  ;;  %v5811_v60 = vpop.f32.mrb[121].mxu0  ;;  %11912 = vpow2.f32 %v6598_v16  ;;  %v5262_v17 = vmul.f32 %v16031_v20, %v15948_v5  ;;  %v5330_v32 = vadd.f32 1.0, %v11891_v24  ;;  %v5287_v37 = vsub.f32 0.0, %v16039_v28  ;;  %v16071_v24 = vld [vmem:[#allocation20 + $0x4] ss:$0 sm:$0xff] }
 0xb00   :  { %v11897_v22 = vpop.eup %11896  ;;  %11914 = vrcp.f32 %v5329_v15  ;;  %v10512_v55 = vpop.f32.mrb[122].mxu0  ;;  %v5328_v50 = vadd.f32 1.0, %v11893_v49  ;;  %v5319_v48 = vmul.f32 1.442695, %v5289_v38  ;;  %v5290_v34 = vsub.f32 0.0, %v16042_v44 }
 0xb01   :  { %v16063_v56 = vpop.eup %11898  ;;  %11916 = vrcp.f32 %v5327_v19  ;;  %v5814_v39 = vpop.f32.mrb[123].mxu0  ;;  %v16066_v8 = vmul.f32 %v11897_v22, %v5261_v26  ;;  %v5315_v5 = vmul.f32 1.442695, %v5287_v37  ;;  %v16069_v15 = vmul.f32 %v15919_v42, %v5230_v41 }
 0xb02   :  { %v11901_v16 = vpop.eup %11900  ;;  %11918 = vpow2.f32 %v5309_v61  ;;  %v5321_v19 = vmul.f32 1.442695, %v5290_v34  ;;  %v5820_v49 = vadd.f32 %v10511_v11, %v16061_v31  ;;  %v5260_v0 = vmul.f32 %v16031_v20, %v15952_v46 }
 0xb03   :  { %v11903_v13 = vpop.eup %11902  ;;  %v16073_v57 = vmul.f32 %v11901_v16, %v5262_v17  ;;  %11920 = vpow2.f32 %v5319_v48  ;;  %v16080_v61 = vmul.f32 %v16031_v20, %v15971_v27  ;;  %v5288_v42 = vsub.f32 0.0, %v16069_v15 }
 0xb04   :  { %v11905_v38 = vpop.eup %11904  ;;  %11922 = vpow2.f32 %v5315_v5  ;;  %v16086_v34 = vmul.f32 %v16071_v24, %v5820_v49  ;;  %v5812_v46 = vadd.f32 %v16061_v31, %v5811_v60  ;;  %v5823_v27 = vadd.f32 %v10512_v55, %v16061_v31 }
 0xb05   :  { %v11907_v41 = vpop.eup %11906  ;;  %v5333_v22 = vadd.f32 1.0, %v11905_v38  ;;  %11924 = vpow2.f32 %v5321_v19  ;;  %v5317_v11 = vmul.f32 1.442695, %v5288_v42  ;;  %v5372_v37 = vmul.f32 %v11903_v13, %v5260_v0 }
 0xb06   :  { %v11909_v48 = vpop.eup %11908  ;;  %11926 = vrcp.f32 %v5330_v32  ;;  %v10515_v17 = vpop.f32.mrb[124].mxu0  ;;  %v16092_v16 = vmul.f32 %v16031_v20, %v15975_v43  ;;  %v5918_v5 = vsub.f32 0.0, %v16086_v34  ;;  %v5331_v49 = vadd.f32 1.0, %v11907_v41 }
 0xb07   :  { %11928 = vrcp.f32 %v5328_v50  ;;  %v5827_v19 = vpop.f32.mrb[125].mxu0  ;;  %v11911_v38 = vpop.eup %11910  ;;  %v16096_v26 = vmul.f32 %v16071_v24, %v5812_v46  ;;  %v16099_v32 = vmul.f32 %v16071_v24, %v5823_v27  ;;  %v5815_v60 = vadd.f32 %v16061_v31, %v5814_v39 }
 0xb08   :  { %v10516_v55 = vpop.f32.mrb[126].mxu0  ;;  %11930 = vrcp.f32 %v5333_v22  ;;  %v5334_v0 = vadd.f32 1.0, %v11909_v48  ;;  %v5936_v43 = vmul.f32 1.442695, %v5918_v5  ;;  %v5836_v50 = vadd.f32 %v10515_v17, %v16061_v31 }
 0xb09   :  { %v16102_v13 = vpop.eup %11912  ;;  %v5830_v42 = vpop.f32.mrb[127].mxu0  ;;  %v16109_v41 = vmul.f32 %v16031_v20, %v15980_v3  ;;  %v5264_v46 = vmul.f32 %v16031_v20, %v15988_v35  ;;  %11932 = vpow2.f32 %v5317_v11  ;;  %v5916_v39 = vsub.f32 0.0, %v16096_v26 }
 0xb0a   :  { %17758 = vst [vmem:[#allocation59_spill] sm:$0xff] %v16102_v13  ;;  %v16105_v23 = vpop.eup %11914  ;;  %v5371_v22 = vmul.f32 %v11911_v38, %v16055_v52  ;;  %v16119_v48 = vmul.f32 %v16031_v20, %v15999_v40  ;;  %11934 = vpow2.f32 %v5936_v43  ;;  %v5919_v17 = vsub.f32 0.0, %v16099_v32 }
 0xb0b   :  { %v16114_v27 = vpop.eup %11916  ;;  %11936 = vrcp.f32 %v5331_v49  ;;  %v5932_v3 = vmul.f32 1.442695, %v5916_v39  ;;  %v16123_v4 = vmul.f32 %v16071_v24, %v5815_v60  ;;  %v16126_v35 = vmul.f32 %v16071_v24, %v5836_v50  ;;  %v10819_v39 = vld [vmem:[#allocation22 + $0x28] sm:$0xff]  }
 0xb0c   :  { %v11919_v5 = vpop.eup %11918  ;;  %11938 = vrcp.f32 %v5334_v0  ;;  %v5828_v52 = vadd.f32 %v16061_v31, %v5827_v19  ;;  %v5387_v38 = vpack.c.bf16 %v5372_v37, %v5371_v22  ;;  %v16131_v43 = vmul.f32 %v16031_v20, %v16004_v54 }
 0xb0d   :  { %v11921_v11 = vpop.eup %11920  ;;  %v5332_v45 = vadd.f32 1.0, %v11919_v5  ;;  %11940 = vpow2.f32 %v5932_v3  ;;  %v5917_v49 = vsub.f32 0.0, %v16123_v4  ;;  %v5938_v58 = vmul.f32 1.442695, %v5919_v17 }
 0xb0e   :  { %v11923_v40 = vpop.eup %11922  ;;  %v5337_v51 = vadd.f32 1.0, %v11921_v11  ;;  %v10519_v60 = vpop.f32.mrb[128].mxu0  ;;  %v5922_v0 = vsub.f32 0.0, %v16126_v35  ;;  %10485 = vmatprep.mubr.msk.bf16.mxu1 %vm509_vm0, %v5387_v38  ;;  %v16137_v5 = vmul.f32 %v16071_v24, %v5828_v52  ;;  %v17759_v3 = vpack.c.bf16 %v16073_v57, %v16066_v8  ;;  %v10820_v52 = vld [vmem:[#allocation22 + $0x30] sm:$0xff]  }
 0xb0f   :  { %v11925_v59 = vpop.eup %11924  ;;  %11942 = vrcp.f32 %v5332_v45  ;;  %v5335_v50 = vadd.f32 1.0, %v11923_v40  ;;  %v5843_v37 = vpop.f32.mrb[129].mxu0  ;;  %v5934_v54 = vmul.f32 1.442695, %v5917_v49  ;;  %v5839_v40 = vadd.f32 %v10516_v55, %v16061_v31 }
 0xb10   :  { %v11927_v19 = vpop.eup %11926  ;;  %11944 = vrcp.f32 %v5337_v51  ;;  %v5338_v22 = vadd.f32 1.0, %v11925_v59  ;;  %10486 = vmatmul.mubr.msk.bf16.vlgmr.msra.gmra.mrb[120].mxu1 %vm509_vm0, %v17759_v3  ;;  %v10520_v45 = vpop.f32.mrb[130].mxu0  ;;  %v5944_v17 = vmul.f32 1.442695, %v5922_v0  ;;  %v5831_v38 = vadd.f32 %v16061_v31, %v5830_v42 }
 0xb11   :  { %v11929_v11 = vpop.eup %11928  ;;  %11946 = vrcp.f32 %v5335_v50  ;;  %10526 = vmatpush3.bf16.msra.mxu1 %v15895_v6  ;;  %v16146_v59 = vpop.f32.mrb[131].mxu0  ;;  %v16150_v51 = vmul.f32 %v16031_v20, %v16009_v47  ;;  %v5268_v57 = vmul.f32 %v16031_v20, %v16018_v7  ;;  %v5920_v8 = vsub.f32 0.0, %v16137_v5 }
 0xb12   :  { %11948 = vrcp.f32 %v5338_v22  ;;  %10527 = vmatprep.subr.bf16.mxu1 %v10819_v39  ;;  %v11931_v49 = vpop.eup %11930  ;;  %v16157_v55 = vmul.f32 %v16031_v20, %v16036_v63  ;;  %v16160_v6 = vmul.f32 %v16071_v24, %v5839_v40  ;;  %v16163_v47 = vmul.f32 %v16071_v24, %v5831_v38 }
 0xb13   :  { %11950 = vpow2.f32 %v5938_v58  ;;  %v11933_v42 = vpop.eup %11932  ;;  %v5376_v50 = vmul.f32 %v11929_v11, %v5264_v46  ;;  %v5940_v7 = vmul.f32 1.442695, %v5920_v8  ;;  %v5852_v0 = vadd.f32 %v10519_v60, %v16061_v31  ;;  %v10821_v11 = vld [vmem:[#allocation22 + $0x38] sm:$0xff]  }
 0xb14   :  { %11952 = vpow2.f32 %v5934_v54  ;;  %v11935_v22 = vpop.eup %11934  ;;  %v16168_v3 = vmul.f32 %v16031_v20, %v16039_v28  ;;  %v5336_v63 = vadd.f32 1.0, %v11933_v42  ;;  %v5923_v58 = vsub.f32 0.0, %v16160_v6 }
 0xb15   :  { %11954 = vpow2.f32 %v5944_v17  ;;  %10528 = vmatpush3.bf16.msra.mxu1 %v10819_v39  ;;  %v11937_v40 = vpop.eup %11936  ;;  %v5375_v38 = vmul.f32 %v16114_v27, %v16092_v16  ;;  %v5378_v46 = vmul.f32 %v11927_v19, %v16109_v41  ;;  %v5921_v54 = vsub.f32 0.0, %v16163_v47 }
 0xb16   :  { %11956 = vpow2.f32 %v5940_v7  ;;  %v10523_v60 = vpop.f32.mrb[132].mxu0  ;;  %10529 = vmatprep.subr.bf16.mxu1 %v10820_v52  ;;  %v11939_v8 = vpop.eup %11938  ;;  %v5946_v28 = vmul.f32 1.442695, %v5923_v58  ;;  %v16176_v17 = vmul.f32 %v16071_v24, %v5852_v0  ;;  %v5844_v39 = vadd.f32 %v16061_v31, %v5843_v37 }
 0xb17   :  { %11958 = vrcp.f32 %v5336_v63  ;;  %v5859_v42 = vpop.f32.mrb[133].mxu0  ;;  %v11941_v13 = vpop.eup %11940  ;;  %v5966_v9 = vadd.f32 1.0, %v11935_v22  ;;  %v5942_v16 = vmul.f32 1.442695, %v5921_v54  ;;  %v5389_v27 = vpack.c.bf16 %v5376_v50, %v5375_v38  ;;  %v16198_v54 = vld [vmem:[#allocation25] sm:$0xff]  }
 0xb18   :  { %v5855_v41 = vadd.f32 %v10520_v45, %v16061_v31  ;;  %v16180_v19 = vpop.f32.mrb[134].mxu0  ;;  %v5377_v2 = vmul.f32 %v16105_v23, %v16080_v61  ;;  %v5964_v63 = vadd.f32 1.0, %v11941_v13  ;;  %11960 = vpow2.f32 %v5946_v28 }
 0xb19   :  { %v11943_v7 = vpop.eup %11942  ;;  %v5926_v0 = vsub.f32 0.0, %v16176_v17  ;;  %v16185_v58 = vpop.f32.mrb[135].mxu0  ;;  %10530 = vmatpush3.bf16.msra.mxu1 %v10820_v52  ;;  %v5274_v22 = vmul.f32 %v16031_v20, %v16042_v44  ;;  %11962 = vpow2.f32 %v5942_v16  ;;  %v16190_v45 = vmul.f32 %v16071_v24, %v5844_v39  ;;  %10489 = vmatprep.mubr.msk.bf16.mxu1 %vm509_vm0, %v5389_v27 }
 0xb1a   :  { %v11945_v37 = vpop.eup %11944  ;;  %v16194_v50 = vmul.f32 %v16071_v24, %v5855_v41  ;;  %10531 = vmatprep.subr.bf16.mxu1 %v10821_v11  ;;  %v5380_v61 = vmul.f32 %v11943_v7, %v5268_v57  ;;  %v5272_v13 = vmul.f32 %v16031_v20, %v16069_v15  ;;  %v5390_v38 = vpack.c.bf16 %v5378_v46, %v5377_v2 }
 0xb1b   :  { %v11947_v23 = vpop.eup %11946  ;;  %v5952_v52 = vmul.f32 1.442695, %v5926_v0  ;;  %v5381_v28 = vmul.f32 %v11931_v49, %v16119_v48  ;;  %v5379_v39 = vmul.f32 %v11937_v40, %v16131_v43  ;;  %11964 = vrcp.f32 %v5966_v9 }
 0xb1c   :  { %v11949_v44 = vpop.eup %11948  ;;  %v5924_v16 = vsub.f32 0.0, %v16190_v45  ;;  %v5382_v41 = vmul.f32 %v11939_v8, %v16150_v51  ;;  %11966 = vrcp.f32 %v5964_v63  ;;  %v5927_v57 = vsub.f32 0.0, %v16194_v50  ;;  %10490 = vmatmul.mubr.msk.bf16.gmra.mrb[124].mxu1 %vm509_vm0, %v5390_v38 }
 0xb1d   :  { %v11951_v27 = vpop.eup %11950  ;;  %v5847_v2 = vadd.f32 %v16061_v31, %v16146_v59  ;;  %11968 = vpow2.f32 %v5952_v52  ;;  %v5868_v48 = vadd.f32 %v10523_v60, %v16061_v31  ;;  %v5860_v9 = vadd.f32 %v16061_v31, %v5859_v42  ;;  %10532 = vmatpush3.bf16.msra.mxu1 %v10821_v11 }
 0xb1e   :  { %v11953_v20 = vpop.eup %11952  ;;  %v5967_v15 = vadd.f32 1.0, %v11951_v27  ;;  %v5948_v40 = vmul.f32 1.442695, %v5924_v16  ;;  %v5391_v46 = vpack.c.bf16 %v5380_v61, %v5379_v39  ;;  %10573 = vmatprep.subr.bf16.mxu1 %v16198_v54  ;;  %v5954_v63 = vmul.f32 1.442695, %v5927_v57 }
 0xb1f   :  { %v11955_v43 = vpop.eup %11954  ;;  %v5965_v49 = vadd.f32 1.0, %v11953_v20  ;;  %v16211_v51 = vmul.f32 %v16071_v24, %v5847_v2  ;;  %v16215_v7 = vmul.f32 %v16071_v24, %v5868_v48  ;;  %v16218_v60 = vmul.f32 %v16071_v24, %v5860_v9 }
 0xb20   :  { %v11957_v8 = vpop.eup %11956  ;;  %11970 = vrcp.f32 %v5967_v15  ;;  %v5970_v59 = vadd.f32 1.0, %v11955_v43  ;;  %10493 = vmatprep.mubr.msk.bf16.mxu1 %vm509_vm0, %v5391_v46  ;;  %v16223_v61 = vmul.f32 %v11945_v37, %v16157_v55  ;;  %v5383_v52 = vmul.f32 %v11947_v23, %v16168_v3  ;;  %v16232_v23 = vld [vmem:[#allocation20 + $0x3] ss:$0 sm:$0xff] }
 0xb21   :  { %v11959_v42 = vpop.eup %11958  ;;  %11972 = vrcp.f32 %v5965_v49  ;;  %v5968_v11 = vadd.f32 1.0, %v11957_v8  ;;  %v5925_v0 = vsub.f32 0.0, %v16211_v51  ;;  %v5930_v38 = vsub.f32 0.0, %v16215_v7 }
 0xb22   :  { %11974 = vrcp.f32 %v5970_v59  ;;  %v11961_v39 = vpop.eup %11960  ;;  %v16227_v16 = vmul.f32 %v11949_v44, %v5274_v22  ;;  %v5384_v27 = vmul.f32 %v11959_v42, %v5272_v13  ;;  %v5928_v48 = vsub.f32 0.0, %v16218_v60 }
 0xb23   :  { %11976 = vrcp.f32 %v5968_v11  ;;  %v5950_v2 = vmul.f32 1.442695, %v5925_v0  ;;  %v11963_v20 = vpop.eup %11962  ;;  %v5971_v57 = vadd.f32 1.0, %v11961_v39  ;;  %v5960_v15 = vmul.f32 1.442695, %v5930_v38 }
 0xb24   :  { %11978 = vpow2.f32 %v5948_v40  ;;  %v5969_v9 = vadd.f32 1.0, %v11963_v20  ;;  %v5871_v55 = vadd.f32 %v16180_v19, %v16061_v31  ;;  %v5392_v3 = vpack.c.bf16 %v5382_v41, %v5381_v28 }
 0xb25   :  { %11980 = vpow2.f32 %v5954_v63  ;;  %v11965_v37 = vpop.eup %11964  ;;  %v5956_v22 = vmul.f32 1.442695, %v5928_v48  ;;  %v5863_v13 = vadd.f32 %v16061_v31, %v16185_v58  ;;  %v17760_v44 = vsub.f32 0.0, %v16014_v1 }
 0xb26   :  { %11982 = vrcp.f32 %v5971_v57  ;;  %v11967_v49 = vpop.eup %11966  ;;  %v16239_v40 = vmul.f32 %v16071_v24, %v5871_v55  ;;  %10494 = vmatmul.mubr.msk.bf16.gmra.mrb[128].mxu1 %vm509_vm0, %v5392_v3  ;;  %v5393_v19 = vpack.c.bf16 %v5384_v27, %v5383_v52  ;;  %v5394_v28 = vpack.c.bf16 %v16227_v16, %v16223_v61 }
 0xb27   :  { %v6600_v43 = vmul.f32 1.442695, %v17760_v44  ;;  %11984 = vrcp.f32 %v5969_v9  ;;  %v11969_v41 = vpop.eup %11968  ;;  %v16245_v46 = vmul.f32 %v16071_v24, %v5863_v13  ;;  %v16249_v31 = vmul.f32 %v15917_v21, %v13958_v14 }
 0xb28   :  { %11986 = vpow2.f32 %v5950_v2  ;;  %v6580_v58 = vsub.f32 0.0, %v16047_v53  ;;  %v5902_v8 = vmul.f32 %v16232_v23, %v16086_v34  ;;  %v5903_v59 = vmul.f32 %v16232_v23, %v16099_v32  ;;  %10497 = vmatprep.mubr.msk.bf16.mxu1 %vm509_vm0, %v5393_v19 }
 0xb29   :  { %11988 = vpow2.f32 %v5960_v15  ;;  %v5931_v42 = vsub.f32 0.0, %v16239_v40  ;;  %v5900_v24 = vmul.f32 %v16232_v23, %v16096_v26  ;;  %v5901_v63 = vmul.f32 %v16232_v23, %v16123_v4 }
 0xb2a   :  { %v11971_v11 = vpop.eup %11970  ;;  %v5929_v0 = vsub.f32 0.0, %v16245_v46  ;;  %11990 = vpow2.f32 %v6600_v43  ;;  %v6014_v34 = vmul.f32 %v11965_v37, %v5902_v8  ;;  %v5974_v27 = vadd.f32 1.0, %v11969_v41 }
 0xb2b   :  { %v11973_v61 = vpop.eup %11972  ;;  %v6015_v52 = vmul.f32 %v11971_v11, %v5903_v59  ;;  %11992 = vpow2.f32 %v5956_v22  ;;  %v5962_v32 = vmul.f32 1.442695, %v5931_v42  ;;  %v6012_v39 = vmul.f32 %v11967_v49, %v5900_v24 }
 0xb2c   :  { %v11975_v38 = vpop.eup %11974  ;;  %v6013_v16 = vmul.f32 %v11973_v61, %v5901_v63  ;;  %v5958_v2 = vmul.f32 1.442695, %v5929_v0  ;;  %v6622_v26 = vadd.f32 1.0, %v16020_v18  ;;  %v6581_v48 = vsub.f32 0.0, %v16249_v31 }
 0xb2d   :  { %v11977_v20 = vpop.eup %11976  ;;  %v6029_v57 = vpack.c.bf16 %v6015_v52, %v6014_v34  ;;  %11994 = vpow2.f32 %v5962_v32  ;;  %v6602_v9 = vmul.f32 1.442695, %v6580_v58  ;;  %v5906_v3 = vmul.f32 %v16232_v23, %v16126_v35  ;;  %v10823_v52 = vld [vmem:[#allocation25 + $0x8] sm:$0xff]  }
 0xb2e   :  { %v11979_v15 = vpop.eup %11978  ;;  %11996 = vpow2.f32 %v5958_v2  ;;  %v6028_v4 = vpack.c.bf16 %v6013_v16, %v6012_v39  ;;  %v5907_v37 = vmul.f32 %v16232_v23, %v16160_v6  ;;  %10498 = vmatmul.mubr.msk.bf16.gmra.mrb[132].mxu1 %vm509_vm0, %v5394_v28  ;;  %v16272_v13 = vmul.f32 %v15917_v21, %v17689_v25 }
 0xb2f   :  { %v11981_v55 = vpop.eup %11980  ;;  %v5972_v22 = vadd.f32 1.0, %v11979_v15  ;;  %v5904_v44 = vmul.f32 %v16232_v23, %v16137_v5  ;;  %v5905_v43 = vmul.f32 %v16232_v23, %v16163_v47  ;;  %11998 = vrcp.f32 %v5974_v27  ;;  %v10824_v15 = vld [vmem:[#allocation25 + $0x10] sm:$0xff]  }
 0xb30   :  { %v11983_v18 = vpop.eup %11982  ;;  %v5975_v49 = vadd.f32 1.0, %v11981_v55  ;;  %10533 = vmatprep.mubr.msk.bf16.mxu1 %vm509_vm0, %v6028_v4  ;;  %v16279_v6 = vmul.f32 %v11975_v38, %v5906_v3  ;;  %12000 = vrcp.f32 %v6622_v26  ;;  %v16285_v28 = vmul.f32 %v15917_v21, %v17687_v33 }
 0xb31   :  { %v11985_v35 = vpop.eup %11984  ;;  %v16281_v19 = vmul.f32 %v11983_v18, %v5907_v37  ;;  %v6016_v58 = vmul.f32 %v11977_v20, %v5904_v44  ;;  %v6604_v8 = vmul.f32 1.442695, %v6581_v48  ;;  %v6623_v11 = vadd.f32 1.0, %v16025_v10 }
 0xb32   :  { %v11987_v41 = vpop.eup %11986  ;;  %v6017_v5 = vmul.f32 %v11985_v35, %v5905_v43  ;;  %12002 = vrcp.f32 %v5975_v49  ;;  %v6583_v61 = vsub.f32 0.0, %v16272_v13  ;;  %v6582_v38 = vsub.f32 0.0, %v16285_v28 }
 0xb33   :  { %v11989_v47 = vpop.eup %11988  ;;  %12004 = vrcp.f32 %v5972_v22  ;;  %v5973_v59 = vadd.f32 1.0, %v11987_v41  ;;  %v6031_v42 = vpack.c.bf16 %v16281_v19, %v16279_v6  ;;  %v16295_v10 = vmul.f32 %v15917_v21, %v14001_v30  ;;  %v10825_v6 = vld [vmem:[#allocation25 + $0x18] sm:$0xff]  }
 0xb34   :  { %v11991_v24 = vpop.eup %11990  ;;  %v5978_v63 = vadd.f32 1.0, %v11989_v47  ;;  %v6030_v0 = vpack.c.bf16 %v6017_v5, %v6016_v58  ;;  %12006 = vpow2.f32 %v6602_v9  ;;  %v16299_v16 = vmul.f32 %v15917_v21, %v17688_v29 }
 0xb35   :  { %v11993_v34 = vpop.eup %11992  ;;  %12008 = vrcp.f32 %v5973_v59  ;;  %v6608_v20 = vmul.f32 1.442695, %v6583_v61  ;;  %v6624_v48 = vadd.f32 1.0, %v16049_v36  ;;  %v6606_v9 = vmul.f32 1.442695, %v6582_v38  ;;  %v17762_v61 = vld [vmem:[#allocation58_spill] sm:$0xff] }
 0xb36   :  { %v5976_v32 = vadd.f32 1.0, %v11993_v34  ;;  %12010 = vpow2.f32 %v6604_v8  ;;  %10534 = vmatmul.mubr.msk.bf16.vlgmr.msra.gmra.mrb[136].mxu1 %vm509_vm0, %v6029_v57  ;;  %v16305_v57 = vmul.f32 %v15917_v21, %v17692_v12  ;;  %v16310_v55 = vmul.f32 %v15917_v21, %v17690_v62  ;;  %v17763_v38 = vld [vmem:[#allocation59_spill] sm:$0xff] }
 0xb37   :  { %v11995_v39 = vpop.eup %11994  ;;  %12012 = vrcp.f32 %v6623_v11  ;;  %10574 = vmatpush3.bf16.msra.mxu1 %v16198_v54  ;;  %10537 = vmatprep.mubr.msk.bf16.mxu1 %vm509_vm0, %v6030_v0  ;;  %v5910_v3 = vmul.f32 %v16232_v23, %v16176_v17  ;;  %v5911_v37 = vmul.f32 %v16232_v23, %v16194_v50  ;;  %v6585_v22 = vsub.f32 0.0, %v16299_v16  ;;  %v17761_v11 = vld [vmem:[#allocation60_spill] sm:$0xff] }
 0xb38   :  { %v11997_v27 = vpop.eup %11996  ;;  %12014 = vrcp.f32 %v5978_v63  ;;  %v5979_v2 = vadd.f32 1.0, %v11995_v39  ;;  %10575 = vmatprep.subr.bf16.mxu1 %v10823_v52  ;;  %v6584_v36 = vsub.f32 0.0, %v16295_v10  ;;  %v6587_v44 = vsub.f32 0.0, %v16305_v57 }
 0xb39   :  { %12016 = vrcp.f32 %v5976_v32  ;;  %v5977_v26 = vadd.f32 1.0, %v11997_v27  ;;  %v11999_v4 = vpop.eup %11998  ;;  %v6625_v17 = vadd.f32 1.0, %v16063_v56  ;;  %v6627_v19 = vadd.f32 1.0, %v11991_v24 }
 0xb3a   :  { %12018 = vrcp.f32 %v5979_v2  ;;  %v16312_v54 = vpop.eup %12000  ;;  %v6022_v49 = vmul.f32 %v11999_v4, %v5910_v3  ;;  %v5908_v50 = vmul.f32 %v16232_v23, %v16190_v45  ;;  %v5909_v58 = vmul.f32 %v16232_v23, %v16211_v51 }
 0xb3b   :  { %12020 = vrcp.f32 %v5977_v26  ;;  %10576 = vmatpush3.bf16.msra.mxu1 %v10823_v52  ;;  %v6586_v5 = vsub.f32 0.0, %v16310_v55  ;;  %v6612_v59 = vmul.f32 1.442695, %v6585_v22  ;;  %v16330_v56 = vmul.f32 %v15917_v21, %v17761_v11 }
 0xb3c   :  { %v12003_v18 = vpop.eup %12002  ;;  %12022 = vpow2.f32 %v6608_v20  ;;  %10577 = vmatprep.subr.bf16.mxu1 %v10824_v15  ;;  %v6616_v45 = vmul.f32 1.442695, %v6587_v44  ;;  %v16334_v51 = vmul.f32 %v15917_v21, %v17762_v61  ;;  %v6626_v39 = vadd.f32 1.0, %v17763_v38  ;;  %v16349_v44 = vld [vmem:[#allocation23] ss:$0 sm:$0xff] }
 0xb3d   :  { %v12005_v43 = vpop.eup %12004  ;;  %v6023_v35 = vmul.f32 %v12003_v18, %v5911_v37  ;;  %12024 = vpow2.f32 %v6606_v9  ;;  %v6614_v27 = vmul.f32 1.442695, %v6586_v5  ;;  %v5914_v20 = vmul.f32 %v16232_v23, %v16215_v7 }
 0xb3e   :  { %v12007_v41 = vpop.eup %12006  ;;  %10538 = vmatmul.mubr.msk.bf16.gmra.mrb[140].mxu1 %vm509_vm0, %v6031_v42  ;;  %12026 = vrcp.f32 %v6624_v48  ;;  %v6020_v63 = vmul.f32 %v12005_v43, %v5908_v50  ;;  %v6610_v42 = vmul.f32 1.442695, %v6584_v36  ;;  %v5915_v26 = vmul.f32 %v16232_v23, %v16239_v40  ;;  %v17765_v50 = vld [vmem:[#allocation63_spill] sm:$0xff] }
 0xb3f   :  { %v12009_v8 = vpop.eup %12008  ;;  %v6033_v47 = vpack.c.bf16 %v6023_v35, %v6022_v49  ;;  %10578 = vmatpush3.bf16.msra.mxu1 %v10824_v15  ;;  %12028 = vrcp.f32 %v6625_v17  ;;  %v6589_v21 = vsub.f32 0.0, %v16330_v56  ;;  %v5912_v4 = vmul.f32 %v16232_v23, %v16218_v60  ;;  %v17764_v49 = vld [vmem:[#allocation57_spill] sm:$0xff] }
 0xb40   :  { %v12011_v24 = vpop.eup %12010  ;;  %v6021_v0 = vmul.f32 %v12009_v8, %v5909_v58  ;;  %10579 = vmatprep.subr.bf16.mxu1 %v10825_v6  ;;  %12030 = vrcp.f32 %v6627_v19  ;;  %v5913_v48 = vmul.f32 %v16232_v23, %v16245_v46  ;;  %v6588_v9 = vsub.f32 0.0, %v16334_v51 }
 0xb41   :  { %v12013_v34 = vpop.eup %12012  ;;  %12032 = vpow2.f32 %v6612_v59  ;;  %v6629_v36 = vadd.f32 1.0, %v12011_v24  ;;  %v6620_v23 = vmul.f32 1.442695, %v6589_v21  ;;  %v6559_v35 = vmul.f32 %v16349_v44, %v17764_v49  ;;  %v17768_v21 = vld [vmem:[#allocation56_spill] sm:$0xff] }
 0xb42   :  { %v12015_v52 = vpop.eup %12014  ;;  %v6032_v32 = vpack.c.bf16 %v6021_v0, %v6020_v63  ;;  %12034 = vpow2.f32 %v6616_v45  ;;  %v6558_v58 = vmul.f32 %v16349_v44, %v17765_v50  ;;  %v6628_v8 = vadd.f32 1.0, %v12007_v41 }
 0xb43   :  { %v12017_v2 = vpop.eup %12016  ;;  %10580 = vmatpush3.bf16.msra.mxu1 %v10825_v6  ;;  %v6026_v3 = vmul.f32 %v12015_v52, %v5914_v20  ;;  %12036 = vpow2.f32 %v6610_v42  ;;  %v6618_v6 = vmul.f32 1.442695, %v6588_v9  ;;  %v6671_v5 = vmul.f32 %v12013_v34, %v6559_v35 }
 0xb44   :  { %v12019_v15 = vpop.eup %12018  ;;  %10541 = vmatprep.mubr.msk.bf16.mxu1 %vm509_vm0, %v6032_v32  ;;  %v6024_v22 = vmul.f32 %v12017_v2, %v5912_v4  ;;  %12038 = vpow2.f32 %v6614_v27  ;;  %v6670_v63 = vmul.f32 %v16312_v54, %v6558_v58  ;;  %v17766_v32 = vld [vmem:[#allocation65_spill] sm:$0xff]  ;;  %v6563_v38 = vmul.f32 %v16349_v44, %v16014_v1  ;;  %v17767_v27 = vld [vmem:[#allocation64_spill] sm:$0xff] }
 0xb45   :  { %v12021_v7 = vpop.eup %12020  ;;  %v6027_v37 = vmul.f32 %v12019_v15, %v5915_v26  ;;  %12040 = vrcp.f32 %v6626_v39  ;;  %v6561_v34 = vmul.f32 %v16349_v44, %v17766_v32  ;;  %v6560_v2 = vmul.f32 %v16349_v44, %v17767_v27  ;;  %v10826_v27 = vld [vmem:[#allocation22 + $0x40] sm:$0xff]  }
 0xb46   :  { %v12023_v40 = vpop.eup %12022  ;;  %v6025_v18 = vmul.f32 %v12021_v7, %v5913_v48  ;;  %10542 = vmatmul.mubr.msk.bf16.gmra.mrb[144].mxu1 %vm509_vm0, %v6033_v47  ;;  %12042 = vrcp.f32 %v6629_v36  ;;  %v6686_v42 = vpack.c.bf16 %v6671_v5, %v6670_v63  ;;  %v6562_v15 = vmul.f32 %v16349_v44, %v17768_v21  ;;  %10549 = vmatprep.subr.bf16.mxu0 %v10826_v27 }
 0xb47   :  { %v6035_v60 = vpack.c.bf16 %v6027_v37, %v6026_v3  ;;  %v12025_v46 = vpop.eup %12024  ;;  %v6631_v19 = vadd.f32 1.0, %v12023_v40  ;;  %12044 = vpow2.f32 %v6620_v23  ;;  %v6564_v35 = vmul.f32 %v16349_v44, %v16047_v53  ;;  %10550 = vmatpush3.bf16.msra.mxu0 %v10826_v27 }
 0xb48   :  { %v6034_v43 = vpack.c.bf16 %v6025_v18, %v6024_v22  ;;  %v12027_v17 = vpop.eup %12026  ;;  %v6630_v59 = vadd.f32 1.0, %v12025_v46  ;;  %12046 = vpow2.f32 %v6618_v6  ;;  %v6567_v46 = vmul.f32 %v16349_v44, %v16272_v13 }
 0xb49   :  { %v12029_v47 = vpop.eup %12028  ;;  %12048 = vrcp.f32 %v6631_v19  ;;  %v6672_v9 = vmul.f32 %v12027_v17, %v6560_v2  ;;  %v6566_v17 = vmul.f32 %v16349_v44, %v16285_v28  ;;  %v6569_v13 = vmul.f32 %v16349_v44, %v16299_v16  ;;  %v10827_v2 = vld [vmem:[#allocation22 + $0x48] sm:$0xff]  }
 0xb4a   :  { %10545 = vmatprep.mubr.msk.bf16.mxu1 %vm509_vm0, %v6034_v43  ;;  %v12031_v24 = vpop.eup %12030  ;;  %12050 = vrcp.f32 %v6628_v8  ;;  %v6673_v20 = vmul.f32 %v12029_v47, %v6561_v34  ;;  %v6571_v28 = vmul.f32 %v16349_v44, %v16305_v57  ;;  %v6568_v63 = vmul.f32 %v16349_v44, %v16295_v10  ;;  %10551 = vmatprep.subr.bf16.mxu0 %v10827_v2 }
 0xb4b   :  { %v12033_v0 = vpop.eup %12032  ;;  %12052 = vrcp.f32 %v6630_v59  ;;  %v6675_v4 = vmul.f32 %v12031_v24, %v6563_v38  ;;  %v6573_v38 = vmul.f32 %v16349_v44, %v16330_v56  ;;  %v6572_v10 = vmul.f32 %v16349_v44, %v16334_v51  ;;  %10552 = vmatpush3.bf16.msra.mxu0 %v10827_v2  ;;  %v10829_v56 = vld [vmem:[#allocation22 + $0x58] sm:$0xff]   ;;  %v9445_v51 = vld [vmem:[#allocation17 + $0x8] ss:$0 sm:$0xff] }
 0xb4c   :  { %v12035_v45 = vpop.eup %12034  ;;  %v6633_v54 = vadd.f32 1.0, %v12033_v0  ;;  %v6687_v22 = vpack.c.bf16 %v6673_v20, %v6672_v9  ;;  %v10828_v20 = vld [vmem:[#allocation22 + $0x50] sm:$0xff]   ;;  %v17769_v2 = vld [vmem:[#allocation48_spill] sm:$0xff] }
 0xb4d   :  { %v12037_v52 = vpop.eup %12036  ;;  %v6635_v26 = vadd.f32 1.0, %v12035_v45  ;;  %v6570_v45 = vmul.f32 %v16349_v44, %v16310_v55  ;;  %10553 = vmatprep.subr.bf16.mxu0 %v10828_v20 }
 0xb4e   :  { %10546 = vmatmul.mubr.msk.bf16.gmra.mrb[148].mxu1 %vm509_vm0, %v6035_v60  ;;  %v12039_v41 = vpop.eup %12038  ;;  %v6632_v48 = vadd.f32 1.0, %v12037_v52  ;;  %12054 = vrcp.f32 %v6633_v54  ;;  %v6565_v60 = vmul.f32 %v16349_v44, %v16249_v31 }
 0xb4f   :  { %10581 = vmatprep.mubr.msk.bf16.mxu1 %vm509_vm0, %v6686_v42  ;;  %v12041_v39 = vpop.eup %12040  ;;  %v6634_v7 = vadd.f32 1.0, %v12039_v41  ;;  %12056 = vrcp.f32 %v6635_v26  ;;  %10554 = vmatpush3.bf16.msra.mxu0 %v10828_v20  ;;  %v16394_v26 = vld [vmem:[#allocation25 + $0x20] sm:$0xff]  }
 0xb50   :  { %v12043_v3 = vpop.eup %12042  ;;  %v6674_v37 = vmul.f32 %v12041_v39, %v6562_v15  ;;  %12058 = vrcp.f32 %v6632_v48  ;;  %10555 = vmatprep.subr.bf16.mxu0 %v10829_v56 }
 0xb51   :  { %v12045_v40 = vpop.eup %12044  ;;  %12060 = vrcp.f32 %v6634_v7  ;;  %v6677_v6 = vmul.f32 %v12043_v3, %v6565_v60 }
 0xb52   :  { %v12047_v1 = vpop.eup %12046  ;;  %v6688_v18 = vpack.c.bf16 %v6675_v4, %v6674_v37  ;;  %v6637_v43 = vadd.f32 1.0, %v12045_v40 }
 0xb53   :  { %v12049_v36 = vpop.eup %12048  ;;  %v6636_v50 = vadd.f32 1.0, %v12047_v1  ;;  %10556 = vmatpush3.bf16.msra.mxu0 %v10829_v56 }
 0xb54   :  { %v12051_v23 = vpop.eup %12050  ;;  %v6679_v19 = vmul.f32 %v12049_v36, %v6567_v46  ;;  %12062 = vrcp.f32 %v6637_v43  ;;  %10597 = vmatprep.subr.bf16.mxu0 %v16394_v26 }
 0xb55   :  { %v12053_v49 = vpop.eup %12052  ;;  %v6676_v58 = vmul.f32 %v12051_v23, %v6564_v35  ;;  %12064 = vrcp.f32 %v6636_v50 }
 0xb56   :  { %10582 = vmatmul.mubr.msk.bf16.vlgmr.msra.gmra.mrb[152].mxu1 %vm509_vm0, %v6687_v22  ;;  %v6678_v31 = vmul.f32 %v12053_v49, %v6566_v17 }
 0xb57   :  { %10585 = vmatprep.mubr.msk.bf16.mxu1 %vm509_vm0, %v6688_v18  ;;  %v6689_v5 = vpack.c.bf16 %v6677_v6, %v6676_v58 }
 0xb58   :  { %v12055_v8 = vpop.eup %12054  ;;  %v6690_v47 = vpack.c.bf16 %v6679_v19, %v6678_v31 }
 0xb59   :  { %v12057_v59 = vpop.eup %12056  ;;  %v6681_v0 = vmul.f32 %v12055_v8, %v6569_v13 }
 0xb5a   :  { %v12059_v53 = vpop.eup %12058  ;;  %v6683_v42 = vmul.f32 %v12057_v59, %v6571_v28 }
 0xb5b   :  { %v12061_v24 = vpop.eup %12060  ;;  %v6680_v52 = vmul.f32 %v12059_v53, %v6568_v63 }
 0xb5c   :  { %v6682_v32 = vmul.f32 %v12061_v24, %v6570_v45 }
 0xb5d   :  { %v6691_v34 = vpack.c.bf16 %v6681_v0, %v6680_v52 }
 0xb5e   :  { %10586 = vmatmul.mubr.msk.bf16.gmra.mrb[156].mxu1 %vm509_vm0, %v6689_v5  ;;  %v12063_v41 = vpop.eup %12062  ;;  %v6692_v16 = vpack.c.bf16 %v6683_v42, %v6682_v32 }
 0xb5f   :  { %10589 = vmatprep.mubr.msk.bf16.mxu1 %vm509_vm0, %v6690_v47  ;;  %v12065_v57 = vpop.eup %12064  ;;  %v6685_v54 = vmul.f32 %v12063_v41, %v6573_v38 }
 0xb60   :  { %v6684_v39 = vmul.f32 %v12065_v57, %v6572_v10 }
 0xb62   :  { %v6693_v55 = vpack.c.bf16 %v6685_v54, %v6684_v39  ;;  %v16410_v54 = vld [vmem:[#allocation26 + $0x1] ss:$0 sm:$0xff]  ;;  %v16412_v39 = vld [vmem:[#allocation20 + $0x5] ss:$0 sm:$0xff] }
 0xb63   :  { %v16417_v20 = vmul.f32 %v16410_v54, %v17769_v2 }
 0xb65   :  { %17770 = vst [vmem:[#allocation62_spill] sm:$0xff] %v16417_v20 }
 0xb66   :  { %10590 = vmatmul.mubr.msk.bf16.gmra.mrb[160].mxu1 %vm509_vm0, %v6691_v34 }
 0xb67   :  { %10593 = vmatprep.mubr.msk.bf16.mxu1 %vm509_vm0, %v6692_v16 }
 0xb6e   :  { %10594 = vmatmul.mubr.msk.bf16.gmra.mrb[164].mxu1 %vm509_vm0, %v6693_v55 }
 0xbe3   :  { %v10487_v44 = vpop.f32.mrb[120].mxu1 }
 0xbe4   :  { %v5500_v21 = vadd.f32 %v10487_v44, %v9445_v51  ;;  %v5491_v15 = vpop.f32.mrb[121].mxu1 }
 0xbe5   :  { %v10488_v4 = vpop.f32.mrb[122].mxu1  ;;  %v5492_v9 = vadd.f32 %v9445_v51, %v5491_v15 }
 0xbe6   :  { %v9755_v48 = vpack.c.bf16 %v5500_v21, %v5500_v21  ;;  %v5503_v7 = vadd.f32 %v10488_v4, %v9445_v51  ;;  %v5494_v3 = vpop.f32.mrb[123].mxu1 }
 0xbe7   :  { %v5495_v40 = vadd.f32 %v9445_v51, %v5494_v3  ;;  %v9753_v22 = vpack.c.bf16 %v5492_v9, %v5492_v9 }
 0xbe8   :  { %v9756_v37 = vpack.c.bf16 %v5503_v7, %v5503_v7  ;;  %8814 = vrot.lane.b32.xlu0 %v9755_v48, %s12966_s28  ;;  %v17771_v48 = vld [vmem:[#allocation50_spill] sm:$0xff]  ;;  %v17773_v7 = vld [vmem:[#allocation47_spill] sm:$0xff] }
 0xbe9   :  { %v9754_v1 = vpack.c.bf16 %v5495_v40, %v5495_v40  ;;  %v16426_v9 = vmul.f32 %v16410_v54, %v17771_v48 }
 0xbea   :  { %8816 = vrot.lane.b32.xlu1 %v9756_v37, %s12966_s28 }
 0xbeb   :  { %17772 = vst [vmem:[#allocation55_spill] sm:$0xff] %v16426_v9 }
 0xbec   :  { %8810 = vrot.lane.b32.xlu0 %v9753_v22, %s12966_s28 }
 0xbee   :  { %8812 = vrot.lane.b32.xlu1 %v9754_v1, %s12966_s28 }
 0xbef   :  { %v10491_v18 = vpop.f32.mrb[124].mxu1 }
 0xbf0   :  { %v5516_v36 = vadd.f32 %v10491_v18, %v9445_v51  ;;  %v5507_v60 = vpop.f32.mrb[125].mxu1  ;;  %v7552_v18 = vsub.f32 0.0, %v16417_v20 }
 0xbf1   :  { %v10492_v23 = vpop.f32.mrb[126].mxu1  ;;  %v5508_v43 = vadd.f32 %v9445_v51, %v5507_v60  ;;  %v17774_v60 = vld [vmem:[#allocation49_spill] sm:$0xff] }
 0xbf2   :  { %v9759_v46 = vpack.c.bf16 %v5516_v36, %v5516_v36  ;;  %v5519_v49 = vadd.f32 %v10492_v23, %v9445_v51  ;;  %v5510_v35 = vpop.f32.mrb[127].mxu1 }
 0xbf3   :  { %v5511_v17 = vadd.f32 %v9445_v51, %v5510_v35  ;;  %v9757_v19 = vpack.c.bf16 %v5508_v43, %v5508_v43 }
 0xbf4   :  { %v9760_v6 = vpack.c.bf16 %v5519_v49, %v5519_v49  ;;  %8822 = vrot.lane.b32.xlu0 %v9759_v46, %s12966_s28  ;;  %v7553_v49 = vsub.f32 0.0, %v16426_v9 }
 0xbf5   :  { %v9758_v50 = vpack.c.bf16 %v5511_v17, %v5511_v17 }
 0xbf6   :  { %8824 = vrot.lane.b32.xlu1 %v9760_v6, %s12966_s28 }
 0xbf8   :  { %8818 = vrot.lane.b32.xlu0 %v9757_v19, %s12966_s28 }
 0xbf9   :  { %v10495_v58 = vpop.f32.mrb[128].mxu1 }
 0xbfa   :  { %v5532_v31 = vadd.f32 %v10495_v58, %v9445_v51  ;;  %v5523_v5 = vpop.f32.mrb[129].mxu1  ;;  %8820 = vrot.lane.b32.xlu1 %v9758_v50, %s12966_s28  ;;  %v7568_v58 = vmul.f32 1.442695, %v7552_v18 }
 0xbfb   :  { %v10496_v8 = vpop.f32.mrb[130].mxu1  ;;  %v5524_v59 = vadd.f32 %v9445_v51, %v5523_v5 }
 0xbfc   :  { %v9763_v47 = vpack.c.bf16 %v5532_v31, %v5532_v31  ;;  %v5535_v13 = vadd.f32 %v10496_v8, %v9445_v51  ;;  %v5526_v53 = vpop.f32.mrb[131].mxu1  ;;  %v16453_v31 = vmul.f32 %v16410_v54, %v17773_v7 }
 0xbfd   :  { %v5527_v24 = vadd.f32 %v9445_v51, %v5526_v53  ;;  %v9761_v63 = vpack.c.bf16 %v5524_v59, %v5524_v59 }
 0xbfe   :  { %v9764_v28 = vpack.c.bf16 %v5535_v13, %v5535_v13  ;;  %8830 = vrot.lane.b32.xlu0 %v9763_v47, %s12966_s28  ;;  %17775 = vst [vmem:[#allocation59_spill] sm:$0xff] %v16453_v31  ;;  %v16459_v13 = vmul.f32 %v16410_v54, %v17774_v60 }
 0xbff   :  { %v9762_v45 = vpack.c.bf16 %v5527_v24, %v5527_v24 }
 0xc00   :  { %8832 = vrot.lane.b32.xlu1 %v9764_v28, %s12966_s28  ;;  %17776 = vst [vmem:[#allocation57_spill] sm:$0xff] %v16459_v13 }
 0xc01   :  { %v10499_v0 = vpop.f32.mrb[132].mxu1 }
 0xc02   :  { %v5548_v42 = vadd.f32 %v10499_v0, %v9445_v51  ;;  %v5539_v52 = vpop.f32.mrb[133].mxu1  ;;  %8826 = vrot.lane.b32.xlu0 %v9761_v63, %s12966_s28  ;;  %v7570_v0 = vmul.f32 1.442695, %v7553_v49 }
 0xc03   :  { %v10500_v32 = vpop.f32.mrb[134].mxu1  ;;  %v5540_v41 = vadd.f32 %v9445_v51, %v5539_v52 }
 0xc04   :  { %v9767_v34 = vpack.c.bf16 %v5548_v42, %v5548_v42  ;;  %v5551_v16 = vadd.f32 %v10500_v32, %v9445_v51  ;;  %v5542_v38 = vpop.f32.mrb[135].mxu1  ;;  %8828 = vrot.lane.b32.xlu1 %v9762_v45, %s12966_s28  ;;  %v17777_v42 = vld [vmem:[#allocation51_spill] sm:$0xff] }
 0xc05   :  { %v5543_v10 = vadd.f32 %v9445_v51, %v5542_v38  ;;  %v9765_v55 = vpack.c.bf16 %v5540_v41, %v5540_v41  ;;  %v16421_v51 = vld [vmem:[#allocation20 + $0x7] ss:$0 sm:$0xff] }
 0xc06   :  { %v9768_v57 = vpack.c.bf16 %v5551_v16, %v5551_v16  ;;  %8838 = vrot.lane.b32.xlu0 %v9767_v34, %s12966_s28  ;;  %v17778_v16 = vld [vmem:[#allocation52_spill] sm:$0xff] }
 0xc07   :  { %v9766_v56 = vpack.c.bf16 %v5543_v10, %v5543_v10  ;;  %v16489_v49 = vmul.f32 %v16410_v54, %v17778_v16 }
 0xc08   :  { %8840 = vrot.lane.b32.xlu1 %v9768_v57, %s12966_s28 }
 0xc09   :  { %v10535_v27 = vpop.f32.mrb[136].mxu1  ;;  %17780 = vst [vmem:[#allocation63_spill] sm:$0xff] %v16489_v49 }
 0xc0a   :  { %v6141_v44 = vadd.f32 %v10535_v27, %v16412_v39  ;;  %v6132_v21 = vpop.f32.mrb[137].mxu1  ;;  %8834 = vrot.lane.b32.xlu0 %v9765_v55, %s12966_s28 }
 0xc0b   :  { %v6133_v15 = vadd.f32 %v16412_v39, %v6132_v21  ;;  %v10536_v4 = vpop.f32.mrb[138].mxu1 }
 0xc0c   :  { %v6197_v3 = vadd.f32 %v6141_v44, %v17773_v7  ;;  %v6144_v37 = vadd.f32 %v10536_v4, %v16412_v39  ;;  %v6135_v40 = vpop.f32.mrb[139].mxu1  ;;  %8836 = vrot.lane.b32.xlu1 %v9766_v56, %s12966_s28  ;;  %v17779_v56 = vld [vmem:[#allocation54_spill] sm:$0xff]  ;;  %v7554_v4 = vsub.f32 0.0, %v16453_v31 }
 0xc0d   :  { %v6195_v22 = vadd.f32 %v6133_v15, %v17769_v2  ;;  %v6136_v1 = vadd.f32 %v16412_v39, %v6135_v40 }
 0xc0e   :  { %v16435_v36 = vmul.f32 %v16421_v51, %v6197_v3  ;;  %v6198_v23 = vadd.f32 %v6144_v37, %v17774_v60 }
 0xc0f   :  { %v16439_v46 = vmul.f32 %v16421_v51, %v6195_v22  ;;  %v6196_v43 = vadd.f32 %v6136_v1, %v17771_v48  ;;  %v7555_v22 = vsub.f32 0.0, %v16459_v13 }
 0xc10   :  { %v6255_v35 = vsub.f32 0.0, %v16435_v36  ;;  %v16445_v6 = vmul.f32 %v16421_v51, %v6198_v23 }
 0xc11   :  { %v6253_v17 = vsub.f32 0.0, %v16439_v46  ;;  %v16449_v19 = vmul.f32 %v16421_v51, %v6196_v43  ;;  %v10539_v50 = vpop.f32.mrb[140].mxu1 }
 0xc12   :  { %v6273_v5 = vmul.f32 1.442695, %v6255_v35  ;;  %v6256_v8 = vsub.f32 0.0, %v16445_v6  ;;  %v6157_v47 = vadd.f32 %v10539_v50, %v16412_v39  ;;  %v6148_v59 = vpop.f32.mrb[141].mxu1 }
 0xc13   :  { %v6269_v53 = vmul.f32 1.442695, %v6253_v17  ;;  %v6254_v28 = vsub.f32 0.0, %v16449_v19  ;;  %v6149_v24 = vadd.f32 %v16412_v39, %v6148_v59  ;;  %v10540_v63 = vpop.f32.mrb[142].mxu1 }
 0xc14   :  { %12066 = vpow2.f32 %v6273_v5  ;;  %v6275_v45 = vmul.f32 1.442695, %v6256_v8  ;;  %v6201_v52 = vadd.f32 %v6157_v47, %v17777_v42  ;;  %v6160_v32 = vadd.f32 %v10540_v63, %v16412_v39  ;;  %v6151_v34 = vpop.f32.mrb[143].mxu1 }
 0xc15   :  { %v6271_v41 = vmul.f32 1.442695, %v6254_v28  ;;  %v6199_v38 = vadd.f32 %v6149_v24, %v17778_v16  ;;  %v6152_v57 = vadd.f32 %v16412_v39, %v6151_v34  ;;  %12068 = vpow2.f32 %v7568_v58 }
 0xc16   :  { %12070 = vpow2.f32 %v6275_v45  ;;  %v16468_v10 = vmul.f32 %v16421_v51, %v6201_v52  ;;  %v6202_v55 = vadd.f32 %v6160_v32, %v13958_v14  ;;  %v16495_v5 = vmul.f32 %v16410_v54, %v17779_v56 }
 0xc17   :  { %12072 = vpow2.f32 %v6271_v41  ;;  %v16472_v27 = vmul.f32 %v16421_v51, %v6199_v38  ;;  %v6200_v44 = vadd.f32 %v6152_v57, %v17779_v56  ;;  %v7572_v32 = vmul.f32 1.442695, %v7554_v4 }
 0xc18   :  { %12074 = vpow2.f32 %v6269_v53  ;;  %v6259_v21 = vsub.f32 0.0, %v16468_v10  ;;  %v16477_v15 = vmul.f32 %v16421_v51, %v6202_v55 }
 0xc19   :  { %v6257_v3 = vsub.f32 0.0, %v16472_v27  ;;  %v16482_v37 = vmul.f32 %v16421_v51, %v6200_v44  ;;  %v10543_v40 = vpop.f32.mrb[144].mxu1  ;;  %12076 = vpow2.f32 %v7570_v0 }
 0xc1a   :  { %v6281_v1 = vmul.f32 1.442695, %v6259_v21  ;;  %v6260_v18 = vsub.f32 0.0, %v16477_v15  ;;  %v6173_v23 = vadd.f32 %v10543_v40, %v16412_v39  ;;  %v6164_v43 = vpop.f32.mrb[145].mxu1  ;;  %v7556_v40 = vsub.f32 0.0, %v16489_v49 }
 0xc1b   :  { %v6277_v35 = vmul.f32 1.442695, %v6257_v3  ;;  %v6258_v17 = vsub.f32 0.0, %v16482_v37  ;;  %v6165_v50 = vadd.f32 %v16412_v39, %v6164_v43  ;;  %v10544_v58 = vpop.f32.mrb[146].mxu1  ;;  %v7574_v3 = vmul.f32 1.442695, %v7555_v22 }
 0xc1c   :  { %12078 = vpow2.f32 %v6281_v1  ;;  %v6283_v8 = vmul.f32 1.442695, %v6260_v18  ;;  %v6205_v47 = vadd.f32 %v6173_v23, %v14001_v30  ;;  %v6176_v59 = vadd.f32 %v10544_v58, %v16412_v39  ;;  %v6167_v53 = vpop.f32.mrb[147].mxu1 }
 0xc1d   :  { %12080 = vpow2.f32 %v6277_v35  ;;  %v6279_v28 = vmul.f32 1.442695, %v6258_v17  ;;  %v6203_v24 = vadd.f32 %v6165_v50, %v17687_v33  ;;  %v6168_v63 = vadd.f32 %v16412_v39, %v6167_v53 }
 0xc1e   :  { %v12067_v0 = vpop.eup %12066  ;;  %12082 = vpow2.f32 %v6283_v8  ;;  %v16502_v45 = vmul.f32 %v16421_v51, %v6205_v47  ;;  %v6206_v52 = vadd.f32 %v6176_v59, %v17688_v29  ;;  %v16520_v8 = vmul.f32 %v16410_v54, %v17777_v42 }
 0xc1f   :  { %v16505_v34 = vpop.eup %12068  ;;  %v6303_v41 = vadd.f32 1.0, %v12067_v0  ;;  %12084 = vpow2.f32 %v6279_v28  ;;  %v16508_v38 = vmul.f32 %v16421_v51, %v6203_v24  ;;  %v6204_v57 = vadd.f32 %v6168_v63, %v17689_v25 }
 0xc20   :  { %v12071_v55 = vpop.eup %12070  ;;  %v6263_v44 = vsub.f32 0.0, %v16502_v45  ;;  %v16513_v21 = vmul.f32 %v16421_v51, %v6206_v52 }
 0xc21   :  { %v12073_v1 = vpop.eup %12072  ;;  %12086 = vrcp.f32 %v6303_v41  ;;  %v6304_v4 = vadd.f32 1.0, %v12071_v55  ;;  %v6261_v18 = vsub.f32 0.0, %v16508_v38  ;;  %v10547_v23 = vpop.f32.mrb[148].mxu1  ;;  %v16526_v53 = vmul.f32 %v16421_v51, %v6204_v57 }
 0xc22   :  { %v12075_v35 = vpop.eup %12074  ;;  %v6302_v17 = vadd.f32 1.0, %v12073_v1  ;;  %v6289_v50 = vmul.f32 1.442695, %v6263_v44  ;;  %v6180_v58 = vpop.f32.mrb[149].mxu1  ;;  %12088 = vpow2.f32 %v7572_v32  ;;  %v6264_v59 = vsub.f32 0.0, %v16513_v21 }
 0xc23   :  { %v16522_v22 = vpop.eup %12076  ;;  %12090 = vrcp.f32 %v6304_v4  ;;  %v6285_v47 = vmul.f32 1.442695, %v6261_v18  ;;  %v10548_v28 = vpop.f32.mrb[150].mxu1  ;;  %v6189_v24 = vadd.f32 %v10547_v23, %v16412_v39  ;;  %v6181_v63 = vadd.f32 %v16412_v39, %v6180_v58  ;;  %v16535_v23 = vld [vmem:[#allocation20 + $0x6] ss:$0 sm:$0xff] }
 0xc24   :  { %12092 = vrcp.f32 %v6302_v17  ;;  %v6192_v0 = vadd.f32 %v10548_v28, %v16412_v39  ;;  %v6183_v52 = vpop.f32.mrb[151].mxu1  ;;  %v6301_v32 = vadd.f32 1.0, %v12075_v35  ;;  %v6291_v41 = vmul.f32 1.442695, %v6264_v59 }
 0xc25   :  { %12094 = vpow2.f32 %v6289_v50  ;;  %v6262_v55 = vsub.f32 0.0, %v16526_v53  ;;  %v6209_v1 = vadd.f32 %v6189_v24, %v17762_v61  ;;  %v6207_v57 = vadd.f32 %v6181_v63, %v17690_v62 }
 0xc26   :  { %v12079_v44 = vpop.eup %12078  ;;  %12096 = vpow2.f32 %v6285_v47  ;;  %v6210_v4 = vadd.f32 %v6192_v0, %v17761_v11  ;;  %v6184_v58 = vadd.f32 %v16412_v39, %v6183_v52  ;;  %v16538_v35 = vmul.f32 1.442695, %v7556_v40 }
 0xc27   :  { %v12081_v18 = vpop.eup %12080  ;;  %v6307_v17 = vadd.f32 1.0, %v12079_v44  ;;  %12098 = vpow2.f32 %v6291_v41  ;;  %v16541_v28 = vmul.f32 %v16421_v51, %v6209_v1  ;;  %v16544_v47 = vmul.f32 %v16421_v51, %v6207_v57 }
 0xc28   :  { %v12083_v50 = vpop.eup %12082  ;;  %v6305_v59 = vadd.f32 1.0, %v12081_v18  ;;  %v16547_v24 = vmul.f32 %v16421_v51, %v6210_v4  ;;  %12100 = vrcp.f32 %v6301_v32  ;;  %v6287_v0 = vmul.f32 1.442695, %v6262_v55 }
 0xc29   :  { %v12085_v63 = vpop.eup %12084  ;;  %v6208_v41 = vadd.f32 %v6184_v58, %v17692_v12  ;;  %v10583_v44 = vpop.f32.mrb[152].mxu1  ;;  %v16552_v39 = vmul.f32 %v16410_v54, %v13958_v14  ;;  %v6239_v40 = vmul.f32 %v16535_v23, %v16435_v36  ;;  %v16558_v52 = vmul.f32 %v16535_v23, %v16439_v46  ;;  %v16564_v58 = vld [vmem:[#allocation23 + $0x2] ss:$0 sm:$0xff] }
 0xc2a   :  { %v6267_v1 = vsub.f32 0.0, %v16541_v28  ;;  %v6789_v57 = vpop.f32.mrb[153].mxu1  ;;  %12102 = vpow2.f32 %v7574_v3  ;;  %v6240_v55 = vmul.f32 %v16535_v23, %v16445_v6  ;;  %v6308_v4 = vadd.f32 1.0, %v12083_v50  ;;  %v16574_v50 = vld [vmem:[#allocation23 + $0x4] ss:$0 sm:$0xff] }
 0xc2b   :  { %v12087_v32 = vpop.eup %12086  ;;  %12104 = vrcp.f32 %v6307_v17  ;;  %v6265_v18 = vsub.f32 0.0, %v16544_v47  ;;  %v10584_v43 = vpop.f32.mrb[154].mxu1  ;;  %v6306_v46 = vadd.f32 1.0, %v12085_v63  ;;  %v6268_v14 = vsub.f32 0.0, %v16547_v24 }
 0xc2c   :  { %v16566_v36 = vpop.eup %12088  ;;  %12106 = vrcp.f32 %v6305_v59  ;;  %v6297_v56 = vmul.f32 1.442695, %v6267_v1  ;;  %v6792_v16 = vpop.f32.mrb[155].mxu1  ;;  %v16569_v42 = vmul.f32 %v12087_v32, %v6239_v40  ;;  %v16572_v17 = vmul.f32 %v16421_v51, %v6208_v41 }
 0xc2d   :  { %v12091_v3 = vpop.eup %12090  ;;  %12108 = vpow2.f32 %v6287_v0  ;;  %v6293_v6 = vmul.f32 1.442695, %v6265_v18  ;;  %v6299_v59 = vmul.f32 1.442695, %v6268_v14  ;;  %v6798_v63 = vadd.f32 %v10583_v44, %v16564_v58 }
 0xc2e   :  { %v12093_v48 = vpop.eup %12092  ;;  %v16576_v60 = vmul.f32 %v12091_v3, %v6240_v55  ;;  %12110 = vpow2.f32 %v6297_v56  ;;  %v6238_v2 = vmul.f32 %v16535_v23, %v16449_v19  ;;  %v16583_v0 = vmul.f32 %v16535_v23, %v16468_v10 }
 0xc2f   :  { %v12095_v1 = vpop.eup %12094  ;;  %12112 = vpow2.f32 %v6293_v6  ;;  %v6266_v51 = vsub.f32 0.0, %v16572_v17  ;;  %v16589_v14 = vmul.f32 %v16574_v50, %v6798_v63  ;;  %v6790_v19 = vadd.f32 %v16564_v58, %v6789_v57 }
 0xc30   :  { %v12097_v41 = vpop.eup %12096  ;;  %v6311_v32 = vadd.f32 1.0, %v12095_v1  ;;  %12114 = vpow2.f32 %v6299_v59  ;;  %v6801_v10 = vadd.f32 %v10584_v43, %v16564_v58  ;;  %v6350_v18 = vmul.f32 %v12093_v48, %v6238_v2 }
 0xc31   :  { %v12099_v56 = vpop.eup %12098  ;;  %12116 = vrcp.f32 %v6308_v4  ;;  %v6295_v44 = vmul.f32 1.442695, %v6266_v51  ;;  %v10587_v55 = vpop.f32.mrb[156].mxu1  ;;  %v16595_v3 = vmul.f32 %v16535_v23, %v16472_v27  ;;  %v6896_v6 = vsub.f32 0.0, %v16589_v14 }
 0xc32   :  { %12118 = vrcp.f32 %v6306_v46  ;;  %v6805_v59 = vpop.f32.mrb[157].mxu1  ;;  %v12101_v1 = vpop.eup %12100  ;;  %v6309_v63 = vadd.f32 1.0, %v12097_v41  ;;  %v16599_v40 = vmul.f32 %v16574_v50, %v6790_v19  ;;  %v16602_v4 = vmul.f32 %v16574_v50, %v6801_v10 }
 0xc33   :  { %v6793_v43 = vadd.f32 %v16564_v58, %v6792_v16  ;;  %v10588_v57 = vpop.f32.mrb[158].mxu1  ;;  %12120 = vrcp.f32 %v6311_v32  ;;  %v6312_v48 = vadd.f32 1.0, %v12099_v56  ;;  %v6914_v27 = vmul.f32 1.442695, %v6896_v6 }
 0xc34   :  { %v16605_v2 = vpop.eup %12102  ;;  %v6814_v46 = vadd.f32 %v10587_v55, %v16564_v58  ;;  %v6808_v51 = vpop.f32.mrb[159].mxu1  ;;  %v16612_v41 = vmul.f32 %v16535_v23, %v16477_v15  ;;  %v6242_v19 = vmul.f32 %v16535_v23, %v16482_v37  ;;  %12122 = vpow2.f32 %v6295_v44 }
 0xc35   :  { %17781 = vst [vmem:[#allocation65_spill] sm:$0xff] %v16605_v2  ;;  %v16608_v7 = vpop.eup %12104  ;;  %v6894_v16 = vsub.f32 0.0, %v16599_v40  ;;  %v6349_v32 = vmul.f32 %v12101_v1, %v16558_v52  ;;  %v16622_v56 = vmul.f32 %v16535_v23, %v16502_v45  ;;  %12124 = vpow2.f32 %v6914_v27 }
 0xc36   :  { %v16617_v10 = vpop.eup %12106  ;;  %v6897_v55 = vsub.f32 0.0, %v16602_v4  ;;  %12126 = vrcp.f32 %v6309_v63  ;;  %v16626_v49 = vmul.f32 %v16574_v50, %v6793_v43  ;;  %v16629_v37 = vmul.f32 %v16574_v50, %v6814_v46 }
 0xc37   :  { %v12109_v6 = vpop.eup %12108  ;;  %v6910_v15 = vmul.f32 1.442695, %v6894_v16  ;;  %12128 = vrcp.f32 %v6312_v48  ;;  %v6806_v52 = vadd.f32 %v16564_v58, %v6805_v59  ;;  %v6365_v1 = vpack.c.bf16 %v6350_v18, %v6349_v32  ;;  %v10831_v16 = vld [vmem:[#allocation25 + $0x28] sm:$0xff]  }
 0xc38   :  { %v12111_v44 = vpop.eup %12110  ;;  %v6310_v31 = vadd.f32 1.0, %v12109_v6  ;;  %v16634_v27 = vmul.f32 %v16535_v23, %v16508_v38  ;;  %v6895_v63 = vsub.f32 0.0, %v16626_v49  ;;  %v6916_v9 = vmul.f32 1.442695, %v6897_v55 }
 0xc39   :  { %v12113_v45 = vpop.eup %12112  ;;  %v6315_v13 = vadd.f32 1.0, %v12111_v44  ;;  %12130 = vpow2.f32 %v6910_v15  ;;  %v10591_v43 = vpop.f32.mrb[160].mxu1  ;;  %v6900_v48 = vsub.f32 0.0, %v16629_v37  ;;  %10557 = vmatprep.mubr.msk.bf16.mxu0 %vm509_vm0, %v6365_v1  ;;  %v16640_v6 = vmul.f32 %v16574_v50, %v6806_v52  ;;  %v10832_v52 = vld [vmem:[#allocation25 + $0x30] sm:$0xff]  }
 0xc3a   :  { %v12115_v20 = vpop.eup %12114  ;;  %12132 = vrcp.f32 %v6310_v31  ;;  %v6313_v46 = vadd.f32 1.0, %v12113_v45  ;;  %v6821_v18 = vpop.f32.mrb[161].mxu1  ;;  %v6912_v38 = vmul.f32 1.442695, %v6895_v63  ;;  %v17782_v15 = vpack.c.bf16 %v16576_v60, %v16569_v42 }
 0xc3b   :  { %v12117_v59 = vpop.eup %12116  ;;  %12134 = vrcp.f32 %v6315_v13  ;;  %v6316_v32 = vadd.f32 1.0, %v12115_v20  ;;  %v10592_v31 = vpop.f32.mrb[162].mxu1  ;;  %v6922_v55 = vmul.f32 1.442695, %v6900_v48  ;;  %v6817_v45 = vadd.f32 %v10588_v57, %v16564_v58 }
 0xc3c   :  { %10558 = vmatmul.mubr.msk.bf16.vlgmr.msra.gmra.mrb[136].mxu0 %vm509_vm0, %v17782_v15  ;;  %v12119_v44 = vpop.eup %12118  ;;  %12136 = vrcp.f32 %v6313_v46  ;;  %v6809_v1 = vadd.f32 %v16564_v58, %v6808_v51  ;;  %v16649_v20 = vpop.f32.mrb[163].mxu1  ;;  %v16653_v13 = vmul.f32 %v16535_v23, %v16513_v21  ;;  %v6246_v60 = vmul.f32 %v16535_v23, %v16526_v53 }
 0xc3d   :  { %10598 = vmatpush3.bf16.msra.mxu0 %v16394_v26  ;;  %12138 = vrcp.f32 %v6316_v32  ;;  %v6898_v42 = vsub.f32 0.0, %v16640_v6  ;;  %v12121_v63 = vpop.eup %12120  ;;  %v16660_v57 = vmul.f32 %v16535_v23, %v16541_v28  ;;  %v16663_v26 = vmul.f32 %v16574_v50, %v6817_v45 }
 0xc3e   :  { %10599 = vmatprep.subr.bf16.mxu0 %v10831_v16  ;;  %12140 = vpow2.f32 %v6916_v9  ;;  %v16666_v21 = vmul.f32 %v16574_v50, %v6809_v1  ;;  %v12123_v51 = vpop.eup %12122  ;;  %v6354_v46 = vmul.f32 %v12119_v44, %v6242_v19  ;;  %v6830_v48 = vadd.f32 %v10591_v43, %v16564_v58  ;;  %v10833_v44 = vld [vmem:[#allocation25 + $0x38] sm:$0xff]  }
 0xc3f   :  { %12142 = vpow2.f32 %v6912_v38  ;;  %v6918_v53 = vmul.f32 1.442695, %v6898_v42  ;;  %v12125_v32 = vpop.eup %12124  ;;  %v16671_v15 = vmul.f32 %v16535_v23, %v16544_v47  ;;  %v6314_v28 = vadd.f32 1.0, %v12123_v51 }
 0xc40   :  { %12144 = vpow2.f32 %v6922_v55  ;;  %v6901_v9 = vsub.f32 0.0, %v16663_v26  ;;  %v12127_v45 = vpop.eup %12126  ;;  %v6353_v1 = vmul.f32 %v16617_v10, %v16595_v3  ;;  %v6356_v19 = vmul.f32 %v12117_v59, %v16612_v41 }
 0xc41   :  { %10600 = vmatpush3.bf16.msra.mxu0 %v10831_v16  ;;  %12146 = vpow2.f32 %v6918_v53  ;;  %v6899_v38 = vsub.f32 0.0, %v16666_v21  ;;  %v10595_v43 = vpop.f32.mrb[164].mxu1  ;;  %v12129_v42 = vpop.eup %12128  ;;  %v16679_v55 = vmul.f32 %v16574_v50, %v6830_v48  ;;  %v6822_v16 = vadd.f32 %v16564_v58, %v6821_v18 }
 0xc42   :  { %10601 = vmatprep.subr.bf16.mxu0 %v10832_v52  ;;  %12148 = vrcp.f32 %v6314_v28  ;;  %v6924_v47 = vmul.f32 1.442695, %v6901_v9  ;;  %v6837_v51 = vpop.f32.mrb[165].mxu1  ;;  %v6944_v11 = vadd.f32 1.0, %v12125_v32  ;;  %v6367_v10 = vpack.c.bf16 %v6354_v46, %v6353_v1 }
 0xc43   :  { %v12131_v61 = vpop.eup %12130  ;;  %v6920_v3 = vmul.f32 1.442695, %v6899_v38  ;;  %v6833_v41 = vadd.f32 %v10592_v31, %v16564_v58  ;;  %v16683_v59 = vpop.f32.mrb[166].mxu1  ;;  %v6355_v2 = vmul.f32 %v16608_v7, %v16583_v0  ;;  %v6904_v48 = vsub.f32 0.0, %v16679_v55  ;;  %v16701_v38 = vld [vmem:[#allocation28] sm:$0xff]  }
 0xc44   :  { %v12133_v53 = vpop.eup %12132  ;;  %v6942_v28 = vadd.f32 1.0, %v12131_v61  ;;  %12150 = vpow2.f32 %v6924_v47  ;;  %v16688_v9 = vpop.f32.mrb[167].mxu1  ;;  %v6252_v32 = vmul.f32 %v16535_v23, %v16547_v24  ;;  %v16693_v31 = vmul.f32 %v16574_v50, %v6822_v16  ;;  %10561 = vmatprep.mubr.msk.bf16.mxu0 %vm509_vm0, %v6367_v10 }
 0xc45   :  { %10602 = vmatpush3.bf16.msra.mxu0 %v10832_v52  ;;  %v12135_v18 = vpop.eup %12134  ;;  %12152 = vpow2.f32 %v6920_v3  ;;  %v16697_v46 = vmul.f32 %v16574_v50, %v6833_v41  ;;  %v6358_v7 = vmul.f32 %v12133_v53, %v6246_v60  ;;  %v6250_v0 = vmul.f32 %v16535_v23, %v16572_v17 }
 0xc46   :  { %10603 = vmatprep.subr.bf16.mxu0 %v10833_v44  ;;  %v12137_v61 = vpop.eup %12136  ;;  %v6930_v52 = vmul.f32 1.442695, %v6904_v48  ;;  %v6368_v1 = vpack.c.bf16 %v6356_v19, %v6355_v2  ;;  %v6359_v47 = vmul.f32 %v12121_v63, %v16622_v56  ;;  %v6357_v16 = vmul.f32 %v12127_v45, %v16634_v27 }
 0xc47   :  { %v12139_v24 = vpop.eup %12138  ;;  %12154 = vrcp.f32 %v6944_v11  ;;  %v6902_v3 = vsub.f32 0.0, %v16693_v31  ;;  %v6360_v41 = vmul.f32 %v12129_v42, %v16653_v13  ;;  %v6905_v60 = vsub.f32 0.0, %v16697_v46 }
 0xc48   :  { %v12141_v10 = vpop.eup %12140  ;;  %12156 = vrcp.f32 %v6942_v28  ;;  %10562 = vmatmul.mubr.msk.bf16.gmra.mrb[140].mxu0 %vm509_vm0, %v6368_v1  ;;  %v6825_v23 = vadd.f32 %v16564_v58, %v16649_v20  ;;  %v6846_v56 = vadd.f32 %v10595_v43, %v16564_v58  ;;  %v6838_v11 = vadd.f32 %v16564_v58, %v6837_v51 }
 0xc49   :  { %v12143_v17 = vpop.eup %12142  ;;  %v6945_v2 = vadd.f32 1.0, %v12141_v10  ;;  %12158 = vpow2.f32 %v6930_v52  ;;  %10604 = vmatpush3.bf16.msra.mxu0 %v10833_v44  ;;  %v6926_v45 = vmul.f32 1.442695, %v6902_v3  ;;  %v6369_v19 = vpack.c.bf16 %v6358_v7, %v6357_v16 }
 0xc4a   :  { %v12145_v27 = vpop.eup %12144  ;;  %v6943_v63 = vadd.f32 1.0, %v12143_v17  ;;  %v16714_v13 = vmul.f32 %v16574_v50, %v6825_v23  ;;  %10645 = vmatprep.subr.bf16.mxu0 %v16701_v38  ;;  %v16718_v53 = vmul.f32 %v16574_v50, %v6846_v56  ;;  %v16721_v43 = vmul.f32 %v16574_v50, %v6838_v11 }
 0xc4b   :  { %v12147_v42 = vpop.eup %12146  ;;  %12160 = vrcp.f32 %v6945_v2  ;;  %v6948_v20 = vadd.f32 1.0, %v12145_v27  ;;  %v6932_v28 = vmul.f32 1.442695, %v6905_v60  ;;  %10565 = vmatprep.mubr.msk.bf16.mxu0 %vm509_vm0, %v6369_v19  ;;  %v16726_v7 = vmul.f32 %v12135_v18, %v16660_v57 }
 0xc4c   :  { %v12149_v51 = vpop.eup %12148  ;;  %12162 = vrcp.f32 %v6943_v63  ;;  %v6946_v44 = vadd.f32 1.0, %v12147_v42  ;;  %v6903_v48 = vsub.f32 0.0, %v16714_v13  ;;  %v6361_v52 = vmul.f32 %v12137_v61, %v16671_v15  ;;  %v16735_v61 = vld [vmem:[#allocation23 + $0x3] ss:$0 sm:$0xff] }
 0xc4d   :  { %12164 = vrcp.f32 %v6948_v20  ;;  %v6908_v1 = vsub.f32 0.0, %v16718_v53  ;;  %v16730_v3 = vmul.f32 %v12139_v24, %v6252_v32  ;;  %v6362_v10 = vmul.f32 %v12149_v51, %v6250_v0 }
 0xc4e   :  { %v12151_v16 = vpop.eup %12150  ;;  %12166 = vrcp.f32 %v6946_v44  ;;  %v6928_v23 = vmul.f32 1.442695, %v6903_v48  ;;  %v6906_v56 = vsub.f32 0.0, %v16721_v43  ;;  %v6849_v57 = vadd.f32 %v16683_v59, %v16564_v58 }
 0xc4f   :  { %v12153_v17 = vpop.eup %12152  ;;  %v6949_v60 = vadd.f32 1.0, %v12151_v16  ;;  %12168 = vpow2.f32 %v6926_v45  ;;  %v6938_v2 = vmul.f32 1.442695, %v6908_v1  ;;  %v6370_v15 = vpack.c.bf16 %v6360_v41, %v6359_v47 }
 0xc50   :  { %v6947_v11 = vadd.f32 1.0, %v12153_v17  ;;  %12170 = vpow2.f32 %v6932_v28  ;;  %v6934_v32 = vmul.f32 1.442695, %v6906_v56  ;;  %v6841_v0 = vadd.f32 %v16564_v58, %v16688_v9 }
 0xc51   :  { %v12155_v18 = vpop.eup %12154  ;;  %12172 = vrcp.f32 %v6949_v60  ;;  %v7600_v24 = vadd.f32 1.0, %v16505_v34  ;;  %v16741_v63 = vmul.f32 %v16574_v50, %v6849_v57  ;;  %10566 = vmatmul.mubr.msk.bf16.gmra.mrb[144].mxu0 %vm509_vm0, %v6370_v15  ;;  %v6371_v45 = vpack.c.bf16 %v6362_v10, %v6361_v52 }
 0xc52   :  { %v12157_v27 = vpop.eup %12156  ;;  %12174 = vrcp.f32 %v6947_v11  ;;  %v6372_v59 = vpack.c.bf16 %v16730_v3, %v16726_v7  ;;  %v16747_v41 = vmul.f32 %v16574_v50, %v6841_v0  ;;  %v7601_v58 = vadd.f32 1.0, %v16522_v22 }
 0xc53   :  { %v12159_v47 = vpop.eup %12158  ;;  %12176 = vpow2.f32 %v6928_v23  ;;  %v16752_v34 = vmul.f32 %v16410_v54, %v17689_v25  ;;  %v6880_v9 = vmul.f32 %v16735_v61, %v16589_v14  ;;  %v6881_v19 = vmul.f32 %v16735_v61, %v16602_v4  ;;  %10569 = vmatprep.mubr.msk.bf16.mxu0 %vm509_vm0, %v6371_v45 }
 0xc54   :  { %12178 = vpow2.f32 %v6938_v2  ;;  %v6909_v42 = vsub.f32 0.0, %v16741_v63  ;;  %v6878_v50 = vmul.f32 %v16735_v61, %v16599_v40  ;;  %v6879_v22 = vmul.f32 %v16735_v61, %v16626_v49 }
 0xc55   :  { %v12161_v20 = vpop.eup %12160  ;;  %v6907_v51 = vsub.f32 0.0, %v16747_v41  ;;  %12180 = vrcp.f32 %v7600_v24  ;;  %v16765_v14 = vmul.f32 %v12155_v18, %v6880_v9  ;;  %v6952_v1 = vadd.f32 1.0, %v12159_v47 }
 0xc56   :  { %v12163_v44 = vpop.eup %12162  ;;  %v16767_v28 = vmul.f32 %v12161_v20, %v6881_v19  ;;  %12182 = vpow2.f32 %v6934_v32  ;;  %v6940_v4 = vmul.f32 1.442695, %v6909_v42  ;;  %v6990_v7 = vmul.f32 %v12157_v27, %v6878_v50 }
 0xc57   :  { %v12165_v48 = vpop.eup %12164  ;;  %v6991_v52 = vmul.f32 %v12163_v44, %v6879_v22  ;;  %v6936_v16 = vmul.f32 1.442695, %v6907_v51  ;;  %v17783_v49 = vsub.f32 0.0, %v16495_v5  ;;  %v7559_v23 = vsub.f32 0.0, %v16552_v39 }
 0xc58   :  { %v12167_v3 = vpop.eup %12166  ;;  %v7007_v40 = vpack.c.bf16 %v16767_v28, %v16765_v14  ;;  %12184 = vpow2.f32 %v6940_v4  ;;  %v16776_v56 = vmul.f32 %v16410_v54, %v17687_v33  ;;  %v7561_v11 = vsub.f32 0.0, %v16752_v34 }
 0xc59   :  { %v7578_v10 = vmul.f32 1.442695, %v17783_v49  ;;  %v12169_v17 = vpop.eup %12168  ;;  %12186 = vpow2.f32 %v6936_v16  ;;  %v7006_v60 = vpack.c.bf16 %v6991_v52, %v6990_v7  ;;  %v6884_v15 = vmul.f32 %v16735_v61, %v16629_v37  ;;  %10570 = vmatmul.mubr.msk.bf16.gmra.mrb[148].mxu0 %vm509_vm0, %v6372_v59  ;;  %v10835_v7 = vld [vmem:[#allocation28 + $0x8] sm:$0xff]  }
 0xc5a   :  { %v8815_v2 = vpop.permute.xlu0 %8814  ;;  %v12171_v57 = vpop.eup %12170  ;;  %v6885_v18 = vmul.f32 %v16735_v61, %v16663_v26  ;;  %v6950_v32 = vadd.f32 1.0, %v12169_v17  ;;  %12188 = vrcp.f32 %v7601_v58  ;;  %v6882_v24 = vmul.f32 %v16735_v61, %v16640_v6 }
 0xc5b   :  { %8860 = vst.msk [vmem:[#allocation30 + $0x14] sm:$0xf] %vm8665_vm2, %v8815_v2  ;;  %v12173_v0 = vpop.eup %12172  ;;  %v6883_v27 = vmul.f32 %v16735_v61, %v16666_v21  ;;  %12190 = vrcp.f32 %v6952_v1  ;;  %v6953_v45 = vadd.f32 1.0, %v12171_v57  ;;  %10605 = vmatprep.mubr.msk.bf16.mxu0 %vm509_vm0, %v7006_v60  ;;  %v16790_v26 = vmul.f32 %v12165_v48, %v6884_v15 }
 0xc5c   :  { %v8817_v37 = vpop.permute.xlu1 %8816  ;;  %v12175_v47 = vpop.eup %12174  ;;  %v16792_v9 = vmul.f32 %v12173_v0, %v6885_v18  ;;  %12192 = vpow2.f32 %v16538_v35  ;;  %v7582_v59 = vmul.f32 1.442695, %v7559_v23  ;;  %v6994_v6 = vmul.f32 %v12167_v3, %v6882_v24 }
 0xc5d   :  { %8861 = vst.msk [vmem:[#allocation30 + $0x1c] sm:$0xf] %vm8665_vm2, %v8817_v37  ;;  %v12177_v58 = vpop.eup %12176  ;;  %v6995_v19 = vmul.f32 %v12175_v47, %v6883_v27  ;;  %12194 = vrcp.f32 %v6953_v45  ;;  %v16798_v42 = vmul.f32 %v16410_v54, %v14001_v30  ;;  %v7586_v51 = vmul.f32 1.442695, %v7561_v11 }
 0xc5e   :  { %v8811_v21 = vpop.permute.xlu0 %8810  ;;  %v12179_v20 = vpop.eup %12178  ;;  %12196 = vrcp.f32 %v6950_v32  ;;  %v6951_v50 = vadd.f32 1.0, %v12177_v58  ;;  %v7009_v22 = vpack.c.bf16 %v16792_v9, %v16790_v26  ;;  %v7558_v4 = vsub.f32 0.0, %v16520_v8 }
 0xc5f   :  { %8858 = vst.msk [vmem:[#allocation30 + $0x4] sm:$0xf] %vm8665_vm2, %v8811_v21  ;;  %v16803_v35 = vpop.eup %12180  ;;  %v6956_v44 = vadd.f32 1.0, %v12179_v20  ;;  %v7008_v14 = vpack.c.bf16 %v6995_v19, %v6994_v6  ;;  %12198 = vpow2.f32 %v7578_v10  ;;  %v7560_v52 = vsub.f32 0.0, %v16776_v56  ;;  %v10837_v19 = vld [vmem:[#allocation28 + $0x18] sm:$0xff]  }
 0xc60   :  { %v8813_v28 = vpop.permute.xlu1 %8812  ;;  %v12183_v48 = vpop.eup %12182  ;;  %12200 = vrcp.f32 %v6951_v50  ;;  %v16810_v16 = vmul.f32 %v16410_v54, %v17688_v29  ;;  %v7562_v49 = vsub.f32 0.0, %v16798_v42  ;;  %v7580_v17 = vmul.f32 1.442695, %v7558_v4 }
 0xc61   :  { %8859 = vst.msk [vmem:[#allocation30 + $0xc] sm:$0xf] %vm8665_vm2, %v8813_v28  ;;  %v6954_v1 = vadd.f32 1.0, %v12183_v48  ;;  %12202 = vpow2.f32 %v7582_v59  ;;  %10606 = vmatmul.mubr.msk.bf16.vlgmr.msra.gmra.mrb[152].mxu0 %vm509_vm0, %v7007_v40  ;;  %v16818_v60 = vmul.f32 %v16410_v54, %v17692_v12  ;;  %v10836_v40 = vld [vmem:[#allocation28 + $0x10] sm:$0xff]   ;;  %v7584_v57 = vmul.f32 1.442695, %v7560_v52 }
 0xc62   :  { %v12185_v3 = vpop.eup %12184  ;;  %12204 = vpow2.f32 %v7586_v51  ;;  %10646 = vmatpush3.bf16.msra.mxu0 %v16701_v38  ;;  %10609 = vmatprep.mubr.msk.bf16.mxu0 %vm509_vm0, %v7008_v14  ;;  %v7563_v18 = vsub.f32 0.0, %v16810_v16  ;;  %v16825_v38 = vmul.f32 %v16410_v54, %v17690_v62  ;;  %v6888_v0 = vmul.f32 %v16735_v61, %v16679_v55  ;;  %v12467_v48 = vld [vmem:[#allocation26 + $0x1] ss:$0 sm:$0xff] }
 0xc63   :  { %v12187_v10 = vpop.eup %12186  ;;  %12206 = vrcp.f32 %v6956_v44  ;;  %v6957_v23 = vadd.f32 1.0, %v12185_v3  ;;  %10647 = vmatprep.subr.bf16.mxu0 %v10835_v7  ;;  %v6889_v24 = vmul.f32 %v16735_v61, %v16697_v46  ;;  %v7588_v45 = vmul.f32 1.442695, %v7562_v49  ;;  %v17784_v46 = vld [vmem:[#allocation65_spill] sm:$0xff] }
 0xc64   :  { %v16820_v2 = vpop.eup %12188  ;;  %12208 = vrcp.f32 %v6954_v1  ;;  %v6955_v11 = vadd.f32 1.0, %v12187_v10  ;;  %v7602_v47 = vadd.f32 1.0, %v16566_v36  ;;  %v7565_v54 = vsub.f32 0.0, %v16818_v60 }
 0xc65   :  { %v12191_v15 = vpop.eup %12190  ;;  %12210 = vrcp.f32 %v6957_v23  ;;  %v7603_v21 = vadd.f32 1.0, %v17784_v46  ;;  %v6886_v50 = vmul.f32 %v16735_v61, %v16693_v31  ;;  %v6887_v36 = vmul.f32 %v16735_v61, %v16714_v13  ;;  %v17785_v31 = vld [vmem:[#allocation60_spill] sm:$0xff] }
 0xc66   :  { %v12193_v32 = vpop.eup %12192  ;;  %12212 = vrcp.f32 %v6955_v11  ;;  %v8823_v27 = vpop.permute.xlu0 %8822  ;;  %10648 = vmatpush3.bf16.msra.mxu0 %v10835_v7  ;;  %v16834_v58 = vmul.f32 %v12191_v15, %v6888_v0  ;;  %v7590_v51 = vmul.f32 1.442695, %v7563_v18  ;;  %v7564_v44 = vsub.f32 0.0, %v16825_v38 }
 0xc67   :  { %v12195_v37 = vpop.eup %12194  ;;  %8864 = vst.msk [vmem:[#allocation30 + $0x34] sm:$0xf] %vm8665_vm2, %v8823_v27  ;;  %12214 = vpow2.f32 %v7580_v17  ;;  %10649 = vmatprep.subr.bf16.mxu0 %v10836_v40  ;;  %v16849_v7 = vmul.f32 %v12467_v48, %v17785_v31  ;;  %v7594_v3 = vmul.f32 1.442695, %v7565_v54  ;;  %v6893_v15 = vmul.f32 %v16735_v61, %v16741_v63 }
 0xc68   :  { %v12197_v59 = vpop.eup %12196  ;;  %v7001_v6 = vmul.f32 %v12195_v37, %v6889_v24  ;;  %v8825_v55 = vpop.permute.xlu1 %8824  ;;  %12216 = vpow2.f32 %v7584_v57  ;;  %v7592_v11 = vmul.f32 1.442695, %v7564_v44  ;;  %v7604_v18 = vadd.f32 1.0, %v12193_v32 }
 0xc69   :  { %v12199_v20 = vpop.eup %12198  ;;  %8865 = vst.msk [vmem:[#allocation30 + $0x3c] sm:$0xf] %vm8665_vm2, %v8825_v55  ;;  %10610 = vmatmul.mubr.msk.bf16.gmra.mrb[156].mxu0 %vm509_vm0, %v7009_v22  ;;  %12218 = vpow2.f32 %v7588_v45  ;;  %v6998_v52 = vmul.f32 %v12197_v59, %v6886_v50  ;;  %v17786_v22 = vld [vmem:[#allocation58_spill] sm:$0xff]  ;;  %v7567_v0 = vsub.f32 0.0, %v16849_v7  ;;  %v6890_v27 = vmul.f32 %v16735_v61, %v16721_v43 }
 0xc6a   :  { %v12201_v14 = vpop.eup %12200  ;;  %v7011_v28 = vpack.c.bf16 %v7001_v6, %v16834_v58  ;;  %v8819_v4 = vpop.permute.xlu0 %8818  ;;  %10650 = vmatpush3.bf16.msra.mxu0 %v10836_v40  ;;  %12220 = vrcp.f32 %v7602_v47  ;;  %v7605_v9 = vadd.f32 1.0, %v12199_v20  ;;  %v16853_v10 = vmul.f32 %v12467_v48, %v17786_v22 }
 0xc6b   :  { %v12203_v13 = vpop.eup %12202  ;;  %v6999_v1 = vmul.f32 %v12201_v14, %v6887_v36  ;;  %8862 = vst.msk [vmem:[#allocation30 + $0x24] sm:$0xf] %vm8665_vm2, %v8819_v4  ;;  %10651 = vmatprep.subr.bf16.mxu0 %v10837_v19  ;;  %12222 = vrcp.f32 %v7603_v21  ;;  %v6892_v40 = vmul.f32 %v16735_v61, %v16718_v53  ;;  %v6891_v45 = vmul.f32 %v16735_v61, %v16747_v41  ;;  %v16869_v41 = vld [vmem:[#allocation26] ss:$0 sm:$0xff]  ;;  %v17787_v21 = vld [vmem:[#allocation55_spill] sm:$0xff] }
 0xc6c   :  { %v12205_v49 = vpop.eup %12204  ;;  %v8821_v26 = vpop.permute.xlu1 %8820  ;;  %12224 = vpow2.f32 %v7590_v51  ;;  %v7566_v63 = vsub.f32 0.0, %v16853_v10  ;;  %v7607_v43 = vadd.f32 1.0, %v12203_v13  ;;  %v7537_v20 = vmul.f32 %v16869_v41, %v17787_v21 }
 0xc6d   :  { %v12207_v23 = vpop.eup %12206  ;;  %v7010_v17 = vpack.c.bf16 %v6999_v1, %v6998_v52  ;;  %8863 = vst.msk [vmem:[#allocation30 + $0x2c] sm:$0xf] %vm8665_vm2, %v8821_v26  ;;  %12226 = vpow2.f32 %v7594_v3  ;;  %v7609_v50 = vadd.f32 1.0, %v12205_v49 }
 0xc6e   :  { %v12209_v57 = vpop.eup %12208  ;;  %10652 = vmatpush3.bf16.msra.mxu0 %v10837_v19  ;;  %v7004_v47 = vmul.f32 %v12207_v23, %v6892_v40  ;;  %12228 = vrcp.f32 %v7605_v9  ;;  %v7598_v19 = vmul.f32 1.442695, %v7567_v0  ;;  %v7596_v44 = vmul.f32 1.442695, %v7566_v63 }
 0xc6f   :  { %v12211_v24 = vpop.eup %12210  ;;  %10613 = vmatprep.mubr.msk.bf16.mxu0 %vm509_vm0, %v7010_v17  ;;  %v7002_v59 = vmul.f32 %v12209_v57, %v6890_v27  ;;  %12230 = vpow2.f32 %v7592_v11  ;;  %v7649_v48 = vmul.f32 %v16820_v2, %v7537_v20  ;;  %v17789_v11 = vld [vmem:[#allocation57_spill] sm:$0xff]  ;;  %v7543_v20 = vmul.f32 %v16869_v41, %v16552_v39 }
 0xc70   :  { %v12213_v37 = vpop.eup %12212  ;;  %v7005_v53 = vmul.f32 %v12211_v24, %v6893_v15  ;;  %v8831_v54 = vpop.permute.xlu0 %8830  ;;  %12232 = vrcp.f32 %v7604_v18  ;;  %v7539_v57 = vmul.f32 %v16869_v41, %v17789_v11  ;;  %v17790_v24 = vld [vmem:[#allocation59_spill] sm:$0xff] }
 0xc71   :  { %v12215_v32 = vpop.eup %12214  ;;  %v7003_v58 = vmul.f32 %v12213_v37, %v6891_v45  ;;  %8868 = vst.msk [vmem:[#allocation30 + $0x54] sm:$0xf] %vm8665_vm2, %v8831_v54  ;;  %10614 = vmatmul.mubr.msk.bf16.gmra.mrb[160].mxu0 %vm509_vm0, %v7011_v28  ;;  %v17788_v28 = vld [vmem:[#allocation62_spill] sm:$0xff]  ;;  %12234 = vrcp.f32 %v7607_v43  ;;  %v7538_v27 = vmul.f32 %v16869_v41, %v17790_v24 }
 0xc72   :  { %v12217_v6 = vpop.eup %12216  ;;  %v7013_v61 = vpack.c.bf16 %v7005_v53, %v7004_v47  ;;  %v8833_v55 = vpop.permute.xlu1 %8832  ;;  %v7536_v4 = vmul.f32 %v16869_v41, %v17788_v28  ;;  %v7606_v13 = vadd.f32 1.0, %v12215_v32  ;;  %12236 = vpow2.f32 %v7598_v19  ;;  %v17791_v53 = vld [vmem:[#allocation63_spill] sm:$0xff] }
 0xc73   :  { %v7012_v46 = vpack.c.bf16 %v7003_v58, %v7002_v59  ;;  %8869 = vst.msk [vmem:[#allocation30 + $0x5c] sm:$0xf] %vm8665_vm2, %v8833_v55  ;;  %v12219_v36 = vpop.eup %12218  ;;  %v7608_v3 = vadd.f32 1.0, %v12217_v6  ;;  %12238 = vrcp.f32 %v7609_v50  ;;  %v7540_v54 = vmul.f32 %v16869_v41, %v17791_v53 }
 0xc74   :  { %v8827_v51 = vpop.permute.xlu0 %8826  ;;  %v12221_v14 = vpop.eup %12220  ;;  %v7648_v26 = vmul.f32 %v16803_v35, %v7536_v4  ;;  %12240 = vpow2.f32 %v7596_v44  ;;  %v7541_v35 = vmul.f32 %v16869_v41, %v16495_v5  ;;  %v7610_v32 = vadd.f32 1.0, %v12219_v36 }
 0xc75   :  { %10617 = vmatprep.mubr.msk.bf16.mxu0 %vm509_vm0, %v7012_v46  ;;  %8866 = vst.msk [vmem:[#allocation30 + $0x44] sm:$0xf] %vm8665_vm2, %v8827_v51  ;;  %v12223_v52 = vpop.eup %12222  ;;  %12242 = vrcp.f32 %v7606_v13  ;;  %v7650_v59 = vmul.f32 %v12221_v14, %v7538_v27  ;;  %v7545_v36 = vmul.f32 %v16869_v41, %v16752_v34  ;;  %v7542_v14 = vmul.f32 %v16869_v41, %v16520_v8  ;;  %v10838_v27 = vld [vmem:[#allocation25 + $0x40] sm:$0xff]  }
 0xc76   :  { %v8829_v1 = vpop.permute.xlu1 %8828  ;;  %v12225_v49 = vpop.eup %12224  ;;  %v7664_v17 = vpack.c.bf16 %v7649_v48, %v7648_v26  ;;  %12244 = vrcp.f32 %v7608_v3  ;;  %v7651_v45 = vmul.f32 %v12223_v52, %v7539_v57  ;;  %v7544_v4 = vmul.f32 %v16869_v41, %v16776_v56  ;;  %10621 = vmatprep.subr.bf16.mxu1 %v10838_v27 }
 0xc77   :  { %8867 = vst.msk [vmem:[#allocation30 + $0x4c] sm:$0xf] %vm8665_vm2, %v8829_v1  ;;  %v12227_v23 = vpop.eup %12226  ;;  %v7611_v18 = vadd.f32 1.0, %v12225_v49  ;;  %v7547_v34 = vmul.f32 %v16869_v41, %v16810_v16  ;;  %v7549_v56 = vmul.f32 %v16869_v41, %v16818_v60  ;;  %10622 = vmatpush3.bf16.msra.mxu1 %v10838_v27 }
 0xc78   :  { %v8839_v9 = vpop.permute.xlu0 %8838  ;;  %v12229_v2 = vpop.eup %12228  ;;  %v7613_v47 = vadd.f32 1.0, %v12227_v23  ;;  %v7665_v55 = vpack.c.bf16 %v7651_v45, %v7650_v59  ;;  %v7546_v23 = vmul.f32 %v16869_v41, %v16798_v42  ;;  %v7550_v42 = vmul.f32 %v16869_v41, %v16853_v10  ;;  %v10839_v45 = vld [vmem:[#allocation25 + $0x48] sm:$0xff]  }
 0xc79   :  { %8872 = vst.msk [vmem:[#allocation30 + $0x74] sm:$0xf] %vm8665_vm2, %v8839_v9  ;;  %10618 = vmatmul.mubr.msk.bf16.gmra.mrb[164].mxu0 %vm509_vm0, %v7013_v61  ;;  %v12231_v15 = vpop.eup %12230  ;;  %v7653_v63 = vmul.f32 %v12229_v2, %v7541_v35  ;;  %12246 = vrcp.f32 %v7611_v18  ;;  %v7548_v2 = vmul.f32 %v16869_v41, %v16825_v38  ;;  %v7551_v18 = vmul.f32 %v16869_v41, %v16849_v7  ;;  %v10841_v7 = vld [vmem:[#allocation25 + $0x58] sm:$0xff]   ;;  %v9490_v10 = vld [vmem:[#allocation20 + $0x8] ss:$0 sm:$0xff] }
 0xc7a   :  { %v8841_v40 = vpop.permute.xlu1 %8840  ;;  %10653 = vmatprep.mubr.msk.bf16.mxu0 %vm509_vm0, %v7664_v17  ;;  %v12233_v0 = vpop.eup %12232  ;;  %v7612_v5 = vadd.f32 1.0, %v12231_v15  ;;  %12248 = vrcp.f32 %v7613_v47  ;;  %10623 = vmatprep.subr.bf16.mxu1 %v10839_v45  ;;  %v16922_v47 = vld [vmem:[#allocation28 + $0x20] sm:$0xff]  }
 0xc7b   :  { %8873 = vst.msk [vmem:[#allocation30 + $0x7c] sm:$0xf] %vm8665_vm2, %v8841_v40  ;;  %v12235_v43 = vpop.eup %12234  ;;  %v7652_v6 = vmul.f32 %v12233_v0, %v7540_v54  ;;  %12250 = vrcp.f32 %v7610_v32  ;;  %10624 = vmatpush3.bf16.msra.mxu1 %v10839_v45 }
 0xc7c   :  { %v8835_v37 = vpop.permute.xlu0 %8834  ;;  %v12237_v61 = vpop.eup %12236  ;;  %12252 = vrcp.f32 %v7612_v5  ;;  %v7655_v28 = vmul.f32 %v12235_v43, %v7543_v20 }
 0xc7d   :  { %8870 = vst.msk [vmem:[#allocation30 + $0x64] sm:$0xf] %vm8665_vm2, %v8835_v37  ;;  %v12239_v19 = vpop.eup %12238  ;;  %v7666_v46 = vpack.c.bf16 %v7653_v63, %v7652_v6  ;;  %v7615_v51 = vadd.f32 1.0, %v12237_v61  ;;  %v10840_v37 = vld [vmem:[#allocation25 + $0x50] sm:$0xff]  }
 0xc7e   :  { %v8837_v58 = vpop.permute.xlu1 %8836  ;;  %v12241_v21 = vpop.eup %12240  ;;  %v7657_v48 = vmul.f32 %v12239_v19, %v7545_v36  ;;  %10625 = vmatprep.subr.bf16.mxu1 %v10840_v37 }
 0xc7f   :  { %8871 = vst.msk [vmem:[#allocation30 + $0x6c] sm:$0xf] %vm8665_vm2, %v8837_v58  ;;  %v12243_v50 = vpop.eup %12242  ;;  %v7614_v13 = vadd.f32 1.0, %v12241_v21  ;;  %12254 = vrcp.f32 %v7615_v51  ;;  %10626 = vmatpush3.bf16.msra.mxu1 %v10840_v37  ;;  %v16944_v37 = vld [vmem:[#allocation23 + $0x7] ss:$0 sm:$0xff] }
 0xc80   :  { %v12245_v44 = vpop.eup %12244  ;;  %v7654_v52 = vmul.f32 %v12243_v50, %v7542_v14  ;;  %10627 = vmatprep.subr.bf16.mxu1 %v10841_v7 }
 0xc81   :  { %10654 = vmatmul.mubr.msk.bf16.vlgmr.msra.gmra.mrb[168].mxu0 %vm509_vm0, %v7665_v55  ;;  %v7656_v39 = vmul.f32 %v12245_v44, %v7544_v4  ;;  %12256 = vrcp.f32 %v7614_v13 }
 0xc82   :  { %10657 = vmatprep.mubr.msk.bf16.mxu0 %vm509_vm0, %v7666_v46  ;;  %v7667_v1 = vpack.c.bf16 %v7655_v28, %v7654_v52 }
 0xc83   :  { %v12247_v3 = vpop.eup %12246  ;;  %v7668_v49 = vpack.c.bf16 %v7657_v48, %v7656_v39  ;;  %10628 = vmatpush3.bf16.msra.mxu1 %v10841_v7 }
 0xc84   :  { %v12249_v26 = vpop.eup %12248  ;;  %v7659_v17 = vmul.f32 %v12247_v3, %v7547_v34  ;;  %10669 = vmatprep.subr.bf16.mxu1 %v16922_v47 }
 0xc85   :  { %v12251_v8 = vpop.eup %12250  ;;  %v7661_v11 = vmul.f32 %v12249_v26, %v7549_v56 }
 0xc86   :  { %v12253_v9 = vpop.eup %12252  ;;  %v7658_v57 = vmul.f32 %v12251_v8, %v7546_v23 }
 0xc87   :  { %v7660_v40 = vmul.f32 %v12253_v9, %v7548_v2 }
 0xc88   :  { %v7669_v15 = vpack.c.bf16 %v7659_v17, %v7658_v57 }
 0xc89   :  { %10658 = vmatmul.mubr.msk.bf16.gmra.mrb[172].mxu0 %vm509_vm0, %v7667_v1  ;;  %v12255_v35 = vpop.eup %12254  ;;  %v7670_v16 = vpack.c.bf16 %v7661_v11, %v7660_v40 }
 0xc8a   :  { %10661 = vmatprep.mubr.msk.bf16.mxu0 %vm509_vm0, %v7668_v49  ;;  %v7663_v0 = vmul.f32 %v12255_v35, %v7551_v18 }
 0xc8b   :  { %v12257_v60 = vpop.eup %12256 }
 0xc8c   :  { %v7662_v24 = vmul.f32 %v12257_v60, %v7550_v42 }
 0xc8e   :  { %v7671_v38 = vpack.c.bf16 %v7663_v0, %v7662_v24  ;;  %v16939_v24 = vld [vmem:[#allocation23 + $0x5] ss:$0 sm:$0xff] }
 0xc91   :  { %10662 = vmatmul.mubr.msk.bf16.gmra.mrb[176].mxu0 %vm509_vm0, %v7669_v15 }
 0xc92   :  { %10665 = vmatprep.mubr.msk.bf16.mxu0 %vm509_vm0, %v7670_v16 }
 0xc99   :  { %10666 = vmatmul.mubr.msk.bf16.gmra.mrb[180].mxu0 %vm509_vm0, %v7671_v38 }
 0xd0f   :  { %v10559_v41 = vpop.f32.mrb[136].mxu0 }
 0xd10   :  { %v6478_v53 = vadd.f32 %v10559_v41, %v9490_v10  ;;  %v6469_v54 = vpop.f32.mrb[137].mxu0  ;;  %v17792_v41 = vld [vmem:[#allocation47_spill] sm:$0xff] }
 0xd11   :  { %v6470_v63 = vadd.f32 %v9490_v10, %v6469_v54  ;;  %v10560_v32 = vpop.f32.mrb[138].mxu0 }
 0xd12   :  { %v9771_v59 = vpack.c.bf16 %v6478_v53, %v6478_v53  ;;  %v6481_v58 = vadd.f32 %v10560_v32, %v9490_v10  ;;  %v6472_v5 = vpop.f32.mrb[139].mxu0  ;;  %v17793_v32 = vld [vmem:[#allocation48_spill] sm:$0xff] }
 0xd13   :  { %v9769_v43 = vpack.c.bf16 %v6470_v63, %v6470_v63  ;;  %v6473_v6 = vadd.f32 %v9490_v10, %v6472_v5 }
 0xd14   :  { %8940 = vst.msk [vmem:[#allocation32 + $0x8] sm:$0xf] %vm8552_vm1, %v9771_v59  ;;  %v9772_v61 = vpack.c.bf16 %v6481_v58, %v6481_v58 }
 0xd15   :  { %8938 = vst.msk [vmem:[#allocation32] sm:$0xf] %vm8552_vm1, %v9769_v43  ;;  %v9770_v55 = vpack.c.bf16 %v6473_v6, %v6473_v6  ;;  %v17794_v43 = vld [vmem:[#allocation49_spill] sm:$0xff] }
 0xd16   :  { %8941 = vst.msk [vmem:[#allocation32 + $0xc] sm:$0xf] %vm8552_vm1, %v9772_v61 }
 0xd17   :  { %8939 = vst.msk [vmem:[#allocation32 + $0x4] sm:$0xf] %vm8552_vm1, %v9770_v55  ;;  %v17795_v55 = vld [vmem:[#allocation50_spill] sm:$0xff] }
 0xd1b   :  { %v10563_v19 = vpop.f32.mrb[140].mxu0 }
 0xd1c   :  { %v6494_v46 = vadd.f32 %v10563_v19, %v9490_v10  ;;  %v6485_v21 = vpop.f32.mrb[141].mxu0 }
 0xd1d   :  { %v6486_v20 = vadd.f32 %v9490_v10, %v6485_v21  ;;  %v10564_v50 = vpop.f32.mrb[142].mxu0 }
 0xd1e   :  { %v9775_v36 = vpack.c.bf16 %v6494_v46, %v6494_v46  ;;  %v6497_v51 = vadd.f32 %v10564_v50, %v9490_v10  ;;  %v6488_v44 = vpop.f32.mrb[143].mxu0 }
 0xd1f   :  { %v9773_v14 = vpack.c.bf16 %v6486_v20, %v6486_v20  ;;  %v6489_v28 = vadd.f32 %v9490_v10, %v6488_v44 }
 0xd20   :  { %8944 = vst.msk [vmem:[#allocation32 + $0x18] sm:$0xf] %vm8552_vm1, %v9775_v36  ;;  %v9776_v4 = vpack.c.bf16 %v6497_v51, %v6497_v51 }
 0xd21   :  { %8942 = vst.msk [vmem:[#allocation32 + $0x10] sm:$0xf] %vm8552_vm1, %v9773_v14  ;;  %v9774_v48 = vpack.c.bf16 %v6489_v28, %v6489_v28 }
 0xd22   :  { %8945 = vst.msk [vmem:[#allocation32 + $0x1c] sm:$0xf] %vm8552_vm1, %v9776_v4 }
 0xd23   :  { %8943 = vst.msk [vmem:[#allocation32 + $0x14] sm:$0xf] %vm8552_vm1, %v9774_v48 }
 0xd24   :  { %v10567_v13 = vpop.f32.mrb[144].mxu0 }
 0xd25   :  { %v6510_v52 = vadd.f32 %v10567_v13, %v9490_v10  ;;  %v6501_v39 = vpop.f32.mrb[145].mxu0 }
 0xd26   :  { %v6502_v1 = vadd.f32 %v9490_v10, %v6501_v39  ;;  %v10568_v3 = vpop.f32.mrb[146].mxu0 }
 0xd27   :  { %v9779_v49 = vpack.c.bf16 %v6510_v52, %v6510_v52  ;;  %v6513_v26 = vadd.f32 %v10568_v3, %v9490_v10  ;;  %v6504_v34 = vpop.f32.mrb[147].mxu0 }
 0xd28   :  { %v9777_v8 = vpack.c.bf16 %v6502_v1, %v6502_v1  ;;  %v6505_v56 = vadd.f32 %v9490_v10, %v6504_v34  ;;  %v17796_v1 = vld [vmem:[#allocation51_spill] sm:$0xff] }
 0xd29   :  { %8948 = vst.msk [vmem:[#allocation32 + $0x28] sm:$0xf] %vm8552_vm1, %v9779_v49  ;;  %v9780_v9 = vpack.c.bf16 %v6513_v26, %v6513_v26 }
 0xd2a   :  { %8946 = vst.msk [vmem:[#allocation32 + $0x20] sm:$0xf] %vm8552_vm1, %v9777_v8  ;;  %v9778_v23 = vpack.c.bf16 %v6505_v56, %v6505_v56  ;;  %v17797_v8 = vld [vmem:[#allocation52_spill] sm:$0xff] }
 0xd2b   :  { %8949 = vst.msk [vmem:[#allocation32 + $0x2c] sm:$0xf] %vm8552_vm1, %v9780_v9 }
 0xd2c   :  { %8947 = vst.msk [vmem:[#allocation32 + $0x24] sm:$0xf] %vm8552_vm1, %v9778_v23  ;;  %v10571_v17 = vpop.f32.mrb[148].mxu0 }
 0xd2d   :  { %v6526_v2 = vadd.f32 %v10571_v17, %v9490_v10  ;;  %v6517_v11 = vpop.f32.mrb[149].mxu0  ;;  %v17798_v17 = vld [vmem:[#allocation53_spill] sm:$0xff] }
 0xd2e   :  { %v6518_v57 = vadd.f32 %v9490_v10, %v6517_v11  ;;  %v10572_v40 = vpop.f32.mrb[150].mxu0 }
 0xd2f   :  { %v9783_v15 = vpack.c.bf16 %v6526_v2, %v6526_v2  ;;  %v6529_v35 = vadd.f32 %v10572_v40, %v9490_v10  ;;  %v6520_v16 = vpop.f32.mrb[151].mxu0 }
 0xd30   :  { %v9781_v18 = vpack.c.bf16 %v6518_v57, %v6518_v57  ;;  %v6521_v60 = vadd.f32 %v9490_v10, %v6520_v16  ;;  %v17799_v57 = vld [vmem:[#allocation54_spill] sm:$0xff] }
 0xd31   :  { %8952 = vst.msk [vmem:[#allocation32 + $0x38] sm:$0xf] %vm8552_vm1, %v9783_v15  ;;  %v9784_v42 = vpack.c.bf16 %v6529_v35, %v6529_v35 }
 0xd32   :  { %8950 = vst.msk [vmem:[#allocation32 + $0x30] sm:$0xf] %vm8552_vm1, %v9781_v18  ;;  %v9782_v0 = vpack.c.bf16 %v6521_v60, %v6521_v60 }
 0xd33   :  { %8953 = vst.msk [vmem:[#allocation32 + $0x3c] sm:$0xf] %vm8552_vm1, %v9784_v42 }
 0xd34   :  { %8951 = vst.msk [vmem:[#allocation32 + $0x34] sm:$0xf] %vm8552_vm1, %v9782_v0  ;;  %v10607_v38 = vpop.f32.mrb[152].mxu0 }
 0xd35   :  { %v7119_v27 = vadd.f32 %v10607_v38, %v16939_v24  ;;  %v7110_v45 = vpop.f32.mrb[153].mxu0 }
 0xd36   :  { %v7111_v7 = vadd.f32 %v16939_v24, %v7110_v45  ;;  %v10608_v10 = vpop.f32.mrb[154].mxu0 }
 0xd37   :  { %v7175_v53 = vadd.f32 %v7119_v27, %v17792_v41  ;;  %v7122_v54 = vadd.f32 %v10608_v10, %v16939_v24  ;;  %v7113_v63 = vpop.f32.mrb[155].mxu0 }
 0xd38   :  { %v7173_v59 = vadd.f32 %v7111_v7, %v17793_v32  ;;  %v7114_v58 = vadd.f32 %v16939_v24, %v7113_v63 }
 0xd39   :  { %v16952_v5 = vmul.f32 %v16944_v37, %v7175_v53  ;;  %v7176_v6 = vadd.f32 %v7122_v54, %v17794_v43 }
 0xd3a   :  { %v16956_v61 = vmul.f32 %v16944_v37, %v7173_v59  ;;  %v7174_v19 = vadd.f32 %v7114_v58, %v17795_v55 }
 0xd3b   :  { %v7233_v46 = vsub.f32 0.0, %v16952_v5  ;;  %v16961_v21 = vmul.f32 %v16944_v37, %v7176_v6 }
 0xd3c   :  { %v7231_v20 = vsub.f32 0.0, %v16956_v61  ;;  %v16965_v50 = vmul.f32 %v16944_v37, %v7174_v19  ;;  %v10611_v36 = vpop.f32.mrb[156].mxu0 }
 0xd3d   :  { %v7251_v51 = vmul.f32 1.442695, %v7233_v46  ;;  %v7234_v44 = vsub.f32 0.0, %v16961_v21  ;;  %v7135_v14 = vadd.f32 %v10611_v36, %v16939_v24  ;;  %v7126_v28 = vpop.f32.mrb[157].mxu0 }
 0xd3e   :  { %v7247_v4 = vmul.f32 1.442695, %v7231_v20  ;;  %v7232_v48 = vsub.f32 0.0, %v16965_v50  ;;  %v7127_v13 = vadd.f32 %v16939_v24, %v7126_v28  ;;  %v10612_v52 = vpop.f32.mrb[158].mxu0 }
 0xd3f   :  { %12258 = vpow2.f32 %v7251_v51  ;;  %v7253_v39 = vmul.f32 1.442695, %v7234_v44  ;;  %v7179_v3 = vadd.f32 %v7135_v14, %v17796_v1  ;;  %v7138_v49 = vadd.f32 %v10612_v52, %v16939_v24  ;;  %v7129_v26 = vpop.f32.mrb[159].mxu0 }
 0xd40   :  { %v7249_v34 = vmul.f32 1.442695, %v7232_v48  ;;  %v7177_v56 = vadd.f32 %v7127_v13, %v17797_v8  ;;  %v7130_v9 = vadd.f32 %v16939_v24, %v7129_v26 }
 0xd41   :  { %12260 = vpow2.f32 %v7253_v39  ;;  %v16976_v23 = vmul.f32 %v16944_v37, %v7179_v3  ;;  %v7180_v2 = vadd.f32 %v7138_v49, %v17798_v17 }
 0xd42   :  { %12262 = vpow2.f32 %v7249_v34  ;;  %v16980_v11 = vmul.f32 %v16944_v37, %v7177_v56  ;;  %v7178_v40 = vadd.f32 %v7130_v9, %v17799_v57 }
 0xd43   :  { %12264 = vpow2.f32 %v7247_v4  ;;  %v7237_v15 = vsub.f32 0.0, %v16976_v23  ;;  %v16985_v35 = vmul.f32 %v16944_v37, %v7180_v2 }
 0xd44   :  { %v7235_v16 = vsub.f32 0.0, %v16980_v11  ;;  %v16989_v18 = vmul.f32 %v16944_v37, %v7178_v40  ;;  %v10615_v60 = vpop.f32.mrb[160].mxu0 }
 0xd45   :  { %v7259_v42 = vmul.f32 1.442695, %v7237_v15  ;;  %v7238_v0 = vsub.f32 0.0, %v16985_v35  ;;  %v7151_v38 = vadd.f32 %v10615_v60, %v16939_v24  ;;  %v7142_v27 = vpop.f32.mrb[161].mxu0 }
 0xd46   :  { %v7255_v45 = vmul.f32 1.442695, %v7235_v16  ;;  %v7236_v7 = vsub.f32 0.0, %v16989_v18  ;;  %v7143_v10 = vadd.f32 %v16939_v24, %v7142_v27  ;;  %v10616_v53 = vpop.f32.mrb[162].mxu0 }
 0xd47   :  { %12266 = vpow2.f32 %v7259_v42  ;;  %v7261_v54 = vmul.f32 1.442695, %v7238_v0  ;;  %v7183_v63 = vadd.f32 %v7151_v38, %v14001_v30  ;;  %v7154_v59 = vadd.f32 %v10616_v53, %v16939_v24  ;;  %v7145_v58 = vpop.f32.mrb[163].mxu0 }
 0xd48   :  { %12268 = vpow2.f32 %v7255_v45  ;;  %v7257_v6 = vmul.f32 1.442695, %v7236_v7  ;;  %v7181_v19 = vadd.f32 %v7143_v10, %v17687_v33  ;;  %v7146_v46 = vadd.f32 %v16939_v24, %v7145_v58  ;;  %v17023_v58 = vld [vmem:[#allocation23 + $0x6] ss:$0 sm:$0xff] }
 0xd49   :  { %v12259_v20 = vpop.eup %12258  ;;  %12270 = vpow2.f32 %v7261_v54  ;;  %v17000_v36 = vmul.f32 %v16944_v37, %v7183_v63  ;;  %v7184_v51 = vadd.f32 %v7154_v59, %v17688_v29 }
 0xd4a   :  { %v7281_v44 = vadd.f32 1.0, %v12259_v20  ;;  %12272 = vpow2.f32 %v7257_v6  ;;  %v17004_v14 = vmul.f32 %v16944_v37, %v7181_v19  ;;  %v7182_v28 = vadd.f32 %v7146_v46, %v17689_v25 }
 0xd4b   :  { %v12261_v4 = vpop.eup %12260  ;;  %v7241_v48 = vsub.f32 0.0, %v17000_v36  ;;  %v17009_v13 = vmul.f32 %v16944_v37, %v7184_v51 }
 0xd4c   :  { %v12263_v52 = vpop.eup %12262  ;;  %12274 = vrcp.f32 %v7281_v44  ;;  %v7282_v39 = vadd.f32 1.0, %v12261_v4  ;;  %v7239_v3 = vsub.f32 0.0, %v17004_v14  ;;  %v10619_v49 = vpop.f32.mrb[164].mxu0  ;;  %v17014_v15 = vmul.f32 %v16944_v37, %v7182_v28 }
 0xd4d   :  { %v12265_v26 = vpop.eup %12264  ;;  %v7280_v34 = vadd.f32 1.0, %v12263_v52  ;;  %v7267_v56 = vmul.f32 1.442695, %v7241_v48  ;;  %v7158_v9 = vpop.f32.mrb[165].mxu0  ;;  %v7242_v40 = vsub.f32 0.0, %v17009_v13  ;;  %v7167_v60 = vadd.f32 %v10619_v49, %v16939_v24 }
 0xd4e   :  { %12276 = vrcp.f32 %v7282_v39  ;;  %v7263_v2 = vmul.f32 1.442695, %v7239_v3  ;;  %v10620_v16 = vpop.f32.mrb[166].mxu0  ;;  %v7159_v42 = vadd.f32 %v16939_v24, %v7158_v9  ;;  %v7279_v27 = vadd.f32 1.0, %v12265_v26 }
 0xd4f   :  { %12278 = vrcp.f32 %v7280_v34  ;;  %v7170_v0 = vadd.f32 %v10620_v16, %v16939_v24  ;;  %v7161_v38 = vpop.f32.mrb[167].mxu0  ;;  %v7269_v45 = vmul.f32 1.442695, %v7242_v40  ;;  %v7240_v7 = vsub.f32 0.0, %v17014_v15  ;;  %v17046_v40 = vld [vmem:[#allocation26 + $0x2] ss:$0 sm:$0xff] }
 0xd50   :  { %12280 = vpow2.f32 %v7267_v56  ;;  %v7187_v53 = vadd.f32 %v7167_v60, %v17786_v22  ;;  %v7185_v54 = vadd.f32 %v7159_v42, %v17690_v62  ;;  %v7162_v19 = vadd.f32 %v16939_v24, %v7161_v38 }
 0xd51   :  { %v12267_v10 = vpop.eup %12266  ;;  %12282 = vpow2.f32 %v7263_v2  ;;  %v7188_v63 = vadd.f32 %v7170_v0, %v17785_v31  ;;  %v7265_v48 = vmul.f32 1.442695, %v7240_v7  ;;  %v7217_v24 = vmul.f32 %v17023_v58, %v16952_v5 }
 0xd52   :  { %v12269_v59 = vpop.eup %12268  ;;  %v7285_v6 = vadd.f32 1.0, %v12267_v10  ;;  %12284 = vpow2.f32 %v7269_v45  ;;  %v17027_v51 = vmul.f32 %v16944_v37, %v7187_v53  ;;  %v17030_v44 = vmul.f32 %v16944_v37, %v7185_v54  ;;  %v17054_v45 = vld [vmem:[#allocation26 + $0x4] ss:$0 sm:$0xff] }
 0xd53   :  { %v12271_v46 = vpop.eup %12270  ;;  %v7283_v20 = vadd.f32 1.0, %v12269_v59  ;;  %v17033_v28 = vmul.f32 %v16944_v37, %v7188_v63  ;;  %12286 = vrcp.f32 %v7279_v27  ;;  %v7186_v52 = vadd.f32 %v7162_v19, %v17692_v12 }
 0xd54   :  { %v12273_v4 = vpop.eup %12272  ;;  %v10655_v39 = vpop.f32.mrb[168].mxu0  ;;  %v17040_v3 = vmul.f32 %v17023_v58, %v16956_v61  ;;  %v7245_v49 = vsub.f32 0.0, %v17027_v51  ;;  %v7218_v56 = vmul.f32 %v17023_v58, %v16961_v21  ;;  %12288 = vrcp.f32 %v7285_v6 }
 0xd55   :  { %v7767_v26 = vpop.f32.mrb[169].mxu0  ;;  %v7286_v9 = vadd.f32 1.0, %v12271_v46  ;;  %v7243_v2 = vsub.f32 0.0, %v17030_v44  ;;  %12290 = vrcp.f32 %v7283_v20  ;;  %v7284_v5 = vadd.f32 1.0, %v12273_v4 }
 0xd56   :  { %v12275_v34 = vpop.eup %12274  ;;  %v10656_v16 = vpop.f32.mrb[170].mxu0  ;;  %v7275_v60 = vmul.f32 1.442695, %v7245_v49  ;;  %v7246_v61 = vsub.f32 0.0, %v17033_v28  ;;  %12292 = vpow2.f32 %v7265_v48  ;;  %v17052_v21 = vmul.f32 %v16944_v37, %v7186_v52 }
 0xd57   :  { %v7770_v42 = vpop.f32.mrb[171].mxu0  ;;  %v17049_v38 = vmul.f32 %v12275_v34, %v7217_v24  ;;  %v7271_v27 = vmul.f32 1.442695, %v7243_v2  ;;  %v7776_v54 = vadd.f32 %v10655_v39, %v17046_v40  ;;  %v7216_v59 = vmul.f32 %v17023_v58, %v16965_v50 }
 0xd58   :  { %v12277_v0 = vpop.eup %12276  ;;  %12294 = vpow2.f32 %v7275_v60  ;;  %v7277_v53 = vmul.f32 1.442695, %v7246_v61  ;;  %v17063_v6 = vmul.f32 %v17023_v58, %v16976_v23  ;;  %v7244_v37 = vsub.f32 0.0, %v17052_v21 }
 0xd59   :  { %v12279_v7 = vpop.eup %12278  ;;  %v17056_v10 = vmul.f32 %v12277_v0, %v7218_v56  ;;  %12296 = vpow2.f32 %v7271_v27  ;;  %v17069_v4 = vmul.f32 %v17054_v45, %v7776_v54  ;;  %v7768_v50 = vadd.f32 %v17046_v40, %v7767_v26 }
 0xd5a   :  { %v12281_v63 = vpop.eup %12280  ;;  %12298 = vpow2.f32 %v7277_v53  ;;  %v7273_v52 = vmul.f32 1.442695, %v7244_v37  ;;  %v7779_v23 = vadd.f32 %v10656_v16, %v17046_v40  ;;  %v7328_v24 = vmul.f32 %v12279_v7, %v7216_v59 }
 0xd5b   :  { %v12283_v19 = vpop.eup %12282  ;;  %v7344_v46 = vpack.c.bf16 %v17056_v10, %v17049_v38  ;;  %v7289_v20 = vadd.f32 1.0, %v12281_v63  ;;  %12300 = vrcp.f32 %v7286_v9  ;;  %v17075_v49 = vmul.f32 %v17023_v58, %v16980_v11 }
 0xd5c   :  { %v12285_v48 = vpop.eup %12284  ;;  %v10659_v39 = vpop.f32.mrb[172].mxu0  ;;  %12302 = vrcp.f32 %v7284_v5  ;;  %v7874_v34 = vsub.f32 0.0, %v17069_v4  ;;  %v7287_v60 = vadd.f32 1.0, %v12283_v19  ;;  %v17079_v61 = vmul.f32 %v17054_v45, %v7768_v50 }
 0xd5d   :  { %v7783_v56 = vpop.f32.mrb[173].mxu0  ;;  %v12287_v2 = vpop.eup %12286  ;;  %v17082_v9 = vmul.f32 %v17054_v45, %v7779_v23  ;;  %v7771_v26 = vadd.f32 %v17046_v40, %v7770_v42  ;;  %12304 = vrcp.f32 %v7289_v20  ;;  %v7290_v0 = vadd.f32 1.0, %v12285_v48 }
 0xd5e   :  { %v10660_v16 = vpop.f32.mrb[174].mxu0  ;;  %v7892_v27 = vmul.f32 1.442695, %v7874_v34  ;;  %v7792_v11 = vadd.f32 %v10659_v39, %v17046_v40  ;;  %v17086_v7 = vpop.eup %12288  ;;  %v17090_v53 = vmul.f32 %v17023_v58, %v16985_v35  ;;  %v7220_v54 = vmul.f32 %v17023_v58, %v16989_v18 }
 0xd5f   :  { %v7786_v5 = vpop.f32.mrb[175].mxu0  ;;  %12306 = vpow2.f32 %v7273_v52  ;;  %v7872_v63 = vsub.f32 0.0, %v17079_v61  ;;  %v17095_v42 = vpop.eup %12290  ;;  %v7327_v59 = vmul.f32 %v12287_v2, %v17040_v3  ;;  %v17100_v37 = vmul.f32 %v17023_v58, %v17000_v36 }
 0xd60   :  { %12308 = vpow2.f32 %v7892_v27  ;;  %v7875_v19 = vsub.f32 0.0, %v17082_v9  ;;  %v12293_v20 = vpop.eup %12292  ;;  %v17104_v48 = vmul.f32 %v17054_v45, %v7771_v26  ;;  %v17107_v18 = vmul.f32 %v17054_v45, %v7792_v11  ;;  %v10843_v26 = vld [vmem:[#allocation28 + $0x28] sm:$0xff]  }
 0xd61   :  { %12310 = vrcp.f32 %v7287_v60  ;;  %v7888_v35 = vmul.f32 1.442695, %v7872_v63  ;;  %v7288_v50 = vadd.f32 1.0, %v12293_v20  ;;  %v7784_v3 = vadd.f32 %v17046_v40, %v7783_v56 }
 0xd62   :  { %v12295_v52 = vpop.eup %12294  ;;  %12312 = vrcp.f32 %v7290_v0  ;;  %v7343_v23 = vpack.c.bf16 %v7328_v24, %v7327_v59  ;;  %v17112_v39 = vmul.f32 %v17023_v58, %v17004_v14  ;;  %v7873_v2 = vsub.f32 0.0, %v17104_v48 }
 0xd63   :  { %v12297_v36 = vpop.eup %12296  ;;  %v7293_v34 = vadd.f32 1.0, %v12295_v52  ;;  %12314 = vpow2.f32 %v7888_v35  ;;  %v7894_v63 = vmul.f32 1.442695, %v7875_v19  ;;  %v7878_v0 = vsub.f32 0.0, %v17107_v18 }
 0xd64   :  { %v10663_v60 = vpop.f32.mrb[176].mxu0  ;;  %v12299_v27 = vpop.eup %12298  ;;  %12316 = vrcp.f32 %v7288_v50  ;;  %v7291_v11 = vadd.f32 1.0, %v12297_v36  ;;  %10629 = vmatprep.mubr.msk.bf16.mxu1 %vm509_vm0, %v7343_v23  ;;  %v7890_v14 = vmul.f32 1.442695, %v7873_v2  ;;  %v17118_v20 = vmul.f32 %v17054_v45, %v7784_v3 }
 0xd65   :  { %v7799_v24 = vpop.f32.mrb[177].mxu0  ;;  %v12301_v56 = vpop.eup %12300  ;;  %12318 = vrcp.f32 %v7293_v34  ;;  %v7294_v59 = vadd.f32 1.0, %v12299_v27  ;;  %10630 = vmatmul.mubr.msk.bf16.vlgmr.msra.gmra.mrb[168].mxu1 %vm509_vm0, %v7344_v46  ;;  %v7900_v19 = vmul.f32 1.442695, %v7878_v0  ;;  %v7795_v50 = vadd.f32 %v10660_v16, %v17046_v40  ;;  %v10844_v46 = vld [vmem:[#allocation28 + $0x30] sm:$0xff]  }
 0xd66   :  { %v10664_v35 = vpop.f32.mrb[178].mxu0  ;;  %v12303_v52 = vpop.eup %12302  ;;  %12320 = vrcp.f32 %v7291_v11  ;;  %v7787_v23 = vadd.f32 %v17046_v40, %v7786_v5  ;;  %10670 = vmatpush3.bf16.msra.mxu1 %v16922_v47  ;;  %v17131_v3 = vmul.f32 %v17023_v58, %v17009_v13  ;;  %v7224_v38 = vmul.f32 %v17023_v58, %v17014_v15 }
 0xd67   :  { %v17127_v36 = vpop.f32.mrb[179].mxu0  ;;  %12322 = vrcp.f32 %v7294_v59  ;;  %v7876_v10 = vsub.f32 0.0, %v17118_v20  ;;  %10671 = vmatprep.subr.bf16.mxu1 %v10843_v26  ;;  %v12305_v34 = vpop.eup %12304  ;;  %v17138_v16 = vmul.f32 %v17023_v58, %v17027_v51  ;;  %v17141_v47 = vmul.f32 %v17054_v45, %v7795_v50 }
 0xd68   :  { %12324 = vpow2.f32 %v7894_v63  ;;  %v17144_v13 = vmul.f32 %v17054_v45, %v7787_v23  ;;  %v7332_v2 = vmul.f32 %v12303_v52, %v7220_v54  ;;  %v7808_v27 = vadd.f32 %v10663_v60, %v17046_v40  ;;  %v10845_v52 = vld [vmem:[#allocation28 + $0x38] sm:$0xff]  }
 0xd69   :  { %v12307_v5 = vpop.eup %12306  ;;  %12326 = vpow2.f32 %v7890_v14  ;;  %v7896_v15 = vmul.f32 1.442695, %v7876_v10  ;;  %v17149_v0 = vmul.f32 %v17023_v58, %v17030_v44  ;;  %v7879_v63 = vsub.f32 0.0, %v17141_v47 }
 0xd6a   :  { %v12309_v11 = vpop.eup %12308  ;;  %v7292_v51 = vadd.f32 1.0, %v12307_v5  ;;  %12328 = vpow2.f32 %v7900_v19  ;;  %10672 = vmatpush3.bf16.msra.mxu1 %v10843_v26  ;;  %v7331_v50 = vmul.f32 %v17095_v42, %v17075_v49  ;;  %v7334_v54 = vmul.f32 %v12301_v56, %v17090_v53 }
 0xd6b   :  { %v12311_v59 = vpop.eup %12310  ;;  %12330 = vpow2.f32 %v7896_v15  ;;  %v7877_v14 = vsub.f32 0.0, %v17144_v13  ;;  %10673 = vmatprep.subr.bf16.mxu1 %v10844_v46  ;;  %v7902_v44 = vmul.f32 1.442695, %v7879_v63  ;;  %v17157_v19 = vmul.f32 %v17054_v45, %v7808_v27 }
 0xd6c   :  { %v10667_v60 = vpop.f32.mrb[180].mxu0  ;;  %v12313_v23 = vpop.eup %12312  ;;  %12332 = vrcp.f32 %v7292_v51  ;;  %v7800_v26 = vadd.f32 %v17046_v40, %v7799_v24  ;;  %v7922_v12 = vadd.f32 1.0, %v12309_v11  ;;  %v7345_v42 = vpack.c.bf16 %v7332_v2, %v7331_v50 }
 0xd6d   :  { %v7815_v10 = vpop.f32.mrb[181].mxu0  ;;  %v12315_v5 = vpop.eup %12314  ;;  %v7898_v49 = vmul.f32 1.442695, %v7877_v14  ;;  %v7811_v53 = vadd.f32 %v10664_v35, %v17046_v40  ;;  %v7333_v31 = vmul.f32 %v17086_v7, %v17063_v6  ;;  %12334 = vpow2.f32 %v7902_v44 }
 0xd6e   :  { %v17161_v56 = vpop.f32.mrb[182].mxu0  ;;  %v12317_v15 = vpop.eup %12316  ;;  %v7920_v51 = vadd.f32 1.0, %v12315_v5  ;;  %v7882_v27 = vsub.f32 0.0, %v17157_v19  ;;  %10674 = vmatpush3.bf16.msra.mxu1 %v10844_v46  ;;  %v7230_v11 = vmul.f32 %v17023_v58, %v17033_v28  ;;  %v17171_v35 = vmul.f32 %v17054_v45, %v7800_v26  ;;  %10633 = vmatprep.mubr.msk.bf16.mxu1 %vm509_vm0, %v7345_v42 }
 0xd6f   :  { %v17166_v63 = vpop.f32.mrb[183].mxu0  ;;  %v12319_v24 = vpop.eup %12318  ;;  %12336 = vpow2.f32 %v7898_v49  ;;  %v17175_v2 = vmul.f32 %v17054_v45, %v7811_v53  ;;  %10675 = vmatprep.subr.bf16.mxu1 %v10845_v52  ;;  %v7336_v7 = vmul.f32 %v12317_v15, %v7224_v38  ;;  %v7228_v50 = vmul.f32 %v17023_v58, %v17052_v21 }
 0xd70   :  { %v12321_v6 = vpop.eup %12320  ;;  %v7908_v46 = vmul.f32 1.442695, %v7882_v27  ;;  %v7346_v14 = vpack.c.bf16 %v7334_v54, %v7333_v31  ;;  %v7337_v28 = vmul.f32 %v12305_v34, %v17100_v37  ;;  %v7335_v5 = vmul.f32 %v12311_v59, %v17112_v39 }
 0xd71   :  { %v12323_v44 = vpop.eup %12322  ;;  %12338 = vrcp.f32 %v7922_v12  ;;  %v7880_v26 = vsub.f32 0.0, %v17171_v35  ;;  %v7338_v42 = vmul.f32 %v12313_v23, %v17131_v3  ;;  %v7883_v53 = vsub.f32 0.0, %v17175_v2 }
 0xd72   :  { %v12325_v49 = vpop.eup %12324  ;;  %12340 = vrcp.f32 %v7920_v51  ;;  %10634 = vmatmul.mubr.msk.bf16.gmra.mrb[172].mxu1 %vm509_vm0, %v7346_v14  ;;  %v7803_v58 = vadd.f32 %v17046_v40, %v17127_v36  ;;  %v7824_v37 = vadd.f32 %v10667_v60, %v17046_v40  ;;  %v7816_v12 = vadd.f32 %v17046_v40, %v7815_v10 }
 0xd73   :  { %v12327_v31 = vpop.eup %12326  ;;  %v7923_v21 = vadd.f32 1.0, %v12325_v49  ;;  %12342 = vpow2.f32 %v7908_v46  ;;  %10676 = vmatpush3.bf16.msra.mxu1 %v10845_v52  ;;  %v7904_v34 = vmul.f32 1.442695, %v7880_v26  ;;  %v7347_v59 = vpack.c.bf16 %v7336_v7, %v7335_v5 }
 0xd74   :  { %v12329_v39 = vpop.eup %12328  ;;  %v7921_v38 = vadd.f32 1.0, %v12327_v31  ;;  %v17190_v3 = vmul.f32 %v17054_v45, %v7803_v58  ;;  %v17193_v36 = vmul.f32 %v17054_v45, %v7824_v37  ;;  %v17196_v15 = vmul.f32 %v17054_v45, %v7816_v12 }
 0xd75   :  { %v12331_v54 = vpop.eup %12330  ;;  %12344 = vrcp.f32 %v7923_v21  ;;  %v7926_v23 = vadd.f32 1.0, %v12329_v39  ;;  %v7910_v52 = vmul.f32 1.442695, %v7883_v53  ;;  %10637 = vmatprep.mubr.msk.bf16.mxu1 %vm509_vm0, %v7347_v59  ;;  %v7341_v27 = vmul.f32 %v12319_v24, %v17138_v16 }
 0xd76   :  { %v12333_v60 = vpop.eup %12332  ;;  %12346 = vrcp.f32 %v7921_v38  ;;  %v7924_v10 = vadd.f32 1.0, %v12331_v54  ;;  %v7881_v51 = vsub.f32 0.0, %v17190_v3  ;;  %v7339_v7 = vmul.f32 %v12321_v6, %v17149_v0  ;;  %v17206_v6 = vld [vmem:[#allocation26 + $0x3] ss:$0 sm:$0xff] }
 0xd77   :  { %12348 = vrcp.f32 %v7926_v23  ;;  %v7886_v46 = vsub.f32 0.0, %v17193_v36  ;;  %v12335_v14 = vpop.eup %12334  ;;  %v7342_v5 = vmul.f32 %v12323_v44, %v7230_v11  ;;  %v7340_v26 = vmul.f32 %v12333_v60, %v7228_v50 }
 0xd78   :  { %12350 = vrcp.f32 %v7924_v10  ;;  %v7906_v49 = vmul.f32 1.442695, %v7881_v51  ;;  %v7927_v31 = vadd.f32 1.0, %v12335_v14  ;;  %v7884_v21 = vsub.f32 0.0, %v17196_v15 }
 0xd79   :  { %v12337_v58 = vpop.eup %12336  ;;  %12352 = vpow2.f32 %v7904_v34  ;;  %v7916_v53 = vmul.f32 1.442695, %v7886_v46  ;;  %v7827_v16 = vadd.f32 %v17161_v56, %v17046_v40  ;;  %v7348_v0 = vpack.c.bf16 %v7338_v42, %v7337_v28 }
 0xd7a   :  { %v7925_v37 = vadd.f32 1.0, %v12337_v58  ;;  %12354 = vpow2.f32 %v7910_v52  ;;  %v7912_v11 = vmul.f32 1.442695, %v7884_v21  ;;  %v7819_v50 = vadd.f32 %v17046_v40, %v17166_v63 }
 0xd7b   :  { %v12339_v24 = vpop.eup %12338  ;;  %12356 = vrcp.f32 %v7927_v31  ;;  %v17211_v12 = vmul.f32 %v17054_v45, %v7827_v16  ;;  %10638 = vmatmul.mubr.msk.bf16.gmra.mrb[176].mxu1 %vm509_vm0, %v7348_v0  ;;  %v7349_v39 = vpack.c.bf16 %v7340_v26, %v7339_v7  ;;  %v7350_v38 = vpack.c.bf16 %v7342_v5, %v7341_v27 }
 0xd7c   :  { %v12341_v44 = vpop.eup %12340  ;;  %12358 = vrcp.f32 %v7925_v37  ;;  %v17215_v56 = vmul.f32 %v17054_v45, %v7819_v50  ;;  %v7858_v28 = vmul.f32 %v17206_v6, %v17069_v4  ;;  %v7859_v40 = vmul.f32 %v17206_v6, %v17082_v9 }
 0xd7d   :  { %v12343_v34 = vpop.eup %12342  ;;  %12360 = vpow2.f32 %v7906_v49  ;;  %v7887_v63 = vsub.f32 0.0, %v17211_v12  ;;  %10641 = vmatprep.mubr.msk.bf16.mxu1 %vm509_vm0, %v7349_v39  ;;  %v7856_v59 = vmul.f32 %v17206_v6, %v17079_v61  ;;  %v7857_v54 = vmul.f32 %v17206_v6, %v17104_v48 }
 0xd7e   :  { %12362 = vpow2.f32 %v7916_v53  ;;  %v7885_v45 = vsub.f32 0.0, %v17215_v56  ;;  %v7970_v60 = vmul.f32 %v12339_v24, %v7858_v28  ;;  %v7930_v27 = vadd.f32 1.0, %v12343_v34 }
 0xd7f   :  { %v12345_v42 = vpop.eup %12344  ;;  %12364 = vpow2.f32 %v7912_v11  ;;  %v7918_v10 = vmul.f32 1.442695, %v7887_v63  ;;  %v7968_v52 = vmul.f32 %v12341_v44, %v7856_v59  ;;  %v7862_v48 = vmul.f32 %v17206_v6, %v17107_v18 }
 0xd80   :  { %v12347_v23 = vpop.eup %12346  ;;  %v7971_v4 = vmul.f32 %v12345_v42, %v7859_v40  ;;  %v7914_v7 = vmul.f32 1.442695, %v7885_v45  ;;  %v7863_v49 = vmul.f32 %v17206_v6, %v17141_v47  ;;  %v7860_v53 = vmul.f32 %v17206_v6, %v17118_v20 }
 0xd81   :  { %v12349_v9 = vpop.eup %12348  ;;  %v7969_v51 = vmul.f32 %v12347_v23, %v7857_v54  ;;  %12366 = vpow2.f32 %v7918_v10  ;;  %v7861_v21 = vmul.f32 %v17206_v6, %v17144_v13  ;;  %v7866_v54 = vmul.f32 %v17206_v6, %v17157_v19 }
 0xd82   :  { %v12351_v46 = vpop.eup %12350  ;;  %v7985_v14 = vpack.c.bf16 %v7971_v4, %v7970_v60  ;;  %12368 = vpow2.f32 %v7914_v7  ;;  %v7974_v0 = vmul.f32 %v12349_v9, %v7862_v48  ;;  %v7867_v45 = vmul.f32 %v17206_v6, %v17175_v2 }
 0xd83   :  { %v12353_v5 = vpop.eup %12352  ;;  %v7984_v61 = vpack.c.bf16 %v7969_v51, %v7968_v52  ;;  %10642 = vmatmul.mubr.msk.bf16.gmra.mrb[180].mxu1 %vm509_vm0, %v7350_v38  ;;  %12370 = vrcp.f32 %v7930_v27  ;;  %v7972_v11 = vmul.f32 %v12351_v46, %v7860_v53  ;;  %v7864_v9 = vmul.f32 %v17206_v6, %v17171_v35 }
 0xd84   :  { %v12355_v26 = vpop.eup %12354  ;;  %v7928_v58 = vadd.f32 1.0, %v12353_v5  ;;  %v7865_v52 = vmul.f32 %v17206_v6, %v17190_v3  ;;  %v7870_v5 = vmul.f32 %v17206_v6, %v17193_v36  ;;  %v7868_v35 = vmul.f32 %v17206_v6, %v17196_v15  ;;  %v10847_v15 = vld [vmem:[#allocation28 + $0x48] sm:$0xff]  }
 0xd85   :  { %v12357_v31 = vpop.eup %12356  ;;  %v7931_v37 = vadd.f32 1.0, %v12355_v26  ;;  %10677 = vmatprep.mubr.msk.bf16.mxu1 %vm509_vm0, %v7984_v61  ;;  %v7871_v61 = vmul.f32 %v17206_v6, %v17211_v12  ;;  %v7869_v3 = vmul.f32 %v17206_v6, %v17215_v56  ;;  %v10846_v12 = vld [vmem:[#allocation28 + $0x40] sm:$0xff]   ;;  %v10848_v6 = vld [vmem:[#allocation28 + $0x50] sm:$0xff]   ;;  %v10849_v56 = vld [vmem:[#allocation28 + $0x58] sm:$0xff]  }
 0xd86   :  { %v12359_v16 = vpop.eup %12358  ;;  %v7975_v18 = vmul.f32 %v12357_v31, %v7863_v49  ;;  %10693 = vmatprep.subr.bf16.mxu0 %v10846_v12 }
 0xd87   :  { %v12361_v24 = vpop.eup %12360  ;;  %v7973_v47 = vmul.f32 %v12359_v16, %v7861_v21  ;;  %12372 = vrcp.f32 %v7931_v37  ;;  %10694 = vmatpush3.bf16.msra.mxu0 %v10846_v12  ;;  %v9535_v37 = vld [vmem:[#allocation23 + $0x8] ss:$0 sm:$0xff] }
 0xd88   :  { %v12363_v50 = vpop.eup %12362  ;;  %12374 = vrcp.f32 %v7928_v58  ;;  %v7929_v44 = vadd.f32 1.0, %v12361_v24  ;;  %v7987_v39 = vpack.c.bf16 %v7975_v18, %v7974_v0  ;;  %10695 = vmatprep.subr.bf16.mxu0 %v10847_v15 }
 0xd89   :  { %v7934_v38 = vadd.f32 1.0, %v12363_v50  ;;  %v7986_v20 = vpack.c.bf16 %v7973_v47, %v7972_v11  ;;  %v12365_v34 = vpop.eup %12364 }
 0xd8a   :  { %12376 = vrcp.f32 %v7929_v44  ;;  %v7932_v13 = vadd.f32 1.0, %v12365_v34 }
 0xd8b   :  { %v12367_v28 = vpop.eup %12366  ;;  %10678 = vmatmul.mubr.msk.bf16.vlgmr.msra.gmra.mrb[184].mxu1 %vm509_vm0, %v7985_v14  ;;  %12378 = vrcp.f32 %v7934_v38  ;;  %10696 = vmatpush3.bf16.msra.mxu0 %v10847_v15 }
 0xd8c   :  { %v12369_v40 = vpop.eup %12368  ;;  %v7935_v63 = vadd.f32 1.0, %v12367_v28  ;;  %10681 = vmatprep.mubr.msk.bf16.mxu1 %vm509_vm0, %v7986_v20  ;;  %12380 = vrcp.f32 %v7932_v13  ;;  %10697 = vmatprep.subr.bf16.mxu0 %v10848_v6 }
 0xd8d   :  { %v7933_v42 = vadd.f32 1.0, %v12369_v40  ;;  %v12371_v59 = vpop.eup %12370 }
 0xd8e   :  { %12382 = vrcp.f32 %v7935_v63  ;;  %v7978_v4 = vmul.f32 %v12371_v59, %v7866_v54 }
 0xd8f   :  { %12384 = vrcp.f32 %v7933_v42  ;;  %10698 = vmatpush3.bf16.msra.mxu0 %v10848_v6 }
 0xd90   :  { %10699 = vmatprep.subr.bf16.mxu0 %v10849_v56 }
 0xd91   :  { %v12373_v23 = vpop.eup %12372 }
 0xd92   :  { %v12375_v60 = vpop.eup %12374  ;;  %v7979_v10 = vmul.f32 %v12373_v23, %v7867_v45 }
 0xd93   :  { %10682 = vmatmul.mubr.msk.bf16.gmra.mrb[188].mxu1 %vm509_vm0, %v7987_v39  ;;  %v7976_v7 = vmul.f32 %v12375_v60, %v7864_v9  ;;  %10700 = vmatpush3.bf16.msra.mxu0 %v10849_v56  ;;  %v17275_v56 = vld [vmem:[#allocation26 + $0x5] ss:$0 sm:$0xff] }
 0xd94   :  { %v12377_v51 = vpop.eup %12376  ;;  %v7989_v27 = vpack.c.bf16 %v7979_v10, %v7978_v4 }
 0xd95   :  { %v7977_v19 = vmul.f32 %v12377_v51, %v7865_v52  ;;  %v12379_v46 = vpop.eup %12378 }
 0xd96   :  { %v12381_v2 = vpop.eup %12380  ;;  %v7982_v49 = vmul.f32 %v12379_v46, %v7870_v5 }
 0xd97   :  { %v7988_v14 = vpack.c.bf16 %v7977_v19, %v7976_v7  ;;  %v7980_v31 = vmul.f32 %v12381_v2, %v7868_v35 }
 0xd98   :  { %v12383_v26 = vpop.eup %12382 }
 0xd99   :  { %10685 = vmatprep.mubr.msk.bf16.mxu1 %vm509_vm0, %v7988_v14  ;;  %v12385_v48 = vpop.eup %12384  ;;  %v7983_v58 = vmul.f32 %v12383_v26, %v7871_v61 }
 0xd9a   :  { %v7981_v53 = vmul.f32 %v12385_v48, %v7869_v3 }
 0xd9b   :  { %10686 = vmatmul.mubr.msk.bf16.gmra.mrb[192].mxu1 %vm509_vm0, %v7989_v27  ;;  %v7991_v36 = vpack.c.bf16 %v7983_v58, %v7982_v49 }
 0xd9c   :  { %v7990_v21 = vpack.c.bf16 %v7981_v53, %v7980_v31 }
 0xd9e   :  { %10689 = vmatprep.mubr.msk.bf16.mxu1 %vm509_vm0, %v7990_v21 }
 0xda3   :  { %10690 = vmatmul.mubr.msk.bf16.gmra.mrb[196].mxu1 %vm509_vm0, %v7991_v36 }
 0xe38   :  { %v10631_v16 = vpop.f32.mrb[168].mxu1 }
 0xe39   :  { %v7456_v0 = vadd.f32 %v10631_v16, %v9535_v37  ;;  %v7447_v18 = vpop.f32.mrb[169].mxu1 }
 0xe3a   :  { %v7448_v24 = vadd.f32 %v9535_v37, %v7447_v18  ;;  %v10632_v11 = vpop.f32.mrb[170].mxu1 }
 0xe3b   :  { %v9787_v47 = vpack.c.bf16 %v7456_v0, %v7456_v0  ;;  %v7459_v50 = vadd.f32 %v10632_v11, %v9535_v37  ;;  %v7450_v44 = vpop.f32.mrb[171].mxu1 }
 0xe3c   :  { %v9785_v39 = vpack.c.bf16 %v7448_v24, %v7448_v24  ;;  %v7451_v38 = vadd.f32 %v9535_v37, %v7450_v44  ;;  %v17280_v24 = vld [vmem:[#allocation26 + $0x7] ss:$0 sm:$0xff] }
 0xe3d   :  { %9020 = vst.msk [vmem:[#allocation33 + $0x8] sm:$0xf] %vm8552_vm1, %v9787_v47  ;;  %v9788_v20 = vpack.c.bf16 %v7459_v50, %v7459_v50 }
 0xe3e   :  { %9018 = vst.msk [vmem:[#allocation33] sm:$0xf] %vm8552_vm1, %v9785_v39  ;;  %v9786_v34 = vpack.c.bf16 %v7451_v38, %v7451_v38 }
 0xe3f   :  { %9021 = vst.msk [vmem:[#allocation33 + $0xc] sm:$0xf] %vm8552_vm1, %v9788_v20 }
 0xe40   :  { %9019 = vst.msk [vmem:[#allocation33 + $0x4] sm:$0xf] %vm8552_vm1, %v9786_v34 }
 0xe45   :  { %v10635_v13 = vpop.f32.mrb[172].mxu1 }
 0xe46   :  { %v7472_v28 = vadd.f32 %v10635_v13, %v9535_v37  ;;  %v7463_v40 = vpop.f32.mrb[173].mxu1 }
 0xe47   :  { %v7464_v63 = vadd.f32 %v9535_v37, %v7463_v40  ;;  %v10636_v42 = vpop.f32.mrb[174].mxu1 }
 0xe48   :  { %v9791_v59 = vpack.c.bf16 %v7472_v28, %v7472_v28  ;;  %v7475_v54 = vadd.f32 %v10636_v42, %v9535_v37  ;;  %v7466_v45 = vpop.f32.mrb[175].mxu1 }
 0xe49   :  { %v9789_v23 = vpack.c.bf16 %v7464_v63, %v7464_v63  ;;  %v7467_v60 = vadd.f32 %v9535_v37, %v7466_v45 }
 0xe4a   :  { %9024 = vst.msk [vmem:[#allocation33 + $0x18] sm:$0xf] %vm8552_vm1, %v9791_v59  ;;  %v9792_v4 = vpack.c.bf16 %v7475_v54, %v7475_v54 }
 0xe4b   :  { %9022 = vst.msk [vmem:[#allocation33 + $0x10] sm:$0xf] %vm8552_vm1, %v9789_v23  ;;  %v9790_v10 = vpack.c.bf16 %v7467_v60, %v7467_v60 }
 0xe4c   :  { %9025 = vst.msk [vmem:[#allocation33 + $0x1c] sm:$0xf] %vm8552_vm1, %v9792_v4 }
 0xe4d   :  { %9023 = vst.msk [vmem:[#allocation33 + $0x14] sm:$0xf] %vm8552_vm1, %v9790_v10 }
 0xe4e   :  { %v10639_v9 = vpop.f32.mrb[176].mxu1 }
 0xe4f   :  { %v7488_v52 = vadd.f32 %v10639_v9, %v9535_v37  ;;  %v7479_v51 = vpop.f32.mrb[177].mxu1 }
 0xe50   :  { %v7480_v27 = vadd.f32 %v9535_v37, %v7479_v51  ;;  %v10640_v7 = vpop.f32.mrb[178].mxu1 }
 0xe51   :  { %v9795_v19 = vpack.c.bf16 %v7488_v52, %v7488_v52  ;;  %v7491_v46 = vadd.f32 %v10640_v7, %v9535_v37  ;;  %v7482_v14 = vpop.f32.mrb[179].mxu1 }
 0xe52   :  { %v9793_v2 = vpack.c.bf16 %v7480_v27, %v7480_v27  ;;  %v7483_v5 = vadd.f32 %v9535_v37, %v7482_v14 }
 0xe53   :  { %9028 = vst.msk [vmem:[#allocation33 + $0x28] sm:$0xf] %vm8552_vm1, %v9795_v19  ;;  %v9796_v61 = vpack.c.bf16 %v7491_v46, %v7491_v46 }
 0xe54   :  { %9026 = vst.msk [vmem:[#allocation33 + $0x20] sm:$0xf] %vm8552_vm1, %v9793_v2  ;;  %v9794_v26 = vpack.c.bf16 %v7483_v5, %v7483_v5 }
 0xe55   :  { %9029 = vst.msk [vmem:[#allocation33 + $0x2c] sm:$0xf] %vm8552_vm1, %v9796_v61 }
 0xe56   :  { %9027 = vst.msk [vmem:[#allocation33 + $0x24] sm:$0xf] %vm8552_vm1, %v9794_v26  ;;  %v10643_v35 = vpop.f32.mrb[180].mxu1 }
 0xe57   :  { %v7504_v3 = vadd.f32 %v10643_v35, %v9535_v37  ;;  %v7495_v48 = vpop.f32.mrb[181].mxu1 }
 0xe58   :  { %v7496_v49 = vadd.f32 %v9535_v37, %v7495_v48  ;;  %v10644_v58 = vpop.f32.mrb[182].mxu1 }
 0xe59   :  { %v9799_v31 = vpack.c.bf16 %v7504_v3, %v7504_v3  ;;  %v7507_v53 = vadd.f32 %v10644_v58, %v9535_v37  ;;  %v7498_v36 = vpop.f32.mrb[183].mxu1 }
 0xe5a   :  { %v9797_v21 = vpack.c.bf16 %v7496_v49, %v7496_v49  ;;  %v7499_v12 = vadd.f32 %v9535_v37, %v7498_v36 }
 0xe5b   :  { %9032 = vst.msk [vmem:[#allocation33 + $0x38] sm:$0xf] %vm8552_vm1, %v9799_v31  ;;  %v9800_v15 = vpack.c.bf16 %v7507_v53, %v7507_v53 }
 0xe5c   :  { %9030 = vst.msk [vmem:[#allocation33 + $0x30] sm:$0xf] %vm8552_vm1, %v9797_v21  ;;  %v9798_v6 = vpack.c.bf16 %v7499_v12, %v7499_v12 }
 0xe5d   :  { %9033 = vst.msk [vmem:[#allocation33 + $0x3c] sm:$0xf] %vm8552_vm1, %v9800_v15 }
 0xe5e   :  { %9031 = vst.msk [vmem:[#allocation33 + $0x34] sm:$0xf] %vm8552_vm1, %v9798_v6  ;;  %v10679_v16 = vpop.f32.mrb[184].mxu1 }
 0xe5f   :  { %v8097_v0 = vadd.f32 %v10679_v16, %v17275_v56  ;;  %v8088_v18 = vpop.f32.mrb[185].mxu1 }
 0xe60   :  { %v8089_v37 = vadd.f32 %v17275_v56, %v8088_v18  ;;  %v10680_v11 = vpop.f32.mrb[186].mxu1 }
 0xe61   :  { %v8153_v47 = vadd.f32 %v8097_v0, %v17792_v41  ;;  %v8100_v50 = vadd.f32 %v10680_v11, %v17275_v56  ;;  %v8091_v44 = vpop.f32.mrb[187].mxu1 }
 0xe62   :  { %v8151_v39 = vadd.f32 %v8089_v37, %v17793_v32  ;;  %v8092_v38 = vadd.f32 %v17275_v56, %v8091_v44 }
 0xe63   :  { %v17288_v20 = vmul.f32 %v17280_v24, %v8153_v47  ;;  %v8154_v34 = vadd.f32 %v8100_v50, %v17794_v43 }
 0xe64   :  { %v17292_v13 = vmul.f32 %v17280_v24, %v8151_v39  ;;  %v8152_v28 = vadd.f32 %v8092_v38, %v17795_v55 }
 0xe65   :  { %v8211_v40 = vsub.f32 0.0, %v17288_v20  ;;  %v17297_v41 = vmul.f32 %v17280_v24, %v8154_v34 }
 0xe66   :  { %v8209_v63 = vsub.f32 0.0, %v17292_v13  ;;  %v17301_v32 = vmul.f32 %v17280_v24, %v8152_v28  ;;  %v10683_v42 = vpop.f32.mrb[188].mxu1 }
 0xe67   :  { %v8229_v59 = vmul.f32 1.442695, %v8211_v40  ;;  %v8212_v54 = vsub.f32 0.0, %v17297_v41  ;;  %v8113_v43 = vadd.f32 %v10683_v42, %v17275_v56  ;;  %v8104_v45 = vpop.f32.mrb[189].mxu1 }
 0xe68   :  { %v8225_v23 = vmul.f32 1.442695, %v8209_v63  ;;  %v8210_v55 = vsub.f32 0.0, %v17301_v32  ;;  %v8105_v60 = vadd.f32 %v17275_v56, %v8104_v45  ;;  %v10684_v4 = vpop.f32.mrb[190].mxu1 }
 0xe69   :  { %12386 = vpow2.f32 %v8229_v59  ;;  %v8231_v10 = vmul.f32 1.442695, %v8212_v54  ;;  %v8157_v9 = vadd.f32 %v8113_v43, %v17796_v1  ;;  %v8116_v52 = vadd.f32 %v10684_v4, %v17275_v56  ;;  %v8107_v51 = vpop.f32.mrb[191].mxu1 }
 0xe6a   :  { %12388 = vpow2.f32 %v8225_v23  ;;  %v8227_v27 = vmul.f32 1.442695, %v8210_v55  ;;  %v8155_v7 = vadd.f32 %v8105_v60, %v17797_v8  ;;  %v8108_v19 = vadd.f32 %v17275_v56, %v8107_v51 }
 0xe6b   :  { %12390 = vpow2.f32 %v8231_v10  ;;  %v17312_v46 = vmul.f32 %v17280_v24, %v8157_v9  ;;  %v8158_v14 = vadd.f32 %v8116_v52, %v17798_v17 }
 0xe6c   :  { %12392 = vpow2.f32 %v8227_v27  ;;  %v17316_v2 = vmul.f32 %v17280_v24, %v8155_v7  ;;  %v8156_v1 = vadd.f32 %v8108_v19, %v17799_v57  ;;  %v17800_v19 = vld [vmem:[#allocation60_spill] sm:$0xff] }
 0xe6d   :  { %v8215_v5 = vsub.f32 0.0, %v17312_v46  ;;  %v17321_v61 = vmul.f32 %v17280_v24, %v8158_v14 }
 0xe6e   :  { %v8213_v8 = vsub.f32 0.0, %v17316_v2  ;;  %v17325_v26 = vmul.f32 %v17280_v24, %v8156_v1  ;;  %v10687_v35 = vpop.f32.mrb[192].mxu1 }
 0xe6f   :  { %v8237_v3 = vmul.f32 1.442695, %v8215_v5  ;;  %v8216_v17 = vsub.f32 0.0, %v17321_v61  ;;  %v8129_v48 = vadd.f32 %v10687_v35, %v17275_v56  ;;  %v8120_v49 = vpop.f32.mrb[193].mxu1 }
 0xe70   :  { %v8233_v58 = vmul.f32 1.442695, %v8213_v8  ;;  %v8214_v57 = vsub.f32 0.0, %v17325_v26  ;;  %v8121_v31 = vadd.f32 %v17275_v56, %v8120_v49  ;;  %v10688_v53 = vpop.f32.mrb[194].mxu1 }
 0xe71   :  { %12394 = vpow2.f32 %v8237_v3  ;;  %v8239_v36 = vmul.f32 1.442695, %v8216_v17  ;;  %v8161_v21 = vadd.f32 %v8129_v48, %v14001_v30  ;;  %v8132_v12 = vadd.f32 %v10688_v53, %v17275_v56  ;;  %v8123_v15 = vpop.f32.mrb[195].mxu1  ;;  %v17360_v3 = vld [vmem:[#allocation26 + $0x6] ss:$0 sm:$0xff] }
 0xe72   :  { %12396 = vpow2.f32 %v8233_v58  ;;  %v8235_v6 = vmul.f32 1.442695, %v8214_v57  ;;  %v8159_v16 = vadd.f32 %v8121_v31, %v17687_v33  ;;  %v8124_v0 = vadd.f32 %v17275_v56, %v8123_v15  ;;  %v17801_v31 = vld [vmem:[#allocation61_spill] sm:$0xff] }
 0xe73   :  { %v12387_v18 = vpop.eup %12386  ;;  %12398 = vpow2.f32 %v8239_v36  ;;  %v17336_v37 = vmul.f32 %v17280_v24, %v8161_v21  ;;  %v8162_v11 = vadd.f32 %v8132_v12, %v17688_v29  ;;  %v8195_v12 = vmul.f32 %v17360_v3, %v17288_v20 }
 0xe74   :  { %v12389_v47 = vpop.eup %12388  ;;  %v8259_v50 = vadd.f32 1.0, %v12387_v18  ;;  %12400 = vpow2.f32 %v8235_v6  ;;  %v17340_v30 = vmul.f32 %v17280_v24, %v8159_v16  ;;  %v8160_v44 = vadd.f32 %v8124_v0, %v17689_v25 }
 0xe75   :  { %v12391_v39 = vpop.eup %12390  ;;  %v8257_v38 = vadd.f32 1.0, %v12389_v47  ;;  %v8219_v33 = vsub.f32 0.0, %v17336_v37  ;;  %v17345_v34 = vmul.f32 %v17280_v24, %v8162_v11  ;;  %v8193_v15 = vmul.f32 %v17360_v3, %v17292_v13 }
 0xe76   :  { %v12393_v28 = vpop.eup %12392  ;;  %12402 = vrcp.f32 %v8259_v50  ;;  %v8260_v40 = vadd.f32 1.0, %v12391_v39  ;;  %v8217_v29 = vsub.f32 0.0, %v17340_v30  ;;  %v10691_v63 = vpop.f32.mrb[196].mxu1  ;;  %v17350_v45 = vmul.f32 %v17280_v24, %v8160_v44 }
 0xe77   :  { %12404 = vrcp.f32 %v8257_v38  ;;  %v8258_v42 = vadd.f32 1.0, %v12393_v28  ;;  %v8245_v59 = vmul.f32 1.442695, %v8219_v33  ;;  %v8136_v54 = vpop.f32.mrb[197].mxu1  ;;  %v8220_v25 = vsub.f32 0.0, %v17345_v34 }
 0xe78   :  { %12406 = vrcp.f32 %v8260_v40  ;;  %v8241_v43 = vmul.f32 1.442695, %v8217_v29  ;;  %v10692_v23 = vpop.f32.mrb[198].mxu1  ;;  %v8145_v55 = vadd.f32 %v10691_v63, %v17275_v56  ;;  %v8137_v60 = vadd.f32 %v17275_v56, %v8136_v54 }
 0xe79   :  { %12408 = vrcp.f32 %v8258_v42  ;;  %v8148_v4 = vadd.f32 %v10692_v23, %v17275_v56  ;;  %v8139_v10 = vpop.f32.mrb[199].mxu1  ;;  %v8247_v9 = vmul.f32 1.442695, %v8220_v25  ;;  %v8218_v52 = vsub.f32 0.0, %v17350_v45 }
 0xe7a   :  { %12410 = vpow2.f32 %v8245_v59  ;;  %v8165_v27 = vadd.f32 %v8145_v55, %v17786_v22  ;;  %v8163_v7 = vadd.f32 %v8137_v60, %v17690_v62  ;;  %v8140_v8 = vadd.f32 %v17275_v56, %v8139_v10 }
 0xe7b   :  { %v12395_v51 = vpop.eup %12394  ;;  %12412 = vpow2.f32 %v8241_v43  ;;  %v8166_v14 = vadd.f32 %v8148_v4, %v17800_v19  ;;  %v8243_v57 = vmul.f32 1.442695, %v8218_v52  ;;  %v8196_v0 = vmul.f32 %v17360_v3, %v17297_v41 }
 0xe7c   :  { %v12397_v1 = vpop.eup %12396  ;;  %v8263_v5 = vadd.f32 1.0, %v12395_v51  ;;  %12414 = vpow2.f32 %v8247_v9  ;;  %v17363_v48 = vmul.f32 %v17280_v24, %v8165_v27  ;;  %v17366_v49 = vmul.f32 %v17280_v24, %v8163_v7 }
 0xe7d   :  { %v12399_v35 = vpop.eup %12398  ;;  %v8261_v17 = vadd.f32 1.0, %v12397_v1  ;;  %v17369_v22 = vmul.f32 %v17280_v24, %v8166_v14  ;;  %v8164_v53 = vadd.f32 %v8140_v8, %v17801_v31  ;;  %v8194_v50 = vmul.f32 %v17360_v3, %v17301_v32 }
 0xe7e   :  { %v12401_v62 = vpop.eup %12400  ;;  %12416 = vrcp.f32 %v8263_v5  ;;  %v8264_v58 = vadd.f32 1.0, %v12399_v35  ;;  %v8223_v36 = vsub.f32 0.0, %v17363_v48  ;;  %v8221_v6 = vsub.f32 0.0, %v17366_v49 }
 0xe7f   :  { %12418 = vrcp.f32 %v8261_v17  ;;  %v8262_v56 = vadd.f32 1.0, %v12401_v62  ;;  %v8224_v11 = vsub.f32 0.0, %v17369_v22  ;;  %v17384_v44 = vmul.f32 %v17280_v24, %v8164_v53 }
 0xe80   :  { %v12403_v21 = vpop.eup %12402  ;;  %12420 = vrcp.f32 %v8264_v58  ;;  %v8253_v18 = vmul.f32 1.442695, %v8223_v36  ;;  %v8249_v20 = vmul.f32 1.442695, %v8221_v6  ;;  %v8199_v55 = vmul.f32 %v17360_v3, %v17312_v46 }
 0xe81   :  { %v12405_v16 = vpop.eup %12404  ;;  %12422 = vrcp.f32 %v8262_v56  ;;  %v8307_v39 = vmul.f32 %v12403_v21, %v8195_v12  ;;  %v8255_v33 = vmul.f32 1.442695, %v8224_v11  ;;  %v8222_v29 = vsub.f32 0.0, %v17384_v44 }
 0xe82   :  { %v12407_v47 = vpop.eup %12406  ;;  %12424 = vpow2.f32 %v8243_v57  ;;  %v8305_v41 = vmul.f32 %v12405_v16, %v8193_v15  ;;  %v8200_v60 = vmul.f32 %v17360_v3, %v17321_v61  ;;  %v8197_v9 = vmul.f32 %v17360_v3, %v17316_v2 }
 0xe83   :  { %v12409_v13 = vpop.eup %12408  ;;  %v8308_v38 = vmul.f32 %v12407_v47, %v8196_v0  ;;  %12426 = vpow2.f32 %v8253_v18  ;;  %v8251_v54 = vmul.f32 1.442695, %v8222_v29  ;;  %v8198_v52 = vmul.f32 %v17360_v3, %v17325_v26  ;;  %v17419_v29 = vld [vmem:[#allocation26 + $0x8] ss:$0 sm:$0xff] }
 0xe84   :  { %v12411_v28 = vpop.eup %12410  ;;  %v8306_v40 = vmul.f32 %v12409_v13, %v8194_v50  ;;  %12428 = vpow2.f32 %v8249_v20  ;;  %v8203_v57 = vmul.f32 %v17360_v3, %v17336_v37  ;;  %v8204_v31 = vmul.f32 %v17360_v3, %v17345_v34 }
 0xe85   :  { %v12413_v63 = vpop.eup %12412  ;;  %v8322_v42 = vpack.c.bf16 %v8308_v38, %v8307_v39  ;;  %v8267_v59 = vadd.f32 1.0, %v12411_v28  ;;  %12430 = vpow2.f32 %v8255_v33  ;;  %v8201_v16 = vmul.f32 %v17360_v3, %v17340_v30 }
 0xe86   :  { %v12415_v32 = vpop.eup %12414  ;;  %v8321_v43 = vpack.c.bf16 %v8306_v40, %v8305_v41  ;;  %v8265_v4 = vadd.f32 1.0, %v12413_v63  ;;  %v8202_v0 = vmul.f32 %v17360_v3, %v17350_v45  ;;  %v8207_v47 = vmul.f32 %v17360_v3, %v17363_v48 }
 0xe87   :  { %12432 = vrcp.f32 %v8267_v59  ;;  %v8268_v24 = vadd.f32 1.0, %v12415_v32  ;;  %v8208_v50 = vmul.f32 %v17360_v3, %v17369_v22  ;;  %v8205_v33 = vmul.f32 %v17360_v3, %v17366_v49 }
 0xe88   :  { %v12417_v25 = vpop.eup %12416  ;;  %10701 = vmatprep.mubr.msk.bf16.mxu0 %vm509_vm0, %v8321_v43  ;;  %v8206_v28 = vmul.f32 %v17360_v3, %v17384_v44 }
 0xe89   :  { %v12419_v23 = vpop.eup %12418  ;;  %12434 = vrcp.f32 %v8268_v24  ;;  %10702 = vmatmul.mubr.msk.bf16.vlgmr.msra.gmra.mrb[184].mxu0 %vm509_vm0, %v8322_v42  ;;  %v8311_v27 = vmul.f32 %v12417_v25, %v8199_v55 }
 0xe8a   :  { %v12421_v10 = vpop.eup %12420  ;;  %12436 = vpow2.f32 %v8251_v54  ;;  %v8309_v46 = vmul.f32 %v12419_v23, %v8197_v9 }
 0xe8b   :  { %v12423_v51 = vpop.eup %12422  ;;  %v8312_v7 = vmul.f32 %v12421_v10, %v8200_v60  ;;  %12438 = vrcp.f32 %v8265_v4 }
 0xe8c   :  { %v12425_v19 = vpop.eup %12424  ;;  %v8310_v14 = vmul.f32 %v12423_v51, %v8198_v52 }
 0xe8d   :  { %v12427_v1 = vpop.eup %12426  ;;  %v8266_v61 = vadd.f32 1.0, %v12425_v19  ;;  %v8324_v5 = vpack.c.bf16 %v8312_v7, %v8311_v27 }
 0xe8e   :  { %v12429_v8 = vpop.eup %12428  ;;  %v8271_v35 = vadd.f32 1.0, %v12427_v1  ;;  %v8323_v17 = vpack.c.bf16 %v8310_v14, %v8309_v46 }
 0xe8f   :  { %v12431_v62 = vpop.eup %12430  ;;  %12440 = vrcp.f32 %v8266_v61  ;;  %v8269_v58 = vadd.f32 1.0, %v12429_v8 }
 0xe90   :  { %12442 = vrcp.f32 %v8271_v35  ;;  %v8272_v2 = vadd.f32 1.0, %v12431_v62  ;;  %10705 = vmatprep.mubr.msk.bf16.mxu0 %vm509_vm0, %v8323_v17 }
 0xe91   :  { %v12433_v26 = vpop.eup %12432  ;;  %10706 = vmatmul.mubr.msk.bf16.gmra.mrb[188].mxu0 %vm509_vm0, %v8324_v5 }
 0xe92   :  { %12444 = vrcp.f32 %v8272_v2  ;;  %v8315_v36 = vmul.f32 %v12433_v26, %v8203_v57 }
 0xe93   :  { %v12435_v53 = vpop.eup %12434  ;;  %12446 = vrcp.f32 %v8269_v58 }
 0xe94   :  { %v12437_v56 = vpop.eup %12436  ;;  %v8316_v21 = vmul.f32 %v12435_v53, %v8204_v31 }
 0xe95   :  { %v8270_v12 = vadd.f32 1.0, %v12437_v56  ;;  %v12439_v6 = vpop.eup %12438 }
 0xe96   :  { %v8326_v15 = vpack.c.bf16 %v8316_v21, %v8315_v36  ;;  %v8313_v11 = vmul.f32 %v12439_v6, %v8201_v16 }
 0xe97   :  { %12448 = vrcp.f32 %v8270_v12 }
 0xe99   :  { %v12441_v37 = vpop.eup %12440 }
 0xe9a   :  { %v12443_v18 = vpop.eup %12442  ;;  %v8314_v34 = vmul.f32 %v12441_v37, %v8202_v0 }
 0xe9b   :  { %v8319_v39 = vmul.f32 %v12443_v18, %v8207_v47 }
 0xe9c   :  { %v12445_v20 = vpop.eup %12444  ;;  %v8325_v13 = vpack.c.bf16 %v8314_v34, %v8313_v11 }
 0xe9d   :  { %v8320_v38 = vmul.f32 %v12445_v20, %v8208_v50  ;;  %v12447_v30 = vpop.eup %12446 }
 0xe9e   :  { %10709 = vmatprep.mubr.msk.bf16.mxu0 %vm509_vm0, %v8325_v13  ;;  %v8317_v41 = vmul.f32 %v12447_v30, %v8205_v33 }
 0xe9f   :  { %10710 = vmatmul.mubr.msk.bf16.gmra.mrb[192].mxu0 %vm509_vm0, %v8326_v15  ;;  %v8328_v45 = vpack.c.bf16 %v8320_v38, %v8319_v39 }
 0xea1   :  { %v12449_v48 = vpop.eup %12448 }
 0xea2   :  { %v8318_v40 = vmul.f32 %v12449_v48, %v8206_v28 }
 0xea4   :  { %v8327_v22 = vpack.c.bf16 %v8318_v40, %v8317_v41 }
 0xea6   :  { %10713 = vmatprep.mubr.msk.bf16.mxu0 %vm509_vm0, %v8327_v22 }
 0xea7   :  { %10714 = vmatmul.mubr.msk.bf16.gmra.mrb[196].mxu0 %vm509_vm0, %v8328_v45 }
 0xf5c   :  { %v10703_v63 = vpop.f32.mrb[184].mxu0 }
 0xf5d   :  { %v8434_v42 = vadd.f32 %v10703_v63, %v17419_v29  ;;  %v8425_v59 = vpop.f32.mrb[185].mxu0 }
 0xf5e   :  { %v10704_v32 = vpop.f32.mrb[186].mxu0  ;;  %v8426_v49 = vadd.f32 %v17419_v29, %v8425_v59 }
 0xf5f   :  { %v9803_v54 = vpack.c.bf16 %v8434_v42, %v8434_v42  ;;  %v8437_v3 = vadd.f32 %v10704_v32, %v17419_v29  ;;  %v8428_v44 = vpop.f32.mrb[187].mxu0 }
 0xf60   :  { %v8429_v24 = vadd.f32 %v17419_v29, %v8428_v44  ;;  %v9801_v25 = vpack.c.bf16 %v8426_v49, %v8426_v49 }
 0xf61   :  { %v9804_v43 = vpack.c.bf16 %v8437_v3, %v8437_v3  ;;  %9086 = vrot.lane.b32.xlu0 %v9803_v54, %s12966_s28 }
 0xf62   :  { %v9802_v55 = vpack.c.bf16 %v8429_v24, %v8429_v24 }
 0xf63   :  { %9088 = vrot.lane.b32.xlu1 %v9804_v43, %s12966_s28 }
 0xf64   :  { %v10707_v23 = vpop.f32.mrb[188].mxu0 }
 0xf65   :  { %v8450_v60 = vadd.f32 %v10707_v23, %v17419_v29  ;;  %v8441_v4 = vpop.f32.mrb[189].mxu0  ;;  %9082 = vrot.lane.b32.xlu0 %v9801_v25, %s12966_s28 }
 0xf66   :  { %v10708_v10 = vpop.f32.mrb[190].mxu0  ;;  %v8442_v52 = vadd.f32 %v17419_v29, %v8441_v4 }
 0xf67   :  { %v9807_v9 = vpack.c.bf16 %v8450_v60, %v8450_v60  ;;  %v8453_v51 = vadd.f32 %v10708_v10, %v17419_v29  ;;  %v8444_v27 = vpop.f32.mrb[191].mxu0  ;;  %9084 = vrot.lane.b32.xlu1 %v9802_v55, %s12966_s28 }
 0xf68   :  { %v8445_v19 = vadd.f32 %v17419_v29, %v8444_v27  ;;  %v9805_v46 = vpack.c.bf16 %v8442_v52, %v8442_v52 }
 0xf69   :  { %v9808_v7 = vpack.c.bf16 %v8453_v51, %v8453_v51  ;;  %9094 = vrot.lane.b32.xlu0 %v9807_v9, %s12966_s28 }
 0xf6a   :  { %v9806_v14 = vpack.c.bf16 %v8445_v19, %v8445_v19 }
 0xf6b   :  { %9096 = vrot.lane.b32.xlu1 %v9808_v7, %s12966_s28 }
 0xf6d   :  { %9090 = vrot.lane.b32.xlu0 %v9805_v46, %s12966_s28 }
 0xf6f   :  { %9092 = vrot.lane.b32.xlu1 %v9806_v14, %s12966_s28 }
 0xf72   :  { %v10711_v1 = vpop.f32.mrb[192].mxu0 }
 0xf73   :  { %v8466_v61 = vadd.f32 %v10711_v1, %v17419_v29  ;;  %v8457_v5 = vpop.f32.mrb[193].mxu0 }
 0xf74   :  { %v10712_v8 = vpop.f32.mrb[194].mxu0  ;;  %v8458_v17 = vadd.f32 %v17419_v29, %v8457_v5 }
 0xf75   :  { %v9811_v35 = vpack.c.bf16 %v8466_v61, %v8466_v61  ;;  %v8469_v62 = vadd.f32 %v10712_v8, %v17419_v29  ;;  %v8460_v2 = vpop.f32.mrb[195].mxu0 }
 0xf76   :  { %v8461_v58 = vadd.f32 %v17419_v29, %v8460_v2  ;;  %v9809_v57 = vpack.c.bf16 %v8458_v17, %v8458_v17 }
 0xf77   :  { %v9812_v26 = vpack.c.bf16 %v8469_v62, %v8469_v62  ;;  %9102 = vrot.lane.b32.xlu0 %v9811_v35, %s12966_s28 }
 0xf78   :  { %v9810_v53 = vpack.c.bf16 %v8461_v58, %v8461_v58 }
 0xf79   :  { %9104 = vrot.lane.b32.xlu1 %v9812_v26, %s12966_s28 }
 0xf7a   :  { %v10715_v31 = vpop.f32.mrb[196].mxu0 }
 0xf7b   :  { %v8473_v56 = vpop.f32.mrb[197].mxu0  ;;  %9098 = vrot.lane.b32.xlu0 %v9809_v57, %s12966_s28 }
 0xf7c   :  { %v8474_v36 = vadd.f32 %v17419_v29, %v8473_v56  ;;  %v10716_v21 = vpop.f32.mrb[198].mxu0 }
 0xf7d   :  { %12853 = shalt.err (!%p12850_p0)
}
 0xf7e   :  { %s12854_s30 = scalar_lea.hbm %s17554_s18, 2048 }
 0xf7f   :  { %p12855_p1 = scmp.ne.s32.totalorder %s17554_s18, %s12854_s30  ;;  %p12858_p2 = scmp.lt.u32.totalorder %s12854_s30, %s17554_s18 }
 0xf81   :  { %p12860_p3 = pnand %p12858_p2, %p12855_p1 }
 0xf83   :  { %12863 = shalt.err (!%p12860_p3)
}
 0xf84   :  { %9169 = dma.vmem_to_hbm [thread:$0]  %s9164_s13, 2048, %s17554_s18, [#allocation31], %s12956_s0, %s12956_s0, %s12957_s21   ;;  %v8476_v12 = vpop.f32.mrb[199].mxu0  ;;  %v8482_v15 = vadd.f32 %v10715_v31, %v17419_v29  ;;  %v9813_v6 = vpack.c.bf16 %v8474_v36, %v8474_v36 }
 0xf85   :  { %9100 = vrot.lane.b32.xlu1 %v9810_v53, %s12966_s28  ;;  %v8477_v16 = vadd.f32 %v17419_v29, %v8476_v12  ;;  %s12864_s27 = scalar_lea.vmem %s17444_s15, 2048  ;;  %p12869_p5 = scmp.lt.s32.totalorder %s17444_s15, %s17444_s15 }
 0xf86   :  { %p12865_p4 = scmp.ne.s32.totalorder %s17444_s15, %s12864_s27  ;;  %p12870_p6 = scmp.lt.s32.totalorder %s12864_s27, %s12864_s27 }
 0xf88   :  { %p12871_p7 = por %p12870_p6, %p12869_p5 }
 0xf8a   :  { %p12872_p8 = pnand %p12871_p7, %p12865_p4 }
 0xf8c   :  { %12875 = shalt.err (!%p12872_p8)
}
 0xf8d   :  { %s12876_s18 = scalar_lea.hbm %s17553_s17, 2048 }
 0xf8e   :  { %p12877_p9 = scmp.ne.s32.totalorder %s17553_s17, %s12876_s18  ;;  %p12880_p10 = scmp.lt.u32.totalorder %s12876_s18, %s17553_s17 }
 0xf90   :  { %p12882_p11 = pnand %p12880_p10, %p12877_p9 }
 0xf92   :  { %12885 = shalt.err (!%p12882_p11)
}
 0xf93   :  { %9157 = dma.vmem_to_hbm [thread:$0]  %s17444_s15, 2048, %s17553_s17, [#allocation4], %s12956_s0, %s12956_s0, %s12957_s21   ;;  %v8485_v0 = vadd.f32 %v10716_v21, %v17419_v29  ;;  %v9814_v37 = vpack.c.bf16 %v8477_v16, %v8477_v16 }
 0xf94   :  { %s12977_s14 = smov [#allocation32]   ;;  %9106 = vrot.lane.b32.xlu0 %v9813_v6, %s12966_s28 }
 0xf95   :  { %s9175_s25 = sshll.u32 %s12977_s14, 4  ;;  %s9176_s25 = int_to_ptr.vmem [resolvable:$true] %s9175_s25 }
 0xf96   :  { %s12886_s16 = scalar_lea.vmem %s9176_s25, 1024  ;;  %p12891_p13 = scmp.lt.s32.totalorder %s9176_s25, %s9176_s25 }
 0xf97   :  { %p12887_p12 = scmp.ne.s32.totalorder %s9176_s25, %s12886_s16  ;;  %p12892_p0 = scmp.lt.s32.totalorder %s12886_s16, %s12886_s16 }
 0xf99   :  { %p12893_p1 = por %p12892_p0, %p12891_p13 }
 0xf9b   :  { %p12894_p2 = pnand %p12893_p1, %p12887_p12 }
 0xf9d   :  { %12897 = shalt.err (!%p12894_p2)
}
 0xf9e   :  { %s17802_s20 = sld [smem:[#allocation71_spill]] }
 0xfa4   :  { %s12898_s22 = scalar_lea.hbm %s17802_s20, 1024 }
 0xfa5   :  { %p12899_p3 = scmp.ne.s32.totalorder %s17802_s20, %s12898_s22  ;;  %p12902_p4 = scmp.lt.u32.totalorder %s12898_s22, %s17802_s20 }
 0xfa7   :  { %p12904_p5 = pnand %p12902_p4, %p12899_p3 }
 0xfa9   :  { %12907 = shalt.err (!%p12904_p5)
}
 0xfaa   :  { %9181 = dma.vmem_to_hbm [thread:$0]  %s9176_s25, 1024, %s17802_s20, [#allocation31], %s12966_s28, %s12966_s28, %s12967_s29   ;;  %v9815_v18 = vpack.c.bf16 %v8482_v15, %v8482_v15  ;;  %v9816_v11 = vpack.c.bf16 %v8485_v0, %v8485_v0 }
 0xfab   :  { %9108 = vrot.lane.b32.xlu1 %v9814_v37, %s12966_s28  ;;  %s12978_s7 = smov [#allocation33]  }
 0xfac   :  { %9110 = vrot.lane.b32.xlu0 %v9815_v18, %s12966_s28  ;;  %s9187_s8 = sshll.u32 %s12978_s7, 4  ;;  %s9188_s8 = int_to_ptr.vmem [resolvable:$true] %s9187_s8 }
 0xfad   :  { %s12908_s19 = scalar_lea.vmem %s9188_s8, 1024  ;;  %p12913_p7 = scmp.lt.s32.totalorder %s9188_s8, %s9188_s8 }
 0xfae   :  { %p12909_p6 = scmp.ne.s32.totalorder %s9188_s8, %s12908_s19  ;;  %p12914_p8 = scmp.lt.s32.totalorder %s12908_s19, %s12908_s19 }
 0xfaf   :  { %9112 = vrot.lane.b32.xlu1 %v9816_v11, %s12966_s28 }
 0xfb0   :  { %p12915_p9 = por %p12914_p8, %p12913_p7 }
 0xfb2   :  { %p12916_p10 = pnand %p12915_p9, %p12909_p6 }
 0xfd3   :  { %v9087_v34 = vpop.permute.xlu0 %9086 }
 0xfd4   :  { %9132 = vst.msk [vmem:[#allocation33 + $0x8] sm:$0xf] %vm8665_vm2, %v9087_v34 }
 0xfd5   :  { %v9089_v47 = vpop.permute.xlu1 %9088 }
 0xfd6   :  { %9133 = vst.msk [vmem:[#allocation33 + $0xc] sm:$0xf] %vm8665_vm2, %v9089_v47 }
 0xfd7   :  { %v9083_v50 = vpop.permute.xlu0 %9082 }
 0xfd8   :  { %9130 = vst.msk [vmem:[#allocation33] sm:$0xf] %vm8665_vm2, %v9083_v50 }
 0xfd9   :  { %v9085_v20 = vpop.permute.xlu1 %9084 }
 0xfda   :  { %9131 = vst.msk [vmem:[#allocation33 + $0x4] sm:$0xf] %vm8665_vm2, %v9085_v20 }
 0xfdb   :  { %v9095_v13 = vpop.permute.xlu0 %9094 }
 0xfdc   :  { %9136 = vst.msk [vmem:[#allocation33 + $0x18] sm:$0xf] %vm8665_vm2, %v9095_v13 }
 0xfdd   :  { %v9097_v39 = vpop.permute.xlu1 %9096 }
 0xfde   :  { %9137 = vst.msk [vmem:[#allocation33 + $0x1c] sm:$0xf] %vm8665_vm2, %v9097_v39 }
 0xfdf   :  { %v9091_v38 = vpop.permute.xlu0 %9090 }
 0xfe0   :  { %9134 = vst.msk [vmem:[#allocation33 + $0x10] sm:$0xf] %vm8665_vm2, %v9091_v38 }
 0xfe1   :  { %v9093_v30 = vpop.permute.xlu1 %9092 }
 0xfe2   :  { %9135 = vst.msk [vmem:[#allocation33 + $0x14] sm:$0xf] %vm8665_vm2, %v9093_v30 }
 0xfe9   :  { %v9103_v45 = vpop.permute.xlu0 %9102 }
 0xfea   :  { %9140 = vst.msk [vmem:[#allocation33 + $0x28] sm:$0xf] %vm8665_vm2, %v9103_v45 }
 0xfeb   :  { %v9105_v33 = vpop.permute.xlu1 %9104 }
 0xfec   :  { %9141 = vst.msk [vmem:[#allocation33 + $0x2c] sm:$0xf] %vm8665_vm2, %v9105_v33 }
 0xfed   :  { %v9099_v28 = vpop.permute.xlu0 %9098 }
 0xfee   :  { %9138 = vst.msk [vmem:[#allocation33 + $0x20] sm:$0xf] %vm8665_vm2, %v9099_v28 }
 0xff7   :  { %v9101_v48 = vpop.permute.xlu1 %9100 }
 0xff8   :  { %9139 = vst.msk [vmem:[#allocation33 + $0x24] sm:$0xf] %vm8665_vm2, %v9101_v48 }
0x1006   :  { %v9107_v41 = vpop.permute.xlu0 %9106 }
0x1007   :  { %9142 = vst.msk [vmem:[#allocation33 + $0x30] sm:$0xf] %vm8665_vm2, %v9107_v41 }
0x101d   :  { %v9109_v40 = vpop.permute.xlu1 %9108 }
0x101e   :  { %9143 = vst.msk [vmem:[#allocation33 + $0x34] sm:$0xf] %vm8665_vm2, %v9109_v40  ;;  %v9111_v22 = vpop.permute.xlu0 %9110 }
0x101f   :  { %9144 = vst.msk [vmem:[#allocation33 + $0x38] sm:$0xf] %vm8665_vm2, %v9111_v22 }
0x1021   :  { %v9113_v29 = vpop.permute.xlu1 %9112 }
0x1022   :  { %9145 = vst.msk [vmem:[#allocation33 + $0x3c] sm:$0xf] %vm8665_vm2, %v9113_v29 }
0x1023   :  { %12919 = shalt.err (!%p12916_p10)
}
0x1024   :  { %s17803_s5 = sld [smem:[#allocation72_spill]] }
0x102a   :  { %s12920_s27 = scalar_lea.hbm %s17803_s5, 1024 }
0x102b   :  { %p12921_p11 = scmp.ne.s32.totalorder %s17803_s5, %s12920_s27  ;;  %p12924_p12 = scmp.lt.u32.totalorder %s12920_s27, %s17803_s5 }
0x102d   :  { %p12926_p13 = pnand %p12924_p12, %p12921_p11 }
0x102f   :  { %12929 = shalt.err (!%p12926_p13)
}
0x1030   :  { %9193 = dma.vmem_to_hbm [thread:$0]  %s9188_s8, 1024, %s17803_s5, [#allocation34], %s12966_s28, %s12966_s28, %s12967_s29  }
0x1031   :  { %12948 = dma.done.wait [#allocation4], 2048  }
0x1032   :  { %12949 = vsyncadd [#allocation4], 4294965248 }
0x1033   :  { %12950 = dma.done.wait [#allocation31], 3072  }
0x1034   :  { %12951 = vsyncadd [#allocation31], 4294964224 }
0x1035   :  { %12952 = dma.done.wait [#allocation34], 1024  }
0x1036   :  { %12953 = vsyncadd [#allocation34], 4294966272 }
0x1037   :  { %9206 = vsyncpa [#allocation3], 1 }
0x1038   :  { %9207 = vsyncpa [#allocation6], 1 }
0x1039   :  { %9208 = vsyncpa [#allocation9], 1 }
0x103a   :  { %9209 = vsyncpa [#allocation12], 1 }
0x103b   :  { %9210 = vsyncpa [#allocation15], 1 }
0x103c   :  { %9211 = vsyncpa [#allocation18], 1 }
0x103d   :  { %9212 = vsyncpa [#allocation21], 1 }
0x103e   :  { %9213 = vsyncpa [#allocation24], 1 }
0x103f   :  { %9214 = vsyncpa [#allocation27], 1 }
0x1040   :  { %9215 = vsyncpa [#allocation4], 1 }
0x1041   :  { %9216 = vsyncpa [#allocation31], 1 }
0x1042   :  { %9217 = vsyncpa [#allocation34], 1 }

</bundles_post_ra>
